<compile_context>
chip_gen: v7x
topology: tpu7x:2x2x1
jax: 0.10.0
libtpu: 0.0.40
codegen_flags: <defaults>
</compile_context>

<pallas_src>
import jax
import jax.numpy as jnp
from jax.experimental import pallas as pl
from jax.experimental.pallas import tpu as pltpu


_FAST_PATH_BYTES = 1 << 20          # below this, plain XLA add is cheaper
_LANE_WIDTHS = (2048, 1024, 512, 256, 128)


def _int_add_alpha_kernel(c_ref, x_ref, y_ref, o_ref):
    # out = x + alpha * y in the tensor's integer dtype (torch.add alpha
    # semantics).  alpha lives in SMEM as int32; cast so sub-32-bit int dtypes
    # wrap exactly like torch's fixed-width arithmetic.
    alpha = c_ref[0].astype(x_ref.dtype)
    o_ref[...] = x_ref[...] + alpha * y_ref[...]


def _vmem_limit_bytes() -> int:
    try:
        cap = int(pltpu.get_tpu_info().vmem_capacity_bytes)
    except Exception:
        cap = 64 << 20  # conservative default (v7x per-TC VMEM)
    # Half of physical VMEM, never more than 64 MiB: 64 MiB on v5e/v6e,
    # 32 MiB on v7x -- always leaves headroom for compiler-internal scratch.
    return min(cap // 2, 64 << 20)


def _flatten_lane_dense(a: jax.Array) -> jax.Array:
    """Reshape to a 2-D slab whose last dim is a big multiple of 128 if possible."""
    total = a.size
    for w in _LANE_WIDTHS:
        if total % w == 0:
            return a.reshape(total // w, w)
    # Fallback: keep the original trailing dim; edges handled via cdiv grid.
    if a.ndim >= 2:
        return a.reshape(-1, a.shape[-1])
    return a.reshape(1, -1)


def _choose_blocks(m, n, itemsize, block_cap):
    """Pick (bm, bn): full-width rows when they fit, cdiv-tiled along M."""
    row_bytes = n * itemsize
    if row_bytes <= block_cap:
        bn = n                                    # full rows: long contiguous DMA
        max_rows = max(1, block_cap // row_bytes)
        if m <= max_rows:
            bm = m                                # whole array fits in one block
        else:
            bm = max(8, (max_rows // 8) * 8)
        # Guarantee >=2 parallel steps so both v7x TensorCores get work.
        if bm >= m and m >= 16:
            bm = (((m + 1) // 2) + 7) // 8 * 8
    else:
        # A single row exceeds the block budget: split the lane dim too.
        bn = max(128, (block_cap // (8 * itemsize)) // 128 * 128)
        bn = min(bn, ((n + 127) // 128) * 128)
        rows = max(1, block_cap // (bn * itemsize))
        bm = m if m <= rows else max(8, (rows // 8) * 8)
    return bm, bn


def int_add_with_alpha(x: jax.Array, y: jax.Array, c) -> jax.Array:
    """JAX/Pallas equivalent of ModuleIntAddWithAlpha.forward (x + c*y)."""
    assert x.shape == y.shape and x.dtype == y.dtype
    orig_shape = x.shape

    # Tiny inputs (including the module's literal (2,2) case): a kernel launch
    # plus DMA setup costs far more than the op itself -- let XLA fuse it.
    if x.size * x.dtype.itemsize <= _FAST_PATH_BYTES:
        return x + jnp.asarray(c).astype(x.dtype) * y

    x2 = _flatten_lane_dense(x)
    y2 = _flatten_lane_dense(y)
    m, n = x2.shape
    itemsize = x2.dtype.itemsize

    vmem_limit = _vmem_limit_bytes()
    block_cap = min(4 << 20, vmem_limit // 8)     # per-buffer bytes (6 live buffers)
    bm, bn = _choose_blocks(m, n, itemsize, block_cap)

    if bn == n:
        grid = (pl.cdiv(m, bm),)
        idx = lambda i, _c: (i, 0)
        dims = ("parallel",)
    else:
        grid = (pl.cdiv(m, bm), pl.cdiv(n, bn))
        idx = lambda i, j, _c: (i, j)
        dims = ("parallel", "parallel")

    c_arr = jnp.asarray([c], dtype=jnp.int32)     # alpha -> SMEM scalar prefetch

    out2 = pl.pallas_call(
        _int_add_alpha_kernel,
        out_shape=jax.ShapeDtypeStruct((m, n), x.dtype),
        grid_spec=pltpu.PrefetchScalarGridSpec(
            num_scalar_prefetch=1,
            grid=grid,
            in_specs=[
                pl.BlockSpec((bm, bn), idx),
                pl.BlockSpec((bm, bn), idx),
            ],
            out_specs=pl.BlockSpec((bm, bn), idx),
        ),
        compiler_params=pltpu.CompilerParams(
            dimension_semantics=dims,
            vmem_limit_bytes=vmem_limit),
    )(c_arr, x2, y2)

    return out2.reshape(orig_shape)


if __name__ == "__main__":
    key = jax.random.PRNGKey(0)
    k1, k2, k3, k4, k5, k6 = jax.random.split(key, 6)

    # Module spec shapes: two (2, 2) int tensors, alpha in [0, 10].
    x = jax.random.randint(k1, (2, 2), 0, 10, dtype=jnp.int32)
    y = jax.random.randint(k2, (2, 2), 0, 10, dtype=jnp.int32)
    c = 7
    out = int_add_with_alpha(x, y, c)
    jax.block_until_ready(out)
    assert out.shape == x.shape and out.dtype == x.dtype
    assert jnp.array_equal(out, x + c * y)

    # Lane-dense tiled Pallas path (full-width rows, >=2 parallel grid steps).
    xl = jax.random.randint(k3, (1024, 2048), 0, 10, dtype=jnp.int32)
    yl = jax.random.randint(k4, (1024, 2048), 0, 10, dtype=jnp.int32)
    outl = int_add_with_alpha(xl, yl, 3)
    jax.block_until_ready(outl)
    assert jnp.array_equal(outl, xl + 3 * yl)

    # Non-128-divisible element count: exercises the cdiv edge-block fallback.
    xo = jax.random.randint(k5, (1000, 300), 0, 10, dtype=jnp.int32)
    yo = jax.random.randint(k6, (1000, 300), 0, 10, dtype=jnp.int32)
    outo = int_add_with_alpha(xo, yo, 5)
    jax.block_until_ready(outo)
    assert jnp.array_equal(outo, xo + 5 * yo)

    print("KERNEL_OK")
</pallas_src>

<mosaic_0001>
module attributes {stable_mosaic.version = 11 : i64} {
  func.func @_int_add_alpha_kernel(%arg0: i32, %arg1: memref<1xi32, #tpu.memory_space<smem>>, %arg2: memref<512x2048xi32, #tpu.memory_space<vmem>>, %arg3: memref<512x2048xi32, #tpu.memory_space<vmem>>, %arg4: memref<512x2048xi32, #tpu.memory_space<vmem>>) attributes {dimension_semantics = [#tpu.dimension_semantics<parallel>], iteration_bounds = array<i64: 2>, scalar_prefetch = 1 : i64, scratch_operands = 0 : i64, tpu.core_type = #tpu.core_type<tc>, window_params = [{transform_indices = @transform_0, window_bounds = array<i64: 512, 2048>}, {transform_indices = @transform_1, window_bounds = array<i64: 512, 2048>}, {transform_indices = @transform_2, window_bounds = array<i64: 512, 2048>}]} {
    %c0 = arith.constant 0 : index
    %0 = memref.load %arg1[%c0] : memref<1xi32, #tpu.memory_space<smem>>
    %c0_0 = arith.constant 0 : index
    %c0_1 = arith.constant 0 : index
    %1 = vector.load %arg2[%c0_0, %c0_1] : memref<512x2048xi32, #tpu.memory_space<vmem>>, vector<512x2048xi32>
    %c0_2 = arith.constant 0 : index
    %c0_3 = arith.constant 0 : index
    %2 = vector.load %arg3[%c0_2, %c0_3] : memref<512x2048xi32, #tpu.memory_space<vmem>>, vector<512x2048xi32>
    %3 = vector.broadcast %0 : i32 to vector<512x2048xi32>
    %4 = arith.muli %3, %2 : vector<512x2048xi32>
    %5 = arith.addi %1, %4 : vector<512x2048xi32>
    %c0_4 = arith.constant 0 : index
    %c0_5 = arith.constant 0 : index
    %6 = vector.load %arg4[%c0_4, %c0_5] : memref<512x2048xi32, #tpu.memory_space<vmem>>, vector<512x2048xi32>
    tpu.vector_store %arg4[%c0_4, %c0_5], %5 {strides = array<i32>} : memref<512x2048xi32, #tpu.memory_space<vmem>>, vector<512x2048xi32>,
    return
  }
  func.func @transform_0(%arg0: i32, %arg1: memref<1xi32, #tpu.memory_space<smem>>) -> (i32, i32) {
    %c0_i32 = arith.constant 0 : i32
    %c0_i32_0 = arith.constant 0 : i32
    return %arg0, %c0_i32 : i32, i32
  }
  func.func @transform_1(%arg0: i32, %arg1: memref<1xi32, #tpu.memory_space<smem>>) -> (i32, i32) {
    %c0_i32 = arith.constant 0 : i32
    %c0_i32_0 = arith.constant 0 : i32
    return %arg0, %c0_i32 : i32, i32
  }
  func.func @transform_2(%arg0: i32, %arg1: memref<1xi32, #tpu.memory_space<smem>>) -> (i32, i32) {
    %c0_i32 = arith.constant 0 : i32
    %c0_i32_0 = arith.constant 0 : i32
    return %arg0, %c0_i32 : i32, i32
  }
}

</mosaic_0001>

<bundles_post_ra>
// kernel: tpu_custom_call.1
= control target key start
LH: loop header
LB: loop body
LE: loop exit
PB: predicated region body
PF: predicated region fallthrough
CT: control target
= control target key end

     0   :  { %s10019_s0 = inlined_call_operand.<no memory space> [shape: s32[1], index: 0, kind: input, shape index: {}]   ;;  %s10020_s1 = inlined_call_operand.hbm [shape: s32[1024,2048], index: 1, kind: input, shape index: {}]   ;;  %s10021_s2 = inlined_call_operand.hbm [shape: s32[1024,2048], index: 2, kind: input, shape index: {}]   ;;  %s10022_s3 = inlined_call_operand.hbm [shape: s32[1024,2048], index: 3, kind: output, shape index: {}]  }
   0x1   :  { %8 = sst [smem:[#allocation3]] %s10019_s0 }
   0x2   :  { %9 = vsyncpa [#allocation5], 0 }
   0x3   :  { %11 = vsyncpa [#allocation5 + $0x1], 0 }
   0x4   :  { %12 = vsyncpa [#allocation8], 0 }
   0x5   :  { %14 = vsyncpa [#allocation8 + $0x1], 0 }
   0x6   :  { %15 = vsyncpa [#allocation6], 0 }
   0x7   :  { %17 = vsyncpa [#allocation6 + $0x1], 0  ;;  %s5686_s14 = smov 0   ;;  %s5688_s15 = smov 0  }
   0x8   :  { %s5690_s16 = smov 0   ;;  %s5692_s17 = smov 0  }
   0x9 LB: > { %s5707_s0 = sadd.s32 4294967295, %s5654_s17   ;;  %s5442_s18 = sadd.s32 4294967294, %s5654_s17   ;;  %s5654_s17 = sphi %s5692_s17, %s10038_s17   ;;  %s5650_s16 = sphi %s5690_s16, %s10037_s16   ;;  %s5646_s15 = sphi %s5688_s15, %s10036_s15   ;;  %s5642_s14 = sphi %s5686_s14, %s10035_s14  }
   0xa   : > { %s5711_s19 = sadd.s32 1, %s5654_s17   ;;  %s30_s20 = sadd.s32 1, %s5650_s16 }
   0xb   : > { %s27_s21 = ssub.s32 %s5654_s17, %s5711_s19  ;;  %p37_p0 = scmp.ne.s32.totalorder %s5650_s16, %s5646_s15 }
   0xc   : > { %p28_p1 = scmp.eq.s32.totalorder %s27_s21, 0  ;;  %p38_p2 = scmp.eq.s32.totalorder %s5654_s17, 0 }
   0xd   : > { %p43_p3 = scmp.ne.s32.totalorder %s5646_s15, %s5642_s14  ;;  %p44_p4 = scmp.eq.s32.totalorder %s5707_s0, 0 }
   0xe   : > { %s5723_s22 = scalar_select %p28_p1, %s5650_s16, %s30_s20  }
   0xf   : > { %p5725_p5 = por %p38_p2, %p37_p0  ;;  %p5729_p6 = por %p44_p4, %p43_p3 }
  0x10   : > { %p93_p7 = scmp.eq.s32.totalorder %s5707_s0, 1  ;;  %p99_p8 = scmp.eq.s32.totalorder %s5442_s18, 1 }
  0x11   : > { %s10026_s24 = scalar_select %p5729_p6, 1, 0 }
  0x12   : > { %p5486_p10 = scmp.lt.s32.totalorder %s5654_s17, 2  ;;  %p5736_p11 = por %p93_p7, %p37_p0 }
  0x13   : > { %p5740_p12 = por %p99_p8, %p43_p3  ;;  %s5745_s27 = sand.u32 1, %s5650_s16  }
  0x14   : > { %s10027_s25 = scalar_select %p5736_p11, 1, 0 }
  0x15   : > { %s10028_s26 = scalar_select %p5740_p12, 1, 0 }
  0x16   : > { %s5464_s28 = sshll.u32 %s5654_s17, 17  ;;  %s5445_s29 = sshll.u32 %s5745_s27, 13 }
  0x17   : > { %s5754_s5 = scalar_lea.hbm %s10020_s1, %s5464_s28  ;;  %s123_s6 = scalar_lea.vmem [#allocation4], %s5445_s29 }
  0x18   : > { %s131_s7 = sshll.u32 %s123_s6, 4  ;;  %p5760_p13 = pnand %p5486_p10, %p5725_p5  ;;  %s5764_s7 = int_to_ptr.vmem [resolvable:$true] %s131_s7 }
  0x19   : > { %s120_s9 = scalar_lea.sflag [#allocation5], %s5745_s27  ;;  %s5524_s10 = scalar_lea.hbm %s5754_s5, 131072 }
  0x1a   : > { %p5525_p0 = scmp.ne.s32.totalorder %s5754_s5, %s5524_s10  ;;  %p5526_p1 = pneg %p5760_p13 }
  0x1b   : > { %s5529_s13 = scalar_lea.hbm %s10020_s1, 262144  ;;  %p5530_p4 = scmp.lt.u32.totalorder %s5754_s5, %s10020_s1 }
  0x1c   : > { %p5527_p2 = pnand %p5526_p1, %p5525_p0  ;;  %p5531_p5 = scmp.lt.u32.totalorder %s5529_s13, %s5524_s10 }
  0x1d   : > { %p5533_p8 = scmp.lt.u32.totalorder %s5524_s10, %s5754_s5 }
  0x1e   : > { %p5528_p3 = pneg %p5527_p2  ;;  %p5532_p7 = por %p5531_p5, %p5530_p4 }
  0x20   : > { %p5534_p10 = por %p5533_p8, %p5532_p7 }
  0x22   : > { %p5535_p9 = pnand %p5534_p10, %p5528_p3 }
  0x24   : > { %5538 = shalt.err (!%p5535_p9)
}
  0x25   : > { %s5539_s21 = scalar_lea.vmem %s5764_s7, 131072  ;;  %s5656_s23 = smov [#allocation4]  }
  0x26   : > { %p5540_p0 = scmp.ne.s32.totalorder %s5764_s7, %s5539_s21  ;;  %s5544_s30 = sshll.u32 %s5656_s23, 4  ;;  %s5545_s30 = int_to_ptr.vmem [resolvable:$false] %s5544_s30 }
  0x27   : > { %s5546_s4 = scalar_lea.vmem %s5545_s30, 262144  ;;  %p5547_p11 = scmp.lt.s32.totalorder %s5764_s7, %s5545_s30 }
  0x28   : > { %p5542_p2 = pnand %p5540_p0, %p5526_p1  ;;  %p5548_p4 = scmp.lt.s32.totalorder %s5546_s4, %s5539_s21 }
  0x2a   : > { %p5543_p12 = pneg %p5542_p2  ;;  %p5549_p5 = por %p5548_p4, %p5547_p11 }
  0x2c   : > { %p5550_p7 = pnand %p5549_p5, %p5543_p12 }
  0x2e   : > { %5553 = shalt.err (!%p5550_p7)
}
  0x2f   : > { %s5657_s6 = smov 2048   ;;  %s5658_s10 = smov 128  }
  0x30   : > { %5478 = dma.hbm_to_vmem [thread:$0]  (!%p5760_p13), %s5754_s5, 131072, %s5764_s7, %s120_s9, %s5657_s6, %s5657_s6, %s5658_s10  }
  0x31   : > { %p5453_p9 = scmp.ge.s32.totalorder %s5654_s17, 1  ;;  %p161_p11 = scmp.lt.s32.totalorder %s5654_s17, 3 }
  0x32   : > { %s5808_s18 = scalar_lea.hbm %s10021_s2, %s5464_s28  ;;  %s145_s20 = scalar_lea.vmem [#allocation7], %s5445_s29 }
  0x33   : > { %p5799_p12 = pnand %p5453_p9, %p161_p11  ;;  %s153_s21 = sshll.u32 %s145_s20, 4  ;;  %s5812_s21 = int_to_ptr.vmem [resolvable:$true] %s153_s21 }
  0x34   : > { %s142_s5 = scalar_lea.sflag [#allocation8], %s5745_s27  ;;  %s5554_s7 = scalar_lea.hbm %s5808_s18, 131072 }
  0x35   : > { %p5555_p3 = scmp.ne.s32.totalorder %s5808_s18, %s5554_s7  ;;  %s5559_s28 = scalar_lea.hbm %s10021_s2, 262144 }
  0x36   : > { %p5560_p0 = scmp.lt.u32.totalorder %s5808_s18, %s10021_s2  ;;  %p5561_p2 = scmp.lt.u32.totalorder %s5559_s28, %s5554_s7 }
  0x37   : > { %p5557_p8 = pnand %p5555_p3, %p5526_p1  ;;  %p5563_p5 = scmp.lt.u32.totalorder %s5554_s7, %s5808_s18 }
  0x38   : > { %p5562_p4 = por %p5561_p2, %p5560_p0 }
  0x39   : > { %p5558_p10 = pneg %p5557_p8 }
  0x3a   : > { %p5564_p7 = por %p5563_p5, %p5562_p4 }
  0x3c   : > { %p5565_p9 = pnand %p5564_p7, %p5558_p10 }
  0x3e   : > { %5568 = shalt.err (!%p5565_p9)
}
  0x3f   : > { %s5569_s29 = scalar_lea.vmem %s5812_s21, 131072  ;;  %s5659_s12 = smov [#allocation7]  }
  0x40   : > { %p5570_p11 = scmp.ne.s32.totalorder %s5812_s21, %s5569_s29  ;;  %s5574_s13 = sshll.u32 %s5659_s12, 4  ;;  %s5575_s13 = int_to_ptr.vmem [resolvable:$false] %s5574_s13 }
  0x41   : > { %s5576_s20 = scalar_lea.vmem %s5575_s13, 262144  ;;  %p5577_p6 = scmp.lt.s32.totalorder %s5812_s21, %s5575_s13 }
  0x42   : > { %p5572_p3 = pnand %p5570_p11, %p5526_p1  ;;  %p5578_p0 = scmp.lt.s32.totalorder %s5576_s20, %s5569_s29 }
  0x44   : > { %p5573_p8 = pneg %p5572_p3  ;;  %p5579_p2 = por %p5578_p0, %p5577_p6 }
  0x46   : > { %p5580_p4 = pnand %p5579_p2, %p5573_p8 }
  0x48   : > { %5583 = shalt.err (!%p5580_p4)
}
  0x49   : > { %5481 = dma.hbm_to_vmem [thread:$0]  (!%p5760_p13), %s5808_s18, 131072, %s5812_s21, %s142_s5, %s5657_s6, %s5657_s6, %s5658_s10  }
  0x4a   : > { %165 = sbr.rel (%p5799_p12) target bundleno = 885 (0x375), region = 28  ;;  %s5846_s7 = sand.u32 (!%p5799_p12), 1, %s5646_s15  }
  0x4b   : > { %s5849_s9 = sshll.u32 (!%p5799_p12), %s5846_s7, 13  ;;  %s168_s8 = scalar_lea.sflag (!%p5799_p12), [#allocation5], %s5846_s7 }
  0x4c   : > { %s5853_s23 = scalar_lea.vmem (!%p5799_p12), [#allocation4], %s5849_s9  ;;  %p10031_p6 = scmp.ne.s32.totalorder (!%p5799_p12), %s10026_s24, 0 }
  0x51   : > { %5629 = dma.done.wait (%p10031_p6), %s168_s8, 131072  }
  0x52   : > { %5631 = vsyncadd (%p10031_p6), %s168_s8, 4294836224  ;;  %s177_s27 = scalar_lea.sflag [#allocation8], %s5846_s7  ;;  %s5861_s6 = scalar_lea.vmem [#allocation7], %s5849_s9 }
  0x53   : > { %5633 = dma.done.wait (%p10031_p6), %s177_s27, 131072  }
  0x54   : > { %5635 = vsyncadd (%p10031_p6), %s177_s27, 4294836224  ;;  %s209_s10 = sld [smem:[#allocation3]]  ;;  %v210_v0 = vld [vmem:[%s5853_s23] sm:$0xff]  ;;  %v211_v3 = vld [vmem:[%s5853_s23 + $0x8] sm:$0xff]  ;;  %s5891_s24 = scalar_lea.vmem [#allocation9], %s5849_s9 }
  0x55   : > { %v1234_v1 = vld [vmem:[%s5861_s6] sm:$0xff]  ;;  %v1235_v5 = vld [vmem:[%s5861_s6 + $0x8] sm:$0xff]  ;;  %v212_v6 = vld [vmem:[%s5853_s23 + $0x10] sm:$0xff]  ;;  %s5468_s11 = sshll.u32 %s5707_s0, 17  ;;  %s5346_s18 = sshll.u32 %s5891_s24, 4  ;;  %s9971_s18 = int_to_ptr.vmem [resolvable:$true] %s5346_s18 }
  0x56   : > { %v1236_v7 = vld [vmem:[%s5861_s6 + $0x10] sm:$0xff]  ;;  %v213_v10 = vld [vmem:[%s5853_s23 + $0x18] sm:$0xff]  ;;  %v214_v12 = vld [vmem:[%s5853_s23 + $0x20] sm:$0xff]  ;;  %s9969_s5 = scalar_lea.hbm %s10022_s3, %s5468_s11  ;;  %s5332_s28 = scalar_lea.sflag [#allocation6], %s5846_s7 }
  0x57   : > { %v1237_v11 = vld [vmem:[%s5861_s6 + $0x18] sm:$0xff]  ;;  %v1238_v15 = vld [vmem:[%s5861_s6 + $0x20] sm:$0xff]  ;;  %v215_v16 = vld [vmem:[%s5853_s23 + $0x28] sm:$0xff]  ;;  %s5584_s30 = scalar_lea.vmem %s9971_s18, 131072  ;;  %p10032_p1 = scmp.ne.s32.totalorder %s10027_s25, 0 }
  0x58   : > { %v1239_v17 = vld [vmem:[%s5861_s6 + $0x28] sm:$0xff]  ;;  %v216_v22 = vld [vmem:[%s5853_s23 + $0x30] sm:$0xff]  ;;  %v217_v24 = vld [vmem:[%s5853_s23 + $0x38] sm:$0xff]  ;;  %p5585_p13 = scmp.ne.s32.totalorder %s9971_s18, %s5584_s30  ;;  %s5660_s4 = smov [#allocation9]  }
  0x59   : > { %v1240_v23 = vld [vmem:[%s5861_s6 + $0x30] sm:$0xff]  ;;  %v1241_v27 = vld [vmem:[%s5861_s6 + $0x38] sm:$0xff]  ;;  %v218_v28 = vld [vmem:[%s5853_s23 + $0x40] sm:$0xff]  ;;  %s5588_s29 = sshll.u32 %s5660_s4, 4  ;;  %s5589_s29 = int_to_ptr.vmem [resolvable:$false] %s5588_s29 }
  0x5a   : > { %v5869_v2 = vstv %s209_s10  ;;  %v1242_v29 = vld [vmem:[%s5861_s6 + $0x40] sm:$0xff]  ;;  %v219_v34 = vld [vmem:[%s5853_s23 + $0x48] sm:$0xff]  ;;  %v220_v36 = vld [vmem:[%s5853_s23 + $0x50] sm:$0xff]  ;;  %p5586_p12 = pnand %p5585_p13, %p10032_p1  ;;  %s5590_s12 = scalar_lea.vmem %s5589_s29, 262144 }
  0x5b   : > { %v2259_v4 = vmul.u32 %v5869_v2, %v1234_v1  ;;  %v2260_v8 = vmul.u32 %v5869_v2, %v1235_v5  ;;  %v1243_v35 = vld [vmem:[%s5861_s6 + $0x48] sm:$0xff]  ;;  %v1244_v39 = vld [vmem:[%s5861_s6 + $0x50] sm:$0xff]  ;;  %v221_v40 = vld [vmem:[%s5853_s23 + $0x58] sm:$0xff]  ;;  %p5591_p5 = scmp.lt.s32.totalorder %s9971_s18, %s5589_s29  ;;  %p5592_p7 = scmp.lt.s32.totalorder %s5590_s12, %s5584_s30 }
  0x5c   : > { %v2261_v9 = vmul.u32 %v5869_v2, %v1236_v7  ;;  %v2262_v14 = vmul.u32 %v5869_v2, %v1237_v11  ;;  %v1245_v41 = vld [vmem:[%s5861_s6 + $0x58] sm:$0xff]  ;;  %v222_v46 = vld [vmem:[%s5853_s23 + $0x60] sm:$0xff]  ;;  %v223_v48 = vld [vmem:[%s5853_s23 + $0x68] sm:$0xff]  ;;  %p5587_p10 = pneg %p5586_p12 }
  0x5d   : > { %v3283_v13 = vadd.s32 %v2259_v4, %v210_v0  ;;  %v3284_v18 = vadd.s32 %v2260_v8, %v211_v3  ;;  %v2263_v20 = vmul.u32 %v5869_v2, %v1238_v15  ;;  %v2264_v21 = vmul.u32 %v5869_v2, %v1239_v17  ;;  %v1246_v47 = vld [vmem:[%s5861_s6 + $0x60] sm:$0xff]  ;;  %v1247_v51 = vld [vmem:[%s5861_s6 + $0x68] sm:$0xff]  ;;  %v224_v52 = vld [vmem:[%s5853_s23 + $0x70] sm:$0xff]  ;;  %p5593_p9 = por %p5592_p7, %p5591_p5 }
  0x5e   : > { %v3285_v19 = vadd.s32 %v2261_v9, %v212_v6  ;;  %v3286_v25 = vadd.s32 %v2262_v14, %v213_v10  ;;  %v2265_v26 = vmul.u32 %v5869_v2, %v1240_v23  ;;  %v2266_v32 = vmul.u32 %v5869_v2, %v1241_v27  ;;  %v1248_v53 = vld [vmem:[%s5861_s6 + $0x70] sm:$0xff]  ;;  %v225_v58 = vld [vmem:[%s5853_s23 + $0x78] sm:$0xff]  ;;  %v226_v60 = vld [vmem:[%s5853_s23 + $0x80] sm:$0xff] }
  0x5f   : > { %4307 = vst [vmem:[%s5891_s24] sm:$0xff] %v3283_v13  ;;  %4308 = vst [vmem:[%s5891_s24 + $0x8] sm:$0xff] %v3284_v18  ;;  %v3287_v30 = vadd.s32 %v2263_v20, %v214_v12  ;;  %v3288_v31 = vadd.s32 %v2264_v21, %v215_v16  ;;  %v2267_v33 = vmul.u32 %v5869_v2, %v1242_v29  ;;  %v1249_v59 = vld [vmem:[%s5861_s6 + $0x78] sm:$0xff]  ;;  %v1250_v63 = vld [vmem:[%s5861_s6 + $0x80] sm:$0xff]  ;;  %p5594_p11 = pnand %p5593_p9, %p5587_p10 }
  0x60   : > { %4309 = vst [vmem:[%s5891_s24 + $0x10] sm:$0xff] %v3285_v19  ;;  %4310 = vst [vmem:[%s5891_s24 + $0x18] sm:$0xff] %v3286_v25  ;;  %v3289_v37 = vadd.s32 %v2265_v26, %v216_v22  ;;  %v2268_v38 = vmul.u32 %v5869_v2, %v1243_v35  ;;  %v3290_v42 = vadd.s32 %v2266_v32, %v217_v24  ;;  %v227_v0 = vld [vmem:[%s5853_s23 + $0x88] sm:$0xff]  ;;  %v228_v7 = vld [vmem:[%s5853_s23 + $0x90] sm:$0xff] }
  0x61   : > { %4311 = vst [vmem:[%s5891_s24 + $0x20] sm:$0xff] %v3287_v30  ;;  %4312 = vst [vmem:[%s5891_s24 + $0x28] sm:$0xff] %v3288_v31  ;;  %v3291_v43 = vadd.s32 %v2267_v33, %v218_v28  ;;  %v2269_v44 = vmul.u32 %v5869_v2, %v1244_v39  ;;  %v2270_v45 = vmul.u32 %v5869_v2, %v1245_v41  ;;  %v1251_v1 = vld [vmem:[%s5861_s6 + $0x88] sm:$0xff]  ;;  %v1252_v8 = vld [vmem:[%s5861_s6 + $0x90] sm:$0xff] }
  0x62   : > { %4313 = vst [vmem:[%s5891_s24 + $0x30] sm:$0xff] %v3289_v37  ;;  %v3292_v49 = vadd.s32 %v2268_v38, %v219_v34  ;;  %v2271_v50 = vmul.u32 %v5869_v2, %v1246_v47  ;;  %4314 = vst [vmem:[%s5891_s24 + $0x38] sm:$0xff] %v3290_v42  ;;  %v2272_v56 = vmul.u32 %v5869_v2, %v1247_v51  ;;  %v229_v9 = vld [vmem:[%s5853_s23 + $0x98] sm:$0xff]  ;;  %v230_v13 = vld [vmem:[%s5853_s23 + $0xa0] sm:$0xff] }
  0x63   : > { %4315 = vst [vmem:[%s5891_s24 + $0x40] sm:$0xff] %v3291_v43  ;;  %v3293_v54 = vadd.s32 %v2269_v44, %v220_v36  ;;  %v3294_v55 = vadd.s32 %v2270_v45, %v221_v40  ;;  %v2273_v57 = vmul.u32 %v5869_v2, %v1248_v53  ;;  %v2274_v62 = vmul.u32 %v5869_v2, %v1249_v59  ;;  %v1253_v12 = vld [vmem:[%s5861_s6 + $0x98] sm:$0xff]  ;;  %v1254_v14 = vld [vmem:[%s5861_s6 + $0xa0] sm:$0xff]  ;;  %v231_v19 = vld [vmem:[%s5853_s23 + $0xa8] sm:$0xff] }
  0x64   : > { %4316 = vst [vmem:[%s5891_s24 + $0x48] sm:$0xff] %v3292_v49  ;;  %v3295_v61 = vadd.s32 %v2271_v50, %v222_v46  ;;  %v3296_v3 = vadd.s32 %v2272_v56, %v223_v48  ;;  %v2275_v5 = vmul.u32 %v5869_v2, %v1250_v63  ;;  %v2276_v6 = vmul.u32 %v5869_v2, %v1251_v1  ;;  %v1255_v20 = vld [vmem:[%s5861_s6 + $0xa8] sm:$0xff]  ;;  %v232_v21 = vld [vmem:[%s5853_s23 + $0xb0] sm:$0xff]  ;;  %v233_v25 = vld [vmem:[%s5853_s23 + $0xb8] sm:$0xff] }
  0x65   : > { %4317 = vst [vmem:[%s5891_s24 + $0x50] sm:$0xff] %v3293_v54  ;;  %4318 = vst [vmem:[%s5891_s24 + $0x58] sm:$0xff] %v3294_v55  ;;  %v3297_v4 = vadd.s32 %v2273_v57, %v224_v52  ;;  %v3298_v10 = vadd.s32 %v2274_v62, %v225_v58  ;;  %v2277_v11 = vmul.u32 %v5869_v2, %v1252_v8  ;;  %v1256_v24 = vld [vmem:[%s5861_s6 + $0xb0] sm:$0xff]  ;;  %v1257_v26 = vld [vmem:[%s5861_s6 + $0xb8] sm:$0xff] }
  0x66   : > { %4319 = vst [vmem:[%s5891_s24 + $0x60] sm:$0xff] %v3295_v61  ;;  %4320 = vst [vmem:[%s5891_s24 + $0x68] sm:$0xff] %v3296_v3  ;;  %v3299_v15 = vadd.s32 %v2275_v5, %v226_v60  ;;  %v3300_v16 = vadd.s32 %v2276_v6, %v227_v0  ;;  %v2278_v17 = vmul.u32 %v5869_v2, %v1253_v12  ;;  %v234_v31 = vld [vmem:[%s5853_s23 + $0xc0] sm:$0xff]  ;;  %v235_v33 = vld [vmem:[%s5853_s23 + $0xc8] sm:$0xff] }
  0x67   : > { %4321 = vst [vmem:[%s5891_s24 + $0x70] sm:$0xff] %v3297_v4  ;;  %v2279_v18 = vmul.u32 %v5869_v2, %v1254_v14  ;;  %4322 = vst [vmem:[%s5891_s24 + $0x78] sm:$0xff] %v3298_v10  ;;  %v3301_v22 = vadd.s32 %v2277_v11, %v228_v7  ;;  %v2280_v23 = vmul.u32 %v5869_v2, %v1255_v20  ;;  %v1258_v32 = vld [vmem:[%s5861_s6 + $0xc0] sm:$0xff]  ;;  %v1259_v36 = vld [vmem:[%s5861_s6 + $0xc8] sm:$0xff] }
  0x68   : > { %4323 = vst [vmem:[%s5891_s24 + $0x80] sm:$0xff] %v3299_v15  ;;  %4324 = vst [vmem:[%s5891_s24 + $0x88] sm:$0xff] %v3300_v16  ;;  %v3302_v27 = vadd.s32 %v2278_v17, %v229_v9  ;;  %v2281_v29 = vmul.u32 %v5869_v2, %v1256_v24  ;;  %v2282_v30 = vmul.u32 %v5869_v2, %v1257_v26  ;;  %v236_v37 = vld [vmem:[%s5853_s23 + $0xd0] sm:$0xff]  ;;  %v237_v43 = vld [vmem:[%s5853_s23 + $0xd8] sm:$0xff] }
  0x69   : > { %v3303_v28 = vadd.s32 %v2279_v18, %v230_v13  ;;  %4325 = vst [vmem:[%s5891_s24 + $0x90] sm:$0xff] %v3301_v22  ;;  %v3304_v34 = vadd.s32 %v2280_v23, %v231_v19  ;;  %v2283_v35 = vmul.u32 %v5869_v2, %v1258_v32  ;;  %v1260_v38 = vld [vmem:[%s5861_s6 + $0xd0] sm:$0xff]  ;;  %v2284_v41 = vmul.u32 %v5869_v2, %v1259_v36  ;;  %v1261_v44 = vld [vmem:[%s5861_s6 + $0xd8] sm:$0xff]  ;;  %v238_v45 = vld [vmem:[%s5853_s23 + $0xe0] sm:$0xff] }
  0x6a   : > { %4326 = vst [vmem:[%s5891_s24 + $0x98] sm:$0xff] %v3302_v27  ;;  %v3305_v39 = vadd.s32 %v2281_v29, %v232_v21  ;;  %v3306_v40 = vadd.s32 %v2282_v30, %v233_v25  ;;  %v2285_v42 = vmul.u32 %v5869_v2, %v1260_v38  ;;  %v2286_v47 = vmul.u32 %v5869_v2, %v1261_v44  ;;  %v1262_v48 = vld [vmem:[%s5861_s6 + $0xe0] sm:$0xff]  ;;  %v239_v49 = vld [vmem:[%s5853_s23 + $0xe8] sm:$0xff]  ;;  %v240_v55 = vld [vmem:[%s5853_s23 + $0xf0] sm:$0xff] }
  0x6b   : > { %4327 = vst [vmem:[%s5891_s24 + $0xa0] sm:$0xff] %v3303_v28  ;;  %4328 = vst [vmem:[%s5891_s24 + $0xa8] sm:$0xff] %v3304_v34  ;;  %v3307_v46 = vadd.s32 %v2283_v35, %v234_v31  ;;  %v1263_v50 = vld [vmem:[%s5861_s6 + $0xe8] sm:$0xff]  ;;  %v3308_v51 = vadd.s32 %v2284_v41, %v235_v33  ;;  %v2287_v53 = vmul.u32 %v5869_v2, %v1262_v48  ;;  %v1264_v56 = vld [vmem:[%s5861_s6 + $0xf0] sm:$0xff] }
  0x6c   : > { %4329 = vst [vmem:[%s5891_s24 + $0xb0] sm:$0xff] %v3305_v39  ;;  %4330 = vst [vmem:[%s5891_s24 + $0xb8] sm:$0xff] %v3306_v40  ;;  %v3309_v52 = vadd.s32 %v2285_v42, %v236_v37  ;;  %v2288_v54 = vmul.u32 %v5869_v2, %v1263_v50  ;;  %v241_v57 = vld [vmem:[%s5853_s23 + $0xf8] sm:$0xff]  ;;  %v3310_v58 = vadd.s32 %v2286_v47, %v237_v43  ;;  %v242_v61 = vld [vmem:[%s5853_s23 + $0x100] sm:$0xff] }
  0x6d   : > { %4331 = vst [vmem:[%s5891_s24 + $0xc0] sm:$0xff] %v3307_v46  ;;  %v2289_v59 = vmul.u32 %v5869_v2, %v1264_v56  ;;  %v1265_v60 = vld [vmem:[%s5861_s6 + $0xf8] sm:$0xff]  ;;  %v1266_v62 = vld [vmem:[%s5861_s6 + $0x100] sm:$0xff]  ;;  %4332 = vst [vmem:[%s5891_s24 + $0xc8] sm:$0xff] %v3308_v51  ;;  %v3311_v63 = vadd.s32 %v2287_v53, %v238_v45 }
  0x6e   : > { %4333 = vst [vmem:[%s5891_s24 + $0xd0] sm:$0xff] %v3309_v52  ;;  %v3312_v0 = vadd.s32 %v2288_v54, %v239_v49  ;;  %v2290_v1 = vmul.u32 %v5869_v2, %v1265_v60  ;;  %v2291_v3 = vmul.u32 %v5869_v2, %v1266_v62  ;;  %v243_v4 = vld [vmem:[%s5853_s23 + $0x108] sm:$0xff]  ;;  %v244_v6 = vld [vmem:[%s5853_s23 + $0x110] sm:$0xff]  ;;  %4334 = vst [vmem:[%s5891_s24 + $0xd8] sm:$0xff] %v3310_v58 }
  0x6f   : > { %v1267_v5 = vld [vmem:[%s5861_s6 + $0x108] sm:$0xff]  ;;  %v3313_v7 = vadd.s32 %v2289_v59, %v240_v55  ;;  %v1268_v9 = vld [vmem:[%s5861_s6 + $0x110] sm:$0xff]  ;;  %v245_v10 = vld [vmem:[%s5853_s23 + $0x118] sm:$0xff]  ;;  %4335 = vst [vmem:[%s5891_s24 + $0xe0] sm:$0xff] %v3311_v63 }
  0x70   : > { %v2292_v8 = vmul.u32 %v5869_v2, %v1267_v5  ;;  %v1269_v11 = vld [vmem:[%s5861_s6 + $0x118] sm:$0xff]  ;;  %4336 = vst [vmem:[%s5891_s24 + $0xe8] sm:$0xff] %v3312_v0  ;;  %v3314_v12 = vadd.s32 %v2290_v1, %v241_v57  ;;  %v3315_v13 = vadd.s32 %v2291_v3, %v242_v61  ;;  %v2293_v14 = vmul.u32 %v5869_v2, %v1268_v9  ;;  %v246_v16 = vld [vmem:[%s5853_s23 + $0x120] sm:$0xff]  ;;  %v247_v18 = vld [vmem:[%s5853_s23 + $0x128] sm:$0xff] }
  0x71   : > { %v2294_v15 = vmul.u32 %v5869_v2, %v1269_v11  ;;  %v1270_v17 = vld [vmem:[%s5861_s6 + $0x120] sm:$0xff]  ;;  %4337 = vst [vmem:[%s5891_s24 + $0xf0] sm:$0xff] %v3313_v7  ;;  %v1271_v21 = vld [vmem:[%s5861_s6 + $0x128] sm:$0xff]  ;;  %v248_v22 = vld [vmem:[%s5853_s23 + $0x130] sm:$0xff] }
  0x72   : > { %v3316_v19 = vadd.s32 %v2292_v8, %v243_v4  ;;  %v2295_v20 = vmul.u32 %v5869_v2, %v1270_v17  ;;  %v1272_v23 = vld [vmem:[%s5861_s6 + $0x130] sm:$0xff]  ;;  %4338 = vst [vmem:[%s5891_s24 + $0xf8] sm:$0xff] %v3314_v12  ;;  %4339 = vst [vmem:[%s5891_s24 + $0x100] sm:$0xff] %v3315_v13  ;;  %v3317_v24 = vadd.s32 %v2293_v14, %v244_v6  ;;  %v249_v28 = vld [vmem:[%s5853_s23 + $0x138] sm:$0xff] }
  0x73   : > { %v3318_v25 = vadd.s32 %v2294_v15, %v245_v10  ;;  %v2296_v26 = vmul.u32 %v5869_v2, %v1271_v21  ;;  %v2297_v27 = vmul.u32 %v5869_v2, %v1272_v23  ;;  %v1273_v29 = vld [vmem:[%s5861_s6 + $0x138] sm:$0xff]  ;;  %v250_v30 = vld [vmem:[%s5853_s23 + $0x140] sm:$0xff]  ;;  %v251_v34 = vld [vmem:[%s5853_s23 + $0x148] sm:$0xff] }
  0x74   : > { %4340 = vst [vmem:[%s5891_s24 + $0x108] sm:$0xff] %v3316_v19  ;;  %v3319_v31 = vadd.s32 %v2295_v20, %v246_v16  ;;  %v2298_v32 = vmul.u32 %v5869_v2, %v1273_v29  ;;  %v1274_v33 = vld [vmem:[%s5861_s6 + $0x140] sm:$0xff]  ;;  %v1275_v35 = vld [vmem:[%s5861_s6 + $0x148] sm:$0xff]  ;;  %4341 = vst [vmem:[%s5891_s24 + $0x110] sm:$0xff] %v3317_v24 }
  0x75   : > { %4342 = vst [vmem:[%s5891_s24 + $0x118] sm:$0xff] %v3318_v25  ;;  %v3320_v36 = vadd.s32 %v2296_v26, %v247_v18  ;;  %v3321_v37 = vadd.s32 %v2297_v27, %v248_v22  ;;  %v2299_v38 = vmul.u32 %v5869_v2, %v1274_v33  ;;  %v2300_v39 = vmul.u32 %v5869_v2, %v1275_v35  ;;  %v252_v40 = vld [vmem:[%s5853_s23 + $0x150] sm:$0xff]  ;;  %v253_v42 = vld [vmem:[%s5853_s23 + $0x158] sm:$0xff]  ;;  %v254_v46 = vld [vmem:[%s5853_s23 + $0x160] sm:$0xff] }
  0x76   : > { %v1276_v41 = vld [vmem:[%s5861_s6 + $0x150] sm:$0xff]  ;;  %4343 = vst [vmem:[%s5891_s24 + $0x120] sm:$0xff] %v3319_v31  ;;  %v3322_v43 = vadd.s32 %v2298_v32, %v249_v28  ;;  %v1277_v45 = vld [vmem:[%s5861_s6 + $0x158] sm:$0xff]  ;;  %v1278_v47 = vld [vmem:[%s5861_s6 + $0x160] sm:$0xff] }
  0x77   : > { %v2301_v44 = vmul.u32 %v5869_v2, %v1276_v41  ;;  %4344 = vst [vmem:[%s5891_s24 + $0x128] sm:$0xff] %v3320_v36  ;;  %4345 = vst [vmem:[%s5891_s24 + $0x130] sm:$0xff] %v3321_v37  ;;  %v3323_v48 = vadd.s32 %v2299_v38, %v250_v30  ;;  %v3324_v49 = vadd.s32 %v2300_v39, %v251_v34  ;;  %v255_v52 = vld [vmem:[%s5853_s23 + $0x168] sm:$0xff]  ;;  %v256_v54 = vld [vmem:[%s5853_s23 + $0x170] sm:$0xff] }
  0x78   : > { %v2302_v50 = vmul.u32 %v5869_v2, %v1277_v45  ;;  %v2303_v51 = vmul.u32 %v5869_v2, %v1278_v47  ;;  %v1279_v53 = vld [vmem:[%s5861_s6 + $0x168] sm:$0xff]  ;;  %4346 = vst [vmem:[%s5891_s24 + $0x138] sm:$0xff] %v3322_v43  ;;  %v1280_v57 = vld [vmem:[%s5861_s6 + $0x170] sm:$0xff]  ;;  %v257_v58 = vld [vmem:[%s5853_s23 + $0x178] sm:$0xff] }
  0x79   : > { %v3325_v55 = vadd.s32 %v2301_v44, %v252_v40  ;;  %v2304_v56 = vmul.u32 %v5869_v2, %v1279_v53  ;;  %v1281_v59 = vld [vmem:[%s5861_s6 + $0x178] sm:$0xff]  ;;  %4347 = vst [vmem:[%s5891_s24 + $0x140] sm:$0xff] %v3323_v48  ;;  %4348 = vst [vmem:[%s5891_s24 + $0x148] sm:$0xff] %v3324_v49  ;;  %v2305_v62 = vmul.u32 %v5869_v2, %v1280_v57  ;;  %v258_v0 = vld [vmem:[%s5853_s23 + $0x180] sm:$0xff] }
  0x7a   : > { %v3326_v60 = vadd.s32 %v2302_v50, %v253_v42  ;;  %v3327_v61 = vadd.s32 %v2303_v51, %v254_v46  ;;  %v2306_v63 = vmul.u32 %v5869_v2, %v1281_v59  ;;  %v1282_v1 = vld [vmem:[%s5861_s6 + $0x180] sm:$0xff]  ;;  %v259_v3 = vld [vmem:[%s5853_s23 + $0x188] sm:$0xff]  ;;  %v260_v7 = vld [vmem:[%s5853_s23 + $0x190] sm:$0xff] }
  0x7b   : > { %4349 = vst [vmem:[%s5891_s24 + $0x150] sm:$0xff] %v3325_v55  ;;  %v3328_v4 = vadd.s32 %v2304_v56, %v255_v52  ;;  %v2307_v5 = vmul.u32 %v5869_v2, %v1282_v1  ;;  %v1283_v6 = vld [vmem:[%s5861_s6 + $0x188] sm:$0xff]  ;;  %v1284_v8 = vld [vmem:[%s5861_s6 + $0x190] sm:$0xff]  ;;  %v3329_v9 = vadd.s32 %v2305_v62, %v256_v54  ;;  %v261_v13 = vld [vmem:[%s5853_s23 + $0x198] sm:$0xff] }
  0x7c   : > { %4350 = vst [vmem:[%s5891_s24 + $0x158] sm:$0xff] %v3326_v60  ;;  %4351 = vst [vmem:[%s5891_s24 + $0x160] sm:$0xff] %v3327_v61  ;;  %v3330_v10 = vadd.s32 %v2306_v63, %v257_v58  ;;  %v2308_v11 = vmul.u32 %v5869_v2, %v1283_v6  ;;  %v2309_v12 = vmul.u32 %v5869_v2, %v1284_v8  ;;  %v1285_v14 = vld [vmem:[%s5861_s6 + $0x198] sm:$0xff]  ;;  %v262_v15 = vld [vmem:[%s5853_s23 + $0x1a0] sm:$0xff] }
  0x7d   : > { %4352 = vst [vmem:[%s5891_s24 + $0x168] sm:$0xff] %v3328_v4  ;;  %v3331_v16 = vadd.s32 %v2307_v5, %v258_v0  ;;  %v2310_v17 = vmul.u32 %v5869_v2, %v1285_v14  ;;  %v1286_v18 = vld [vmem:[%s5861_s6 + $0x1a0] sm:$0xff]  ;;  %v263_v19 = vld [vmem:[%s5853_s23 + $0x1a8] sm:$0xff]  ;;  %4353 = vst [vmem:[%s5891_s24 + $0x170] sm:$0xff] %v3329_v9 }
  0x7e   : > { %v1287_v20 = vld [vmem:[%s5861_s6 + $0x1a8] sm:$0xff]  ;;  %4354 = vst [vmem:[%s5891_s24 + $0x178] sm:$0xff] %v3330_v10  ;;  %v3332_v21 = vadd.s32 %v2308_v11, %v259_v3  ;;  %v3333_v22 = vadd.s32 %v2309_v12, %v260_v7  ;;  %v2311_v23 = vmul.u32 %v5869_v2, %v1286_v18  ;;  %v264_v25 = vld [vmem:[%s5853_s23 + $0x1b0] sm:$0xff]  ;;  %v265_v27 = vld [vmem:[%s5853_s23 + $0x1b8] sm:$0xff] }
  0x7f   : > { %v2312_v24 = vmul.u32 %v5869_v2, %v1287_v20  ;;  %v1288_v26 = vld [vmem:[%s5861_s6 + $0x1b0] sm:$0xff]  ;;  %4355 = vst [vmem:[%s5891_s24 + $0x180] sm:$0xff] %v3331_v16  ;;  %v3334_v28 = vadd.s32 %v2310_v17, %v261_v13  ;;  %v1289_v30 = vld [vmem:[%s5861_s6 + $0x1b8] sm:$0xff]  ;;  %v266_v31 = vld [vmem:[%s5853_s23 + $0x1c0] sm:$0xff] }
  0x80   : > { %v2313_v29 = vmul.u32 %v5869_v2, %v1288_v26  ;;  %v1290_v32 = vld [vmem:[%s5861_s6 + $0x1c0] sm:$0xff]  ;;  %4356 = vst [vmem:[%s5891_s24 + $0x188] sm:$0xff] %v3332_v21  ;;  %4357 = vst [vmem:[%s5891_s24 + $0x190] sm:$0xff] %v3333_v22  ;;  %v3335_v33 = vadd.s32 %v2311_v23, %v262_v15  ;;  %v2314_v35 = vmul.u32 %v5869_v2, %v1289_v30  ;;  %v267_v37 = vld [vmem:[%s5853_s23 + $0x1c8] sm:$0xff] }
  0x81   : > { %v3336_v34 = vadd.s32 %v2312_v24, %v263_v19  ;;  %v2315_v36 = vmul.u32 %v5869_v2, %v1290_v32  ;;  %v1291_v38 = vld [vmem:[%s5861_s6 + $0x1c8] sm:$0xff]  ;;  %v268_v39 = vld [vmem:[%s5853_s23 + $0x1d0] sm:$0xff]  ;;  %4358 = vst [vmem:[%s5891_s24 + $0x198] sm:$0xff] %v3334_v28  ;;  %v269_v43 = vld [vmem:[%s5853_s23 + $0x1d8] sm:$0xff] }
  0x82   : > { %v3337_v40 = vadd.s32 %v2313_v29, %v264_v25  ;;  %v2316_v41 = vmul.u32 %v5869_v2, %v1291_v38  ;;  %v1292_v42 = vld [vmem:[%s5861_s6 + $0x1d0] sm:$0xff]  ;;  %v1293_v44 = vld [vmem:[%s5861_s6 + $0x1d8] sm:$0xff]  ;;  %4359 = vst [vmem:[%s5891_s24 + $0x1a0] sm:$0xff] %v3335_v33  ;;  %v3338_v45 = vadd.s32 %v2314_v35, %v265_v27  ;;  %v270_v49 = vld [vmem:[%s5853_s23 + $0x1e0] sm:$0xff] }
  0x83   : > { %4360 = vst [vmem:[%s5891_s24 + $0x1a8] sm:$0xff] %v3336_v34  ;;  %v3339_v46 = vadd.s32 %v2315_v36, %v266_v31  ;;  %v2317_v47 = vmul.u32 %v5869_v2, %v1292_v42  ;;  %v2318_v48 = vmul.u32 %v5869_v2, %v1293_v44  ;;  %v1294_v50 = vld [vmem:[%s5861_s6 + $0x1e0] sm:$0xff]  ;;  %v271_v51 = vld [vmem:[%s5853_s23 + $0x1e8] sm:$0xff]  ;;  %v272_v55 = vld [vmem:[%s5853_s23 + $0x1f0] sm:$0xff] }
  0x84   : > { %4361 = vst [vmem:[%s5891_s24 + $0x1b0] sm:$0xff] %v3337_v40  ;;  %v3340_v52 = vadd.s32 %v2316_v41, %v267_v37  ;;  %v2319_v53 = vmul.u32 %v5869_v2, %v1294_v50  ;;  %v1295_v54 = vld [vmem:[%s5861_s6 + $0x1e8] sm:$0xff]  ;;  %v1296_v56 = vld [vmem:[%s5861_s6 + $0x1f0] sm:$0xff]  ;;  %4362 = vst [vmem:[%s5891_s24 + $0x1b8] sm:$0xff] %v3338_v45 }
  0x85   : > { %4363 = vst [vmem:[%s5891_s24 + $0x1c0] sm:$0xff] %v3339_v46  ;;  %v3341_v57 = vadd.s32 %v2317_v47, %v268_v39  ;;  %v3342_v58 = vadd.s32 %v2318_v48, %v269_v43  ;;  %v2320_v59 = vmul.u32 %v5869_v2, %v1295_v54  ;;  %v2321_v60 = vmul.u32 %v5869_v2, %v1296_v56  ;;  %v273_v61 = vld [vmem:[%s5853_s23 + $0x1f8] sm:$0xff]  ;;  %v274_v63 = vld [vmem:[%s5853_s23 + $0x200] sm:$0xff]  ;;  %v275_v4 = vld [vmem:[%s5853_s23 + $0x208] sm:$0xff] }
  0x86   : > { %v1297_v62 = vld [vmem:[%s5861_s6 + $0x1f8] sm:$0xff]  ;;  %4364 = vst [vmem:[%s5891_s24 + $0x1c8] sm:$0xff] %v3340_v52  ;;  %v3343_v0 = vadd.s32 %v2319_v53, %v270_v49  ;;  %v1298_v3 = vld [vmem:[%s5861_s6 + $0x200] sm:$0xff]  ;;  %v1299_v5 = vld [vmem:[%s5861_s6 + $0x208] sm:$0xff] }
  0x87   : > { %v2322_v1 = vmul.u32 %v5869_v2, %v1297_v62  ;;  %4365 = vst [vmem:[%s5891_s24 + $0x1d0] sm:$0xff] %v3341_v57  ;;  %4366 = vst [vmem:[%s5891_s24 + $0x1d8] sm:$0xff] %v3342_v58  ;;  %v3344_v6 = vadd.s32 %v2320_v59, %v271_v51  ;;  %v3345_v7 = vadd.s32 %v2321_v60, %v272_v55  ;;  %v276_v10 = vld [vmem:[%s5853_s23 + $0x210] sm:$0xff]  ;;  %v277_v12 = vld [vmem:[%s5853_s23 + $0x218] sm:$0xff] }
  0x88   : > { %v2323_v8 = vmul.u32 %v5869_v2, %v1298_v3  ;;  %v2324_v9 = vmul.u32 %v5869_v2, %v1299_v5  ;;  %v1300_v11 = vld [vmem:[%s5861_s6 + $0x210] sm:$0xff]  ;;  %4367 = vst [vmem:[%s5891_s24 + $0x1e0] sm:$0xff] %v3343_v0  ;;  %v1301_v15 = vld [vmem:[%s5861_s6 + $0x218] sm:$0xff]  ;;  %v278_v16 = vld [vmem:[%s5853_s23 + $0x220] sm:$0xff] }
  0x89   : > { %v3346_v13 = vadd.s32 %v2322_v1, %v273_v61  ;;  %v2325_v14 = vmul.u32 %v5869_v2, %v1300_v11  ;;  %v1302_v17 = vld [vmem:[%s5861_s6 + $0x220] sm:$0xff]  ;;  %4368 = vst [vmem:[%s5891_s24 + $0x1e8] sm:$0xff] %v3344_v6  ;;  %4369 = vst [vmem:[%s5891_s24 + $0x1f0] sm:$0xff] %v3345_v7  ;;  %v2326_v20 = vmul.u32 %v5869_v2, %v1301_v15  ;;  %v279_v22 = vld [vmem:[%s5853_s23 + $0x228] sm:$0xff] }
  0x8a   : > { %v3347_v18 = vadd.s32 %v2323_v8, %v274_v63  ;;  %v3348_v19 = vadd.s32 %v2324_v9, %v275_v4  ;;  %v2327_v21 = vmul.u32 %v5869_v2, %v1302_v17  ;;  %v1303_v23 = vld [vmem:[%s5861_s6 + $0x228] sm:$0xff]  ;;  %v280_v24 = vld [vmem:[%s5853_s23 + $0x230] sm:$0xff]  ;;  %v281_v28 = vld [vmem:[%s5853_s23 + $0x238] sm:$0xff] }
  0x8b   : > { %4370 = vst [vmem:[%s5891_s24 + $0x1f8] sm:$0xff] %v3346_v13  ;;  %v3349_v25 = vadd.s32 %v2325_v14, %v276_v10  ;;  %v2328_v26 = vmul.u32 %v5869_v2, %v1303_v23  ;;  %v1304_v27 = vld [vmem:[%s5861_s6 + $0x230] sm:$0xff]  ;;  %v1305_v29 = vld [vmem:[%s5861_s6 + $0x238] sm:$0xff]  ;;  %v3350_v30 = vadd.s32 %v2326_v20, %v277_v12  ;;  %v282_v34 = vld [vmem:[%s5853_s23 + $0x240] sm:$0xff] }
  0x8c   : > { %4371 = vst [vmem:[%s5891_s24 + $0x200] sm:$0xff] %v3347_v18  ;;  %4372 = vst [vmem:[%s5891_s24 + $0x208] sm:$0xff] %v3348_v19  ;;  %v3351_v31 = vadd.s32 %v2327_v21, %v278_v16  ;;  %v2329_v32 = vmul.u32 %v5869_v2, %v1304_v27  ;;  %v2330_v33 = vmul.u32 %v5869_v2, %v1305_v29  ;;  %v1306_v35 = vld [vmem:[%s5861_s6 + $0x240] sm:$0xff]  ;;  %v283_v36 = vld [vmem:[%s5853_s23 + $0x248] sm:$0xff] }
  0x8d   : > { %4373 = vst [vmem:[%s5891_s24 + $0x210] sm:$0xff] %v3349_v25  ;;  %v3352_v37 = vadd.s32 %v2328_v26, %v279_v22  ;;  %v2331_v38 = vmul.u32 %v5869_v2, %v1306_v35  ;;  %v1307_v39 = vld [vmem:[%s5861_s6 + $0x248] sm:$0xff]  ;;  %v284_v40 = vld [vmem:[%s5853_s23 + $0x250] sm:$0xff]  ;;  %4374 = vst [vmem:[%s5891_s24 + $0x218] sm:$0xff] %v3350_v30 }
  0x8e   : > { %v1308_v41 = vld [vmem:[%s5861_s6 + $0x250] sm:$0xff]  ;;  %4375 = vst [vmem:[%s5891_s24 + $0x220] sm:$0xff] %v3351_v31  ;;  %v3353_v42 = vadd.s32 %v2329_v32, %v280_v24  ;;  %v3354_v43 = vadd.s32 %v2330_v33, %v281_v28  ;;  %v2332_v44 = vmul.u32 %v5869_v2, %v1307_v39  ;;  %v285_v46 = vld [vmem:[%s5853_s23 + $0x258] sm:$0xff]  ;;  %v286_v48 = vld [vmem:[%s5853_s23 + $0x260] sm:$0xff] }
  0x8f   : > { %v2333_v45 = vmul.u32 %v5869_v2, %v1308_v41  ;;  %v1309_v47 = vld [vmem:[%s5861_s6 + $0x258] sm:$0xff]  ;;  %4376 = vst [vmem:[%s5891_s24 + $0x228] sm:$0xff] %v3352_v37  ;;  %v3355_v49 = vadd.s32 %v2331_v38, %v282_v34  ;;  %v1310_v51 = vld [vmem:[%s5861_s6 + $0x260] sm:$0xff]  ;;  %v287_v52 = vld [vmem:[%s5853_s23 + $0x268] sm:$0xff] }
  0x90   : > { %v2334_v50 = vmul.u32 %v5869_v2, %v1309_v47  ;;  %v1311_v53 = vld [vmem:[%s5861_s6 + $0x268] sm:$0xff]  ;;  %4377 = vst [vmem:[%s5891_s24 + $0x230] sm:$0xff] %v3353_v42  ;;  %4378 = vst [vmem:[%s5891_s24 + $0x238] sm:$0xff] %v3354_v43  ;;  %v3356_v54 = vadd.s32 %v2332_v44, %v283_v36  ;;  %v2335_v56 = vmul.u32 %v5869_v2, %v1310_v51  ;;  %v288_v58 = vld [vmem:[%s5853_s23 + $0x270] sm:$0xff] }
  0x91   : > { %v3357_v55 = vadd.s32 %v2333_v45, %v284_v40  ;;  %v2336_v57 = vmul.u32 %v5869_v2, %v1311_v53  ;;  %v1312_v59 = vld [vmem:[%s5861_s6 + $0x270] sm:$0xff]  ;;  %v289_v60 = vld [vmem:[%s5853_s23 + $0x278] sm:$0xff]  ;;  %4379 = vst [vmem:[%s5891_s24 + $0x240] sm:$0xff] %v3355_v49  ;;  %v290_v0 = vld [vmem:[%s5853_s23 + $0x280] sm:$0xff] }
  0x92   : > { %v3358_v61 = vadd.s32 %v2334_v50, %v285_v46  ;;  %v2337_v62 = vmul.u32 %v5869_v2, %v1312_v59  ;;  %v1313_v63 = vld [vmem:[%s5861_s6 + $0x278] sm:$0xff]  ;;  %v1314_v1 = vld [vmem:[%s5861_s6 + $0x280] sm:$0xff]  ;;  %4380 = vst [vmem:[%s5891_s24 + $0x248] sm:$0xff] %v3356_v54  ;;  %v3359_v3 = vadd.s32 %v2335_v56, %v286_v48  ;;  %v291_v7 = vld [vmem:[%s5853_s23 + $0x288] sm:$0xff] }
  0x93   : > { %4381 = vst [vmem:[%s5891_s24 + $0x250] sm:$0xff] %v3357_v55  ;;  %v3360_v4 = vadd.s32 %v2336_v57, %v287_v52  ;;  %v2338_v5 = vmul.u32 %v5869_v2, %v1313_v63  ;;  %v2339_v6 = vmul.u32 %v5869_v2, %v1314_v1  ;;  %v1315_v8 = vld [vmem:[%s5861_s6 + $0x288] sm:$0xff]  ;;  %v292_v9 = vld [vmem:[%s5853_s23 + $0x290] sm:$0xff]  ;;  %v293_v13 = vld [vmem:[%s5853_s23 + $0x298] sm:$0xff] }
  0x94   : > { %4382 = vst [vmem:[%s5891_s24 + $0x258] sm:$0xff] %v3358_v61  ;;  %v3361_v10 = vadd.s32 %v2337_v62, %v288_v58  ;;  %v2340_v11 = vmul.u32 %v5869_v2, %v1315_v8  ;;  %v1316_v12 = vld [vmem:[%s5861_s6 + $0x290] sm:$0xff]  ;;  %v1317_v14 = vld [vmem:[%s5861_s6 + $0x298] sm:$0xff]  ;;  %4383 = vst [vmem:[%s5891_s24 + $0x260] sm:$0xff] %v3359_v3 }
  0x95   : > { %4384 = vst [vmem:[%s5891_s24 + $0x268] sm:$0xff] %v3360_v4  ;;  %v3362_v15 = vadd.s32 %v2338_v5, %v289_v60  ;;  %v3363_v16 = vadd.s32 %v2339_v6, %v290_v0  ;;  %v2341_v17 = vmul.u32 %v5869_v2, %v1316_v12  ;;  %v2342_v18 = vmul.u32 %v5869_v2, %v1317_v14  ;;  %v294_v19 = vld [vmem:[%s5853_s23 + $0x2a0] sm:$0xff]  ;;  %v295_v21 = vld [vmem:[%s5853_s23 + $0x2a8] sm:$0xff]  ;;  %v296_v25 = vld [vmem:[%s5853_s23 + $0x2b0] sm:$0xff] }
  0x96   : > { %v1318_v20 = vld [vmem:[%s5861_s6 + $0x2a0] sm:$0xff]  ;;  %4385 = vst [vmem:[%s5891_s24 + $0x270] sm:$0xff] %v3361_v10  ;;  %v3364_v22 = vadd.s32 %v2340_v11, %v291_v7  ;;  %v1319_v24 = vld [vmem:[%s5861_s6 + $0x2a8] sm:$0xff]  ;;  %v1320_v26 = vld [vmem:[%s5861_s6 + $0x2b0] sm:$0xff] }
  0x97   : > { %v2343_v23 = vmul.u32 %v5869_v2, %v1318_v20  ;;  %4386 = vst [vmem:[%s5891_s24 + $0x278] sm:$0xff] %v3362_v15  ;;  %4387 = vst [vmem:[%s5891_s24 + $0x280] sm:$0xff] %v3363_v16  ;;  %v3365_v27 = vadd.s32 %v2341_v17, %v292_v9  ;;  %v3366_v28 = vadd.s32 %v2342_v18, %v293_v13  ;;  %v297_v31 = vld [vmem:[%s5853_s23 + $0x2b8] sm:$0xff]  ;;  %v298_v33 = vld [vmem:[%s5853_s23 + $0x2c0] sm:$0xff] }
  0x98   : > { %v2344_v29 = vmul.u32 %v5869_v2, %v1319_v24  ;;  %v2345_v30 = vmul.u32 %v5869_v2, %v1320_v26  ;;  %v1321_v32 = vld [vmem:[%s5861_s6 + $0x2b8] sm:$0xff]  ;;  %4388 = vst [vmem:[%s5891_s24 + $0x288] sm:$0xff] %v3364_v22  ;;  %v1322_v36 = vld [vmem:[%s5861_s6 + $0x2c0] sm:$0xff]  ;;  %v299_v37 = vld [vmem:[%s5853_s23 + $0x2c8] sm:$0xff] }
  0x99   : > { %v3367_v34 = vadd.s32 %v2343_v23, %v294_v19  ;;  %v2346_v35 = vmul.u32 %v5869_v2, %v1321_v32  ;;  %v1323_v38 = vld [vmem:[%s5861_s6 + $0x2c8] sm:$0xff]  ;;  %4389 = vst [vmem:[%s5891_s24 + $0x290] sm:$0xff] %v3365_v27  ;;  %4390 = vst [vmem:[%s5891_s24 + $0x298] sm:$0xff] %v3366_v28  ;;  %v2347_v41 = vmul.u32 %v5869_v2, %v1322_v36  ;;  %v300_v43 = vld [vmem:[%s5853_s23 + $0x2d0] sm:$0xff] }
  0x9a   : > { %v3368_v39 = vadd.s32 %v2344_v29, %v295_v21  ;;  %v3369_v40 = vadd.s32 %v2345_v30, %v296_v25  ;;  %v2348_v42 = vmul.u32 %v5869_v2, %v1323_v38  ;;  %v1324_v44 = vld [vmem:[%s5861_s6 + $0x2d0] sm:$0xff]  ;;  %v301_v45 = vld [vmem:[%s5853_s23 + $0x2d8] sm:$0xff]  ;;  %v302_v49 = vld [vmem:[%s5853_s23 + $0x2e0] sm:$0xff] }
  0x9b   : > { %4391 = vst [vmem:[%s5891_s24 + $0x2a0] sm:$0xff] %v3367_v34  ;;  %v3370_v46 = vadd.s32 %v2346_v35, %v297_v31  ;;  %v2349_v47 = vmul.u32 %v5869_v2, %v1324_v44  ;;  %v1325_v48 = vld [vmem:[%s5861_s6 + $0x2d8] sm:$0xff]  ;;  %v1326_v50 = vld [vmem:[%s5861_s6 + $0x2e0] sm:$0xff]  ;;  %v3371_v51 = vadd.s32 %v2347_v41, %v298_v33  ;;  %v303_v55 = vld [vmem:[%s5853_s23 + $0x2e8] sm:$0xff] }
  0x9c   : > { %4392 = vst [vmem:[%s5891_s24 + $0x2a8] sm:$0xff] %v3368_v39  ;;  %4393 = vst [vmem:[%s5891_s24 + $0x2b0] sm:$0xff] %v3369_v40  ;;  %v3372_v52 = vadd.s32 %v2348_v42, %v299_v37  ;;  %v2350_v53 = vmul.u32 %v5869_v2, %v1325_v48  ;;  %v2351_v54 = vmul.u32 %v5869_v2, %v1326_v50  ;;  %v1327_v56 = vld [vmem:[%s5861_s6 + $0x2e8] sm:$0xff]  ;;  %v304_v57 = vld [vmem:[%s5853_s23 + $0x2f0] sm:$0xff] }
  0x9d   : > { %4394 = vst [vmem:[%s5891_s24 + $0x2b8] sm:$0xff] %v3370_v46  ;;  %v3373_v58 = vadd.s32 %v2349_v47, %v300_v43  ;;  %v2352_v59 = vmul.u32 %v5869_v2, %v1327_v56  ;;  %v1328_v60 = vld [vmem:[%s5861_s6 + $0x2f0] sm:$0xff]  ;;  %v305_v61 = vld [vmem:[%s5853_s23 + $0x2f8] sm:$0xff]  ;;  %4395 = vst [vmem:[%s5891_s24 + $0x2c0] sm:$0xff] %v3371_v51 }
  0x9e   : > { %v1329_v62 = vld [vmem:[%s5861_s6 + $0x2f8] sm:$0xff]  ;;  %4396 = vst [vmem:[%s5891_s24 + $0x2c8] sm:$0xff] %v3372_v52  ;;  %v3374_v63 = vadd.s32 %v2350_v53, %v301_v45  ;;  %v3375_v0 = vadd.s32 %v2351_v54, %v302_v49  ;;  %v2353_v1 = vmul.u32 %v5869_v2, %v1328_v60  ;;  %v306_v4 = vld [vmem:[%s5853_s23 + $0x300] sm:$0xff]  ;;  %v307_v6 = vld [vmem:[%s5853_s23 + $0x308] sm:$0xff] }
  0x9f   : > { %v2354_v3 = vmul.u32 %v5869_v2, %v1329_v62  ;;  %v1330_v5 = vld [vmem:[%s5861_s6 + $0x300] sm:$0xff]  ;;  %4397 = vst [vmem:[%s5891_s24 + $0x2d0] sm:$0xff] %v3373_v58  ;;  %v3376_v7 = vadd.s32 %v2352_v59, %v303_v55  ;;  %v1331_v9 = vld [vmem:[%s5861_s6 + $0x308] sm:$0xff]  ;;  %v308_v10 = vld [vmem:[%s5853_s23 + $0x310] sm:$0xff] }
  0xa0   : > { %v2355_v8 = vmul.u32 %v5869_v2, %v1330_v5  ;;  %v1332_v11 = vld [vmem:[%s5861_s6 + $0x310] sm:$0xff]  ;;  %4398 = vst [vmem:[%s5891_s24 + $0x2d8] sm:$0xff] %v3374_v63  ;;  %4399 = vst [vmem:[%s5891_s24 + $0x2e0] sm:$0xff] %v3375_v0  ;;  %v3377_v12 = vadd.s32 %v2353_v1, %v304_v57  ;;  %v2356_v14 = vmul.u32 %v5869_v2, %v1331_v9  ;;  %v309_v16 = vld [vmem:[%s5853_s23 + $0x318] sm:$0xff] }
  0xa1   : > { %v3378_v13 = vadd.s32 %v2354_v3, %v305_v61  ;;  %v2357_v15 = vmul.u32 %v5869_v2, %v1332_v11  ;;  %v1333_v17 = vld [vmem:[%s5861_s6 + $0x318] sm:$0xff]  ;;  %v310_v18 = vld [vmem:[%s5853_s23 + $0x320] sm:$0xff]  ;;  %4400 = vst [vmem:[%s5891_s24 + $0x2e8] sm:$0xff] %v3376_v7  ;;  %v311_v22 = vld [vmem:[%s5853_s23 + $0x328] sm:$0xff] }
  0xa2   : > { %v3379_v19 = vadd.s32 %v2355_v8, %v306_v4  ;;  %v2358_v20 = vmul.u32 %v5869_v2, %v1333_v17  ;;  %v1334_v21 = vld [vmem:[%s5861_s6 + $0x320] sm:$0xff]  ;;  %v1335_v23 = vld [vmem:[%s5861_s6 + $0x328] sm:$0xff]  ;;  %4401 = vst [vmem:[%s5891_s24 + $0x2f0] sm:$0xff] %v3377_v12  ;;  %v3380_v24 = vadd.s32 %v2356_v14, %v307_v6  ;;  %v312_v28 = vld [vmem:[%s5853_s23 + $0x330] sm:$0xff] }
  0xa3   : > { %4402 = vst [vmem:[%s5891_s24 + $0x2f8] sm:$0xff] %v3378_v13  ;;  %v3381_v25 = vadd.s32 %v2357_v15, %v308_v10  ;;  %v2359_v26 = vmul.u32 %v5869_v2, %v1334_v21  ;;  %v2360_v27 = vmul.u32 %v5869_v2, %v1335_v23  ;;  %v1336_v29 = vld [vmem:[%s5861_s6 + $0x330] sm:$0xff]  ;;  %v313_v30 = vld [vmem:[%s5853_s23 + $0x338] sm:$0xff]  ;;  %v314_v34 = vld [vmem:[%s5853_s23 + $0x340] sm:$0xff] }
  0xa4   : > { %4403 = vst [vmem:[%s5891_s24 + $0x300] sm:$0xff] %v3379_v19  ;;  %v3382_v31 = vadd.s32 %v2358_v20, %v309_v16  ;;  %v2361_v32 = vmul.u32 %v5869_v2, %v1336_v29  ;;  %v1337_v33 = vld [vmem:[%s5861_s6 + $0x338] sm:$0xff]  ;;  %v1338_v35 = vld [vmem:[%s5861_s6 + $0x340] sm:$0xff]  ;;  %4404 = vst [vmem:[%s5891_s24 + $0x308] sm:$0xff] %v3380_v24 }
  0xa5   : > { %4405 = vst [vmem:[%s5891_s24 + $0x310] sm:$0xff] %v3381_v25  ;;  %v3383_v36 = vadd.s32 %v2359_v26, %v310_v18  ;;  %v3384_v37 = vadd.s32 %v2360_v27, %v311_v22  ;;  %v2362_v38 = vmul.u32 %v5869_v2, %v1337_v33  ;;  %v2363_v39 = vmul.u32 %v5869_v2, %v1338_v35  ;;  %v315_v40 = vld [vmem:[%s5853_s23 + $0x348] sm:$0xff]  ;;  %v316_v42 = vld [vmem:[%s5853_s23 + $0x350] sm:$0xff]  ;;  %v317_v46 = vld [vmem:[%s5853_s23 + $0x358] sm:$0xff] }
  0xa6   : > { %v1339_v41 = vld [vmem:[%s5861_s6 + $0x348] sm:$0xff]  ;;  %4406 = vst [vmem:[%s5891_s24 + $0x318] sm:$0xff] %v3382_v31  ;;  %v3385_v43 = vadd.s32 %v2361_v32, %v312_v28  ;;  %v1340_v45 = vld [vmem:[%s5861_s6 + $0x350] sm:$0xff]  ;;  %v1341_v47 = vld [vmem:[%s5861_s6 + $0x358] sm:$0xff] }
  0xa7   : > { %v2364_v44 = vmul.u32 %v5869_v2, %v1339_v41  ;;  %4407 = vst [vmem:[%s5891_s24 + $0x320] sm:$0xff] %v3383_v36  ;;  %4408 = vst [vmem:[%s5891_s24 + $0x328] sm:$0xff] %v3384_v37  ;;  %v3386_v48 = vadd.s32 %v2362_v38, %v313_v30  ;;  %v3387_v49 = vadd.s32 %v2363_v39, %v314_v34  ;;  %v318_v52 = vld [vmem:[%s5853_s23 + $0x360] sm:$0xff]  ;;  %v319_v54 = vld [vmem:[%s5853_s23 + $0x368] sm:$0xff] }
  0xa8   : > { %v2365_v50 = vmul.u32 %v5869_v2, %v1340_v45  ;;  %v2366_v51 = vmul.u32 %v5869_v2, %v1341_v47  ;;  %v1342_v53 = vld [vmem:[%s5861_s6 + $0x360] sm:$0xff]  ;;  %4409 = vst [vmem:[%s5891_s24 + $0x330] sm:$0xff] %v3385_v43  ;;  %v1343_v57 = vld [vmem:[%s5861_s6 + $0x368] sm:$0xff]  ;;  %v320_v58 = vld [vmem:[%s5853_s23 + $0x370] sm:$0xff] }
  0xa9   : > { %v3388_v55 = vadd.s32 %v2364_v44, %v315_v40  ;;  %v2367_v56 = vmul.u32 %v5869_v2, %v1342_v53  ;;  %v1344_v59 = vld [vmem:[%s5861_s6 + $0x370] sm:$0xff]  ;;  %4410 = vst [vmem:[%s5891_s24 + $0x338] sm:$0xff] %v3386_v48  ;;  %4411 = vst [vmem:[%s5891_s24 + $0x340] sm:$0xff] %v3387_v49  ;;  %v2368_v62 = vmul.u32 %v5869_v2, %v1343_v57  ;;  %v321_v0 = vld [vmem:[%s5853_s23 + $0x378] sm:$0xff] }
  0xaa   : > { %v3389_v60 = vadd.s32 %v2365_v50, %v316_v42  ;;  %v3390_v61 = vadd.s32 %v2366_v51, %v317_v46  ;;  %v2369_v63 = vmul.u32 %v5869_v2, %v1344_v59  ;;  %v1345_v1 = vld [vmem:[%s5861_s6 + $0x378] sm:$0xff]  ;;  %v322_v3 = vld [vmem:[%s5853_s23 + $0x380] sm:$0xff]  ;;  %v323_v7 = vld [vmem:[%s5853_s23 + $0x388] sm:$0xff] }
  0xab   : > { %4412 = vst [vmem:[%s5891_s24 + $0x348] sm:$0xff] %v3388_v55  ;;  %v3391_v4 = vadd.s32 %v2367_v56, %v318_v52  ;;  %v2370_v5 = vmul.u32 %v5869_v2, %v1345_v1  ;;  %v1346_v6 = vld [vmem:[%s5861_s6 + $0x380] sm:$0xff]  ;;  %v1347_v8 = vld [vmem:[%s5861_s6 + $0x388] sm:$0xff]  ;;  %v3392_v9 = vadd.s32 %v2368_v62, %v319_v54  ;;  %v324_v13 = vld [vmem:[%s5853_s23 + $0x390] sm:$0xff] }
  0xac   : > { %4413 = vst [vmem:[%s5891_s24 + $0x350] sm:$0xff] %v3389_v60  ;;  %4414 = vst [vmem:[%s5891_s24 + $0x358] sm:$0xff] %v3390_v61  ;;  %v3393_v10 = vadd.s32 %v2369_v63, %v320_v58  ;;  %v2371_v11 = vmul.u32 %v5869_v2, %v1346_v6  ;;  %v2372_v12 = vmul.u32 %v5869_v2, %v1347_v8  ;;  %v1348_v14 = vld [vmem:[%s5861_s6 + $0x390] sm:$0xff]  ;;  %v325_v15 = vld [vmem:[%s5853_s23 + $0x398] sm:$0xff] }
  0xad   : > { %4415 = vst [vmem:[%s5891_s24 + $0x360] sm:$0xff] %v3391_v4  ;;  %v3394_v16 = vadd.s32 %v2370_v5, %v321_v0  ;;  %v2373_v17 = vmul.u32 %v5869_v2, %v1348_v14  ;;  %v1349_v18 = vld [vmem:[%s5861_s6 + $0x398] sm:$0xff]  ;;  %v326_v19 = vld [vmem:[%s5853_s23 + $0x3a0] sm:$0xff]  ;;  %4416 = vst [vmem:[%s5891_s24 + $0x368] sm:$0xff] %v3392_v9 }
  0xae   : > { %v1350_v20 = vld [vmem:[%s5861_s6 + $0x3a0] sm:$0xff]  ;;  %4417 = vst [vmem:[%s5891_s24 + $0x370] sm:$0xff] %v3393_v10  ;;  %v3395_v21 = vadd.s32 %v2371_v11, %v322_v3  ;;  %v3396_v22 = vadd.s32 %v2372_v12, %v323_v7  ;;  %v2374_v23 = vmul.u32 %v5869_v2, %v1349_v18  ;;  %v327_v25 = vld [vmem:[%s5853_s23 + $0x3a8] sm:$0xff]  ;;  %v328_v27 = vld [vmem:[%s5853_s23 + $0x3b0] sm:$0xff] }
  0xaf   : > { %v2375_v24 = vmul.u32 %v5869_v2, %v1350_v20  ;;  %v1351_v26 = vld [vmem:[%s5861_s6 + $0x3a8] sm:$0xff]  ;;  %4418 = vst [vmem:[%s5891_s24 + $0x378] sm:$0xff] %v3394_v16  ;;  %v3397_v28 = vadd.s32 %v2373_v17, %v324_v13  ;;  %v1352_v30 = vld [vmem:[%s5861_s6 + $0x3b0] sm:$0xff]  ;;  %v329_v31 = vld [vmem:[%s5853_s23 + $0x3b8] sm:$0xff] }
  0xb0   : > { %v2376_v29 = vmul.u32 %v5869_v2, %v1351_v26  ;;  %v1353_v32 = vld [vmem:[%s5861_s6 + $0x3b8] sm:$0xff]  ;;  %4419 = vst [vmem:[%s5891_s24 + $0x380] sm:$0xff] %v3395_v21  ;;  %4420 = vst [vmem:[%s5891_s24 + $0x388] sm:$0xff] %v3396_v22  ;;  %v3398_v33 = vadd.s32 %v2374_v23, %v325_v15  ;;  %v2377_v35 = vmul.u32 %v5869_v2, %v1352_v30  ;;  %v330_v37 = vld [vmem:[%s5853_s23 + $0x3c0] sm:$0xff] }
  0xb1   : > { %v3399_v34 = vadd.s32 %v2375_v24, %v326_v19  ;;  %v2378_v36 = vmul.u32 %v5869_v2, %v1353_v32  ;;  %v1354_v38 = vld [vmem:[%s5861_s6 + $0x3c0] sm:$0xff]  ;;  %v331_v39 = vld [vmem:[%s5853_s23 + $0x3c8] sm:$0xff]  ;;  %4421 = vst [vmem:[%s5891_s24 + $0x390] sm:$0xff] %v3397_v28  ;;  %v332_v43 = vld [vmem:[%s5853_s23 + $0x3d0] sm:$0xff] }
  0xb2   : > { %v3400_v40 = vadd.s32 %v2376_v29, %v327_v25  ;;  %v2379_v41 = vmul.u32 %v5869_v2, %v1354_v38  ;;  %v1355_v42 = vld [vmem:[%s5861_s6 + $0x3c8] sm:$0xff]  ;;  %v1356_v44 = vld [vmem:[%s5861_s6 + $0x3d0] sm:$0xff]  ;;  %4422 = vst [vmem:[%s5891_s24 + $0x398] sm:$0xff] %v3398_v33  ;;  %v3401_v45 = vadd.s32 %v2377_v35, %v328_v27  ;;  %v333_v49 = vld [vmem:[%s5853_s23 + $0x3d8] sm:$0xff] }
  0xb3   : > { %4423 = vst [vmem:[%s5891_s24 + $0x3a0] sm:$0xff] %v3399_v34  ;;  %v3402_v46 = vadd.s32 %v2378_v36, %v329_v31  ;;  %v2380_v47 = vmul.u32 %v5869_v2, %v1355_v42  ;;  %v2381_v48 = vmul.u32 %v5869_v2, %v1356_v44  ;;  %v1357_v50 = vld [vmem:[%s5861_s6 + $0x3d8] sm:$0xff]  ;;  %v334_v51 = vld [vmem:[%s5853_s23 + $0x3e0] sm:$0xff]  ;;  %v335_v55 = vld [vmem:[%s5853_s23 + $0x3e8] sm:$0xff] }
  0xb4   : > { %4424 = vst [vmem:[%s5891_s24 + $0x3a8] sm:$0xff] %v3400_v40  ;;  %v3403_v52 = vadd.s32 %v2379_v41, %v330_v37  ;;  %v2382_v53 = vmul.u32 %v5869_v2, %v1357_v50  ;;  %v1358_v54 = vld [vmem:[%s5861_s6 + $0x3e0] sm:$0xff]  ;;  %v1359_v56 = vld [vmem:[%s5861_s6 + $0x3e8] sm:$0xff]  ;;  %4425 = vst [vmem:[%s5891_s24 + $0x3b0] sm:$0xff] %v3401_v45 }
  0xb5   : > { %4426 = vst [vmem:[%s5891_s24 + $0x3b8] sm:$0xff] %v3402_v46  ;;  %v3404_v57 = vadd.s32 %v2380_v47, %v331_v39  ;;  %v3405_v58 = vadd.s32 %v2381_v48, %v332_v43  ;;  %v2383_v59 = vmul.u32 %v5869_v2, %v1358_v54  ;;  %v2384_v60 = vmul.u32 %v5869_v2, %v1359_v56  ;;  %v336_v61 = vld [vmem:[%s5853_s23 + $0x3f0] sm:$0xff]  ;;  %v337_v63 = vld [vmem:[%s5853_s23 + $0x3f8] sm:$0xff]  ;;  %v338_v4 = vld [vmem:[%s5853_s23 + $0x400] sm:$0xff] }
  0xb6   : > { %v1360_v62 = vld [vmem:[%s5861_s6 + $0x3f0] sm:$0xff]  ;;  %4427 = vst [vmem:[%s5891_s24 + $0x3c0] sm:$0xff] %v3403_v52  ;;  %v3406_v0 = vadd.s32 %v2382_v53, %v333_v49  ;;  %v1361_v3 = vld [vmem:[%s5861_s6 + $0x3f8] sm:$0xff]  ;;  %v1362_v5 = vld [vmem:[%s5861_s6 + $0x400] sm:$0xff] }
  0xb7   : > { %v2385_v1 = vmul.u32 %v5869_v2, %v1360_v62  ;;  %4428 = vst [vmem:[%s5891_s24 + $0x3c8] sm:$0xff] %v3404_v57  ;;  %4429 = vst [vmem:[%s5891_s24 + $0x3d0] sm:$0xff] %v3405_v58  ;;  %v3407_v6 = vadd.s32 %v2383_v59, %v334_v51  ;;  %v3408_v7 = vadd.s32 %v2384_v60, %v335_v55  ;;  %v339_v10 = vld [vmem:[%s5853_s23 + $0x408] sm:$0xff]  ;;  %v340_v12 = vld [vmem:[%s5853_s23 + $0x410] sm:$0xff] }
  0xb8   : > { %v2386_v8 = vmul.u32 %v5869_v2, %v1361_v3  ;;  %v2387_v9 = vmul.u32 %v5869_v2, %v1362_v5  ;;  %v1363_v11 = vld [vmem:[%s5861_s6 + $0x408] sm:$0xff]  ;;  %4430 = vst [vmem:[%s5891_s24 + $0x3d8] sm:$0xff] %v3406_v0  ;;  %v1364_v15 = vld [vmem:[%s5861_s6 + $0x410] sm:$0xff]  ;;  %v341_v16 = vld [vmem:[%s5853_s23 + $0x418] sm:$0xff] }
  0xb9   : > { %v3409_v13 = vadd.s32 %v2385_v1, %v336_v61  ;;  %v2388_v14 = vmul.u32 %v5869_v2, %v1363_v11  ;;  %v1365_v17 = vld [vmem:[%s5861_s6 + $0x418] sm:$0xff]  ;;  %4431 = vst [vmem:[%s5891_s24 + $0x3e0] sm:$0xff] %v3407_v6  ;;  %4432 = vst [vmem:[%s5891_s24 + $0x3e8] sm:$0xff] %v3408_v7  ;;  %v2389_v20 = vmul.u32 %v5869_v2, %v1364_v15  ;;  %v342_v22 = vld [vmem:[%s5853_s23 + $0x420] sm:$0xff] }
  0xba   : > { %v3410_v18 = vadd.s32 %v2386_v8, %v337_v63  ;;  %v3411_v19 = vadd.s32 %v2387_v9, %v338_v4  ;;  %v2390_v21 = vmul.u32 %v5869_v2, %v1365_v17  ;;  %v1366_v23 = vld [vmem:[%s5861_s6 + $0x420] sm:$0xff]  ;;  %v343_v24 = vld [vmem:[%s5853_s23 + $0x428] sm:$0xff]  ;;  %v344_v28 = vld [vmem:[%s5853_s23 + $0x430] sm:$0xff] }
  0xbb   : > { %4433 = vst [vmem:[%s5891_s24 + $0x3f0] sm:$0xff] %v3409_v13  ;;  %v3412_v25 = vadd.s32 %v2388_v14, %v339_v10  ;;  %v2391_v26 = vmul.u32 %v5869_v2, %v1366_v23  ;;  %v1367_v27 = vld [vmem:[%s5861_s6 + $0x428] sm:$0xff]  ;;  %v1368_v29 = vld [vmem:[%s5861_s6 + $0x430] sm:$0xff]  ;;  %v3413_v30 = vadd.s32 %v2389_v20, %v340_v12  ;;  %v345_v34 = vld [vmem:[%s5853_s23 + $0x438] sm:$0xff] }
  0xbc   : > { %4434 = vst [vmem:[%s5891_s24 + $0x3f8] sm:$0xff] %v3410_v18  ;;  %4435 = vst [vmem:[%s5891_s24 + $0x400] sm:$0xff] %v3411_v19  ;;  %v3414_v31 = vadd.s32 %v2390_v21, %v341_v16  ;;  %v2392_v32 = vmul.u32 %v5869_v2, %v1367_v27  ;;  %v2393_v33 = vmul.u32 %v5869_v2, %v1368_v29  ;;  %v1369_v35 = vld [vmem:[%s5861_s6 + $0x438] sm:$0xff]  ;;  %v346_v36 = vld [vmem:[%s5853_s23 + $0x440] sm:$0xff] }
  0xbd   : > { %4436 = vst [vmem:[%s5891_s24 + $0x408] sm:$0xff] %v3412_v25  ;;  %v3415_v37 = vadd.s32 %v2391_v26, %v342_v22  ;;  %v2394_v38 = vmul.u32 %v5869_v2, %v1369_v35  ;;  %v1370_v39 = vld [vmem:[%s5861_s6 + $0x440] sm:$0xff]  ;;  %v347_v40 = vld [vmem:[%s5853_s23 + $0x448] sm:$0xff]  ;;  %4437 = vst [vmem:[%s5891_s24 + $0x410] sm:$0xff] %v3413_v30 }
  0xbe   : > { %v1371_v41 = vld [vmem:[%s5861_s6 + $0x448] sm:$0xff]  ;;  %4438 = vst [vmem:[%s5891_s24 + $0x418] sm:$0xff] %v3414_v31  ;;  %v3416_v42 = vadd.s32 %v2392_v32, %v343_v24  ;;  %v3417_v43 = vadd.s32 %v2393_v33, %v344_v28  ;;  %v2395_v44 = vmul.u32 %v5869_v2, %v1370_v39  ;;  %v348_v46 = vld [vmem:[%s5853_s23 + $0x450] sm:$0xff]  ;;  %v349_v48 = vld [vmem:[%s5853_s23 + $0x458] sm:$0xff] }
  0xbf   : > { %v2396_v45 = vmul.u32 %v5869_v2, %v1371_v41  ;;  %v1372_v47 = vld [vmem:[%s5861_s6 + $0x450] sm:$0xff]  ;;  %4439 = vst [vmem:[%s5891_s24 + $0x420] sm:$0xff] %v3415_v37  ;;  %v3418_v49 = vadd.s32 %v2394_v38, %v345_v34  ;;  %v1373_v51 = vld [vmem:[%s5861_s6 + $0x458] sm:$0xff]  ;;  %v350_v52 = vld [vmem:[%s5853_s23 + $0x460] sm:$0xff] }
  0xc0   : > { %v2397_v50 = vmul.u32 %v5869_v2, %v1372_v47  ;;  %v1374_v53 = vld [vmem:[%s5861_s6 + $0x460] sm:$0xff]  ;;  %4440 = vst [vmem:[%s5891_s24 + $0x428] sm:$0xff] %v3416_v42  ;;  %4441 = vst [vmem:[%s5891_s24 + $0x430] sm:$0xff] %v3417_v43  ;;  %v3419_v54 = vadd.s32 %v2395_v44, %v346_v36  ;;  %v2398_v56 = vmul.u32 %v5869_v2, %v1373_v51  ;;  %v351_v58 = vld [vmem:[%s5853_s23 + $0x468] sm:$0xff] }
  0xc1   : > { %v3420_v55 = vadd.s32 %v2396_v45, %v347_v40  ;;  %v2399_v57 = vmul.u32 %v5869_v2, %v1374_v53  ;;  %v1375_v59 = vld [vmem:[%s5861_s6 + $0x468] sm:$0xff]  ;;  %v352_v60 = vld [vmem:[%s5853_s23 + $0x470] sm:$0xff]  ;;  %4442 = vst [vmem:[%s5891_s24 + $0x438] sm:$0xff] %v3418_v49  ;;  %v353_v0 = vld [vmem:[%s5853_s23 + $0x478] sm:$0xff] }
  0xc2   : > { %v3421_v61 = vadd.s32 %v2397_v50, %v348_v46  ;;  %v2400_v62 = vmul.u32 %v5869_v2, %v1375_v59  ;;  %v1376_v63 = vld [vmem:[%s5861_s6 + $0x470] sm:$0xff]  ;;  %v1377_v1 = vld [vmem:[%s5861_s6 + $0x478] sm:$0xff]  ;;  %4443 = vst [vmem:[%s5891_s24 + $0x440] sm:$0xff] %v3419_v54  ;;  %v3422_v3 = vadd.s32 %v2398_v56, %v349_v48  ;;  %v354_v7 = vld [vmem:[%s5853_s23 + $0x480] sm:$0xff] }
  0xc3   : > { %4444 = vst [vmem:[%s5891_s24 + $0x448] sm:$0xff] %v3420_v55  ;;  %v3423_v4 = vadd.s32 %v2399_v57, %v350_v52  ;;  %v2401_v5 = vmul.u32 %v5869_v2, %v1376_v63  ;;  %v2402_v6 = vmul.u32 %v5869_v2, %v1377_v1  ;;  %v1378_v8 = vld [vmem:[%s5861_s6 + $0x480] sm:$0xff]  ;;  %v355_v9 = vld [vmem:[%s5853_s23 + $0x488] sm:$0xff]  ;;  %v356_v13 = vld [vmem:[%s5853_s23 + $0x490] sm:$0xff] }
  0xc4   : > { %4445 = vst [vmem:[%s5891_s24 + $0x450] sm:$0xff] %v3421_v61  ;;  %v3424_v10 = vadd.s32 %v2400_v62, %v351_v58  ;;  %v2403_v11 = vmul.u32 %v5869_v2, %v1378_v8  ;;  %v1379_v12 = vld [vmem:[%s5861_s6 + $0x488] sm:$0xff]  ;;  %v1380_v14 = vld [vmem:[%s5861_s6 + $0x490] sm:$0xff]  ;;  %4446 = vst [vmem:[%s5891_s24 + $0x458] sm:$0xff] %v3422_v3 }
  0xc5   : > { %4447 = vst [vmem:[%s5891_s24 + $0x460] sm:$0xff] %v3423_v4  ;;  %v3425_v15 = vadd.s32 %v2401_v5, %v352_v60  ;;  %v3426_v16 = vadd.s32 %v2402_v6, %v353_v0  ;;  %v2404_v17 = vmul.u32 %v5869_v2, %v1379_v12  ;;  %v2405_v18 = vmul.u32 %v5869_v2, %v1380_v14  ;;  %v357_v19 = vld [vmem:[%s5853_s23 + $0x498] sm:$0xff]  ;;  %v358_v21 = vld [vmem:[%s5853_s23 + $0x4a0] sm:$0xff]  ;;  %v359_v25 = vld [vmem:[%s5853_s23 + $0x4a8] sm:$0xff] }
  0xc6   : > { %v1381_v20 = vld [vmem:[%s5861_s6 + $0x498] sm:$0xff]  ;;  %4448 = vst [vmem:[%s5891_s24 + $0x468] sm:$0xff] %v3424_v10  ;;  %v3427_v22 = vadd.s32 %v2403_v11, %v354_v7  ;;  %v1382_v24 = vld [vmem:[%s5861_s6 + $0x4a0] sm:$0xff]  ;;  %v1383_v26 = vld [vmem:[%s5861_s6 + $0x4a8] sm:$0xff] }
  0xc7   : > { %v2406_v23 = vmul.u32 %v5869_v2, %v1381_v20  ;;  %4449 = vst [vmem:[%s5891_s24 + $0x470] sm:$0xff] %v3425_v15  ;;  %4450 = vst [vmem:[%s5891_s24 + $0x478] sm:$0xff] %v3426_v16  ;;  %v3428_v27 = vadd.s32 %v2404_v17, %v355_v9  ;;  %v3429_v28 = vadd.s32 %v2405_v18, %v356_v13  ;;  %v360_v31 = vld [vmem:[%s5853_s23 + $0x4b0] sm:$0xff]  ;;  %v361_v33 = vld [vmem:[%s5853_s23 + $0x4b8] sm:$0xff] }
  0xc8   : > { %v2407_v29 = vmul.u32 %v5869_v2, %v1382_v24  ;;  %v2408_v30 = vmul.u32 %v5869_v2, %v1383_v26  ;;  %v1384_v32 = vld [vmem:[%s5861_s6 + $0x4b0] sm:$0xff]  ;;  %4451 = vst [vmem:[%s5891_s24 + $0x480] sm:$0xff] %v3427_v22  ;;  %v1385_v36 = vld [vmem:[%s5861_s6 + $0x4b8] sm:$0xff]  ;;  %v362_v37 = vld [vmem:[%s5853_s23 + $0x4c0] sm:$0xff] }
  0xc9   : > { %v3430_v34 = vadd.s32 %v2406_v23, %v357_v19  ;;  %v2409_v35 = vmul.u32 %v5869_v2, %v1384_v32  ;;  %v1386_v38 = vld [vmem:[%s5861_s6 + $0x4c0] sm:$0xff]  ;;  %4452 = vst [vmem:[%s5891_s24 + $0x488] sm:$0xff] %v3428_v27  ;;  %4453 = vst [vmem:[%s5891_s24 + $0x490] sm:$0xff] %v3429_v28  ;;  %v2410_v41 = vmul.u32 %v5869_v2, %v1385_v36  ;;  %v363_v43 = vld [vmem:[%s5853_s23 + $0x4c8] sm:$0xff] }
  0xca   : > { %v3431_v39 = vadd.s32 %v2407_v29, %v358_v21  ;;  %v3432_v40 = vadd.s32 %v2408_v30, %v359_v25  ;;  %v2411_v42 = vmul.u32 %v5869_v2, %v1386_v38  ;;  %v1387_v44 = vld [vmem:[%s5861_s6 + $0x4c8] sm:$0xff]  ;;  %v364_v45 = vld [vmem:[%s5853_s23 + $0x4d0] sm:$0xff]  ;;  %v365_v49 = vld [vmem:[%s5853_s23 + $0x4d8] sm:$0xff] }
  0xcb   : > { %4454 = vst [vmem:[%s5891_s24 + $0x498] sm:$0xff] %v3430_v34  ;;  %v3433_v46 = vadd.s32 %v2409_v35, %v360_v31  ;;  %v2412_v47 = vmul.u32 %v5869_v2, %v1387_v44  ;;  %v1388_v48 = vld [vmem:[%s5861_s6 + $0x4d0] sm:$0xff]  ;;  %v1389_v50 = vld [vmem:[%s5861_s6 + $0x4d8] sm:$0xff]  ;;  %v3434_v51 = vadd.s32 %v2410_v41, %v361_v33  ;;  %v366_v55 = vld [vmem:[%s5853_s23 + $0x4e0] sm:$0xff] }
  0xcc   : > { %4455 = vst [vmem:[%s5891_s24 + $0x4a0] sm:$0xff] %v3431_v39  ;;  %4456 = vst [vmem:[%s5891_s24 + $0x4a8] sm:$0xff] %v3432_v40  ;;  %v3435_v52 = vadd.s32 %v2411_v42, %v362_v37  ;;  %v2413_v53 = vmul.u32 %v5869_v2, %v1388_v48  ;;  %v2414_v54 = vmul.u32 %v5869_v2, %v1389_v50  ;;  %v1390_v56 = vld [vmem:[%s5861_s6 + $0x4e0] sm:$0xff]  ;;  %v367_v57 = vld [vmem:[%s5853_s23 + $0x4e8] sm:$0xff] }
  0xcd   : > { %4457 = vst [vmem:[%s5891_s24 + $0x4b0] sm:$0xff] %v3433_v46  ;;  %v3436_v58 = vadd.s32 %v2412_v47, %v363_v43  ;;  %v2415_v59 = vmul.u32 %v5869_v2, %v1390_v56  ;;  %v1391_v60 = vld [vmem:[%s5861_s6 + $0x4e8] sm:$0xff]  ;;  %v368_v61 = vld [vmem:[%s5853_s23 + $0x4f0] sm:$0xff]  ;;  %4458 = vst [vmem:[%s5891_s24 + $0x4b8] sm:$0xff] %v3434_v51 }
  0xce   : > { %v1392_v62 = vld [vmem:[%s5861_s6 + $0x4f0] sm:$0xff]  ;;  %4459 = vst [vmem:[%s5891_s24 + $0x4c0] sm:$0xff] %v3435_v52  ;;  %v3437_v63 = vadd.s32 %v2413_v53, %v364_v45  ;;  %v3438_v0 = vadd.s32 %v2414_v54, %v365_v49  ;;  %v2416_v1 = vmul.u32 %v5869_v2, %v1391_v60  ;;  %v369_v4 = vld [vmem:[%s5853_s23 + $0x4f8] sm:$0xff]  ;;  %v370_v6 = vld [vmem:[%s5853_s23 + $0x500] sm:$0xff] }
  0xcf   : > { %v2417_v3 = vmul.u32 %v5869_v2, %v1392_v62  ;;  %v1393_v5 = vld [vmem:[%s5861_s6 + $0x4f8] sm:$0xff]  ;;  %4460 = vst [vmem:[%s5891_s24 + $0x4c8] sm:$0xff] %v3436_v58  ;;  %v3439_v7 = vadd.s32 %v2415_v59, %v366_v55  ;;  %v1394_v9 = vld [vmem:[%s5861_s6 + $0x500] sm:$0xff]  ;;  %v371_v10 = vld [vmem:[%s5853_s23 + $0x508] sm:$0xff] }
  0xd0   : > { %v2418_v8 = vmul.u32 %v5869_v2, %v1393_v5  ;;  %v1395_v11 = vld [vmem:[%s5861_s6 + $0x508] sm:$0xff]  ;;  %4461 = vst [vmem:[%s5891_s24 + $0x4d0] sm:$0xff] %v3437_v63  ;;  %4462 = vst [vmem:[%s5891_s24 + $0x4d8] sm:$0xff] %v3438_v0  ;;  %v3440_v12 = vadd.s32 %v2416_v1, %v367_v57  ;;  %v2419_v14 = vmul.u32 %v5869_v2, %v1394_v9  ;;  %v372_v16 = vld [vmem:[%s5853_s23 + $0x510] sm:$0xff] }
  0xd1   : > { %v3441_v13 = vadd.s32 %v2417_v3, %v368_v61  ;;  %v2420_v15 = vmul.u32 %v5869_v2, %v1395_v11  ;;  %v1396_v17 = vld [vmem:[%s5861_s6 + $0x510] sm:$0xff]  ;;  %v373_v18 = vld [vmem:[%s5853_s23 + $0x518] sm:$0xff]  ;;  %4463 = vst [vmem:[%s5891_s24 + $0x4e0] sm:$0xff] %v3439_v7  ;;  %v374_v22 = vld [vmem:[%s5853_s23 + $0x520] sm:$0xff] }
  0xd2   : > { %v3442_v19 = vadd.s32 %v2418_v8, %v369_v4  ;;  %v2421_v20 = vmul.u32 %v5869_v2, %v1396_v17  ;;  %v1397_v21 = vld [vmem:[%s5861_s6 + $0x518] sm:$0xff]  ;;  %v1398_v23 = vld [vmem:[%s5861_s6 + $0x520] sm:$0xff]  ;;  %4464 = vst [vmem:[%s5891_s24 + $0x4e8] sm:$0xff] %v3440_v12  ;;  %v3443_v24 = vadd.s32 %v2419_v14, %v370_v6  ;;  %v375_v28 = vld [vmem:[%s5853_s23 + $0x528] sm:$0xff] }
  0xd3   : > { %4465 = vst [vmem:[%s5891_s24 + $0x4f0] sm:$0xff] %v3441_v13  ;;  %v3444_v25 = vadd.s32 %v2420_v15, %v371_v10  ;;  %v2422_v26 = vmul.u32 %v5869_v2, %v1397_v21  ;;  %v2423_v27 = vmul.u32 %v5869_v2, %v1398_v23  ;;  %v1399_v29 = vld [vmem:[%s5861_s6 + $0x528] sm:$0xff]  ;;  %v376_v30 = vld [vmem:[%s5853_s23 + $0x530] sm:$0xff]  ;;  %v377_v34 = vld [vmem:[%s5853_s23 + $0x538] sm:$0xff] }
  0xd4   : > { %4466 = vst [vmem:[%s5891_s24 + $0x4f8] sm:$0xff] %v3442_v19  ;;  %v3445_v31 = vadd.s32 %v2421_v20, %v372_v16  ;;  %v2424_v32 = vmul.u32 %v5869_v2, %v1399_v29  ;;  %v1400_v33 = vld [vmem:[%s5861_s6 + $0x530] sm:$0xff]  ;;  %v1401_v35 = vld [vmem:[%s5861_s6 + $0x538] sm:$0xff]  ;;  %4467 = vst [vmem:[%s5891_s24 + $0x500] sm:$0xff] %v3443_v24 }
  0xd5   : > { %4468 = vst [vmem:[%s5891_s24 + $0x508] sm:$0xff] %v3444_v25  ;;  %v3446_v36 = vadd.s32 %v2422_v26, %v373_v18  ;;  %v3447_v37 = vadd.s32 %v2423_v27, %v374_v22  ;;  %v2425_v38 = vmul.u32 %v5869_v2, %v1400_v33  ;;  %v2426_v39 = vmul.u32 %v5869_v2, %v1401_v35  ;;  %v378_v40 = vld [vmem:[%s5853_s23 + $0x540] sm:$0xff]  ;;  %v379_v42 = vld [vmem:[%s5853_s23 + $0x548] sm:$0xff]  ;;  %v380_v46 = vld [vmem:[%s5853_s23 + $0x550] sm:$0xff] }
  0xd6   : > { %v1402_v41 = vld [vmem:[%s5861_s6 + $0x540] sm:$0xff]  ;;  %4469 = vst [vmem:[%s5891_s24 + $0x510] sm:$0xff] %v3445_v31  ;;  %v3448_v43 = vadd.s32 %v2424_v32, %v375_v28  ;;  %v1403_v45 = vld [vmem:[%s5861_s6 + $0x548] sm:$0xff]  ;;  %v1404_v47 = vld [vmem:[%s5861_s6 + $0x550] sm:$0xff] }
  0xd7   : > { %v2427_v44 = vmul.u32 %v5869_v2, %v1402_v41  ;;  %4470 = vst [vmem:[%s5891_s24 + $0x518] sm:$0xff] %v3446_v36  ;;  %4471 = vst [vmem:[%s5891_s24 + $0x520] sm:$0xff] %v3447_v37  ;;  %v3449_v48 = vadd.s32 %v2425_v38, %v376_v30  ;;  %v3450_v49 = vadd.s32 %v2426_v39, %v377_v34  ;;  %v381_v52 = vld [vmem:[%s5853_s23 + $0x558] sm:$0xff]  ;;  %v382_v54 = vld [vmem:[%s5853_s23 + $0x560] sm:$0xff] }
  0xd8   : > { %v2428_v50 = vmul.u32 %v5869_v2, %v1403_v45  ;;  %v2429_v51 = vmul.u32 %v5869_v2, %v1404_v47  ;;  %v1405_v53 = vld [vmem:[%s5861_s6 + $0x558] sm:$0xff]  ;;  %4472 = vst [vmem:[%s5891_s24 + $0x528] sm:$0xff] %v3448_v43  ;;  %v1406_v57 = vld [vmem:[%s5861_s6 + $0x560] sm:$0xff]  ;;  %v383_v58 = vld [vmem:[%s5853_s23 + $0x568] sm:$0xff] }
  0xd9   : > { %v3451_v55 = vadd.s32 %v2427_v44, %v378_v40  ;;  %v2430_v56 = vmul.u32 %v5869_v2, %v1405_v53  ;;  %v1407_v59 = vld [vmem:[%s5861_s6 + $0x568] sm:$0xff]  ;;  %4473 = vst [vmem:[%s5891_s24 + $0x530] sm:$0xff] %v3449_v48  ;;  %4474 = vst [vmem:[%s5891_s24 + $0x538] sm:$0xff] %v3450_v49  ;;  %v2431_v62 = vmul.u32 %v5869_v2, %v1406_v57  ;;  %v384_v0 = vld [vmem:[%s5853_s23 + $0x570] sm:$0xff] }
  0xda   : > { %v3452_v60 = vadd.s32 %v2428_v50, %v379_v42  ;;  %v3453_v61 = vadd.s32 %v2429_v51, %v380_v46  ;;  %v2432_v63 = vmul.u32 %v5869_v2, %v1407_v59  ;;  %v1408_v1 = vld [vmem:[%s5861_s6 + $0x570] sm:$0xff]  ;;  %v385_v3 = vld [vmem:[%s5853_s23 + $0x578] sm:$0xff]  ;;  %v386_v7 = vld [vmem:[%s5853_s23 + $0x580] sm:$0xff] }
  0xdb   : > { %4475 = vst [vmem:[%s5891_s24 + $0x540] sm:$0xff] %v3451_v55  ;;  %v3454_v4 = vadd.s32 %v2430_v56, %v381_v52  ;;  %v2433_v5 = vmul.u32 %v5869_v2, %v1408_v1  ;;  %v1409_v6 = vld [vmem:[%s5861_s6 + $0x578] sm:$0xff]  ;;  %v1410_v8 = vld [vmem:[%s5861_s6 + $0x580] sm:$0xff]  ;;  %v3455_v9 = vadd.s32 %v2431_v62, %v382_v54  ;;  %v387_v13 = vld [vmem:[%s5853_s23 + $0x588] sm:$0xff] }
  0xdc   : > { %4476 = vst [vmem:[%s5891_s24 + $0x548] sm:$0xff] %v3452_v60  ;;  %4477 = vst [vmem:[%s5891_s24 + $0x550] sm:$0xff] %v3453_v61  ;;  %v3456_v10 = vadd.s32 %v2432_v63, %v383_v58  ;;  %v2434_v11 = vmul.u32 %v5869_v2, %v1409_v6  ;;  %v2435_v12 = vmul.u32 %v5869_v2, %v1410_v8  ;;  %v1411_v14 = vld [vmem:[%s5861_s6 + $0x588] sm:$0xff]  ;;  %v388_v15 = vld [vmem:[%s5853_s23 + $0x590] sm:$0xff] }
  0xdd   : > { %4478 = vst [vmem:[%s5891_s24 + $0x558] sm:$0xff] %v3454_v4  ;;  %v3457_v16 = vadd.s32 %v2433_v5, %v384_v0  ;;  %v2436_v17 = vmul.u32 %v5869_v2, %v1411_v14  ;;  %v1412_v18 = vld [vmem:[%s5861_s6 + $0x590] sm:$0xff]  ;;  %v389_v19 = vld [vmem:[%s5853_s23 + $0x598] sm:$0xff]  ;;  %4479 = vst [vmem:[%s5891_s24 + $0x560] sm:$0xff] %v3455_v9 }
  0xde   : > { %v1413_v20 = vld [vmem:[%s5861_s6 + $0x598] sm:$0xff]  ;;  %4480 = vst [vmem:[%s5891_s24 + $0x568] sm:$0xff] %v3456_v10  ;;  %v3458_v21 = vadd.s32 %v2434_v11, %v385_v3  ;;  %v3459_v22 = vadd.s32 %v2435_v12, %v386_v7  ;;  %v2437_v23 = vmul.u32 %v5869_v2, %v1412_v18  ;;  %v390_v25 = vld [vmem:[%s5853_s23 + $0x5a0] sm:$0xff]  ;;  %v391_v27 = vld [vmem:[%s5853_s23 + $0x5a8] sm:$0xff] }
  0xdf   : > { %v2438_v24 = vmul.u32 %v5869_v2, %v1413_v20  ;;  %v1414_v26 = vld [vmem:[%s5861_s6 + $0x5a0] sm:$0xff]  ;;  %4481 = vst [vmem:[%s5891_s24 + $0x570] sm:$0xff] %v3457_v16  ;;  %v3460_v28 = vadd.s32 %v2436_v17, %v387_v13  ;;  %v1415_v30 = vld [vmem:[%s5861_s6 + $0x5a8] sm:$0xff]  ;;  %v392_v31 = vld [vmem:[%s5853_s23 + $0x5b0] sm:$0xff] }
  0xe0   : > { %v2439_v29 = vmul.u32 %v5869_v2, %v1414_v26  ;;  %v1416_v32 = vld [vmem:[%s5861_s6 + $0x5b0] sm:$0xff]  ;;  %4482 = vst [vmem:[%s5891_s24 + $0x578] sm:$0xff] %v3458_v21  ;;  %4483 = vst [vmem:[%s5891_s24 + $0x580] sm:$0xff] %v3459_v22  ;;  %v3461_v33 = vadd.s32 %v2437_v23, %v388_v15  ;;  %v2440_v35 = vmul.u32 %v5869_v2, %v1415_v30  ;;  %v393_v37 = vld [vmem:[%s5853_s23 + $0x5b8] sm:$0xff] }
  0xe1   : > { %v3462_v34 = vadd.s32 %v2438_v24, %v389_v19  ;;  %v2441_v36 = vmul.u32 %v5869_v2, %v1416_v32  ;;  %v1417_v38 = vld [vmem:[%s5861_s6 + $0x5b8] sm:$0xff]  ;;  %v394_v39 = vld [vmem:[%s5853_s23 + $0x5c0] sm:$0xff]  ;;  %4484 = vst [vmem:[%s5891_s24 + $0x588] sm:$0xff] %v3460_v28  ;;  %v395_v43 = vld [vmem:[%s5853_s23 + $0x5c8] sm:$0xff] }
  0xe2   : > { %v3463_v40 = vadd.s32 %v2439_v29, %v390_v25  ;;  %v2442_v41 = vmul.u32 %v5869_v2, %v1417_v38  ;;  %v1418_v42 = vld [vmem:[%s5861_s6 + $0x5c0] sm:$0xff]  ;;  %v1419_v44 = vld [vmem:[%s5861_s6 + $0x5c8] sm:$0xff]  ;;  %4485 = vst [vmem:[%s5891_s24 + $0x590] sm:$0xff] %v3461_v33  ;;  %v3464_v45 = vadd.s32 %v2440_v35, %v391_v27  ;;  %v396_v49 = vld [vmem:[%s5853_s23 + $0x5d0] sm:$0xff] }
  0xe3   : > { %4486 = vst [vmem:[%s5891_s24 + $0x598] sm:$0xff] %v3462_v34  ;;  %v3465_v46 = vadd.s32 %v2441_v36, %v392_v31  ;;  %v2443_v47 = vmul.u32 %v5869_v2, %v1418_v42  ;;  %v2444_v48 = vmul.u32 %v5869_v2, %v1419_v44  ;;  %v1420_v50 = vld [vmem:[%s5861_s6 + $0x5d0] sm:$0xff]  ;;  %v397_v51 = vld [vmem:[%s5853_s23 + $0x5d8] sm:$0xff]  ;;  %v398_v55 = vld [vmem:[%s5853_s23 + $0x5e0] sm:$0xff] }
  0xe4   : > { %4487 = vst [vmem:[%s5891_s24 + $0x5a0] sm:$0xff] %v3463_v40  ;;  %v3466_v52 = vadd.s32 %v2442_v41, %v393_v37  ;;  %v2445_v53 = vmul.u32 %v5869_v2, %v1420_v50  ;;  %v1421_v54 = vld [vmem:[%s5861_s6 + $0x5d8] sm:$0xff]  ;;  %v1422_v56 = vld [vmem:[%s5861_s6 + $0x5e0] sm:$0xff]  ;;  %4488 = vst [vmem:[%s5891_s24 + $0x5a8] sm:$0xff] %v3464_v45 }
  0xe5   : > { %4489 = vst [vmem:[%s5891_s24 + $0x5b0] sm:$0xff] %v3465_v46  ;;  %v3467_v57 = vadd.s32 %v2443_v47, %v394_v39  ;;  %v3468_v58 = vadd.s32 %v2444_v48, %v395_v43  ;;  %v2446_v59 = vmul.u32 %v5869_v2, %v1421_v54  ;;  %v2447_v60 = vmul.u32 %v5869_v2, %v1422_v56  ;;  %v399_v61 = vld [vmem:[%s5853_s23 + $0x5e8] sm:$0xff]  ;;  %v400_v63 = vld [vmem:[%s5853_s23 + $0x5f0] sm:$0xff]  ;;  %v401_v4 = vld [vmem:[%s5853_s23 + $0x5f8] sm:$0xff] }
  0xe6   : > { %v1423_v62 = vld [vmem:[%s5861_s6 + $0x5e8] sm:$0xff]  ;;  %4490 = vst [vmem:[%s5891_s24 + $0x5b8] sm:$0xff] %v3466_v52  ;;  %v3469_v0 = vadd.s32 %v2445_v53, %v396_v49  ;;  %v1424_v3 = vld [vmem:[%s5861_s6 + $0x5f0] sm:$0xff]  ;;  %v1425_v5 = vld [vmem:[%s5861_s6 + $0x5f8] sm:$0xff] }
  0xe7   : > { %v2448_v1 = vmul.u32 %v5869_v2, %v1423_v62  ;;  %4491 = vst [vmem:[%s5891_s24 + $0x5c0] sm:$0xff] %v3467_v57  ;;  %4492 = vst [vmem:[%s5891_s24 + $0x5c8] sm:$0xff] %v3468_v58  ;;  %v3470_v6 = vadd.s32 %v2446_v59, %v397_v51  ;;  %v3471_v7 = vadd.s32 %v2447_v60, %v398_v55  ;;  %v402_v10 = vld [vmem:[%s5853_s23 + $0x600] sm:$0xff]  ;;  %v403_v12 = vld [vmem:[%s5853_s23 + $0x608] sm:$0xff] }
  0xe8   : > { %v2449_v8 = vmul.u32 %v5869_v2, %v1424_v3  ;;  %v2450_v9 = vmul.u32 %v5869_v2, %v1425_v5  ;;  %v1426_v11 = vld [vmem:[%s5861_s6 + $0x600] sm:$0xff]  ;;  %4493 = vst [vmem:[%s5891_s24 + $0x5d0] sm:$0xff] %v3469_v0  ;;  %v1427_v15 = vld [vmem:[%s5861_s6 + $0x608] sm:$0xff]  ;;  %v404_v16 = vld [vmem:[%s5853_s23 + $0x610] sm:$0xff] }
  0xe9   : > { %v3472_v13 = vadd.s32 %v2448_v1, %v399_v61  ;;  %v2451_v14 = vmul.u32 %v5869_v2, %v1426_v11  ;;  %v1428_v17 = vld [vmem:[%s5861_s6 + $0x610] sm:$0xff]  ;;  %4494 = vst [vmem:[%s5891_s24 + $0x5d8] sm:$0xff] %v3470_v6  ;;  %4495 = vst [vmem:[%s5891_s24 + $0x5e0] sm:$0xff] %v3471_v7  ;;  %v2452_v20 = vmul.u32 %v5869_v2, %v1427_v15  ;;  %v405_v22 = vld [vmem:[%s5853_s23 + $0x618] sm:$0xff] }
  0xea   : > { %v3473_v18 = vadd.s32 %v2449_v8, %v400_v63  ;;  %v3474_v19 = vadd.s32 %v2450_v9, %v401_v4  ;;  %v2453_v21 = vmul.u32 %v5869_v2, %v1428_v17  ;;  %v1429_v23 = vld [vmem:[%s5861_s6 + $0x618] sm:$0xff]  ;;  %v406_v24 = vld [vmem:[%s5853_s23 + $0x620] sm:$0xff]  ;;  %v407_v28 = vld [vmem:[%s5853_s23 + $0x628] sm:$0xff] }
  0xeb   : > { %4496 = vst [vmem:[%s5891_s24 + $0x5e8] sm:$0xff] %v3472_v13  ;;  %v3475_v25 = vadd.s32 %v2451_v14, %v402_v10  ;;  %v2454_v26 = vmul.u32 %v5869_v2, %v1429_v23  ;;  %v1430_v27 = vld [vmem:[%s5861_s6 + $0x620] sm:$0xff]  ;;  %v1431_v29 = vld [vmem:[%s5861_s6 + $0x628] sm:$0xff]  ;;  %v3476_v30 = vadd.s32 %v2452_v20, %v403_v12  ;;  %v408_v34 = vld [vmem:[%s5853_s23 + $0x630] sm:$0xff] }
  0xec   : > { %4497 = vst [vmem:[%s5891_s24 + $0x5f0] sm:$0xff] %v3473_v18  ;;  %4498 = vst [vmem:[%s5891_s24 + $0x5f8] sm:$0xff] %v3474_v19  ;;  %v3477_v31 = vadd.s32 %v2453_v21, %v404_v16  ;;  %v2455_v32 = vmul.u32 %v5869_v2, %v1430_v27  ;;  %v2456_v33 = vmul.u32 %v5869_v2, %v1431_v29  ;;  %v1432_v35 = vld [vmem:[%s5861_s6 + $0x630] sm:$0xff]  ;;  %v409_v36 = vld [vmem:[%s5853_s23 + $0x638] sm:$0xff] }
  0xed   : > { %4499 = vst [vmem:[%s5891_s24 + $0x600] sm:$0xff] %v3475_v25  ;;  %v3478_v37 = vadd.s32 %v2454_v26, %v405_v22  ;;  %v2457_v38 = vmul.u32 %v5869_v2, %v1432_v35  ;;  %v1433_v39 = vld [vmem:[%s5861_s6 + $0x638] sm:$0xff]  ;;  %v410_v40 = vld [vmem:[%s5853_s23 + $0x640] sm:$0xff]  ;;  %4500 = vst [vmem:[%s5891_s24 + $0x608] sm:$0xff] %v3476_v30 }
  0xee   : > { %v1434_v41 = vld [vmem:[%s5861_s6 + $0x640] sm:$0xff]  ;;  %4501 = vst [vmem:[%s5891_s24 + $0x610] sm:$0xff] %v3477_v31  ;;  %v3479_v42 = vadd.s32 %v2455_v32, %v406_v24  ;;  %v3480_v43 = vadd.s32 %v2456_v33, %v407_v28  ;;  %v2458_v44 = vmul.u32 %v5869_v2, %v1433_v39  ;;  %v411_v46 = vld [vmem:[%s5853_s23 + $0x648] sm:$0xff]  ;;  %v412_v48 = vld [vmem:[%s5853_s23 + $0x650] sm:$0xff] }
  0xef   : > { %v2459_v45 = vmul.u32 %v5869_v2, %v1434_v41  ;;  %v1435_v47 = vld [vmem:[%s5861_s6 + $0x648] sm:$0xff]  ;;  %4502 = vst [vmem:[%s5891_s24 + $0x618] sm:$0xff] %v3478_v37  ;;  %v3481_v49 = vadd.s32 %v2457_v38, %v408_v34  ;;  %v1436_v51 = vld [vmem:[%s5861_s6 + $0x650] sm:$0xff]  ;;  %v413_v52 = vld [vmem:[%s5853_s23 + $0x658] sm:$0xff] }
  0xf0   : > { %v2460_v50 = vmul.u32 %v5869_v2, %v1435_v47  ;;  %v1437_v53 = vld [vmem:[%s5861_s6 + $0x658] sm:$0xff]  ;;  %4503 = vst [vmem:[%s5891_s24 + $0x620] sm:$0xff] %v3479_v42  ;;  %4504 = vst [vmem:[%s5891_s24 + $0x628] sm:$0xff] %v3480_v43  ;;  %v3482_v54 = vadd.s32 %v2458_v44, %v409_v36  ;;  %v2461_v56 = vmul.u32 %v5869_v2, %v1436_v51  ;;  %v414_v58 = vld [vmem:[%s5853_s23 + $0x660] sm:$0xff] }
  0xf1   : > { %v3483_v55 = vadd.s32 %v2459_v45, %v410_v40  ;;  %v2462_v57 = vmul.u32 %v5869_v2, %v1437_v53  ;;  %v1438_v59 = vld [vmem:[%s5861_s6 + $0x660] sm:$0xff]  ;;  %v415_v60 = vld [vmem:[%s5853_s23 + $0x668] sm:$0xff]  ;;  %4505 = vst [vmem:[%s5891_s24 + $0x630] sm:$0xff] %v3481_v49  ;;  %v416_v0 = vld [vmem:[%s5853_s23 + $0x670] sm:$0xff] }
  0xf2   : > { %v3484_v61 = vadd.s32 %v2460_v50, %v411_v46  ;;  %v2463_v62 = vmul.u32 %v5869_v2, %v1438_v59  ;;  %v1439_v63 = vld [vmem:[%s5861_s6 + $0x668] sm:$0xff]  ;;  %v1440_v1 = vld [vmem:[%s5861_s6 + $0x670] sm:$0xff]  ;;  %4506 = vst [vmem:[%s5891_s24 + $0x638] sm:$0xff] %v3482_v54  ;;  %v3485_v3 = vadd.s32 %v2461_v56, %v412_v48  ;;  %v417_v7 = vld [vmem:[%s5853_s23 + $0x678] sm:$0xff] }
  0xf3   : > { %4507 = vst [vmem:[%s5891_s24 + $0x640] sm:$0xff] %v3483_v55  ;;  %v3486_v4 = vadd.s32 %v2462_v57, %v413_v52  ;;  %v2464_v5 = vmul.u32 %v5869_v2, %v1439_v63  ;;  %v2465_v6 = vmul.u32 %v5869_v2, %v1440_v1  ;;  %v1441_v8 = vld [vmem:[%s5861_s6 + $0x678] sm:$0xff]  ;;  %v418_v9 = vld [vmem:[%s5853_s23 + $0x680] sm:$0xff]  ;;  %v419_v13 = vld [vmem:[%s5853_s23 + $0x688] sm:$0xff] }
  0xf4   : > { %4508 = vst [vmem:[%s5891_s24 + $0x648] sm:$0xff] %v3484_v61  ;;  %v3487_v10 = vadd.s32 %v2463_v62, %v414_v58  ;;  %v2466_v11 = vmul.u32 %v5869_v2, %v1441_v8  ;;  %v1442_v12 = vld [vmem:[%s5861_s6 + $0x680] sm:$0xff]  ;;  %v1443_v14 = vld [vmem:[%s5861_s6 + $0x688] sm:$0xff]  ;;  %4509 = vst [vmem:[%s5891_s24 + $0x650] sm:$0xff] %v3485_v3 }
  0xf5   : > { %4510 = vst [vmem:[%s5891_s24 + $0x658] sm:$0xff] %v3486_v4  ;;  %v3488_v15 = vadd.s32 %v2464_v5, %v415_v60  ;;  %v3489_v16 = vadd.s32 %v2465_v6, %v416_v0  ;;  %v2467_v17 = vmul.u32 %v5869_v2, %v1442_v12  ;;  %v2468_v18 = vmul.u32 %v5869_v2, %v1443_v14  ;;  %v420_v19 = vld [vmem:[%s5853_s23 + $0x690] sm:$0xff]  ;;  %v421_v21 = vld [vmem:[%s5853_s23 + $0x698] sm:$0xff]  ;;  %v422_v25 = vld [vmem:[%s5853_s23 + $0x6a0] sm:$0xff] }
  0xf6   : > { %v1444_v20 = vld [vmem:[%s5861_s6 + $0x690] sm:$0xff]  ;;  %4511 = vst [vmem:[%s5891_s24 + $0x660] sm:$0xff] %v3487_v10  ;;  %v3490_v22 = vadd.s32 %v2466_v11, %v417_v7  ;;  %v1445_v24 = vld [vmem:[%s5861_s6 + $0x698] sm:$0xff]  ;;  %v1446_v26 = vld [vmem:[%s5861_s6 + $0x6a0] sm:$0xff] }
  0xf7   : > { %v2469_v23 = vmul.u32 %v5869_v2, %v1444_v20  ;;  %4512 = vst [vmem:[%s5891_s24 + $0x668] sm:$0xff] %v3488_v15  ;;  %4513 = vst [vmem:[%s5891_s24 + $0x670] sm:$0xff] %v3489_v16  ;;  %v3491_v27 = vadd.s32 %v2467_v17, %v418_v9  ;;  %v3492_v28 = vadd.s32 %v2468_v18, %v419_v13  ;;  %v423_v31 = vld [vmem:[%s5853_s23 + $0x6a8] sm:$0xff]  ;;  %v424_v33 = vld [vmem:[%s5853_s23 + $0x6b0] sm:$0xff] }
  0xf8   : > { %v2470_v29 = vmul.u32 %v5869_v2, %v1445_v24  ;;  %v2471_v30 = vmul.u32 %v5869_v2, %v1446_v26  ;;  %v1447_v32 = vld [vmem:[%s5861_s6 + $0x6a8] sm:$0xff]  ;;  %4514 = vst [vmem:[%s5891_s24 + $0x678] sm:$0xff] %v3490_v22  ;;  %v1448_v36 = vld [vmem:[%s5861_s6 + $0x6b0] sm:$0xff]  ;;  %v425_v37 = vld [vmem:[%s5853_s23 + $0x6b8] sm:$0xff] }
  0xf9   : > { %v3493_v34 = vadd.s32 %v2469_v23, %v420_v19  ;;  %v2472_v35 = vmul.u32 %v5869_v2, %v1447_v32  ;;  %v1449_v38 = vld [vmem:[%s5861_s6 + $0x6b8] sm:$0xff]  ;;  %4515 = vst [vmem:[%s5891_s24 + $0x680] sm:$0xff] %v3491_v27  ;;  %4516 = vst [vmem:[%s5891_s24 + $0x688] sm:$0xff] %v3492_v28  ;;  %v2473_v41 = vmul.u32 %v5869_v2, %v1448_v36  ;;  %v426_v43 = vld [vmem:[%s5853_s23 + $0x6c0] sm:$0xff] }
  0xfa   : > { %v3494_v39 = vadd.s32 %v2470_v29, %v421_v21  ;;  %v3495_v40 = vadd.s32 %v2471_v30, %v422_v25  ;;  %v2474_v42 = vmul.u32 %v5869_v2, %v1449_v38  ;;  %v1450_v44 = vld [vmem:[%s5861_s6 + $0x6c0] sm:$0xff]  ;;  %v427_v45 = vld [vmem:[%s5853_s23 + $0x6c8] sm:$0xff]  ;;  %v428_v49 = vld [vmem:[%s5853_s23 + $0x6d0] sm:$0xff] }
  0xfb   : > { %4517 = vst [vmem:[%s5891_s24 + $0x690] sm:$0xff] %v3493_v34  ;;  %v3496_v46 = vadd.s32 %v2472_v35, %v423_v31  ;;  %v2475_v47 = vmul.u32 %v5869_v2, %v1450_v44  ;;  %v1451_v48 = vld [vmem:[%s5861_s6 + $0x6c8] sm:$0xff]  ;;  %v1452_v50 = vld [vmem:[%s5861_s6 + $0x6d0] sm:$0xff]  ;;  %v3497_v51 = vadd.s32 %v2473_v41, %v424_v33  ;;  %v429_v55 = vld [vmem:[%s5853_s23 + $0x6d8] sm:$0xff] }
  0xfc   : > { %4518 = vst [vmem:[%s5891_s24 + $0x698] sm:$0xff] %v3494_v39  ;;  %4519 = vst [vmem:[%s5891_s24 + $0x6a0] sm:$0xff] %v3495_v40  ;;  %v3498_v52 = vadd.s32 %v2474_v42, %v425_v37  ;;  %v2476_v53 = vmul.u32 %v5869_v2, %v1451_v48  ;;  %v2477_v54 = vmul.u32 %v5869_v2, %v1452_v50  ;;  %v1453_v56 = vld [vmem:[%s5861_s6 + $0x6d8] sm:$0xff]  ;;  %v430_v57 = vld [vmem:[%s5853_s23 + $0x6e0] sm:$0xff] }
  0xfd   : > { %4520 = vst [vmem:[%s5891_s24 + $0x6a8] sm:$0xff] %v3496_v46  ;;  %v3499_v58 = vadd.s32 %v2475_v47, %v426_v43  ;;  %v2478_v59 = vmul.u32 %v5869_v2, %v1453_v56  ;;  %v1454_v60 = vld [vmem:[%s5861_s6 + $0x6e0] sm:$0xff]  ;;  %v431_v61 = vld [vmem:[%s5853_s23 + $0x6e8] sm:$0xff]  ;;  %4521 = vst [vmem:[%s5891_s24 + $0x6b0] sm:$0xff] %v3497_v51 }
  0xfe   : > { %v1455_v62 = vld [vmem:[%s5861_s6 + $0x6e8] sm:$0xff]  ;;  %4522 = vst [vmem:[%s5891_s24 + $0x6b8] sm:$0xff] %v3498_v52  ;;  %v3500_v63 = vadd.s32 %v2476_v53, %v427_v45  ;;  %v3501_v0 = vadd.s32 %v2477_v54, %v428_v49  ;;  %v2479_v1 = vmul.u32 %v5869_v2, %v1454_v60  ;;  %v432_v4 = vld [vmem:[%s5853_s23 + $0x6f0] sm:$0xff]  ;;  %v433_v6 = vld [vmem:[%s5853_s23 + $0x6f8] sm:$0xff] }
  0xff   : > { %v2480_v3 = vmul.u32 %v5869_v2, %v1455_v62  ;;  %v1456_v5 = vld [vmem:[%s5861_s6 + $0x6f0] sm:$0xff]  ;;  %4523 = vst [vmem:[%s5891_s24 + $0x6c0] sm:$0xff] %v3499_v58  ;;  %v3502_v7 = vadd.s32 %v2478_v59, %v429_v55  ;;  %v1457_v9 = vld [vmem:[%s5861_s6 + $0x6f8] sm:$0xff]  ;;  %v434_v10 = vld [vmem:[%s5853_s23 + $0x700] sm:$0xff] }
 0x100   : > { %v2481_v8 = vmul.u32 %v5869_v2, %v1456_v5  ;;  %v1458_v11 = vld [vmem:[%s5861_s6 + $0x700] sm:$0xff]  ;;  %4524 = vst [vmem:[%s5891_s24 + $0x6c8] sm:$0xff] %v3500_v63  ;;  %4525 = vst [vmem:[%s5891_s24 + $0x6d0] sm:$0xff] %v3501_v0  ;;  %v3503_v12 = vadd.s32 %v2479_v1, %v430_v57  ;;  %v2482_v14 = vmul.u32 %v5869_v2, %v1457_v9  ;;  %v435_v16 = vld [vmem:[%s5853_s23 + $0x708] sm:$0xff] }
 0x101   : > { %v3504_v13 = vadd.s32 %v2480_v3, %v431_v61  ;;  %v2483_v15 = vmul.u32 %v5869_v2, %v1458_v11  ;;  %v1459_v17 = vld [vmem:[%s5861_s6 + $0x708] sm:$0xff]  ;;  %v436_v18 = vld [vmem:[%s5853_s23 + $0x710] sm:$0xff]  ;;  %4526 = vst [vmem:[%s5891_s24 + $0x6d8] sm:$0xff] %v3502_v7  ;;  %v437_v22 = vld [vmem:[%s5853_s23 + $0x718] sm:$0xff] }
 0x102   : > { %v3505_v19 = vadd.s32 %v2481_v8, %v432_v4  ;;  %v2484_v20 = vmul.u32 %v5869_v2, %v1459_v17  ;;  %v1460_v21 = vld [vmem:[%s5861_s6 + $0x710] sm:$0xff]  ;;  %v1461_v23 = vld [vmem:[%s5861_s6 + $0x718] sm:$0xff]  ;;  %4527 = vst [vmem:[%s5891_s24 + $0x6e0] sm:$0xff] %v3503_v12  ;;  %v3506_v24 = vadd.s32 %v2482_v14, %v433_v6  ;;  %v438_v28 = vld [vmem:[%s5853_s23 + $0x720] sm:$0xff] }
 0x103   : > { %4528 = vst [vmem:[%s5891_s24 + $0x6e8] sm:$0xff] %v3504_v13  ;;  %v3507_v25 = vadd.s32 %v2483_v15, %v434_v10  ;;  %v2485_v26 = vmul.u32 %v5869_v2, %v1460_v21  ;;  %v2486_v27 = vmul.u32 %v5869_v2, %v1461_v23  ;;  %v1462_v29 = vld [vmem:[%s5861_s6 + $0x720] sm:$0xff]  ;;  %v439_v30 = vld [vmem:[%s5853_s23 + $0x728] sm:$0xff]  ;;  %v440_v34 = vld [vmem:[%s5853_s23 + $0x730] sm:$0xff] }
 0x104   : > { %4529 = vst [vmem:[%s5891_s24 + $0x6f0] sm:$0xff] %v3505_v19  ;;  %v3508_v31 = vadd.s32 %v2484_v20, %v435_v16  ;;  %v2487_v32 = vmul.u32 %v5869_v2, %v1462_v29  ;;  %v1463_v33 = vld [vmem:[%s5861_s6 + $0x728] sm:$0xff]  ;;  %v1464_v35 = vld [vmem:[%s5861_s6 + $0x730] sm:$0xff]  ;;  %4530 = vst [vmem:[%s5891_s24 + $0x6f8] sm:$0xff] %v3506_v24 }
 0x105   : > { %4531 = vst [vmem:[%s5891_s24 + $0x700] sm:$0xff] %v3507_v25  ;;  %v3509_v36 = vadd.s32 %v2485_v26, %v436_v18  ;;  %v3510_v37 = vadd.s32 %v2486_v27, %v437_v22  ;;  %v2488_v38 = vmul.u32 %v5869_v2, %v1463_v33  ;;  %v2489_v39 = vmul.u32 %v5869_v2, %v1464_v35  ;;  %v441_v40 = vld [vmem:[%s5853_s23 + $0x738] sm:$0xff]  ;;  %v442_v42 = vld [vmem:[%s5853_s23 + $0x740] sm:$0xff]  ;;  %v443_v46 = vld [vmem:[%s5853_s23 + $0x748] sm:$0xff] }
 0x106   : > { %v1465_v41 = vld [vmem:[%s5861_s6 + $0x738] sm:$0xff]  ;;  %4532 = vst [vmem:[%s5891_s24 + $0x708] sm:$0xff] %v3508_v31  ;;  %v3511_v43 = vadd.s32 %v2487_v32, %v438_v28  ;;  %v1466_v45 = vld [vmem:[%s5861_s6 + $0x740] sm:$0xff]  ;;  %v1467_v47 = vld [vmem:[%s5861_s6 + $0x748] sm:$0xff] }
 0x107   : > { %v2490_v44 = vmul.u32 %v5869_v2, %v1465_v41  ;;  %4533 = vst [vmem:[%s5891_s24 + $0x710] sm:$0xff] %v3509_v36  ;;  %4534 = vst [vmem:[%s5891_s24 + $0x718] sm:$0xff] %v3510_v37  ;;  %v3512_v48 = vadd.s32 %v2488_v38, %v439_v30  ;;  %v3513_v49 = vadd.s32 %v2489_v39, %v440_v34  ;;  %v444_v52 = vld [vmem:[%s5853_s23 + $0x750] sm:$0xff]  ;;  %v445_v54 = vld [vmem:[%s5853_s23 + $0x758] sm:$0xff] }
 0x108   : > { %v2491_v50 = vmul.u32 %v5869_v2, %v1466_v45  ;;  %v2492_v51 = vmul.u32 %v5869_v2, %v1467_v47  ;;  %v1468_v53 = vld [vmem:[%s5861_s6 + $0x750] sm:$0xff]  ;;  %4535 = vst [vmem:[%s5891_s24 + $0x720] sm:$0xff] %v3511_v43  ;;  %v1469_v57 = vld [vmem:[%s5861_s6 + $0x758] sm:$0xff]  ;;  %v446_v58 = vld [vmem:[%s5853_s23 + $0x760] sm:$0xff] }
 0x109   : > { %v3514_v55 = vadd.s32 %v2490_v44, %v441_v40  ;;  %v2493_v56 = vmul.u32 %v5869_v2, %v1468_v53  ;;  %v1470_v59 = vld [vmem:[%s5861_s6 + $0x760] sm:$0xff]  ;;  %4536 = vst [vmem:[%s5891_s24 + $0x728] sm:$0xff] %v3512_v48  ;;  %4537 = vst [vmem:[%s5891_s24 + $0x730] sm:$0xff] %v3513_v49  ;;  %v2494_v62 = vmul.u32 %v5869_v2, %v1469_v57  ;;  %v447_v0 = vld [vmem:[%s5853_s23 + $0x768] sm:$0xff] }
 0x10a   : > { %v3515_v60 = vadd.s32 %v2491_v50, %v442_v42  ;;  %v3516_v61 = vadd.s32 %v2492_v51, %v443_v46  ;;  %v2495_v63 = vmul.u32 %v5869_v2, %v1470_v59  ;;  %v1471_v1 = vld [vmem:[%s5861_s6 + $0x768] sm:$0xff]  ;;  %v448_v3 = vld [vmem:[%s5853_s23 + $0x770] sm:$0xff]  ;;  %v449_v7 = vld [vmem:[%s5853_s23 + $0x778] sm:$0xff] }
 0x10b   : > { %4538 = vst [vmem:[%s5891_s24 + $0x738] sm:$0xff] %v3514_v55  ;;  %v3517_v4 = vadd.s32 %v2493_v56, %v444_v52  ;;  %v2496_v5 = vmul.u32 %v5869_v2, %v1471_v1  ;;  %v1472_v6 = vld [vmem:[%s5861_s6 + $0x770] sm:$0xff]  ;;  %v1473_v8 = vld [vmem:[%s5861_s6 + $0x778] sm:$0xff]  ;;  %v3518_v9 = vadd.s32 %v2494_v62, %v445_v54  ;;  %v450_v13 = vld [vmem:[%s5853_s23 + $0x780] sm:$0xff] }
 0x10c   : > { %4539 = vst [vmem:[%s5891_s24 + $0x740] sm:$0xff] %v3515_v60  ;;  %4540 = vst [vmem:[%s5891_s24 + $0x748] sm:$0xff] %v3516_v61  ;;  %v3519_v10 = vadd.s32 %v2495_v63, %v446_v58  ;;  %v2497_v11 = vmul.u32 %v5869_v2, %v1472_v6  ;;  %v2498_v12 = vmul.u32 %v5869_v2, %v1473_v8  ;;  %v1474_v14 = vld [vmem:[%s5861_s6 + $0x780] sm:$0xff]  ;;  %v451_v15 = vld [vmem:[%s5853_s23 + $0x788] sm:$0xff] }
 0x10d   : > { %4541 = vst [vmem:[%s5891_s24 + $0x750] sm:$0xff] %v3517_v4  ;;  %v3520_v16 = vadd.s32 %v2496_v5, %v447_v0  ;;  %v2499_v17 = vmul.u32 %v5869_v2, %v1474_v14  ;;  %v1475_v18 = vld [vmem:[%s5861_s6 + $0x788] sm:$0xff]  ;;  %v452_v19 = vld [vmem:[%s5853_s23 + $0x790] sm:$0xff]  ;;  %4542 = vst [vmem:[%s5891_s24 + $0x758] sm:$0xff] %v3518_v9 }
 0x10e   : > { %v1476_v20 = vld [vmem:[%s5861_s6 + $0x790] sm:$0xff]  ;;  %4543 = vst [vmem:[%s5891_s24 + $0x760] sm:$0xff] %v3519_v10  ;;  %v3521_v21 = vadd.s32 %v2497_v11, %v448_v3  ;;  %v3522_v22 = vadd.s32 %v2498_v12, %v449_v7  ;;  %v2500_v23 = vmul.u32 %v5869_v2, %v1475_v18  ;;  %v453_v25 = vld [vmem:[%s5853_s23 + $0x798] sm:$0xff]  ;;  %v454_v27 = vld [vmem:[%s5853_s23 + $0x7a0] sm:$0xff] }
 0x10f   : > { %v2501_v24 = vmul.u32 %v5869_v2, %v1476_v20  ;;  %v1477_v26 = vld [vmem:[%s5861_s6 + $0x798] sm:$0xff]  ;;  %4544 = vst [vmem:[%s5891_s24 + $0x768] sm:$0xff] %v3520_v16  ;;  %v3523_v28 = vadd.s32 %v2499_v17, %v450_v13  ;;  %v1478_v30 = vld [vmem:[%s5861_s6 + $0x7a0] sm:$0xff]  ;;  %v455_v31 = vld [vmem:[%s5853_s23 + $0x7a8] sm:$0xff] }
 0x110   : > { %v2502_v29 = vmul.u32 %v5869_v2, %v1477_v26  ;;  %v1479_v32 = vld [vmem:[%s5861_s6 + $0x7a8] sm:$0xff]  ;;  %4545 = vst [vmem:[%s5891_s24 + $0x770] sm:$0xff] %v3521_v21  ;;  %4546 = vst [vmem:[%s5891_s24 + $0x778] sm:$0xff] %v3522_v22  ;;  %v3524_v33 = vadd.s32 %v2500_v23, %v451_v15  ;;  %v2503_v35 = vmul.u32 %v5869_v2, %v1478_v30  ;;  %v456_v37 = vld [vmem:[%s5853_s23 + $0x7b0] sm:$0xff] }
 0x111   : > { %v3525_v34 = vadd.s32 %v2501_v24, %v452_v19  ;;  %v2504_v36 = vmul.u32 %v5869_v2, %v1479_v32  ;;  %v1480_v38 = vld [vmem:[%s5861_s6 + $0x7b0] sm:$0xff]  ;;  %v457_v39 = vld [vmem:[%s5853_s23 + $0x7b8] sm:$0xff]  ;;  %4547 = vst [vmem:[%s5891_s24 + $0x780] sm:$0xff] %v3523_v28  ;;  %v458_v43 = vld [vmem:[%s5853_s23 + $0x7c0] sm:$0xff] }
 0x112   : > { %v3526_v40 = vadd.s32 %v2502_v29, %v453_v25  ;;  %v2505_v41 = vmul.u32 %v5869_v2, %v1480_v38  ;;  %v1481_v42 = vld [vmem:[%s5861_s6 + $0x7b8] sm:$0xff]  ;;  %v1482_v44 = vld [vmem:[%s5861_s6 + $0x7c0] sm:$0xff]  ;;  %4548 = vst [vmem:[%s5891_s24 + $0x788] sm:$0xff] %v3524_v33  ;;  %v3527_v45 = vadd.s32 %v2503_v35, %v454_v27  ;;  %v459_v49 = vld [vmem:[%s5853_s23 + $0x7c8] sm:$0xff] }
 0x113   : > { %4549 = vst [vmem:[%s5891_s24 + $0x790] sm:$0xff] %v3525_v34  ;;  %v3528_v46 = vadd.s32 %v2504_v36, %v455_v31  ;;  %v2506_v47 = vmul.u32 %v5869_v2, %v1481_v42  ;;  %v2507_v48 = vmul.u32 %v5869_v2, %v1482_v44  ;;  %v1483_v50 = vld [vmem:[%s5861_s6 + $0x7c8] sm:$0xff]  ;;  %v460_v51 = vld [vmem:[%s5853_s23 + $0x7d0] sm:$0xff]  ;;  %v461_v55 = vld [vmem:[%s5853_s23 + $0x7d8] sm:$0xff] }
 0x114   : > { %4550 = vst [vmem:[%s5891_s24 + $0x798] sm:$0xff] %v3526_v40  ;;  %v3529_v52 = vadd.s32 %v2505_v41, %v456_v37  ;;  %v2508_v53 = vmul.u32 %v5869_v2, %v1483_v50  ;;  %v1484_v54 = vld [vmem:[%s5861_s6 + $0x7d0] sm:$0xff]  ;;  %v1485_v56 = vld [vmem:[%s5861_s6 + $0x7d8] sm:$0xff]  ;;  %4551 = vst [vmem:[%s5891_s24 + $0x7a0] sm:$0xff] %v3527_v45 }
 0x115   : > { %4552 = vst [vmem:[%s5891_s24 + $0x7a8] sm:$0xff] %v3528_v46  ;;  %v3530_v57 = vadd.s32 %v2506_v47, %v457_v39  ;;  %v3531_v58 = vadd.s32 %v2507_v48, %v458_v43  ;;  %v2509_v59 = vmul.u32 %v5869_v2, %v1484_v54  ;;  %v2510_v60 = vmul.u32 %v5869_v2, %v1485_v56  ;;  %v462_v61 = vld [vmem:[%s5853_s23 + $0x7e0] sm:$0xff]  ;;  %v463_v63 = vld [vmem:[%s5853_s23 + $0x7e8] sm:$0xff]  ;;  %v464_v4 = vld [vmem:[%s5853_s23 + $0x7f0] sm:$0xff] }
 0x116   : > { %v1486_v62 = vld [vmem:[%s5861_s6 + $0x7e0] sm:$0xff]  ;;  %4553 = vst [vmem:[%s5891_s24 + $0x7b0] sm:$0xff] %v3529_v52  ;;  %v3532_v0 = vadd.s32 %v2508_v53, %v459_v49  ;;  %v1487_v3 = vld [vmem:[%s5861_s6 + $0x7e8] sm:$0xff]  ;;  %v1488_v5 = vld [vmem:[%s5861_s6 + $0x7f0] sm:$0xff] }
 0x117   : > { %v2511_v1 = vmul.u32 %v5869_v2, %v1486_v62  ;;  %4554 = vst [vmem:[%s5891_s24 + $0x7b8] sm:$0xff] %v3530_v57  ;;  %4555 = vst [vmem:[%s5891_s24 + $0x7c0] sm:$0xff] %v3531_v58  ;;  %v3533_v6 = vadd.s32 %v2509_v59, %v460_v51  ;;  %v3534_v7 = vadd.s32 %v2510_v60, %v461_v55  ;;  %v465_v10 = vld [vmem:[%s5853_s23 + $0x7f8] sm:$0xff]  ;;  %v466_v12 = vld [vmem:[%s5853_s23 + $0x800] sm:$0xff] }
 0x118   : > { %v2512_v8 = vmul.u32 %v5869_v2, %v1487_v3  ;;  %v2513_v9 = vmul.u32 %v5869_v2, %v1488_v5  ;;  %v1489_v11 = vld [vmem:[%s5861_s6 + $0x7f8] sm:$0xff]  ;;  %4556 = vst [vmem:[%s5891_s24 + $0x7c8] sm:$0xff] %v3532_v0  ;;  %v1490_v15 = vld [vmem:[%s5861_s6 + $0x800] sm:$0xff]  ;;  %v467_v16 = vld [vmem:[%s5853_s23 + $0x808] sm:$0xff] }
 0x119   : > { %v3535_v13 = vadd.s32 %v2511_v1, %v462_v61  ;;  %v2514_v14 = vmul.u32 %v5869_v2, %v1489_v11  ;;  %v1491_v17 = vld [vmem:[%s5861_s6 + $0x808] sm:$0xff]  ;;  %4557 = vst [vmem:[%s5891_s24 + $0x7d0] sm:$0xff] %v3533_v6  ;;  %4558 = vst [vmem:[%s5891_s24 + $0x7d8] sm:$0xff] %v3534_v7  ;;  %v2515_v20 = vmul.u32 %v5869_v2, %v1490_v15  ;;  %v468_v22 = vld [vmem:[%s5853_s23 + $0x810] sm:$0xff] }
 0x11a   : > { %v3536_v18 = vadd.s32 %v2512_v8, %v463_v63  ;;  %v3537_v19 = vadd.s32 %v2513_v9, %v464_v4  ;;  %v2516_v21 = vmul.u32 %v5869_v2, %v1491_v17  ;;  %v1492_v23 = vld [vmem:[%s5861_s6 + $0x810] sm:$0xff]  ;;  %v469_v24 = vld [vmem:[%s5853_s23 + $0x818] sm:$0xff]  ;;  %v470_v28 = vld [vmem:[%s5853_s23 + $0x820] sm:$0xff] }
 0x11b   : > { %4559 = vst [vmem:[%s5891_s24 + $0x7e0] sm:$0xff] %v3535_v13  ;;  %v3538_v25 = vadd.s32 %v2514_v14, %v465_v10  ;;  %v2517_v26 = vmul.u32 %v5869_v2, %v1492_v23  ;;  %v1493_v27 = vld [vmem:[%s5861_s6 + $0x818] sm:$0xff]  ;;  %v1494_v29 = vld [vmem:[%s5861_s6 + $0x820] sm:$0xff]  ;;  %v3539_v30 = vadd.s32 %v2515_v20, %v466_v12  ;;  %v471_v34 = vld [vmem:[%s5853_s23 + $0x828] sm:$0xff] }
 0x11c   : > { %4560 = vst [vmem:[%s5891_s24 + $0x7e8] sm:$0xff] %v3536_v18  ;;  %4561 = vst [vmem:[%s5891_s24 + $0x7f0] sm:$0xff] %v3537_v19  ;;  %v3540_v31 = vadd.s32 %v2516_v21, %v467_v16  ;;  %v2518_v32 = vmul.u32 %v5869_v2, %v1493_v27  ;;  %v2519_v33 = vmul.u32 %v5869_v2, %v1494_v29  ;;  %v1495_v35 = vld [vmem:[%s5861_s6 + $0x828] sm:$0xff]  ;;  %v472_v36 = vld [vmem:[%s5853_s23 + $0x830] sm:$0xff] }
 0x11d   : > { %4562 = vst [vmem:[%s5891_s24 + $0x7f8] sm:$0xff] %v3538_v25  ;;  %v3541_v37 = vadd.s32 %v2517_v26, %v468_v22  ;;  %v2520_v38 = vmul.u32 %v5869_v2, %v1495_v35  ;;  %v1496_v39 = vld [vmem:[%s5861_s6 + $0x830] sm:$0xff]  ;;  %v473_v40 = vld [vmem:[%s5853_s23 + $0x838] sm:$0xff]  ;;  %4563 = vst [vmem:[%s5891_s24 + $0x800] sm:$0xff] %v3539_v30 }
 0x11e   : > { %v1497_v41 = vld [vmem:[%s5861_s6 + $0x838] sm:$0xff]  ;;  %4564 = vst [vmem:[%s5891_s24 + $0x808] sm:$0xff] %v3540_v31  ;;  %v3542_v42 = vadd.s32 %v2518_v32, %v469_v24  ;;  %v3543_v43 = vadd.s32 %v2519_v33, %v470_v28  ;;  %v2521_v44 = vmul.u32 %v5869_v2, %v1496_v39  ;;  %v474_v46 = vld [vmem:[%s5853_s23 + $0x840] sm:$0xff]  ;;  %v475_v48 = vld [vmem:[%s5853_s23 + $0x848] sm:$0xff] }
 0x11f   : > { %v2522_v45 = vmul.u32 %v5869_v2, %v1497_v41  ;;  %v1498_v47 = vld [vmem:[%s5861_s6 + $0x840] sm:$0xff]  ;;  %4565 = vst [vmem:[%s5891_s24 + $0x810] sm:$0xff] %v3541_v37  ;;  %v3544_v49 = vadd.s32 %v2520_v38, %v471_v34  ;;  %v1499_v51 = vld [vmem:[%s5861_s6 + $0x848] sm:$0xff]  ;;  %v476_v52 = vld [vmem:[%s5853_s23 + $0x850] sm:$0xff] }
 0x120   : > { %v2523_v50 = vmul.u32 %v5869_v2, %v1498_v47  ;;  %v1500_v53 = vld [vmem:[%s5861_s6 + $0x850] sm:$0xff]  ;;  %4566 = vst [vmem:[%s5891_s24 + $0x818] sm:$0xff] %v3542_v42  ;;  %4567 = vst [vmem:[%s5891_s24 + $0x820] sm:$0xff] %v3543_v43  ;;  %v3545_v54 = vadd.s32 %v2521_v44, %v472_v36  ;;  %v2524_v56 = vmul.u32 %v5869_v2, %v1499_v51  ;;  %v477_v58 = vld [vmem:[%s5853_s23 + $0x858] sm:$0xff] }
 0x121   : > { %v3546_v55 = vadd.s32 %v2522_v45, %v473_v40  ;;  %v2525_v57 = vmul.u32 %v5869_v2, %v1500_v53  ;;  %v1501_v59 = vld [vmem:[%s5861_s6 + $0x858] sm:$0xff]  ;;  %v478_v60 = vld [vmem:[%s5853_s23 + $0x860] sm:$0xff]  ;;  %4568 = vst [vmem:[%s5891_s24 + $0x828] sm:$0xff] %v3544_v49  ;;  %v479_v0 = vld [vmem:[%s5853_s23 + $0x868] sm:$0xff] }
 0x122   : > { %v3547_v61 = vadd.s32 %v2523_v50, %v474_v46  ;;  %v2526_v62 = vmul.u32 %v5869_v2, %v1501_v59  ;;  %v1502_v63 = vld [vmem:[%s5861_s6 + $0x860] sm:$0xff]  ;;  %v1503_v1 = vld [vmem:[%s5861_s6 + $0x868] sm:$0xff]  ;;  %4569 = vst [vmem:[%s5891_s24 + $0x830] sm:$0xff] %v3545_v54  ;;  %v3548_v3 = vadd.s32 %v2524_v56, %v475_v48  ;;  %v480_v7 = vld [vmem:[%s5853_s23 + $0x870] sm:$0xff] }
 0x123   : > { %4570 = vst [vmem:[%s5891_s24 + $0x838] sm:$0xff] %v3546_v55  ;;  %v3549_v4 = vadd.s32 %v2525_v57, %v476_v52  ;;  %v2527_v5 = vmul.u32 %v5869_v2, %v1502_v63  ;;  %v2528_v6 = vmul.u32 %v5869_v2, %v1503_v1  ;;  %v1504_v8 = vld [vmem:[%s5861_s6 + $0x870] sm:$0xff]  ;;  %v481_v9 = vld [vmem:[%s5853_s23 + $0x878] sm:$0xff]  ;;  %v482_v13 = vld [vmem:[%s5853_s23 + $0x880] sm:$0xff] }
 0x124   : > { %4571 = vst [vmem:[%s5891_s24 + $0x840] sm:$0xff] %v3547_v61  ;;  %v3550_v10 = vadd.s32 %v2526_v62, %v477_v58  ;;  %v2529_v11 = vmul.u32 %v5869_v2, %v1504_v8  ;;  %v1505_v12 = vld [vmem:[%s5861_s6 + $0x878] sm:$0xff]  ;;  %v1506_v14 = vld [vmem:[%s5861_s6 + $0x880] sm:$0xff]  ;;  %4572 = vst [vmem:[%s5891_s24 + $0x848] sm:$0xff] %v3548_v3 }
 0x125   : > { %4573 = vst [vmem:[%s5891_s24 + $0x850] sm:$0xff] %v3549_v4  ;;  %v3551_v15 = vadd.s32 %v2527_v5, %v478_v60  ;;  %v3552_v16 = vadd.s32 %v2528_v6, %v479_v0  ;;  %v2530_v17 = vmul.u32 %v5869_v2, %v1505_v12  ;;  %v2531_v18 = vmul.u32 %v5869_v2, %v1506_v14  ;;  %v483_v19 = vld [vmem:[%s5853_s23 + $0x888] sm:$0xff]  ;;  %v484_v21 = vld [vmem:[%s5853_s23 + $0x890] sm:$0xff]  ;;  %v485_v25 = vld [vmem:[%s5853_s23 + $0x898] sm:$0xff] }
 0x126   : > { %v1507_v20 = vld [vmem:[%s5861_s6 + $0x888] sm:$0xff]  ;;  %4574 = vst [vmem:[%s5891_s24 + $0x858] sm:$0xff] %v3550_v10  ;;  %v3553_v22 = vadd.s32 %v2529_v11, %v480_v7  ;;  %v1508_v24 = vld [vmem:[%s5861_s6 + $0x890] sm:$0xff]  ;;  %v1509_v26 = vld [vmem:[%s5861_s6 + $0x898] sm:$0xff] }
 0x127   : > { %v2532_v23 = vmul.u32 %v5869_v2, %v1507_v20  ;;  %4575 = vst [vmem:[%s5891_s24 + $0x860] sm:$0xff] %v3551_v15  ;;  %4576 = vst [vmem:[%s5891_s24 + $0x868] sm:$0xff] %v3552_v16  ;;  %v3554_v27 = vadd.s32 %v2530_v17, %v481_v9  ;;  %v3555_v28 = vadd.s32 %v2531_v18, %v482_v13  ;;  %v486_v31 = vld [vmem:[%s5853_s23 + $0x8a0] sm:$0xff]  ;;  %v487_v33 = vld [vmem:[%s5853_s23 + $0x8a8] sm:$0xff] }
 0x128   : > { %v2533_v29 = vmul.u32 %v5869_v2, %v1508_v24  ;;  %v2534_v30 = vmul.u32 %v5869_v2, %v1509_v26  ;;  %v1510_v32 = vld [vmem:[%s5861_s6 + $0x8a0] sm:$0xff]  ;;  %4577 = vst [vmem:[%s5891_s24 + $0x870] sm:$0xff] %v3553_v22  ;;  %v1511_v36 = vld [vmem:[%s5861_s6 + $0x8a8] sm:$0xff]  ;;  %v488_v37 = vld [vmem:[%s5853_s23 + $0x8b0] sm:$0xff] }
 0x129   : > { %v3556_v34 = vadd.s32 %v2532_v23, %v483_v19  ;;  %v2535_v35 = vmul.u32 %v5869_v2, %v1510_v32  ;;  %v1512_v38 = vld [vmem:[%s5861_s6 + $0x8b0] sm:$0xff]  ;;  %4578 = vst [vmem:[%s5891_s24 + $0x878] sm:$0xff] %v3554_v27  ;;  %4579 = vst [vmem:[%s5891_s24 + $0x880] sm:$0xff] %v3555_v28  ;;  %v2536_v41 = vmul.u32 %v5869_v2, %v1511_v36  ;;  %v489_v43 = vld [vmem:[%s5853_s23 + $0x8b8] sm:$0xff] }
 0x12a   : > { %v3557_v39 = vadd.s32 %v2533_v29, %v484_v21  ;;  %v3558_v40 = vadd.s32 %v2534_v30, %v485_v25  ;;  %v2537_v42 = vmul.u32 %v5869_v2, %v1512_v38  ;;  %v1513_v44 = vld [vmem:[%s5861_s6 + $0x8b8] sm:$0xff]  ;;  %v490_v45 = vld [vmem:[%s5853_s23 + $0x8c0] sm:$0xff]  ;;  %v491_v49 = vld [vmem:[%s5853_s23 + $0x8c8] sm:$0xff] }
 0x12b   : > { %4580 = vst [vmem:[%s5891_s24 + $0x888] sm:$0xff] %v3556_v34  ;;  %v3559_v46 = vadd.s32 %v2535_v35, %v486_v31  ;;  %v2538_v47 = vmul.u32 %v5869_v2, %v1513_v44  ;;  %v1514_v48 = vld [vmem:[%s5861_s6 + $0x8c0] sm:$0xff]  ;;  %v1515_v50 = vld [vmem:[%s5861_s6 + $0x8c8] sm:$0xff]  ;;  %v3560_v51 = vadd.s32 %v2536_v41, %v487_v33  ;;  %v492_v55 = vld [vmem:[%s5853_s23 + $0x8d0] sm:$0xff] }
 0x12c   : > { %4581 = vst [vmem:[%s5891_s24 + $0x890] sm:$0xff] %v3557_v39  ;;  %4582 = vst [vmem:[%s5891_s24 + $0x898] sm:$0xff] %v3558_v40  ;;  %v3561_v52 = vadd.s32 %v2537_v42, %v488_v37  ;;  %v2539_v53 = vmul.u32 %v5869_v2, %v1514_v48  ;;  %v2540_v54 = vmul.u32 %v5869_v2, %v1515_v50  ;;  %v1516_v56 = vld [vmem:[%s5861_s6 + $0x8d0] sm:$0xff]  ;;  %v493_v57 = vld [vmem:[%s5853_s23 + $0x8d8] sm:$0xff] }
 0x12d   : > { %4583 = vst [vmem:[%s5891_s24 + $0x8a0] sm:$0xff] %v3559_v46  ;;  %v3562_v58 = vadd.s32 %v2538_v47, %v489_v43  ;;  %v2541_v59 = vmul.u32 %v5869_v2, %v1516_v56  ;;  %v1517_v60 = vld [vmem:[%s5861_s6 + $0x8d8] sm:$0xff]  ;;  %v494_v61 = vld [vmem:[%s5853_s23 + $0x8e0] sm:$0xff]  ;;  %4584 = vst [vmem:[%s5891_s24 + $0x8a8] sm:$0xff] %v3560_v51 }
 0x12e   : > { %v1518_v62 = vld [vmem:[%s5861_s6 + $0x8e0] sm:$0xff]  ;;  %4585 = vst [vmem:[%s5891_s24 + $0x8b0] sm:$0xff] %v3561_v52  ;;  %v3563_v63 = vadd.s32 %v2539_v53, %v490_v45  ;;  %v3564_v0 = vadd.s32 %v2540_v54, %v491_v49  ;;  %v2542_v1 = vmul.u32 %v5869_v2, %v1517_v60  ;;  %v495_v4 = vld [vmem:[%s5853_s23 + $0x8e8] sm:$0xff]  ;;  %v496_v6 = vld [vmem:[%s5853_s23 + $0x8f0] sm:$0xff] }
 0x12f   : > { %v2543_v3 = vmul.u32 %v5869_v2, %v1518_v62  ;;  %v1519_v5 = vld [vmem:[%s5861_s6 + $0x8e8] sm:$0xff]  ;;  %4586 = vst [vmem:[%s5891_s24 + $0x8b8] sm:$0xff] %v3562_v58  ;;  %v3565_v7 = vadd.s32 %v2541_v59, %v492_v55  ;;  %v1520_v9 = vld [vmem:[%s5861_s6 + $0x8f0] sm:$0xff]  ;;  %v497_v10 = vld [vmem:[%s5853_s23 + $0x8f8] sm:$0xff] }
 0x130   : > { %v2544_v8 = vmul.u32 %v5869_v2, %v1519_v5  ;;  %v1521_v11 = vld [vmem:[%s5861_s6 + $0x8f8] sm:$0xff]  ;;  %4587 = vst [vmem:[%s5891_s24 + $0x8c0] sm:$0xff] %v3563_v63  ;;  %4588 = vst [vmem:[%s5891_s24 + $0x8c8] sm:$0xff] %v3564_v0  ;;  %v3566_v12 = vadd.s32 %v2542_v1, %v493_v57  ;;  %v2545_v14 = vmul.u32 %v5869_v2, %v1520_v9  ;;  %v498_v16 = vld [vmem:[%s5853_s23 + $0x900] sm:$0xff] }
 0x131   : > { %v3567_v13 = vadd.s32 %v2543_v3, %v494_v61  ;;  %v2546_v15 = vmul.u32 %v5869_v2, %v1521_v11  ;;  %v1522_v17 = vld [vmem:[%s5861_s6 + $0x900] sm:$0xff]  ;;  %v499_v18 = vld [vmem:[%s5853_s23 + $0x908] sm:$0xff]  ;;  %4589 = vst [vmem:[%s5891_s24 + $0x8d0] sm:$0xff] %v3565_v7  ;;  %v500_v22 = vld [vmem:[%s5853_s23 + $0x910] sm:$0xff] }
 0x132   : > { %v3568_v19 = vadd.s32 %v2544_v8, %v495_v4  ;;  %v2547_v20 = vmul.u32 %v5869_v2, %v1522_v17  ;;  %v1523_v21 = vld [vmem:[%s5861_s6 + $0x908] sm:$0xff]  ;;  %v1524_v23 = vld [vmem:[%s5861_s6 + $0x910] sm:$0xff]  ;;  %4590 = vst [vmem:[%s5891_s24 + $0x8d8] sm:$0xff] %v3566_v12  ;;  %v3569_v24 = vadd.s32 %v2545_v14, %v496_v6  ;;  %v501_v28 = vld [vmem:[%s5853_s23 + $0x918] sm:$0xff] }
 0x133   : > { %4591 = vst [vmem:[%s5891_s24 + $0x8e0] sm:$0xff] %v3567_v13  ;;  %v3570_v25 = vadd.s32 %v2546_v15, %v497_v10  ;;  %v2548_v26 = vmul.u32 %v5869_v2, %v1523_v21  ;;  %v2549_v27 = vmul.u32 %v5869_v2, %v1524_v23  ;;  %v1525_v29 = vld [vmem:[%s5861_s6 + $0x918] sm:$0xff]  ;;  %v502_v30 = vld [vmem:[%s5853_s23 + $0x920] sm:$0xff]  ;;  %v503_v34 = vld [vmem:[%s5853_s23 + $0x928] sm:$0xff] }
 0x134   : > { %4592 = vst [vmem:[%s5891_s24 + $0x8e8] sm:$0xff] %v3568_v19  ;;  %v3571_v31 = vadd.s32 %v2547_v20, %v498_v16  ;;  %v2550_v32 = vmul.u32 %v5869_v2, %v1525_v29  ;;  %v1526_v33 = vld [vmem:[%s5861_s6 + $0x920] sm:$0xff]  ;;  %v1527_v35 = vld [vmem:[%s5861_s6 + $0x928] sm:$0xff]  ;;  %4593 = vst [vmem:[%s5891_s24 + $0x8f0] sm:$0xff] %v3569_v24 }
 0x135   : > { %4594 = vst [vmem:[%s5891_s24 + $0x8f8] sm:$0xff] %v3570_v25  ;;  %v3572_v36 = vadd.s32 %v2548_v26, %v499_v18  ;;  %v3573_v37 = vadd.s32 %v2549_v27, %v500_v22  ;;  %v2551_v38 = vmul.u32 %v5869_v2, %v1526_v33  ;;  %v2552_v39 = vmul.u32 %v5869_v2, %v1527_v35  ;;  %v504_v40 = vld [vmem:[%s5853_s23 + $0x930] sm:$0xff]  ;;  %v505_v42 = vld [vmem:[%s5853_s23 + $0x938] sm:$0xff]  ;;  %v506_v46 = vld [vmem:[%s5853_s23 + $0x940] sm:$0xff] }
 0x136   : > { %v1528_v41 = vld [vmem:[%s5861_s6 + $0x930] sm:$0xff]  ;;  %4595 = vst [vmem:[%s5891_s24 + $0x900] sm:$0xff] %v3571_v31  ;;  %v3574_v43 = vadd.s32 %v2550_v32, %v501_v28  ;;  %v1529_v45 = vld [vmem:[%s5861_s6 + $0x938] sm:$0xff]  ;;  %v1530_v47 = vld [vmem:[%s5861_s6 + $0x940] sm:$0xff] }
 0x137   : > { %v2553_v44 = vmul.u32 %v5869_v2, %v1528_v41  ;;  %4596 = vst [vmem:[%s5891_s24 + $0x908] sm:$0xff] %v3572_v36  ;;  %4597 = vst [vmem:[%s5891_s24 + $0x910] sm:$0xff] %v3573_v37  ;;  %v3575_v48 = vadd.s32 %v2551_v38, %v502_v30  ;;  %v3576_v49 = vadd.s32 %v2552_v39, %v503_v34  ;;  %v507_v52 = vld [vmem:[%s5853_s23 + $0x948] sm:$0xff]  ;;  %v508_v54 = vld [vmem:[%s5853_s23 + $0x950] sm:$0xff] }
 0x138   : > { %v2554_v50 = vmul.u32 %v5869_v2, %v1529_v45  ;;  %v2555_v51 = vmul.u32 %v5869_v2, %v1530_v47  ;;  %v1531_v53 = vld [vmem:[%s5861_s6 + $0x948] sm:$0xff]  ;;  %4598 = vst [vmem:[%s5891_s24 + $0x918] sm:$0xff] %v3574_v43  ;;  %v1532_v57 = vld [vmem:[%s5861_s6 + $0x950] sm:$0xff]  ;;  %v509_v58 = vld [vmem:[%s5853_s23 + $0x958] sm:$0xff] }
 0x139   : > { %v3577_v55 = vadd.s32 %v2553_v44, %v504_v40  ;;  %v2556_v56 = vmul.u32 %v5869_v2, %v1531_v53  ;;  %v1533_v59 = vld [vmem:[%s5861_s6 + $0x958] sm:$0xff]  ;;  %4599 = vst [vmem:[%s5891_s24 + $0x920] sm:$0xff] %v3575_v48  ;;  %4600 = vst [vmem:[%s5891_s24 + $0x928] sm:$0xff] %v3576_v49  ;;  %v2557_v62 = vmul.u32 %v5869_v2, %v1532_v57  ;;  %v510_v0 = vld [vmem:[%s5853_s23 + $0x960] sm:$0xff] }
 0x13a   : > { %v3578_v60 = vadd.s32 %v2554_v50, %v505_v42  ;;  %v3579_v61 = vadd.s32 %v2555_v51, %v506_v46  ;;  %v2558_v63 = vmul.u32 %v5869_v2, %v1533_v59  ;;  %v1534_v1 = vld [vmem:[%s5861_s6 + $0x960] sm:$0xff]  ;;  %v511_v3 = vld [vmem:[%s5853_s23 + $0x968] sm:$0xff]  ;;  %v512_v7 = vld [vmem:[%s5853_s23 + $0x970] sm:$0xff] }
 0x13b   : > { %4601 = vst [vmem:[%s5891_s24 + $0x930] sm:$0xff] %v3577_v55  ;;  %v3580_v4 = vadd.s32 %v2556_v56, %v507_v52  ;;  %v2559_v5 = vmul.u32 %v5869_v2, %v1534_v1  ;;  %v1535_v6 = vld [vmem:[%s5861_s6 + $0x968] sm:$0xff]  ;;  %v1536_v8 = vld [vmem:[%s5861_s6 + $0x970] sm:$0xff]  ;;  %v3581_v9 = vadd.s32 %v2557_v62, %v508_v54  ;;  %v513_v13 = vld [vmem:[%s5853_s23 + $0x978] sm:$0xff] }
 0x13c   : > { %4602 = vst [vmem:[%s5891_s24 + $0x938] sm:$0xff] %v3578_v60  ;;  %4603 = vst [vmem:[%s5891_s24 + $0x940] sm:$0xff] %v3579_v61  ;;  %v3582_v10 = vadd.s32 %v2558_v63, %v509_v58  ;;  %v2560_v11 = vmul.u32 %v5869_v2, %v1535_v6  ;;  %v2561_v12 = vmul.u32 %v5869_v2, %v1536_v8  ;;  %v1537_v14 = vld [vmem:[%s5861_s6 + $0x978] sm:$0xff]  ;;  %v514_v15 = vld [vmem:[%s5853_s23 + $0x980] sm:$0xff] }
 0x13d   : > { %4604 = vst [vmem:[%s5891_s24 + $0x948] sm:$0xff] %v3580_v4  ;;  %v3583_v16 = vadd.s32 %v2559_v5, %v510_v0  ;;  %v2562_v17 = vmul.u32 %v5869_v2, %v1537_v14  ;;  %v1538_v18 = vld [vmem:[%s5861_s6 + $0x980] sm:$0xff]  ;;  %v515_v19 = vld [vmem:[%s5853_s23 + $0x988] sm:$0xff]  ;;  %4605 = vst [vmem:[%s5891_s24 + $0x950] sm:$0xff] %v3581_v9 }
 0x13e   : > { %v1539_v20 = vld [vmem:[%s5861_s6 + $0x988] sm:$0xff]  ;;  %4606 = vst [vmem:[%s5891_s24 + $0x958] sm:$0xff] %v3582_v10  ;;  %v3584_v21 = vadd.s32 %v2560_v11, %v511_v3  ;;  %v3585_v22 = vadd.s32 %v2561_v12, %v512_v7  ;;  %v2563_v23 = vmul.u32 %v5869_v2, %v1538_v18  ;;  %v516_v25 = vld [vmem:[%s5853_s23 + $0x990] sm:$0xff]  ;;  %v517_v27 = vld [vmem:[%s5853_s23 + $0x998] sm:$0xff] }
 0x13f   : > { %v2564_v24 = vmul.u32 %v5869_v2, %v1539_v20  ;;  %v1540_v26 = vld [vmem:[%s5861_s6 + $0x990] sm:$0xff]  ;;  %4607 = vst [vmem:[%s5891_s24 + $0x960] sm:$0xff] %v3583_v16  ;;  %v3586_v28 = vadd.s32 %v2562_v17, %v513_v13  ;;  %v1541_v30 = vld [vmem:[%s5861_s6 + $0x998] sm:$0xff]  ;;  %v518_v31 = vld [vmem:[%s5853_s23 + $0x9a0] sm:$0xff] }
 0x140   : > { %v2565_v29 = vmul.u32 %v5869_v2, %v1540_v26  ;;  %v1542_v32 = vld [vmem:[%s5861_s6 + $0x9a0] sm:$0xff]  ;;  %4608 = vst [vmem:[%s5891_s24 + $0x968] sm:$0xff] %v3584_v21  ;;  %4609 = vst [vmem:[%s5891_s24 + $0x970] sm:$0xff] %v3585_v22  ;;  %v3587_v33 = vadd.s32 %v2563_v23, %v514_v15  ;;  %v2566_v35 = vmul.u32 %v5869_v2, %v1541_v30  ;;  %v519_v37 = vld [vmem:[%s5853_s23 + $0x9a8] sm:$0xff] }
 0x141   : > { %v3588_v34 = vadd.s32 %v2564_v24, %v515_v19  ;;  %v2567_v36 = vmul.u32 %v5869_v2, %v1542_v32  ;;  %v1543_v38 = vld [vmem:[%s5861_s6 + $0x9a8] sm:$0xff]  ;;  %v520_v39 = vld [vmem:[%s5853_s23 + $0x9b0] sm:$0xff]  ;;  %4610 = vst [vmem:[%s5891_s24 + $0x978] sm:$0xff] %v3586_v28  ;;  %v521_v43 = vld [vmem:[%s5853_s23 + $0x9b8] sm:$0xff] }
 0x142   : > { %v3589_v40 = vadd.s32 %v2565_v29, %v516_v25  ;;  %v2568_v41 = vmul.u32 %v5869_v2, %v1543_v38  ;;  %v1544_v42 = vld [vmem:[%s5861_s6 + $0x9b0] sm:$0xff]  ;;  %v1545_v44 = vld [vmem:[%s5861_s6 + $0x9b8] sm:$0xff]  ;;  %4611 = vst [vmem:[%s5891_s24 + $0x980] sm:$0xff] %v3587_v33  ;;  %v3590_v45 = vadd.s32 %v2566_v35, %v517_v27  ;;  %v522_v49 = vld [vmem:[%s5853_s23 + $0x9c0] sm:$0xff] }
 0x143   : > { %4612 = vst [vmem:[%s5891_s24 + $0x988] sm:$0xff] %v3588_v34  ;;  %v3591_v46 = vadd.s32 %v2567_v36, %v518_v31  ;;  %v2569_v47 = vmul.u32 %v5869_v2, %v1544_v42  ;;  %v2570_v48 = vmul.u32 %v5869_v2, %v1545_v44  ;;  %v1546_v50 = vld [vmem:[%s5861_s6 + $0x9c0] sm:$0xff]  ;;  %v523_v51 = vld [vmem:[%s5853_s23 + $0x9c8] sm:$0xff]  ;;  %v524_v55 = vld [vmem:[%s5853_s23 + $0x9d0] sm:$0xff] }
 0x144   : > { %4613 = vst [vmem:[%s5891_s24 + $0x990] sm:$0xff] %v3589_v40  ;;  %v3592_v52 = vadd.s32 %v2568_v41, %v519_v37  ;;  %v2571_v53 = vmul.u32 %v5869_v2, %v1546_v50  ;;  %v1547_v54 = vld [vmem:[%s5861_s6 + $0x9c8] sm:$0xff]  ;;  %v1548_v56 = vld [vmem:[%s5861_s6 + $0x9d0] sm:$0xff]  ;;  %4614 = vst [vmem:[%s5891_s24 + $0x998] sm:$0xff] %v3590_v45 }
 0x145   : > { %4615 = vst [vmem:[%s5891_s24 + $0x9a0] sm:$0xff] %v3591_v46  ;;  %v3593_v57 = vadd.s32 %v2569_v47, %v520_v39  ;;  %v3594_v58 = vadd.s32 %v2570_v48, %v521_v43  ;;  %v2572_v59 = vmul.u32 %v5869_v2, %v1547_v54  ;;  %v2573_v60 = vmul.u32 %v5869_v2, %v1548_v56  ;;  %v525_v61 = vld [vmem:[%s5853_s23 + $0x9d8] sm:$0xff]  ;;  %v526_v63 = vld [vmem:[%s5853_s23 + $0x9e0] sm:$0xff]  ;;  %v527_v4 = vld [vmem:[%s5853_s23 + $0x9e8] sm:$0xff] }
 0x146   : > { %v1549_v62 = vld [vmem:[%s5861_s6 + $0x9d8] sm:$0xff]  ;;  %4616 = vst [vmem:[%s5891_s24 + $0x9a8] sm:$0xff] %v3592_v52  ;;  %v3595_v0 = vadd.s32 %v2571_v53, %v522_v49  ;;  %v1550_v3 = vld [vmem:[%s5861_s6 + $0x9e0] sm:$0xff]  ;;  %v1551_v5 = vld [vmem:[%s5861_s6 + $0x9e8] sm:$0xff] }
 0x147   : > { %v2574_v1 = vmul.u32 %v5869_v2, %v1549_v62  ;;  %4617 = vst [vmem:[%s5891_s24 + $0x9b0] sm:$0xff] %v3593_v57  ;;  %4618 = vst [vmem:[%s5891_s24 + $0x9b8] sm:$0xff] %v3594_v58  ;;  %v3596_v6 = vadd.s32 %v2572_v59, %v523_v51  ;;  %v3597_v7 = vadd.s32 %v2573_v60, %v524_v55  ;;  %v528_v10 = vld [vmem:[%s5853_s23 + $0x9f0] sm:$0xff]  ;;  %v529_v12 = vld [vmem:[%s5853_s23 + $0x9f8] sm:$0xff] }
 0x148   : > { %v2575_v8 = vmul.u32 %v5869_v2, %v1550_v3  ;;  %v2576_v9 = vmul.u32 %v5869_v2, %v1551_v5  ;;  %v1552_v11 = vld [vmem:[%s5861_s6 + $0x9f0] sm:$0xff]  ;;  %4619 = vst [vmem:[%s5891_s24 + $0x9c0] sm:$0xff] %v3595_v0  ;;  %v1553_v15 = vld [vmem:[%s5861_s6 + $0x9f8] sm:$0xff]  ;;  %v530_v16 = vld [vmem:[%s5853_s23 + $0xa00] sm:$0xff] }
 0x149   : > { %v3598_v13 = vadd.s32 %v2574_v1, %v525_v61  ;;  %v2577_v14 = vmul.u32 %v5869_v2, %v1552_v11  ;;  %v1554_v17 = vld [vmem:[%s5861_s6 + $0xa00] sm:$0xff]  ;;  %4620 = vst [vmem:[%s5891_s24 + $0x9c8] sm:$0xff] %v3596_v6  ;;  %4621 = vst [vmem:[%s5891_s24 + $0x9d0] sm:$0xff] %v3597_v7  ;;  %v2578_v20 = vmul.u32 %v5869_v2, %v1553_v15  ;;  %v531_v22 = vld [vmem:[%s5853_s23 + $0xa08] sm:$0xff] }
 0x14a   : > { %v3599_v18 = vadd.s32 %v2575_v8, %v526_v63  ;;  %v3600_v19 = vadd.s32 %v2576_v9, %v527_v4  ;;  %v2579_v21 = vmul.u32 %v5869_v2, %v1554_v17  ;;  %v1555_v23 = vld [vmem:[%s5861_s6 + $0xa08] sm:$0xff]  ;;  %v532_v24 = vld [vmem:[%s5853_s23 + $0xa10] sm:$0xff]  ;;  %v533_v28 = vld [vmem:[%s5853_s23 + $0xa18] sm:$0xff] }
 0x14b   : > { %4622 = vst [vmem:[%s5891_s24 + $0x9d8] sm:$0xff] %v3598_v13  ;;  %v3601_v25 = vadd.s32 %v2577_v14, %v528_v10  ;;  %v2580_v26 = vmul.u32 %v5869_v2, %v1555_v23  ;;  %v1556_v27 = vld [vmem:[%s5861_s6 + $0xa10] sm:$0xff]  ;;  %v1557_v29 = vld [vmem:[%s5861_s6 + $0xa18] sm:$0xff]  ;;  %v3602_v30 = vadd.s32 %v2578_v20, %v529_v12  ;;  %v534_v34 = vld [vmem:[%s5853_s23 + $0xa20] sm:$0xff] }
 0x14c   : > { %4623 = vst [vmem:[%s5891_s24 + $0x9e0] sm:$0xff] %v3599_v18  ;;  %4624 = vst [vmem:[%s5891_s24 + $0x9e8] sm:$0xff] %v3600_v19  ;;  %v3603_v31 = vadd.s32 %v2579_v21, %v530_v16  ;;  %v2581_v32 = vmul.u32 %v5869_v2, %v1556_v27  ;;  %v2582_v33 = vmul.u32 %v5869_v2, %v1557_v29  ;;  %v1558_v35 = vld [vmem:[%s5861_s6 + $0xa20] sm:$0xff]  ;;  %v535_v36 = vld [vmem:[%s5853_s23 + $0xa28] sm:$0xff] }
 0x14d   : > { %4625 = vst [vmem:[%s5891_s24 + $0x9f0] sm:$0xff] %v3601_v25  ;;  %v3604_v37 = vadd.s32 %v2580_v26, %v531_v22  ;;  %v2583_v38 = vmul.u32 %v5869_v2, %v1558_v35  ;;  %v1559_v39 = vld [vmem:[%s5861_s6 + $0xa28] sm:$0xff]  ;;  %v536_v40 = vld [vmem:[%s5853_s23 + $0xa30] sm:$0xff]  ;;  %4626 = vst [vmem:[%s5891_s24 + $0x9f8] sm:$0xff] %v3602_v30 }
 0x14e   : > { %v1560_v41 = vld [vmem:[%s5861_s6 + $0xa30] sm:$0xff]  ;;  %4627 = vst [vmem:[%s5891_s24 + $0xa00] sm:$0xff] %v3603_v31  ;;  %v3605_v42 = vadd.s32 %v2581_v32, %v532_v24  ;;  %v3606_v43 = vadd.s32 %v2582_v33, %v533_v28  ;;  %v2584_v44 = vmul.u32 %v5869_v2, %v1559_v39  ;;  %v537_v46 = vld [vmem:[%s5853_s23 + $0xa38] sm:$0xff]  ;;  %v538_v48 = vld [vmem:[%s5853_s23 + $0xa40] sm:$0xff] }
 0x14f   : > { %v2585_v45 = vmul.u32 %v5869_v2, %v1560_v41  ;;  %v1561_v47 = vld [vmem:[%s5861_s6 + $0xa38] sm:$0xff]  ;;  %4628 = vst [vmem:[%s5891_s24 + $0xa08] sm:$0xff] %v3604_v37  ;;  %v3607_v49 = vadd.s32 %v2583_v38, %v534_v34  ;;  %v1562_v51 = vld [vmem:[%s5861_s6 + $0xa40] sm:$0xff]  ;;  %v539_v52 = vld [vmem:[%s5853_s23 + $0xa48] sm:$0xff] }
 0x150   : > { %v2586_v50 = vmul.u32 %v5869_v2, %v1561_v47  ;;  %v1563_v53 = vld [vmem:[%s5861_s6 + $0xa48] sm:$0xff]  ;;  %4629 = vst [vmem:[%s5891_s24 + $0xa10] sm:$0xff] %v3605_v42  ;;  %4630 = vst [vmem:[%s5891_s24 + $0xa18] sm:$0xff] %v3606_v43  ;;  %v3608_v54 = vadd.s32 %v2584_v44, %v535_v36  ;;  %v2587_v56 = vmul.u32 %v5869_v2, %v1562_v51  ;;  %v540_v58 = vld [vmem:[%s5853_s23 + $0xa50] sm:$0xff] }
 0x151   : > { %v3609_v55 = vadd.s32 %v2585_v45, %v536_v40  ;;  %v2588_v57 = vmul.u32 %v5869_v2, %v1563_v53  ;;  %v1564_v59 = vld [vmem:[%s5861_s6 + $0xa50] sm:$0xff]  ;;  %v541_v60 = vld [vmem:[%s5853_s23 + $0xa58] sm:$0xff]  ;;  %4631 = vst [vmem:[%s5891_s24 + $0xa20] sm:$0xff] %v3607_v49  ;;  %v542_v0 = vld [vmem:[%s5853_s23 + $0xa60] sm:$0xff] }
 0x152   : > { %v3610_v61 = vadd.s32 %v2586_v50, %v537_v46  ;;  %v2589_v62 = vmul.u32 %v5869_v2, %v1564_v59  ;;  %v1565_v63 = vld [vmem:[%s5861_s6 + $0xa58] sm:$0xff]  ;;  %v1566_v1 = vld [vmem:[%s5861_s6 + $0xa60] sm:$0xff]  ;;  %4632 = vst [vmem:[%s5891_s24 + $0xa28] sm:$0xff] %v3608_v54  ;;  %v3611_v3 = vadd.s32 %v2587_v56, %v538_v48  ;;  %v543_v7 = vld [vmem:[%s5853_s23 + $0xa68] sm:$0xff] }
 0x153   : > { %4633 = vst [vmem:[%s5891_s24 + $0xa30] sm:$0xff] %v3609_v55  ;;  %v3612_v4 = vadd.s32 %v2588_v57, %v539_v52  ;;  %v2590_v5 = vmul.u32 %v5869_v2, %v1565_v63  ;;  %v2591_v6 = vmul.u32 %v5869_v2, %v1566_v1  ;;  %v1567_v8 = vld [vmem:[%s5861_s6 + $0xa68] sm:$0xff]  ;;  %v544_v9 = vld [vmem:[%s5853_s23 + $0xa70] sm:$0xff]  ;;  %v545_v13 = vld [vmem:[%s5853_s23 + $0xa78] sm:$0xff] }
 0x154   : > { %4634 = vst [vmem:[%s5891_s24 + $0xa38] sm:$0xff] %v3610_v61  ;;  %v3613_v10 = vadd.s32 %v2589_v62, %v540_v58  ;;  %v2592_v11 = vmul.u32 %v5869_v2, %v1567_v8  ;;  %v1568_v12 = vld [vmem:[%s5861_s6 + $0xa70] sm:$0xff]  ;;  %v1569_v14 = vld [vmem:[%s5861_s6 + $0xa78] sm:$0xff]  ;;  %4635 = vst [vmem:[%s5891_s24 + $0xa40] sm:$0xff] %v3611_v3 }
 0x155   : > { %4636 = vst [vmem:[%s5891_s24 + $0xa48] sm:$0xff] %v3612_v4  ;;  %v3614_v15 = vadd.s32 %v2590_v5, %v541_v60  ;;  %v3615_v16 = vadd.s32 %v2591_v6, %v542_v0  ;;  %v2593_v17 = vmul.u32 %v5869_v2, %v1568_v12  ;;  %v2594_v18 = vmul.u32 %v5869_v2, %v1569_v14  ;;  %v546_v19 = vld [vmem:[%s5853_s23 + $0xa80] sm:$0xff]  ;;  %v547_v21 = vld [vmem:[%s5853_s23 + $0xa88] sm:$0xff]  ;;  %v548_v25 = vld [vmem:[%s5853_s23 + $0xa90] sm:$0xff] }
 0x156   : > { %v1570_v20 = vld [vmem:[%s5861_s6 + $0xa80] sm:$0xff]  ;;  %4637 = vst [vmem:[%s5891_s24 + $0xa50] sm:$0xff] %v3613_v10  ;;  %v3616_v22 = vadd.s32 %v2592_v11, %v543_v7  ;;  %v1571_v24 = vld [vmem:[%s5861_s6 + $0xa88] sm:$0xff]  ;;  %v1572_v26 = vld [vmem:[%s5861_s6 + $0xa90] sm:$0xff] }
 0x157   : > { %v2595_v23 = vmul.u32 %v5869_v2, %v1570_v20  ;;  %4638 = vst [vmem:[%s5891_s24 + $0xa58] sm:$0xff] %v3614_v15  ;;  %4639 = vst [vmem:[%s5891_s24 + $0xa60] sm:$0xff] %v3615_v16  ;;  %v3617_v27 = vadd.s32 %v2593_v17, %v544_v9  ;;  %v3618_v28 = vadd.s32 %v2594_v18, %v545_v13  ;;  %v549_v31 = vld [vmem:[%s5853_s23 + $0xa98] sm:$0xff]  ;;  %v550_v33 = vld [vmem:[%s5853_s23 + $0xaa0] sm:$0xff] }
 0x158   : > { %v2596_v29 = vmul.u32 %v5869_v2, %v1571_v24  ;;  %v2597_v30 = vmul.u32 %v5869_v2, %v1572_v26  ;;  %v1573_v32 = vld [vmem:[%s5861_s6 + $0xa98] sm:$0xff]  ;;  %4640 = vst [vmem:[%s5891_s24 + $0xa68] sm:$0xff] %v3616_v22  ;;  %v1574_v36 = vld [vmem:[%s5861_s6 + $0xaa0] sm:$0xff]  ;;  %v551_v37 = vld [vmem:[%s5853_s23 + $0xaa8] sm:$0xff] }
 0x159   : > { %v3619_v34 = vadd.s32 %v2595_v23, %v546_v19  ;;  %v2598_v35 = vmul.u32 %v5869_v2, %v1573_v32  ;;  %v1575_v38 = vld [vmem:[%s5861_s6 + $0xaa8] sm:$0xff]  ;;  %4641 = vst [vmem:[%s5891_s24 + $0xa70] sm:$0xff] %v3617_v27  ;;  %4642 = vst [vmem:[%s5891_s24 + $0xa78] sm:$0xff] %v3618_v28  ;;  %v2599_v41 = vmul.u32 %v5869_v2, %v1574_v36  ;;  %v552_v43 = vld [vmem:[%s5853_s23 + $0xab0] sm:$0xff] }
 0x15a   : > { %v3620_v39 = vadd.s32 %v2596_v29, %v547_v21  ;;  %v3621_v40 = vadd.s32 %v2597_v30, %v548_v25  ;;  %v2600_v42 = vmul.u32 %v5869_v2, %v1575_v38  ;;  %v1576_v44 = vld [vmem:[%s5861_s6 + $0xab0] sm:$0xff]  ;;  %v553_v45 = vld [vmem:[%s5853_s23 + $0xab8] sm:$0xff]  ;;  %v554_v49 = vld [vmem:[%s5853_s23 + $0xac0] sm:$0xff] }
 0x15b   : > { %4643 = vst [vmem:[%s5891_s24 + $0xa80] sm:$0xff] %v3619_v34  ;;  %v3622_v46 = vadd.s32 %v2598_v35, %v549_v31  ;;  %v2601_v47 = vmul.u32 %v5869_v2, %v1576_v44  ;;  %v1577_v48 = vld [vmem:[%s5861_s6 + $0xab8] sm:$0xff]  ;;  %v1578_v50 = vld [vmem:[%s5861_s6 + $0xac0] sm:$0xff]  ;;  %v3623_v51 = vadd.s32 %v2599_v41, %v550_v33  ;;  %v555_v55 = vld [vmem:[%s5853_s23 + $0xac8] sm:$0xff] }
 0x15c   : > { %4644 = vst [vmem:[%s5891_s24 + $0xa88] sm:$0xff] %v3620_v39  ;;  %4645 = vst [vmem:[%s5891_s24 + $0xa90] sm:$0xff] %v3621_v40  ;;  %v3624_v52 = vadd.s32 %v2600_v42, %v551_v37  ;;  %v2602_v53 = vmul.u32 %v5869_v2, %v1577_v48  ;;  %v2603_v54 = vmul.u32 %v5869_v2, %v1578_v50  ;;  %v1579_v56 = vld [vmem:[%s5861_s6 + $0xac8] sm:$0xff]  ;;  %v556_v57 = vld [vmem:[%s5853_s23 + $0xad0] sm:$0xff] }
 0x15d   : > { %4646 = vst [vmem:[%s5891_s24 + $0xa98] sm:$0xff] %v3622_v46  ;;  %v3625_v58 = vadd.s32 %v2601_v47, %v552_v43  ;;  %v2604_v59 = vmul.u32 %v5869_v2, %v1579_v56  ;;  %v1580_v60 = vld [vmem:[%s5861_s6 + $0xad0] sm:$0xff]  ;;  %v557_v61 = vld [vmem:[%s5853_s23 + $0xad8] sm:$0xff]  ;;  %4647 = vst [vmem:[%s5891_s24 + $0xaa0] sm:$0xff] %v3623_v51 }
 0x15e   : > { %v1581_v62 = vld [vmem:[%s5861_s6 + $0xad8] sm:$0xff]  ;;  %4648 = vst [vmem:[%s5891_s24 + $0xaa8] sm:$0xff] %v3624_v52  ;;  %v3626_v63 = vadd.s32 %v2602_v53, %v553_v45  ;;  %v3627_v0 = vadd.s32 %v2603_v54, %v554_v49  ;;  %v2605_v1 = vmul.u32 %v5869_v2, %v1580_v60  ;;  %v558_v4 = vld [vmem:[%s5853_s23 + $0xae0] sm:$0xff]  ;;  %v559_v6 = vld [vmem:[%s5853_s23 + $0xae8] sm:$0xff] }
 0x15f   : > { %v2606_v3 = vmul.u32 %v5869_v2, %v1581_v62  ;;  %v1582_v5 = vld [vmem:[%s5861_s6 + $0xae0] sm:$0xff]  ;;  %4649 = vst [vmem:[%s5891_s24 + $0xab0] sm:$0xff] %v3625_v58  ;;  %v3628_v7 = vadd.s32 %v2604_v59, %v555_v55  ;;  %v1583_v9 = vld [vmem:[%s5861_s6 + $0xae8] sm:$0xff]  ;;  %v560_v10 = vld [vmem:[%s5853_s23 + $0xaf0] sm:$0xff] }
 0x160   : > { %v2607_v8 = vmul.u32 %v5869_v2, %v1582_v5  ;;  %v1584_v11 = vld [vmem:[%s5861_s6 + $0xaf0] sm:$0xff]  ;;  %4650 = vst [vmem:[%s5891_s24 + $0xab8] sm:$0xff] %v3626_v63  ;;  %4651 = vst [vmem:[%s5891_s24 + $0xac0] sm:$0xff] %v3627_v0  ;;  %v3629_v12 = vadd.s32 %v2605_v1, %v556_v57  ;;  %v2608_v14 = vmul.u32 %v5869_v2, %v1583_v9  ;;  %v561_v16 = vld [vmem:[%s5853_s23 + $0xaf8] sm:$0xff] }
 0x161   : > { %v3630_v13 = vadd.s32 %v2606_v3, %v557_v61  ;;  %v2609_v15 = vmul.u32 %v5869_v2, %v1584_v11  ;;  %v1585_v17 = vld [vmem:[%s5861_s6 + $0xaf8] sm:$0xff]  ;;  %v562_v18 = vld [vmem:[%s5853_s23 + $0xb00] sm:$0xff]  ;;  %4652 = vst [vmem:[%s5891_s24 + $0xac8] sm:$0xff] %v3628_v7  ;;  %v563_v22 = vld [vmem:[%s5853_s23 + $0xb08] sm:$0xff] }
 0x162   : > { %v3631_v19 = vadd.s32 %v2607_v8, %v558_v4  ;;  %v2610_v20 = vmul.u32 %v5869_v2, %v1585_v17  ;;  %v1586_v21 = vld [vmem:[%s5861_s6 + $0xb00] sm:$0xff]  ;;  %v1587_v23 = vld [vmem:[%s5861_s6 + $0xb08] sm:$0xff]  ;;  %4653 = vst [vmem:[%s5891_s24 + $0xad0] sm:$0xff] %v3629_v12  ;;  %v3632_v24 = vadd.s32 %v2608_v14, %v559_v6  ;;  %v564_v28 = vld [vmem:[%s5853_s23 + $0xb10] sm:$0xff] }
 0x163   : > { %4654 = vst [vmem:[%s5891_s24 + $0xad8] sm:$0xff] %v3630_v13  ;;  %v3633_v25 = vadd.s32 %v2609_v15, %v560_v10  ;;  %v2611_v26 = vmul.u32 %v5869_v2, %v1586_v21  ;;  %v2612_v27 = vmul.u32 %v5869_v2, %v1587_v23  ;;  %v1588_v29 = vld [vmem:[%s5861_s6 + $0xb10] sm:$0xff]  ;;  %v565_v30 = vld [vmem:[%s5853_s23 + $0xb18] sm:$0xff]  ;;  %v566_v34 = vld [vmem:[%s5853_s23 + $0xb20] sm:$0xff] }
 0x164   : > { %4655 = vst [vmem:[%s5891_s24 + $0xae0] sm:$0xff] %v3631_v19  ;;  %v3634_v31 = vadd.s32 %v2610_v20, %v561_v16  ;;  %v2613_v32 = vmul.u32 %v5869_v2, %v1588_v29  ;;  %v1589_v33 = vld [vmem:[%s5861_s6 + $0xb18] sm:$0xff]  ;;  %v1590_v35 = vld [vmem:[%s5861_s6 + $0xb20] sm:$0xff]  ;;  %4656 = vst [vmem:[%s5891_s24 + $0xae8] sm:$0xff] %v3632_v24 }
 0x165   : > { %4657 = vst [vmem:[%s5891_s24 + $0xaf0] sm:$0xff] %v3633_v25  ;;  %v3635_v36 = vadd.s32 %v2611_v26, %v562_v18  ;;  %v3636_v37 = vadd.s32 %v2612_v27, %v563_v22  ;;  %v2614_v38 = vmul.u32 %v5869_v2, %v1589_v33  ;;  %v2615_v39 = vmul.u32 %v5869_v2, %v1590_v35  ;;  %v567_v40 = vld [vmem:[%s5853_s23 + $0xb28] sm:$0xff]  ;;  %v568_v42 = vld [vmem:[%s5853_s23 + $0xb30] sm:$0xff]  ;;  %v569_v46 = vld [vmem:[%s5853_s23 + $0xb38] sm:$0xff] }
 0x166   : > { %v1591_v41 = vld [vmem:[%s5861_s6 + $0xb28] sm:$0xff]  ;;  %4658 = vst [vmem:[%s5891_s24 + $0xaf8] sm:$0xff] %v3634_v31  ;;  %v3637_v43 = vadd.s32 %v2613_v32, %v564_v28  ;;  %v1592_v45 = vld [vmem:[%s5861_s6 + $0xb30] sm:$0xff]  ;;  %v1593_v47 = vld [vmem:[%s5861_s6 + $0xb38] sm:$0xff] }
 0x167   : > { %v2616_v44 = vmul.u32 %v5869_v2, %v1591_v41  ;;  %4659 = vst [vmem:[%s5891_s24 + $0xb00] sm:$0xff] %v3635_v36  ;;  %4660 = vst [vmem:[%s5891_s24 + $0xb08] sm:$0xff] %v3636_v37  ;;  %v3638_v48 = vadd.s32 %v2614_v38, %v565_v30  ;;  %v3639_v49 = vadd.s32 %v2615_v39, %v566_v34  ;;  %v570_v52 = vld [vmem:[%s5853_s23 + $0xb40] sm:$0xff]  ;;  %v571_v54 = vld [vmem:[%s5853_s23 + $0xb48] sm:$0xff] }
 0x168   : > { %v2617_v50 = vmul.u32 %v5869_v2, %v1592_v45  ;;  %v2618_v51 = vmul.u32 %v5869_v2, %v1593_v47  ;;  %v1594_v53 = vld [vmem:[%s5861_s6 + $0xb40] sm:$0xff]  ;;  %4661 = vst [vmem:[%s5891_s24 + $0xb10] sm:$0xff] %v3637_v43  ;;  %v1595_v57 = vld [vmem:[%s5861_s6 + $0xb48] sm:$0xff]  ;;  %v572_v58 = vld [vmem:[%s5853_s23 + $0xb50] sm:$0xff] }
 0x169   : > { %v3640_v55 = vadd.s32 %v2616_v44, %v567_v40  ;;  %v2619_v56 = vmul.u32 %v5869_v2, %v1594_v53  ;;  %v1596_v59 = vld [vmem:[%s5861_s6 + $0xb50] sm:$0xff]  ;;  %4662 = vst [vmem:[%s5891_s24 + $0xb18] sm:$0xff] %v3638_v48  ;;  %4663 = vst [vmem:[%s5891_s24 + $0xb20] sm:$0xff] %v3639_v49  ;;  %v2620_v62 = vmul.u32 %v5869_v2, %v1595_v57  ;;  %v573_v0 = vld [vmem:[%s5853_s23 + $0xb58] sm:$0xff] }
 0x16a   : > { %v3641_v60 = vadd.s32 %v2617_v50, %v568_v42  ;;  %v3642_v61 = vadd.s32 %v2618_v51, %v569_v46  ;;  %v2621_v63 = vmul.u32 %v5869_v2, %v1596_v59  ;;  %v1597_v1 = vld [vmem:[%s5861_s6 + $0xb58] sm:$0xff]  ;;  %v574_v3 = vld [vmem:[%s5853_s23 + $0xb60] sm:$0xff]  ;;  %v575_v7 = vld [vmem:[%s5853_s23 + $0xb68] sm:$0xff] }
 0x16b   : > { %4664 = vst [vmem:[%s5891_s24 + $0xb28] sm:$0xff] %v3640_v55  ;;  %v3643_v4 = vadd.s32 %v2619_v56, %v570_v52  ;;  %v2622_v5 = vmul.u32 %v5869_v2, %v1597_v1  ;;  %v1598_v6 = vld [vmem:[%s5861_s6 + $0xb60] sm:$0xff]  ;;  %v1599_v8 = vld [vmem:[%s5861_s6 + $0xb68] sm:$0xff]  ;;  %v3644_v9 = vadd.s32 %v2620_v62, %v571_v54  ;;  %v576_v13 = vld [vmem:[%s5853_s23 + $0xb70] sm:$0xff] }
 0x16c   : > { %4665 = vst [vmem:[%s5891_s24 + $0xb30] sm:$0xff] %v3641_v60  ;;  %4666 = vst [vmem:[%s5891_s24 + $0xb38] sm:$0xff] %v3642_v61  ;;  %v3645_v10 = vadd.s32 %v2621_v63, %v572_v58  ;;  %v2623_v11 = vmul.u32 %v5869_v2, %v1598_v6  ;;  %v2624_v12 = vmul.u32 %v5869_v2, %v1599_v8  ;;  %v1600_v14 = vld [vmem:[%s5861_s6 + $0xb70] sm:$0xff]  ;;  %v577_v15 = vld [vmem:[%s5853_s23 + $0xb78] sm:$0xff] }
 0x16d   : > { %4667 = vst [vmem:[%s5891_s24 + $0xb40] sm:$0xff] %v3643_v4  ;;  %v3646_v16 = vadd.s32 %v2622_v5, %v573_v0  ;;  %v2625_v17 = vmul.u32 %v5869_v2, %v1600_v14  ;;  %v1601_v18 = vld [vmem:[%s5861_s6 + $0xb78] sm:$0xff]  ;;  %v578_v19 = vld [vmem:[%s5853_s23 + $0xb80] sm:$0xff]  ;;  %4668 = vst [vmem:[%s5891_s24 + $0xb48] sm:$0xff] %v3644_v9 }
 0x16e   : > { %v1602_v20 = vld [vmem:[%s5861_s6 + $0xb80] sm:$0xff]  ;;  %4669 = vst [vmem:[%s5891_s24 + $0xb50] sm:$0xff] %v3645_v10  ;;  %v3647_v21 = vadd.s32 %v2623_v11, %v574_v3  ;;  %v3648_v22 = vadd.s32 %v2624_v12, %v575_v7  ;;  %v2626_v23 = vmul.u32 %v5869_v2, %v1601_v18  ;;  %v579_v25 = vld [vmem:[%s5853_s23 + $0xb88] sm:$0xff]  ;;  %v580_v27 = vld [vmem:[%s5853_s23 + $0xb90] sm:$0xff] }
 0x16f   : > { %v2627_v24 = vmul.u32 %v5869_v2, %v1602_v20  ;;  %v1603_v26 = vld [vmem:[%s5861_s6 + $0xb88] sm:$0xff]  ;;  %4670 = vst [vmem:[%s5891_s24 + $0xb58] sm:$0xff] %v3646_v16  ;;  %v3649_v28 = vadd.s32 %v2625_v17, %v576_v13  ;;  %v1604_v30 = vld [vmem:[%s5861_s6 + $0xb90] sm:$0xff]  ;;  %v581_v31 = vld [vmem:[%s5853_s23 + $0xb98] sm:$0xff] }
 0x170   : > { %v2628_v29 = vmul.u32 %v5869_v2, %v1603_v26  ;;  %v1605_v32 = vld [vmem:[%s5861_s6 + $0xb98] sm:$0xff]  ;;  %4671 = vst [vmem:[%s5891_s24 + $0xb60] sm:$0xff] %v3647_v21  ;;  %4672 = vst [vmem:[%s5891_s24 + $0xb68] sm:$0xff] %v3648_v22  ;;  %v3650_v33 = vadd.s32 %v2626_v23, %v577_v15  ;;  %v2629_v35 = vmul.u32 %v5869_v2, %v1604_v30  ;;  %v582_v37 = vld [vmem:[%s5853_s23 + $0xba0] sm:$0xff] }
 0x171   : > { %v3651_v34 = vadd.s32 %v2627_v24, %v578_v19  ;;  %v2630_v36 = vmul.u32 %v5869_v2, %v1605_v32  ;;  %v1606_v38 = vld [vmem:[%s5861_s6 + $0xba0] sm:$0xff]  ;;  %v583_v39 = vld [vmem:[%s5853_s23 + $0xba8] sm:$0xff]  ;;  %4673 = vst [vmem:[%s5891_s24 + $0xb70] sm:$0xff] %v3649_v28  ;;  %v584_v43 = vld [vmem:[%s5853_s23 + $0xbb0] sm:$0xff] }
 0x172   : > { %v3652_v40 = vadd.s32 %v2628_v29, %v579_v25  ;;  %v2631_v41 = vmul.u32 %v5869_v2, %v1606_v38  ;;  %v1607_v42 = vld [vmem:[%s5861_s6 + $0xba8] sm:$0xff]  ;;  %v1608_v44 = vld [vmem:[%s5861_s6 + $0xbb0] sm:$0xff]  ;;  %4674 = vst [vmem:[%s5891_s24 + $0xb78] sm:$0xff] %v3650_v33  ;;  %v3653_v45 = vadd.s32 %v2629_v35, %v580_v27  ;;  %v585_v49 = vld [vmem:[%s5853_s23 + $0xbb8] sm:$0xff] }
 0x173   : > { %4675 = vst [vmem:[%s5891_s24 + $0xb80] sm:$0xff] %v3651_v34  ;;  %v3654_v46 = vadd.s32 %v2630_v36, %v581_v31  ;;  %v2632_v47 = vmul.u32 %v5869_v2, %v1607_v42  ;;  %v2633_v48 = vmul.u32 %v5869_v2, %v1608_v44  ;;  %v1609_v50 = vld [vmem:[%s5861_s6 + $0xbb8] sm:$0xff]  ;;  %v586_v51 = vld [vmem:[%s5853_s23 + $0xbc0] sm:$0xff]  ;;  %v587_v55 = vld [vmem:[%s5853_s23 + $0xbc8] sm:$0xff] }
 0x174   : > { %4676 = vst [vmem:[%s5891_s24 + $0xb88] sm:$0xff] %v3652_v40  ;;  %v3655_v52 = vadd.s32 %v2631_v41, %v582_v37  ;;  %v2634_v53 = vmul.u32 %v5869_v2, %v1609_v50  ;;  %v1610_v54 = vld [vmem:[%s5861_s6 + $0xbc0] sm:$0xff]  ;;  %v1611_v56 = vld [vmem:[%s5861_s6 + $0xbc8] sm:$0xff]  ;;  %4677 = vst [vmem:[%s5891_s24 + $0xb90] sm:$0xff] %v3653_v45 }
 0x175   : > { %4678 = vst [vmem:[%s5891_s24 + $0xb98] sm:$0xff] %v3654_v46  ;;  %v3656_v57 = vadd.s32 %v2632_v47, %v583_v39  ;;  %v3657_v58 = vadd.s32 %v2633_v48, %v584_v43  ;;  %v2635_v59 = vmul.u32 %v5869_v2, %v1610_v54  ;;  %v2636_v60 = vmul.u32 %v5869_v2, %v1611_v56  ;;  %v588_v61 = vld [vmem:[%s5853_s23 + $0xbd0] sm:$0xff]  ;;  %v589_v63 = vld [vmem:[%s5853_s23 + $0xbd8] sm:$0xff]  ;;  %v590_v4 = vld [vmem:[%s5853_s23 + $0xbe0] sm:$0xff] }
 0x176   : > { %v1612_v62 = vld [vmem:[%s5861_s6 + $0xbd0] sm:$0xff]  ;;  %4679 = vst [vmem:[%s5891_s24 + $0xba0] sm:$0xff] %v3655_v52  ;;  %v3658_v0 = vadd.s32 %v2634_v53, %v585_v49  ;;  %v1613_v3 = vld [vmem:[%s5861_s6 + $0xbd8] sm:$0xff]  ;;  %v1614_v5 = vld [vmem:[%s5861_s6 + $0xbe0] sm:$0xff] }
 0x177   : > { %v2637_v1 = vmul.u32 %v5869_v2, %v1612_v62  ;;  %4680 = vst [vmem:[%s5891_s24 + $0xba8] sm:$0xff] %v3656_v57  ;;  %4681 = vst [vmem:[%s5891_s24 + $0xbb0] sm:$0xff] %v3657_v58  ;;  %v3659_v6 = vadd.s32 %v2635_v59, %v586_v51  ;;  %v3660_v7 = vadd.s32 %v2636_v60, %v587_v55  ;;  %v591_v10 = vld [vmem:[%s5853_s23 + $0xbe8] sm:$0xff]  ;;  %v592_v12 = vld [vmem:[%s5853_s23 + $0xbf0] sm:$0xff] }
 0x178   : > { %v2638_v8 = vmul.u32 %v5869_v2, %v1613_v3  ;;  %v2639_v9 = vmul.u32 %v5869_v2, %v1614_v5  ;;  %v1615_v11 = vld [vmem:[%s5861_s6 + $0xbe8] sm:$0xff]  ;;  %4682 = vst [vmem:[%s5891_s24 + $0xbb8] sm:$0xff] %v3658_v0  ;;  %v1616_v15 = vld [vmem:[%s5861_s6 + $0xbf0] sm:$0xff]  ;;  %v593_v16 = vld [vmem:[%s5853_s23 + $0xbf8] sm:$0xff] }
 0x179   : > { %v3661_v13 = vadd.s32 %v2637_v1, %v588_v61  ;;  %v2640_v14 = vmul.u32 %v5869_v2, %v1615_v11  ;;  %v1617_v17 = vld [vmem:[%s5861_s6 + $0xbf8] sm:$0xff]  ;;  %4683 = vst [vmem:[%s5891_s24 + $0xbc0] sm:$0xff] %v3659_v6  ;;  %4684 = vst [vmem:[%s5891_s24 + $0xbc8] sm:$0xff] %v3660_v7  ;;  %v2641_v20 = vmul.u32 %v5869_v2, %v1616_v15  ;;  %v594_v22 = vld [vmem:[%s5853_s23 + $0xc00] sm:$0xff] }
 0x17a   : > { %v3662_v18 = vadd.s32 %v2638_v8, %v589_v63  ;;  %v3663_v19 = vadd.s32 %v2639_v9, %v590_v4  ;;  %v2642_v21 = vmul.u32 %v5869_v2, %v1617_v17  ;;  %v1618_v23 = vld [vmem:[%s5861_s6 + $0xc00] sm:$0xff]  ;;  %v595_v24 = vld [vmem:[%s5853_s23 + $0xc08] sm:$0xff]  ;;  %v596_v28 = vld [vmem:[%s5853_s23 + $0xc10] sm:$0xff] }
 0x17b   : > { %4685 = vst [vmem:[%s5891_s24 + $0xbd0] sm:$0xff] %v3661_v13  ;;  %v3664_v25 = vadd.s32 %v2640_v14, %v591_v10  ;;  %v2643_v26 = vmul.u32 %v5869_v2, %v1618_v23  ;;  %v1619_v27 = vld [vmem:[%s5861_s6 + $0xc08] sm:$0xff]  ;;  %v1620_v29 = vld [vmem:[%s5861_s6 + $0xc10] sm:$0xff]  ;;  %v3665_v30 = vadd.s32 %v2641_v20, %v592_v12  ;;  %v597_v34 = vld [vmem:[%s5853_s23 + $0xc18] sm:$0xff] }
 0x17c   : > { %4686 = vst [vmem:[%s5891_s24 + $0xbd8] sm:$0xff] %v3662_v18  ;;  %4687 = vst [vmem:[%s5891_s24 + $0xbe0] sm:$0xff] %v3663_v19  ;;  %v3666_v31 = vadd.s32 %v2642_v21, %v593_v16  ;;  %v2644_v32 = vmul.u32 %v5869_v2, %v1619_v27  ;;  %v2645_v33 = vmul.u32 %v5869_v2, %v1620_v29  ;;  %v1621_v35 = vld [vmem:[%s5861_s6 + $0xc18] sm:$0xff]  ;;  %v598_v36 = vld [vmem:[%s5853_s23 + $0xc20] sm:$0xff] }
 0x17d   : > { %4688 = vst [vmem:[%s5891_s24 + $0xbe8] sm:$0xff] %v3664_v25  ;;  %v3667_v37 = vadd.s32 %v2643_v26, %v594_v22  ;;  %v2646_v38 = vmul.u32 %v5869_v2, %v1621_v35  ;;  %v1622_v39 = vld [vmem:[%s5861_s6 + $0xc20] sm:$0xff]  ;;  %v599_v40 = vld [vmem:[%s5853_s23 + $0xc28] sm:$0xff]  ;;  %4689 = vst [vmem:[%s5891_s24 + $0xbf0] sm:$0xff] %v3665_v30 }
 0x17e   : > { %v1623_v41 = vld [vmem:[%s5861_s6 + $0xc28] sm:$0xff]  ;;  %4690 = vst [vmem:[%s5891_s24 + $0xbf8] sm:$0xff] %v3666_v31  ;;  %v3668_v42 = vadd.s32 %v2644_v32, %v595_v24  ;;  %v3669_v43 = vadd.s32 %v2645_v33, %v596_v28  ;;  %v2647_v44 = vmul.u32 %v5869_v2, %v1622_v39  ;;  %v600_v46 = vld [vmem:[%s5853_s23 + $0xc30] sm:$0xff]  ;;  %v601_v48 = vld [vmem:[%s5853_s23 + $0xc38] sm:$0xff] }
 0x17f   : > { %v2648_v45 = vmul.u32 %v5869_v2, %v1623_v41  ;;  %v1624_v47 = vld [vmem:[%s5861_s6 + $0xc30] sm:$0xff]  ;;  %4691 = vst [vmem:[%s5891_s24 + $0xc00] sm:$0xff] %v3667_v37  ;;  %v3670_v49 = vadd.s32 %v2646_v38, %v597_v34  ;;  %v1625_v51 = vld [vmem:[%s5861_s6 + $0xc38] sm:$0xff]  ;;  %v602_v52 = vld [vmem:[%s5853_s23 + $0xc40] sm:$0xff] }
 0x180   : > { %v2649_v50 = vmul.u32 %v5869_v2, %v1624_v47  ;;  %v1626_v53 = vld [vmem:[%s5861_s6 + $0xc40] sm:$0xff]  ;;  %4692 = vst [vmem:[%s5891_s24 + $0xc08] sm:$0xff] %v3668_v42  ;;  %4693 = vst [vmem:[%s5891_s24 + $0xc10] sm:$0xff] %v3669_v43  ;;  %v3671_v54 = vadd.s32 %v2647_v44, %v598_v36  ;;  %v2650_v56 = vmul.u32 %v5869_v2, %v1625_v51  ;;  %v603_v58 = vld [vmem:[%s5853_s23 + $0xc48] sm:$0xff] }
 0x181   : > { %v3672_v55 = vadd.s32 %v2648_v45, %v599_v40  ;;  %v2651_v57 = vmul.u32 %v5869_v2, %v1626_v53  ;;  %v1627_v59 = vld [vmem:[%s5861_s6 + $0xc48] sm:$0xff]  ;;  %v604_v60 = vld [vmem:[%s5853_s23 + $0xc50] sm:$0xff]  ;;  %4694 = vst [vmem:[%s5891_s24 + $0xc18] sm:$0xff] %v3670_v49  ;;  %v605_v0 = vld [vmem:[%s5853_s23 + $0xc58] sm:$0xff] }
 0x182   : > { %v3673_v61 = vadd.s32 %v2649_v50, %v600_v46  ;;  %v2652_v62 = vmul.u32 %v5869_v2, %v1627_v59  ;;  %v1628_v63 = vld [vmem:[%s5861_s6 + $0xc50] sm:$0xff]  ;;  %v1629_v1 = vld [vmem:[%s5861_s6 + $0xc58] sm:$0xff]  ;;  %4695 = vst [vmem:[%s5891_s24 + $0xc20] sm:$0xff] %v3671_v54  ;;  %v3674_v3 = vadd.s32 %v2650_v56, %v601_v48  ;;  %v606_v7 = vld [vmem:[%s5853_s23 + $0xc60] sm:$0xff] }
 0x183   : > { %4696 = vst [vmem:[%s5891_s24 + $0xc28] sm:$0xff] %v3672_v55  ;;  %v3675_v4 = vadd.s32 %v2651_v57, %v602_v52  ;;  %v2653_v5 = vmul.u32 %v5869_v2, %v1628_v63  ;;  %v2654_v6 = vmul.u32 %v5869_v2, %v1629_v1  ;;  %v1630_v8 = vld [vmem:[%s5861_s6 + $0xc60] sm:$0xff]  ;;  %v607_v9 = vld [vmem:[%s5853_s23 + $0xc68] sm:$0xff]  ;;  %v608_v13 = vld [vmem:[%s5853_s23 + $0xc70] sm:$0xff] }
 0x184   : > { %4697 = vst [vmem:[%s5891_s24 + $0xc30] sm:$0xff] %v3673_v61  ;;  %v3676_v10 = vadd.s32 %v2652_v62, %v603_v58  ;;  %v2655_v11 = vmul.u32 %v5869_v2, %v1630_v8  ;;  %v1631_v12 = vld [vmem:[%s5861_s6 + $0xc68] sm:$0xff]  ;;  %v1632_v14 = vld [vmem:[%s5861_s6 + $0xc70] sm:$0xff]  ;;  %4698 = vst [vmem:[%s5891_s24 + $0xc38] sm:$0xff] %v3674_v3 }
 0x185   : > { %4699 = vst [vmem:[%s5891_s24 + $0xc40] sm:$0xff] %v3675_v4  ;;  %v3677_v15 = vadd.s32 %v2653_v5, %v604_v60  ;;  %v3678_v16 = vadd.s32 %v2654_v6, %v605_v0  ;;  %v2656_v17 = vmul.u32 %v5869_v2, %v1631_v12  ;;  %v2657_v18 = vmul.u32 %v5869_v2, %v1632_v14  ;;  %v609_v19 = vld [vmem:[%s5853_s23 + $0xc78] sm:$0xff]  ;;  %v610_v21 = vld [vmem:[%s5853_s23 + $0xc80] sm:$0xff]  ;;  %v611_v25 = vld [vmem:[%s5853_s23 + $0xc88] sm:$0xff] }
 0x186   : > { %v1633_v20 = vld [vmem:[%s5861_s6 + $0xc78] sm:$0xff]  ;;  %4700 = vst [vmem:[%s5891_s24 + $0xc48] sm:$0xff] %v3676_v10  ;;  %v3679_v22 = vadd.s32 %v2655_v11, %v606_v7  ;;  %v1634_v24 = vld [vmem:[%s5861_s6 + $0xc80] sm:$0xff]  ;;  %v1635_v26 = vld [vmem:[%s5861_s6 + $0xc88] sm:$0xff] }
 0x187   : > { %v2658_v23 = vmul.u32 %v5869_v2, %v1633_v20  ;;  %4701 = vst [vmem:[%s5891_s24 + $0xc50] sm:$0xff] %v3677_v15  ;;  %4702 = vst [vmem:[%s5891_s24 + $0xc58] sm:$0xff] %v3678_v16  ;;  %v3680_v27 = vadd.s32 %v2656_v17, %v607_v9  ;;  %v3681_v28 = vadd.s32 %v2657_v18, %v608_v13  ;;  %v612_v31 = vld [vmem:[%s5853_s23 + $0xc90] sm:$0xff]  ;;  %v613_v33 = vld [vmem:[%s5853_s23 + $0xc98] sm:$0xff] }
 0x188   : > { %v2659_v29 = vmul.u32 %v5869_v2, %v1634_v24  ;;  %v2660_v30 = vmul.u32 %v5869_v2, %v1635_v26  ;;  %v1636_v32 = vld [vmem:[%s5861_s6 + $0xc90] sm:$0xff]  ;;  %4703 = vst [vmem:[%s5891_s24 + $0xc60] sm:$0xff] %v3679_v22  ;;  %v1637_v36 = vld [vmem:[%s5861_s6 + $0xc98] sm:$0xff]  ;;  %v614_v37 = vld [vmem:[%s5853_s23 + $0xca0] sm:$0xff] }
 0x189   : > { %v3682_v34 = vadd.s32 %v2658_v23, %v609_v19  ;;  %v2661_v35 = vmul.u32 %v5869_v2, %v1636_v32  ;;  %v1638_v38 = vld [vmem:[%s5861_s6 + $0xca0] sm:$0xff]  ;;  %4704 = vst [vmem:[%s5891_s24 + $0xc68] sm:$0xff] %v3680_v27  ;;  %4705 = vst [vmem:[%s5891_s24 + $0xc70] sm:$0xff] %v3681_v28  ;;  %v2662_v41 = vmul.u32 %v5869_v2, %v1637_v36  ;;  %v615_v43 = vld [vmem:[%s5853_s23 + $0xca8] sm:$0xff] }
 0x18a   : > { %v3683_v39 = vadd.s32 %v2659_v29, %v610_v21  ;;  %v3684_v40 = vadd.s32 %v2660_v30, %v611_v25  ;;  %v2663_v42 = vmul.u32 %v5869_v2, %v1638_v38  ;;  %v1639_v44 = vld [vmem:[%s5861_s6 + $0xca8] sm:$0xff]  ;;  %v616_v45 = vld [vmem:[%s5853_s23 + $0xcb0] sm:$0xff]  ;;  %v617_v49 = vld [vmem:[%s5853_s23 + $0xcb8] sm:$0xff] }
 0x18b   : > { %4706 = vst [vmem:[%s5891_s24 + $0xc78] sm:$0xff] %v3682_v34  ;;  %v3685_v46 = vadd.s32 %v2661_v35, %v612_v31  ;;  %v2664_v47 = vmul.u32 %v5869_v2, %v1639_v44  ;;  %v1640_v48 = vld [vmem:[%s5861_s6 + $0xcb0] sm:$0xff]  ;;  %v1641_v50 = vld [vmem:[%s5861_s6 + $0xcb8] sm:$0xff]  ;;  %v3686_v51 = vadd.s32 %v2662_v41, %v613_v33  ;;  %v618_v55 = vld [vmem:[%s5853_s23 + $0xcc0] sm:$0xff] }
 0x18c   : > { %4707 = vst [vmem:[%s5891_s24 + $0xc80] sm:$0xff] %v3683_v39  ;;  %4708 = vst [vmem:[%s5891_s24 + $0xc88] sm:$0xff] %v3684_v40  ;;  %v3687_v52 = vadd.s32 %v2663_v42, %v614_v37  ;;  %v2665_v53 = vmul.u32 %v5869_v2, %v1640_v48  ;;  %v2666_v54 = vmul.u32 %v5869_v2, %v1641_v50  ;;  %v1642_v56 = vld [vmem:[%s5861_s6 + $0xcc0] sm:$0xff]  ;;  %v619_v57 = vld [vmem:[%s5853_s23 + $0xcc8] sm:$0xff] }
 0x18d   : > { %4709 = vst [vmem:[%s5891_s24 + $0xc90] sm:$0xff] %v3685_v46  ;;  %v3688_v58 = vadd.s32 %v2664_v47, %v615_v43  ;;  %v2667_v59 = vmul.u32 %v5869_v2, %v1642_v56  ;;  %v1643_v60 = vld [vmem:[%s5861_s6 + $0xcc8] sm:$0xff]  ;;  %v620_v61 = vld [vmem:[%s5853_s23 + $0xcd0] sm:$0xff]  ;;  %4710 = vst [vmem:[%s5891_s24 + $0xc98] sm:$0xff] %v3686_v51 }
 0x18e   : > { %v1644_v62 = vld [vmem:[%s5861_s6 + $0xcd0] sm:$0xff]  ;;  %4711 = vst [vmem:[%s5891_s24 + $0xca0] sm:$0xff] %v3687_v52  ;;  %v3689_v63 = vadd.s32 %v2665_v53, %v616_v45  ;;  %v3690_v0 = vadd.s32 %v2666_v54, %v617_v49  ;;  %v2668_v1 = vmul.u32 %v5869_v2, %v1643_v60  ;;  %v621_v4 = vld [vmem:[%s5853_s23 + $0xcd8] sm:$0xff]  ;;  %v622_v6 = vld [vmem:[%s5853_s23 + $0xce0] sm:$0xff] }
 0x18f   : > { %v2669_v3 = vmul.u32 %v5869_v2, %v1644_v62  ;;  %v1645_v5 = vld [vmem:[%s5861_s6 + $0xcd8] sm:$0xff]  ;;  %4712 = vst [vmem:[%s5891_s24 + $0xca8] sm:$0xff] %v3688_v58  ;;  %v3691_v7 = vadd.s32 %v2667_v59, %v618_v55  ;;  %v1646_v9 = vld [vmem:[%s5861_s6 + $0xce0] sm:$0xff]  ;;  %v623_v10 = vld [vmem:[%s5853_s23 + $0xce8] sm:$0xff] }
 0x190   : > { %v2670_v8 = vmul.u32 %v5869_v2, %v1645_v5  ;;  %v1647_v11 = vld [vmem:[%s5861_s6 + $0xce8] sm:$0xff]  ;;  %4713 = vst [vmem:[%s5891_s24 + $0xcb0] sm:$0xff] %v3689_v63  ;;  %4714 = vst [vmem:[%s5891_s24 + $0xcb8] sm:$0xff] %v3690_v0  ;;  %v3692_v12 = vadd.s32 %v2668_v1, %v619_v57  ;;  %v2671_v14 = vmul.u32 %v5869_v2, %v1646_v9  ;;  %v624_v16 = vld [vmem:[%s5853_s23 + $0xcf0] sm:$0xff] }
 0x191   : > { %v3693_v13 = vadd.s32 %v2669_v3, %v620_v61  ;;  %v2672_v15 = vmul.u32 %v5869_v2, %v1647_v11  ;;  %v1648_v17 = vld [vmem:[%s5861_s6 + $0xcf0] sm:$0xff]  ;;  %v625_v18 = vld [vmem:[%s5853_s23 + $0xcf8] sm:$0xff]  ;;  %4715 = vst [vmem:[%s5891_s24 + $0xcc0] sm:$0xff] %v3691_v7  ;;  %v626_v22 = vld [vmem:[%s5853_s23 + $0xd00] sm:$0xff] }
 0x192   : > { %v3694_v19 = vadd.s32 %v2670_v8, %v621_v4  ;;  %v2673_v20 = vmul.u32 %v5869_v2, %v1648_v17  ;;  %v1649_v21 = vld [vmem:[%s5861_s6 + $0xcf8] sm:$0xff]  ;;  %v1650_v23 = vld [vmem:[%s5861_s6 + $0xd00] sm:$0xff]  ;;  %4716 = vst [vmem:[%s5891_s24 + $0xcc8] sm:$0xff] %v3692_v12  ;;  %v3695_v24 = vadd.s32 %v2671_v14, %v622_v6  ;;  %v627_v28 = vld [vmem:[%s5853_s23 + $0xd08] sm:$0xff] }
 0x193   : > { %4717 = vst [vmem:[%s5891_s24 + $0xcd0] sm:$0xff] %v3693_v13  ;;  %v3696_v25 = vadd.s32 %v2672_v15, %v623_v10  ;;  %v2674_v26 = vmul.u32 %v5869_v2, %v1649_v21  ;;  %v2675_v27 = vmul.u32 %v5869_v2, %v1650_v23  ;;  %v1651_v29 = vld [vmem:[%s5861_s6 + $0xd08] sm:$0xff]  ;;  %v628_v30 = vld [vmem:[%s5853_s23 + $0xd10] sm:$0xff]  ;;  %v629_v34 = vld [vmem:[%s5853_s23 + $0xd18] sm:$0xff] }
 0x194   : > { %4718 = vst [vmem:[%s5891_s24 + $0xcd8] sm:$0xff] %v3694_v19  ;;  %v3697_v31 = vadd.s32 %v2673_v20, %v624_v16  ;;  %v2676_v32 = vmul.u32 %v5869_v2, %v1651_v29  ;;  %v1652_v33 = vld [vmem:[%s5861_s6 + $0xd10] sm:$0xff]  ;;  %v1653_v35 = vld [vmem:[%s5861_s6 + $0xd18] sm:$0xff]  ;;  %4719 = vst [vmem:[%s5891_s24 + $0xce0] sm:$0xff] %v3695_v24 }
 0x195   : > { %4720 = vst [vmem:[%s5891_s24 + $0xce8] sm:$0xff] %v3696_v25  ;;  %v3698_v36 = vadd.s32 %v2674_v26, %v625_v18  ;;  %v3699_v37 = vadd.s32 %v2675_v27, %v626_v22  ;;  %v2677_v38 = vmul.u32 %v5869_v2, %v1652_v33  ;;  %v2678_v39 = vmul.u32 %v5869_v2, %v1653_v35  ;;  %v630_v40 = vld [vmem:[%s5853_s23 + $0xd20] sm:$0xff]  ;;  %v631_v42 = vld [vmem:[%s5853_s23 + $0xd28] sm:$0xff]  ;;  %v632_v46 = vld [vmem:[%s5853_s23 + $0xd30] sm:$0xff] }
 0x196   : > { %v1654_v41 = vld [vmem:[%s5861_s6 + $0xd20] sm:$0xff]  ;;  %4721 = vst [vmem:[%s5891_s24 + $0xcf0] sm:$0xff] %v3697_v31  ;;  %v3700_v43 = vadd.s32 %v2676_v32, %v627_v28  ;;  %v1655_v45 = vld [vmem:[%s5861_s6 + $0xd28] sm:$0xff]  ;;  %v1656_v47 = vld [vmem:[%s5861_s6 + $0xd30] sm:$0xff] }
 0x197   : > { %v2679_v44 = vmul.u32 %v5869_v2, %v1654_v41  ;;  %4722 = vst [vmem:[%s5891_s24 + $0xcf8] sm:$0xff] %v3698_v36  ;;  %4723 = vst [vmem:[%s5891_s24 + $0xd00] sm:$0xff] %v3699_v37  ;;  %v3701_v48 = vadd.s32 %v2677_v38, %v628_v30  ;;  %v3702_v49 = vadd.s32 %v2678_v39, %v629_v34  ;;  %v633_v52 = vld [vmem:[%s5853_s23 + $0xd38] sm:$0xff]  ;;  %v634_v54 = vld [vmem:[%s5853_s23 + $0xd40] sm:$0xff] }
 0x198   : > { %v2680_v50 = vmul.u32 %v5869_v2, %v1655_v45  ;;  %v2681_v51 = vmul.u32 %v5869_v2, %v1656_v47  ;;  %v1657_v53 = vld [vmem:[%s5861_s6 + $0xd38] sm:$0xff]  ;;  %4724 = vst [vmem:[%s5891_s24 + $0xd08] sm:$0xff] %v3700_v43  ;;  %v1658_v57 = vld [vmem:[%s5861_s6 + $0xd40] sm:$0xff]  ;;  %v635_v58 = vld [vmem:[%s5853_s23 + $0xd48] sm:$0xff] }
 0x199   : > { %v3703_v55 = vadd.s32 %v2679_v44, %v630_v40  ;;  %v2682_v56 = vmul.u32 %v5869_v2, %v1657_v53  ;;  %v1659_v59 = vld [vmem:[%s5861_s6 + $0xd48] sm:$0xff]  ;;  %4725 = vst [vmem:[%s5891_s24 + $0xd10] sm:$0xff] %v3701_v48  ;;  %4726 = vst [vmem:[%s5891_s24 + $0xd18] sm:$0xff] %v3702_v49  ;;  %v2683_v62 = vmul.u32 %v5869_v2, %v1658_v57  ;;  %v636_v0 = vld [vmem:[%s5853_s23 + $0xd50] sm:$0xff] }
 0x19a   : > { %v3704_v60 = vadd.s32 %v2680_v50, %v631_v42  ;;  %v3705_v61 = vadd.s32 %v2681_v51, %v632_v46  ;;  %v2684_v63 = vmul.u32 %v5869_v2, %v1659_v59  ;;  %v1660_v1 = vld [vmem:[%s5861_s6 + $0xd50] sm:$0xff]  ;;  %v637_v3 = vld [vmem:[%s5853_s23 + $0xd58] sm:$0xff]  ;;  %v638_v7 = vld [vmem:[%s5853_s23 + $0xd60] sm:$0xff] }
 0x19b   : > { %4727 = vst [vmem:[%s5891_s24 + $0xd20] sm:$0xff] %v3703_v55  ;;  %v3706_v4 = vadd.s32 %v2682_v56, %v633_v52  ;;  %v2685_v5 = vmul.u32 %v5869_v2, %v1660_v1  ;;  %v1661_v6 = vld [vmem:[%s5861_s6 + $0xd58] sm:$0xff]  ;;  %v1662_v8 = vld [vmem:[%s5861_s6 + $0xd60] sm:$0xff]  ;;  %v3707_v9 = vadd.s32 %v2683_v62, %v634_v54  ;;  %v639_v13 = vld [vmem:[%s5853_s23 + $0xd68] sm:$0xff] }
 0x19c   : > { %4728 = vst [vmem:[%s5891_s24 + $0xd28] sm:$0xff] %v3704_v60  ;;  %4729 = vst [vmem:[%s5891_s24 + $0xd30] sm:$0xff] %v3705_v61  ;;  %v3708_v10 = vadd.s32 %v2684_v63, %v635_v58  ;;  %v2686_v11 = vmul.u32 %v5869_v2, %v1661_v6  ;;  %v2687_v12 = vmul.u32 %v5869_v2, %v1662_v8  ;;  %v1663_v14 = vld [vmem:[%s5861_s6 + $0xd68] sm:$0xff]  ;;  %v640_v15 = vld [vmem:[%s5853_s23 + $0xd70] sm:$0xff] }
 0x19d   : > { %4730 = vst [vmem:[%s5891_s24 + $0xd38] sm:$0xff] %v3706_v4  ;;  %v3709_v16 = vadd.s32 %v2685_v5, %v636_v0  ;;  %v2688_v17 = vmul.u32 %v5869_v2, %v1663_v14  ;;  %v1664_v18 = vld [vmem:[%s5861_s6 + $0xd70] sm:$0xff]  ;;  %v641_v19 = vld [vmem:[%s5853_s23 + $0xd78] sm:$0xff]  ;;  %4731 = vst [vmem:[%s5891_s24 + $0xd40] sm:$0xff] %v3707_v9 }
 0x19e   : > { %v1665_v20 = vld [vmem:[%s5861_s6 + $0xd78] sm:$0xff]  ;;  %4732 = vst [vmem:[%s5891_s24 + $0xd48] sm:$0xff] %v3708_v10  ;;  %v3710_v21 = vadd.s32 %v2686_v11, %v637_v3  ;;  %v3711_v22 = vadd.s32 %v2687_v12, %v638_v7  ;;  %v2689_v23 = vmul.u32 %v5869_v2, %v1664_v18  ;;  %v642_v25 = vld [vmem:[%s5853_s23 + $0xd80] sm:$0xff]  ;;  %v643_v27 = vld [vmem:[%s5853_s23 + $0xd88] sm:$0xff] }
 0x19f   : > { %v2690_v24 = vmul.u32 %v5869_v2, %v1665_v20  ;;  %v1666_v26 = vld [vmem:[%s5861_s6 + $0xd80] sm:$0xff]  ;;  %4733 = vst [vmem:[%s5891_s24 + $0xd50] sm:$0xff] %v3709_v16  ;;  %v3712_v28 = vadd.s32 %v2688_v17, %v639_v13  ;;  %v1667_v30 = vld [vmem:[%s5861_s6 + $0xd88] sm:$0xff]  ;;  %v644_v31 = vld [vmem:[%s5853_s23 + $0xd90] sm:$0xff] }
 0x1a0   : > { %v2691_v29 = vmul.u32 %v5869_v2, %v1666_v26  ;;  %v1668_v32 = vld [vmem:[%s5861_s6 + $0xd90] sm:$0xff]  ;;  %4734 = vst [vmem:[%s5891_s24 + $0xd58] sm:$0xff] %v3710_v21  ;;  %4735 = vst [vmem:[%s5891_s24 + $0xd60] sm:$0xff] %v3711_v22  ;;  %v3713_v33 = vadd.s32 %v2689_v23, %v640_v15  ;;  %v2692_v35 = vmul.u32 %v5869_v2, %v1667_v30  ;;  %v645_v37 = vld [vmem:[%s5853_s23 + $0xd98] sm:$0xff] }
 0x1a1   : > { %v3714_v34 = vadd.s32 %v2690_v24, %v641_v19  ;;  %v2693_v36 = vmul.u32 %v5869_v2, %v1668_v32  ;;  %v1669_v38 = vld [vmem:[%s5861_s6 + $0xd98] sm:$0xff]  ;;  %v646_v39 = vld [vmem:[%s5853_s23 + $0xda0] sm:$0xff]  ;;  %4736 = vst [vmem:[%s5891_s24 + $0xd68] sm:$0xff] %v3712_v28  ;;  %v647_v43 = vld [vmem:[%s5853_s23 + $0xda8] sm:$0xff] }
 0x1a2   : > { %v3715_v40 = vadd.s32 %v2691_v29, %v642_v25  ;;  %v2694_v41 = vmul.u32 %v5869_v2, %v1669_v38  ;;  %v1670_v42 = vld [vmem:[%s5861_s6 + $0xda0] sm:$0xff]  ;;  %v1671_v44 = vld [vmem:[%s5861_s6 + $0xda8] sm:$0xff]  ;;  %4737 = vst [vmem:[%s5891_s24 + $0xd70] sm:$0xff] %v3713_v33  ;;  %v3716_v45 = vadd.s32 %v2692_v35, %v643_v27  ;;  %v648_v49 = vld [vmem:[%s5853_s23 + $0xdb0] sm:$0xff] }
 0x1a3   : > { %4738 = vst [vmem:[%s5891_s24 + $0xd78] sm:$0xff] %v3714_v34  ;;  %v3717_v46 = vadd.s32 %v2693_v36, %v644_v31  ;;  %v2695_v47 = vmul.u32 %v5869_v2, %v1670_v42  ;;  %v2696_v48 = vmul.u32 %v5869_v2, %v1671_v44  ;;  %v1672_v50 = vld [vmem:[%s5861_s6 + $0xdb0] sm:$0xff]  ;;  %v649_v51 = vld [vmem:[%s5853_s23 + $0xdb8] sm:$0xff]  ;;  %v650_v55 = vld [vmem:[%s5853_s23 + $0xdc0] sm:$0xff] }
 0x1a4   : > { %4739 = vst [vmem:[%s5891_s24 + $0xd80] sm:$0xff] %v3715_v40  ;;  %v3718_v52 = vadd.s32 %v2694_v41, %v645_v37  ;;  %v2697_v53 = vmul.u32 %v5869_v2, %v1672_v50  ;;  %v1673_v54 = vld [vmem:[%s5861_s6 + $0xdb8] sm:$0xff]  ;;  %v1674_v56 = vld [vmem:[%s5861_s6 + $0xdc0] sm:$0xff]  ;;  %4740 = vst [vmem:[%s5891_s24 + $0xd88] sm:$0xff] %v3716_v45 }
 0x1a5   : > { %4741 = vst [vmem:[%s5891_s24 + $0xd90] sm:$0xff] %v3717_v46  ;;  %v3719_v57 = vadd.s32 %v2695_v47, %v646_v39  ;;  %v3720_v58 = vadd.s32 %v2696_v48, %v647_v43  ;;  %v2698_v59 = vmul.u32 %v5869_v2, %v1673_v54  ;;  %v2699_v60 = vmul.u32 %v5869_v2, %v1674_v56  ;;  %v651_v61 = vld [vmem:[%s5853_s23 + $0xdc8] sm:$0xff]  ;;  %v652_v63 = vld [vmem:[%s5853_s23 + $0xdd0] sm:$0xff]  ;;  %v653_v4 = vld [vmem:[%s5853_s23 + $0xdd8] sm:$0xff] }
 0x1a6   : > { %v1675_v62 = vld [vmem:[%s5861_s6 + $0xdc8] sm:$0xff]  ;;  %4742 = vst [vmem:[%s5891_s24 + $0xd98] sm:$0xff] %v3718_v52  ;;  %v3721_v0 = vadd.s32 %v2697_v53, %v648_v49  ;;  %v1676_v3 = vld [vmem:[%s5861_s6 + $0xdd0] sm:$0xff]  ;;  %v1677_v5 = vld [vmem:[%s5861_s6 + $0xdd8] sm:$0xff] }
 0x1a7   : > { %v2700_v1 = vmul.u32 %v5869_v2, %v1675_v62  ;;  %4743 = vst [vmem:[%s5891_s24 + $0xda0] sm:$0xff] %v3719_v57  ;;  %4744 = vst [vmem:[%s5891_s24 + $0xda8] sm:$0xff] %v3720_v58  ;;  %v3722_v6 = vadd.s32 %v2698_v59, %v649_v51  ;;  %v3723_v7 = vadd.s32 %v2699_v60, %v650_v55  ;;  %v654_v10 = vld [vmem:[%s5853_s23 + $0xde0] sm:$0xff]  ;;  %v655_v12 = vld [vmem:[%s5853_s23 + $0xde8] sm:$0xff] }
 0x1a8   : > { %v2701_v8 = vmul.u32 %v5869_v2, %v1676_v3  ;;  %v2702_v9 = vmul.u32 %v5869_v2, %v1677_v5  ;;  %v1678_v11 = vld [vmem:[%s5861_s6 + $0xde0] sm:$0xff]  ;;  %4745 = vst [vmem:[%s5891_s24 + $0xdb0] sm:$0xff] %v3721_v0  ;;  %v1679_v15 = vld [vmem:[%s5861_s6 + $0xde8] sm:$0xff]  ;;  %v656_v16 = vld [vmem:[%s5853_s23 + $0xdf0] sm:$0xff] }
 0x1a9   : > { %v3724_v13 = vadd.s32 %v2700_v1, %v651_v61  ;;  %v2703_v14 = vmul.u32 %v5869_v2, %v1678_v11  ;;  %v1680_v17 = vld [vmem:[%s5861_s6 + $0xdf0] sm:$0xff]  ;;  %4746 = vst [vmem:[%s5891_s24 + $0xdb8] sm:$0xff] %v3722_v6  ;;  %4747 = vst [vmem:[%s5891_s24 + $0xdc0] sm:$0xff] %v3723_v7  ;;  %v2704_v20 = vmul.u32 %v5869_v2, %v1679_v15  ;;  %v657_v22 = vld [vmem:[%s5853_s23 + $0xdf8] sm:$0xff] }
 0x1aa   : > { %v3725_v18 = vadd.s32 %v2701_v8, %v652_v63  ;;  %v3726_v19 = vadd.s32 %v2702_v9, %v653_v4  ;;  %v2705_v21 = vmul.u32 %v5869_v2, %v1680_v17  ;;  %v1681_v23 = vld [vmem:[%s5861_s6 + $0xdf8] sm:$0xff]  ;;  %v658_v24 = vld [vmem:[%s5853_s23 + $0xe00] sm:$0xff]  ;;  %v659_v28 = vld [vmem:[%s5853_s23 + $0xe08] sm:$0xff] }
 0x1ab   : > { %4748 = vst [vmem:[%s5891_s24 + $0xdc8] sm:$0xff] %v3724_v13  ;;  %v3727_v25 = vadd.s32 %v2703_v14, %v654_v10  ;;  %v2706_v26 = vmul.u32 %v5869_v2, %v1681_v23  ;;  %v1682_v27 = vld [vmem:[%s5861_s6 + $0xe00] sm:$0xff]  ;;  %v1683_v29 = vld [vmem:[%s5861_s6 + $0xe08] sm:$0xff]  ;;  %v3728_v30 = vadd.s32 %v2704_v20, %v655_v12  ;;  %v660_v34 = vld [vmem:[%s5853_s23 + $0xe10] sm:$0xff] }
 0x1ac   : > { %4749 = vst [vmem:[%s5891_s24 + $0xdd0] sm:$0xff] %v3725_v18  ;;  %4750 = vst [vmem:[%s5891_s24 + $0xdd8] sm:$0xff] %v3726_v19  ;;  %v3729_v31 = vadd.s32 %v2705_v21, %v656_v16  ;;  %v2707_v32 = vmul.u32 %v5869_v2, %v1682_v27  ;;  %v2708_v33 = vmul.u32 %v5869_v2, %v1683_v29  ;;  %v1684_v35 = vld [vmem:[%s5861_s6 + $0xe10] sm:$0xff]  ;;  %v661_v36 = vld [vmem:[%s5853_s23 + $0xe18] sm:$0xff] }
 0x1ad   : > { %4751 = vst [vmem:[%s5891_s24 + $0xde0] sm:$0xff] %v3727_v25  ;;  %v3730_v37 = vadd.s32 %v2706_v26, %v657_v22  ;;  %v2709_v38 = vmul.u32 %v5869_v2, %v1684_v35  ;;  %v1685_v39 = vld [vmem:[%s5861_s6 + $0xe18] sm:$0xff]  ;;  %v662_v40 = vld [vmem:[%s5853_s23 + $0xe20] sm:$0xff]  ;;  %4752 = vst [vmem:[%s5891_s24 + $0xde8] sm:$0xff] %v3728_v30 }
 0x1ae   : > { %v1686_v41 = vld [vmem:[%s5861_s6 + $0xe20] sm:$0xff]  ;;  %4753 = vst [vmem:[%s5891_s24 + $0xdf0] sm:$0xff] %v3729_v31  ;;  %v3731_v42 = vadd.s32 %v2707_v32, %v658_v24  ;;  %v3732_v43 = vadd.s32 %v2708_v33, %v659_v28  ;;  %v2710_v44 = vmul.u32 %v5869_v2, %v1685_v39  ;;  %v663_v46 = vld [vmem:[%s5853_s23 + $0xe28] sm:$0xff]  ;;  %v664_v48 = vld [vmem:[%s5853_s23 + $0xe30] sm:$0xff] }
 0x1af   : > { %v2711_v45 = vmul.u32 %v5869_v2, %v1686_v41  ;;  %v1687_v47 = vld [vmem:[%s5861_s6 + $0xe28] sm:$0xff]  ;;  %4754 = vst [vmem:[%s5891_s24 + $0xdf8] sm:$0xff] %v3730_v37  ;;  %v3733_v49 = vadd.s32 %v2709_v38, %v660_v34  ;;  %v1688_v51 = vld [vmem:[%s5861_s6 + $0xe30] sm:$0xff]  ;;  %v665_v52 = vld [vmem:[%s5853_s23 + $0xe38] sm:$0xff] }
 0x1b0   : > { %v2712_v50 = vmul.u32 %v5869_v2, %v1687_v47  ;;  %v1689_v53 = vld [vmem:[%s5861_s6 + $0xe38] sm:$0xff]  ;;  %4755 = vst [vmem:[%s5891_s24 + $0xe00] sm:$0xff] %v3731_v42  ;;  %4756 = vst [vmem:[%s5891_s24 + $0xe08] sm:$0xff] %v3732_v43  ;;  %v3734_v54 = vadd.s32 %v2710_v44, %v661_v36  ;;  %v2713_v56 = vmul.u32 %v5869_v2, %v1688_v51  ;;  %v666_v58 = vld [vmem:[%s5853_s23 + $0xe40] sm:$0xff] }
 0x1b1   : > { %v3735_v55 = vadd.s32 %v2711_v45, %v662_v40  ;;  %v2714_v57 = vmul.u32 %v5869_v2, %v1689_v53  ;;  %v1690_v59 = vld [vmem:[%s5861_s6 + $0xe40] sm:$0xff]  ;;  %v667_v60 = vld [vmem:[%s5853_s23 + $0xe48] sm:$0xff]  ;;  %4757 = vst [vmem:[%s5891_s24 + $0xe10] sm:$0xff] %v3733_v49  ;;  %v668_v0 = vld [vmem:[%s5853_s23 + $0xe50] sm:$0xff] }
 0x1b2   : > { %v3736_v61 = vadd.s32 %v2712_v50, %v663_v46  ;;  %v2715_v62 = vmul.u32 %v5869_v2, %v1690_v59  ;;  %v1691_v63 = vld [vmem:[%s5861_s6 + $0xe48] sm:$0xff]  ;;  %v1692_v1 = vld [vmem:[%s5861_s6 + $0xe50] sm:$0xff]  ;;  %4758 = vst [vmem:[%s5891_s24 + $0xe18] sm:$0xff] %v3734_v54  ;;  %v3737_v3 = vadd.s32 %v2713_v56, %v664_v48  ;;  %v669_v7 = vld [vmem:[%s5853_s23 + $0xe58] sm:$0xff] }
 0x1b3   : > { %4759 = vst [vmem:[%s5891_s24 + $0xe20] sm:$0xff] %v3735_v55  ;;  %v3738_v4 = vadd.s32 %v2714_v57, %v665_v52  ;;  %v2716_v5 = vmul.u32 %v5869_v2, %v1691_v63  ;;  %v2717_v6 = vmul.u32 %v5869_v2, %v1692_v1  ;;  %v1693_v8 = vld [vmem:[%s5861_s6 + $0xe58] sm:$0xff]  ;;  %v670_v9 = vld [vmem:[%s5853_s23 + $0xe60] sm:$0xff]  ;;  %v671_v13 = vld [vmem:[%s5853_s23 + $0xe68] sm:$0xff] }
 0x1b4   : > { %4760 = vst [vmem:[%s5891_s24 + $0xe28] sm:$0xff] %v3736_v61  ;;  %v3739_v10 = vadd.s32 %v2715_v62, %v666_v58  ;;  %v2718_v11 = vmul.u32 %v5869_v2, %v1693_v8  ;;  %v1694_v12 = vld [vmem:[%s5861_s6 + $0xe60] sm:$0xff]  ;;  %v1695_v14 = vld [vmem:[%s5861_s6 + $0xe68] sm:$0xff]  ;;  %4761 = vst [vmem:[%s5891_s24 + $0xe30] sm:$0xff] %v3737_v3 }
 0x1b5   : > { %4762 = vst [vmem:[%s5891_s24 + $0xe38] sm:$0xff] %v3738_v4  ;;  %v3740_v15 = vadd.s32 %v2716_v5, %v667_v60  ;;  %v3741_v16 = vadd.s32 %v2717_v6, %v668_v0  ;;  %v2719_v17 = vmul.u32 %v5869_v2, %v1694_v12  ;;  %v2720_v18 = vmul.u32 %v5869_v2, %v1695_v14  ;;  %v672_v19 = vld [vmem:[%s5853_s23 + $0xe70] sm:$0xff]  ;;  %v673_v21 = vld [vmem:[%s5853_s23 + $0xe78] sm:$0xff]  ;;  %v674_v25 = vld [vmem:[%s5853_s23 + $0xe80] sm:$0xff] }
 0x1b6   : > { %v1696_v20 = vld [vmem:[%s5861_s6 + $0xe70] sm:$0xff]  ;;  %4763 = vst [vmem:[%s5891_s24 + $0xe40] sm:$0xff] %v3739_v10  ;;  %v3742_v22 = vadd.s32 %v2718_v11, %v669_v7  ;;  %v1697_v24 = vld [vmem:[%s5861_s6 + $0xe78] sm:$0xff]  ;;  %v1698_v26 = vld [vmem:[%s5861_s6 + $0xe80] sm:$0xff] }
 0x1b7   : > { %v2721_v23 = vmul.u32 %v5869_v2, %v1696_v20  ;;  %4764 = vst [vmem:[%s5891_s24 + $0xe48] sm:$0xff] %v3740_v15  ;;  %4765 = vst [vmem:[%s5891_s24 + $0xe50] sm:$0xff] %v3741_v16  ;;  %v3743_v27 = vadd.s32 %v2719_v17, %v670_v9  ;;  %v3744_v28 = vadd.s32 %v2720_v18, %v671_v13  ;;  %v675_v31 = vld [vmem:[%s5853_s23 + $0xe88] sm:$0xff]  ;;  %v676_v33 = vld [vmem:[%s5853_s23 + $0xe90] sm:$0xff] }
 0x1b8   : > { %v2722_v29 = vmul.u32 %v5869_v2, %v1697_v24  ;;  %v2723_v30 = vmul.u32 %v5869_v2, %v1698_v26  ;;  %v1699_v32 = vld [vmem:[%s5861_s6 + $0xe88] sm:$0xff]  ;;  %4766 = vst [vmem:[%s5891_s24 + $0xe58] sm:$0xff] %v3742_v22  ;;  %v1700_v36 = vld [vmem:[%s5861_s6 + $0xe90] sm:$0xff]  ;;  %v677_v37 = vld [vmem:[%s5853_s23 + $0xe98] sm:$0xff] }
 0x1b9   : > { %v3745_v34 = vadd.s32 %v2721_v23, %v672_v19  ;;  %v2724_v35 = vmul.u32 %v5869_v2, %v1699_v32  ;;  %v1701_v38 = vld [vmem:[%s5861_s6 + $0xe98] sm:$0xff]  ;;  %4767 = vst [vmem:[%s5891_s24 + $0xe60] sm:$0xff] %v3743_v27  ;;  %4768 = vst [vmem:[%s5891_s24 + $0xe68] sm:$0xff] %v3744_v28  ;;  %v2725_v41 = vmul.u32 %v5869_v2, %v1700_v36  ;;  %v678_v43 = vld [vmem:[%s5853_s23 + $0xea0] sm:$0xff] }
 0x1ba   : > { %v3746_v39 = vadd.s32 %v2722_v29, %v673_v21  ;;  %v3747_v40 = vadd.s32 %v2723_v30, %v674_v25  ;;  %v2726_v42 = vmul.u32 %v5869_v2, %v1701_v38  ;;  %v1702_v44 = vld [vmem:[%s5861_s6 + $0xea0] sm:$0xff]  ;;  %v679_v45 = vld [vmem:[%s5853_s23 + $0xea8] sm:$0xff]  ;;  %v680_v49 = vld [vmem:[%s5853_s23 + $0xeb0] sm:$0xff] }
 0x1bb   : > { %4769 = vst [vmem:[%s5891_s24 + $0xe70] sm:$0xff] %v3745_v34  ;;  %v3748_v46 = vadd.s32 %v2724_v35, %v675_v31  ;;  %v2727_v47 = vmul.u32 %v5869_v2, %v1702_v44  ;;  %v1703_v48 = vld [vmem:[%s5861_s6 + $0xea8] sm:$0xff]  ;;  %v1704_v50 = vld [vmem:[%s5861_s6 + $0xeb0] sm:$0xff]  ;;  %v3749_v51 = vadd.s32 %v2725_v41, %v676_v33  ;;  %v681_v55 = vld [vmem:[%s5853_s23 + $0xeb8] sm:$0xff] }
 0x1bc   : > { %4770 = vst [vmem:[%s5891_s24 + $0xe78] sm:$0xff] %v3746_v39  ;;  %4771 = vst [vmem:[%s5891_s24 + $0xe80] sm:$0xff] %v3747_v40  ;;  %v3750_v52 = vadd.s32 %v2726_v42, %v677_v37  ;;  %v2728_v53 = vmul.u32 %v5869_v2, %v1703_v48  ;;  %v2729_v54 = vmul.u32 %v5869_v2, %v1704_v50  ;;  %v1705_v56 = vld [vmem:[%s5861_s6 + $0xeb8] sm:$0xff]  ;;  %v682_v57 = vld [vmem:[%s5853_s23 + $0xec0] sm:$0xff] }
 0x1bd   : > { %4772 = vst [vmem:[%s5891_s24 + $0xe88] sm:$0xff] %v3748_v46  ;;  %v3751_v58 = vadd.s32 %v2727_v47, %v678_v43  ;;  %v2730_v59 = vmul.u32 %v5869_v2, %v1705_v56  ;;  %v1706_v60 = vld [vmem:[%s5861_s6 + $0xec0] sm:$0xff]  ;;  %v683_v61 = vld [vmem:[%s5853_s23 + $0xec8] sm:$0xff]  ;;  %4773 = vst [vmem:[%s5891_s24 + $0xe90] sm:$0xff] %v3749_v51 }
 0x1be   : > { %v1707_v62 = vld [vmem:[%s5861_s6 + $0xec8] sm:$0xff]  ;;  %4774 = vst [vmem:[%s5891_s24 + $0xe98] sm:$0xff] %v3750_v52  ;;  %v3752_v63 = vadd.s32 %v2728_v53, %v679_v45  ;;  %v3753_v0 = vadd.s32 %v2729_v54, %v680_v49  ;;  %v2731_v1 = vmul.u32 %v5869_v2, %v1706_v60  ;;  %v684_v4 = vld [vmem:[%s5853_s23 + $0xed0] sm:$0xff]  ;;  %v685_v6 = vld [vmem:[%s5853_s23 + $0xed8] sm:$0xff] }
 0x1bf   : > { %v2732_v3 = vmul.u32 %v5869_v2, %v1707_v62  ;;  %v1708_v5 = vld [vmem:[%s5861_s6 + $0xed0] sm:$0xff]  ;;  %4775 = vst [vmem:[%s5891_s24 + $0xea0] sm:$0xff] %v3751_v58  ;;  %v3754_v7 = vadd.s32 %v2730_v59, %v681_v55  ;;  %v1709_v9 = vld [vmem:[%s5861_s6 + $0xed8] sm:$0xff]  ;;  %v686_v10 = vld [vmem:[%s5853_s23 + $0xee0] sm:$0xff] }
 0x1c0   : > { %v2733_v8 = vmul.u32 %v5869_v2, %v1708_v5  ;;  %v1710_v11 = vld [vmem:[%s5861_s6 + $0xee0] sm:$0xff]  ;;  %4776 = vst [vmem:[%s5891_s24 + $0xea8] sm:$0xff] %v3752_v63  ;;  %4777 = vst [vmem:[%s5891_s24 + $0xeb0] sm:$0xff] %v3753_v0  ;;  %v3755_v12 = vadd.s32 %v2731_v1, %v682_v57  ;;  %v2734_v14 = vmul.u32 %v5869_v2, %v1709_v9  ;;  %v687_v16 = vld [vmem:[%s5853_s23 + $0xee8] sm:$0xff] }
 0x1c1   : > { %v3756_v13 = vadd.s32 %v2732_v3, %v683_v61  ;;  %v2735_v15 = vmul.u32 %v5869_v2, %v1710_v11  ;;  %v1711_v17 = vld [vmem:[%s5861_s6 + $0xee8] sm:$0xff]  ;;  %v688_v18 = vld [vmem:[%s5853_s23 + $0xef0] sm:$0xff]  ;;  %4778 = vst [vmem:[%s5891_s24 + $0xeb8] sm:$0xff] %v3754_v7  ;;  %v689_v22 = vld [vmem:[%s5853_s23 + $0xef8] sm:$0xff] }
 0x1c2   : > { %v3757_v19 = vadd.s32 %v2733_v8, %v684_v4  ;;  %v2736_v20 = vmul.u32 %v5869_v2, %v1711_v17  ;;  %v1712_v21 = vld [vmem:[%s5861_s6 + $0xef0] sm:$0xff]  ;;  %v1713_v23 = vld [vmem:[%s5861_s6 + $0xef8] sm:$0xff]  ;;  %4779 = vst [vmem:[%s5891_s24 + $0xec0] sm:$0xff] %v3755_v12  ;;  %v3758_v24 = vadd.s32 %v2734_v14, %v685_v6  ;;  %v690_v28 = vld [vmem:[%s5853_s23 + $0xf00] sm:$0xff] }
 0x1c3   : > { %4780 = vst [vmem:[%s5891_s24 + $0xec8] sm:$0xff] %v3756_v13  ;;  %v3759_v25 = vadd.s32 %v2735_v15, %v686_v10  ;;  %v2737_v26 = vmul.u32 %v5869_v2, %v1712_v21  ;;  %v2738_v27 = vmul.u32 %v5869_v2, %v1713_v23  ;;  %v1714_v29 = vld [vmem:[%s5861_s6 + $0xf00] sm:$0xff]  ;;  %v691_v30 = vld [vmem:[%s5853_s23 + $0xf08] sm:$0xff]  ;;  %v692_v34 = vld [vmem:[%s5853_s23 + $0xf10] sm:$0xff] }
 0x1c4   : > { %4781 = vst [vmem:[%s5891_s24 + $0xed0] sm:$0xff] %v3757_v19  ;;  %v3760_v31 = vadd.s32 %v2736_v20, %v687_v16  ;;  %v2739_v32 = vmul.u32 %v5869_v2, %v1714_v29  ;;  %v1715_v33 = vld [vmem:[%s5861_s6 + $0xf08] sm:$0xff]  ;;  %v1716_v35 = vld [vmem:[%s5861_s6 + $0xf10] sm:$0xff]  ;;  %4782 = vst [vmem:[%s5891_s24 + $0xed8] sm:$0xff] %v3758_v24 }
 0x1c5   : > { %4783 = vst [vmem:[%s5891_s24 + $0xee0] sm:$0xff] %v3759_v25  ;;  %v3761_v36 = vadd.s32 %v2737_v26, %v688_v18  ;;  %v3762_v37 = vadd.s32 %v2738_v27, %v689_v22  ;;  %v2740_v38 = vmul.u32 %v5869_v2, %v1715_v33  ;;  %v2741_v39 = vmul.u32 %v5869_v2, %v1716_v35  ;;  %v693_v40 = vld [vmem:[%s5853_s23 + $0xf18] sm:$0xff]  ;;  %v694_v42 = vld [vmem:[%s5853_s23 + $0xf20] sm:$0xff]  ;;  %v695_v46 = vld [vmem:[%s5853_s23 + $0xf28] sm:$0xff] }
 0x1c6   : > { %v1717_v41 = vld [vmem:[%s5861_s6 + $0xf18] sm:$0xff]  ;;  %4784 = vst [vmem:[%s5891_s24 + $0xee8] sm:$0xff] %v3760_v31  ;;  %v3763_v43 = vadd.s32 %v2739_v32, %v690_v28  ;;  %v1718_v45 = vld [vmem:[%s5861_s6 + $0xf20] sm:$0xff]  ;;  %v1719_v47 = vld [vmem:[%s5861_s6 + $0xf28] sm:$0xff] }
 0x1c7   : > { %v2742_v44 = vmul.u32 %v5869_v2, %v1717_v41  ;;  %4785 = vst [vmem:[%s5891_s24 + $0xef0] sm:$0xff] %v3761_v36  ;;  %4786 = vst [vmem:[%s5891_s24 + $0xef8] sm:$0xff] %v3762_v37  ;;  %v3764_v48 = vadd.s32 %v2740_v38, %v691_v30  ;;  %v3765_v49 = vadd.s32 %v2741_v39, %v692_v34  ;;  %v696_v52 = vld [vmem:[%s5853_s23 + $0xf30] sm:$0xff]  ;;  %v697_v54 = vld [vmem:[%s5853_s23 + $0xf38] sm:$0xff] }
 0x1c8   : > { %v2743_v50 = vmul.u32 %v5869_v2, %v1718_v45  ;;  %v2744_v51 = vmul.u32 %v5869_v2, %v1719_v47  ;;  %v1720_v53 = vld [vmem:[%s5861_s6 + $0xf30] sm:$0xff]  ;;  %4787 = vst [vmem:[%s5891_s24 + $0xf00] sm:$0xff] %v3763_v43  ;;  %v1721_v57 = vld [vmem:[%s5861_s6 + $0xf38] sm:$0xff]  ;;  %v698_v58 = vld [vmem:[%s5853_s23 + $0xf40] sm:$0xff] }
 0x1c9   : > { %v3766_v55 = vadd.s32 %v2742_v44, %v693_v40  ;;  %v2745_v56 = vmul.u32 %v5869_v2, %v1720_v53  ;;  %v1722_v59 = vld [vmem:[%s5861_s6 + $0xf40] sm:$0xff]  ;;  %4788 = vst [vmem:[%s5891_s24 + $0xf08] sm:$0xff] %v3764_v48  ;;  %4789 = vst [vmem:[%s5891_s24 + $0xf10] sm:$0xff] %v3765_v49  ;;  %v2746_v62 = vmul.u32 %v5869_v2, %v1721_v57  ;;  %v699_v0 = vld [vmem:[%s5853_s23 + $0xf48] sm:$0xff] }
 0x1ca   : > { %v3767_v60 = vadd.s32 %v2743_v50, %v694_v42  ;;  %v3768_v61 = vadd.s32 %v2744_v51, %v695_v46  ;;  %v2747_v63 = vmul.u32 %v5869_v2, %v1722_v59  ;;  %v1723_v1 = vld [vmem:[%s5861_s6 + $0xf48] sm:$0xff]  ;;  %v700_v3 = vld [vmem:[%s5853_s23 + $0xf50] sm:$0xff]  ;;  %v701_v7 = vld [vmem:[%s5853_s23 + $0xf58] sm:$0xff] }
 0x1cb   : > { %4790 = vst [vmem:[%s5891_s24 + $0xf18] sm:$0xff] %v3766_v55  ;;  %v3769_v4 = vadd.s32 %v2745_v56, %v696_v52  ;;  %v2748_v5 = vmul.u32 %v5869_v2, %v1723_v1  ;;  %v1724_v6 = vld [vmem:[%s5861_s6 + $0xf50] sm:$0xff]  ;;  %v1725_v8 = vld [vmem:[%s5861_s6 + $0xf58] sm:$0xff]  ;;  %v3770_v9 = vadd.s32 %v2746_v62, %v697_v54  ;;  %v702_v13 = vld [vmem:[%s5853_s23 + $0xf60] sm:$0xff] }
 0x1cc   : > { %4791 = vst [vmem:[%s5891_s24 + $0xf20] sm:$0xff] %v3767_v60  ;;  %4792 = vst [vmem:[%s5891_s24 + $0xf28] sm:$0xff] %v3768_v61  ;;  %v3771_v10 = vadd.s32 %v2747_v63, %v698_v58  ;;  %v2749_v11 = vmul.u32 %v5869_v2, %v1724_v6  ;;  %v2750_v12 = vmul.u32 %v5869_v2, %v1725_v8  ;;  %v1726_v14 = vld [vmem:[%s5861_s6 + $0xf60] sm:$0xff]  ;;  %v703_v15 = vld [vmem:[%s5853_s23 + $0xf68] sm:$0xff] }
 0x1cd   : > { %4793 = vst [vmem:[%s5891_s24 + $0xf30] sm:$0xff] %v3769_v4  ;;  %v3772_v16 = vadd.s32 %v2748_v5, %v699_v0  ;;  %v2751_v17 = vmul.u32 %v5869_v2, %v1726_v14  ;;  %v1727_v18 = vld [vmem:[%s5861_s6 + $0xf68] sm:$0xff]  ;;  %v704_v19 = vld [vmem:[%s5853_s23 + $0xf70] sm:$0xff]  ;;  %4794 = vst [vmem:[%s5891_s24 + $0xf38] sm:$0xff] %v3770_v9 }
 0x1ce   : > { %v1728_v20 = vld [vmem:[%s5861_s6 + $0xf70] sm:$0xff]  ;;  %4795 = vst [vmem:[%s5891_s24 + $0xf40] sm:$0xff] %v3771_v10  ;;  %v3773_v21 = vadd.s32 %v2749_v11, %v700_v3  ;;  %v3774_v22 = vadd.s32 %v2750_v12, %v701_v7  ;;  %v2752_v23 = vmul.u32 %v5869_v2, %v1727_v18  ;;  %v705_v25 = vld [vmem:[%s5853_s23 + $0xf78] sm:$0xff]  ;;  %v706_v27 = vld [vmem:[%s5853_s23 + $0xf80] sm:$0xff] }
 0x1cf   : > { %v2753_v24 = vmul.u32 %v5869_v2, %v1728_v20  ;;  %v1729_v26 = vld [vmem:[%s5861_s6 + $0xf78] sm:$0xff]  ;;  %4796 = vst [vmem:[%s5891_s24 + $0xf48] sm:$0xff] %v3772_v16  ;;  %v3775_v28 = vadd.s32 %v2751_v17, %v702_v13  ;;  %v1730_v30 = vld [vmem:[%s5861_s6 + $0xf80] sm:$0xff]  ;;  %v707_v31 = vld [vmem:[%s5853_s23 + $0xf88] sm:$0xff] }
 0x1d0   : > { %v2754_v29 = vmul.u32 %v5869_v2, %v1729_v26  ;;  %v1731_v32 = vld [vmem:[%s5861_s6 + $0xf88] sm:$0xff]  ;;  %4797 = vst [vmem:[%s5891_s24 + $0xf50] sm:$0xff] %v3773_v21  ;;  %4798 = vst [vmem:[%s5891_s24 + $0xf58] sm:$0xff] %v3774_v22  ;;  %v3776_v33 = vadd.s32 %v2752_v23, %v703_v15  ;;  %v2755_v35 = vmul.u32 %v5869_v2, %v1730_v30  ;;  %v708_v37 = vld [vmem:[%s5853_s23 + $0xf90] sm:$0xff] }
 0x1d1   : > { %v3777_v34 = vadd.s32 %v2753_v24, %v704_v19  ;;  %v2756_v36 = vmul.u32 %v5869_v2, %v1731_v32  ;;  %v1732_v38 = vld [vmem:[%s5861_s6 + $0xf90] sm:$0xff]  ;;  %v709_v39 = vld [vmem:[%s5853_s23 + $0xf98] sm:$0xff]  ;;  %4799 = vst [vmem:[%s5891_s24 + $0xf60] sm:$0xff] %v3775_v28  ;;  %v710_v43 = vld [vmem:[%s5853_s23 + $0xfa0] sm:$0xff] }
 0x1d2   : > { %v3778_v40 = vadd.s32 %v2754_v29, %v705_v25  ;;  %v2757_v41 = vmul.u32 %v5869_v2, %v1732_v38  ;;  %v1733_v42 = vld [vmem:[%s5861_s6 + $0xf98] sm:$0xff]  ;;  %v1734_v44 = vld [vmem:[%s5861_s6 + $0xfa0] sm:$0xff]  ;;  %4800 = vst [vmem:[%s5891_s24 + $0xf68] sm:$0xff] %v3776_v33  ;;  %v3779_v45 = vadd.s32 %v2755_v35, %v706_v27  ;;  %v711_v49 = vld [vmem:[%s5853_s23 + $0xfa8] sm:$0xff] }
 0x1d3   : > { %4801 = vst [vmem:[%s5891_s24 + $0xf70] sm:$0xff] %v3777_v34  ;;  %v3780_v46 = vadd.s32 %v2756_v36, %v707_v31  ;;  %v2758_v47 = vmul.u32 %v5869_v2, %v1733_v42  ;;  %v2759_v48 = vmul.u32 %v5869_v2, %v1734_v44  ;;  %v1735_v50 = vld [vmem:[%s5861_s6 + $0xfa8] sm:$0xff]  ;;  %v712_v51 = vld [vmem:[%s5853_s23 + $0xfb0] sm:$0xff]  ;;  %v713_v55 = vld [vmem:[%s5853_s23 + $0xfb8] sm:$0xff] }
 0x1d4   : > { %4802 = vst [vmem:[%s5891_s24 + $0xf78] sm:$0xff] %v3778_v40  ;;  %v3781_v52 = vadd.s32 %v2757_v41, %v708_v37  ;;  %v2760_v53 = vmul.u32 %v5869_v2, %v1735_v50  ;;  %v1736_v54 = vld [vmem:[%s5861_s6 + $0xfb0] sm:$0xff]  ;;  %v1737_v56 = vld [vmem:[%s5861_s6 + $0xfb8] sm:$0xff]  ;;  %4803 = vst [vmem:[%s5891_s24 + $0xf80] sm:$0xff] %v3779_v45 }
 0x1d5   : > { %4804 = vst [vmem:[%s5891_s24 + $0xf88] sm:$0xff] %v3780_v46  ;;  %v3782_v57 = vadd.s32 %v2758_v47, %v709_v39  ;;  %v3783_v58 = vadd.s32 %v2759_v48, %v710_v43  ;;  %v2761_v59 = vmul.u32 %v5869_v2, %v1736_v54  ;;  %v2762_v60 = vmul.u32 %v5869_v2, %v1737_v56  ;;  %v714_v61 = vld [vmem:[%s5853_s23 + $0xfc0] sm:$0xff]  ;;  %v715_v63 = vld [vmem:[%s5853_s23 + $0xfc8] sm:$0xff]  ;;  %v716_v4 = vld [vmem:[%s5853_s23 + $0xfd0] sm:$0xff] }
 0x1d6   : > { %v1738_v62 = vld [vmem:[%s5861_s6 + $0xfc0] sm:$0xff]  ;;  %4805 = vst [vmem:[%s5891_s24 + $0xf90] sm:$0xff] %v3781_v52  ;;  %v3784_v0 = vadd.s32 %v2760_v53, %v711_v49  ;;  %v1739_v3 = vld [vmem:[%s5861_s6 + $0xfc8] sm:$0xff]  ;;  %v1740_v5 = vld [vmem:[%s5861_s6 + $0xfd0] sm:$0xff] }
 0x1d7   : > { %v2763_v1 = vmul.u32 %v5869_v2, %v1738_v62  ;;  %4806 = vst [vmem:[%s5891_s24 + $0xf98] sm:$0xff] %v3782_v57  ;;  %4807 = vst [vmem:[%s5891_s24 + $0xfa0] sm:$0xff] %v3783_v58  ;;  %v3785_v6 = vadd.s32 %v2761_v59, %v712_v51  ;;  %v3786_v7 = vadd.s32 %v2762_v60, %v713_v55  ;;  %v717_v10 = vld [vmem:[%s5853_s23 + $0xfd8] sm:$0xff]  ;;  %v718_v12 = vld [vmem:[%s5853_s23 + $0xfe0] sm:$0xff] }
 0x1d8   : > { %v2764_v8 = vmul.u32 %v5869_v2, %v1739_v3  ;;  %v2765_v9 = vmul.u32 %v5869_v2, %v1740_v5  ;;  %v1741_v11 = vld [vmem:[%s5861_s6 + $0xfd8] sm:$0xff]  ;;  %4808 = vst [vmem:[%s5891_s24 + $0xfa8] sm:$0xff] %v3784_v0  ;;  %v1742_v15 = vld [vmem:[%s5861_s6 + $0xfe0] sm:$0xff]  ;;  %v719_v16 = vld [vmem:[%s5853_s23 + $0xfe8] sm:$0xff] }
 0x1d9   : > { %v3787_v13 = vadd.s32 %v2763_v1, %v714_v61  ;;  %v2766_v14 = vmul.u32 %v5869_v2, %v1741_v11  ;;  %v1743_v17 = vld [vmem:[%s5861_s6 + $0xfe8] sm:$0xff]  ;;  %4809 = vst [vmem:[%s5891_s24 + $0xfb0] sm:$0xff] %v3785_v6  ;;  %4810 = vst [vmem:[%s5891_s24 + $0xfb8] sm:$0xff] %v3786_v7  ;;  %v2767_v20 = vmul.u32 %v5869_v2, %v1742_v15  ;;  %v720_v22 = vld [vmem:[%s5853_s23 + $0xff0] sm:$0xff] }
 0x1da   : > { %v3788_v18 = vadd.s32 %v2764_v8, %v715_v63  ;;  %v3789_v19 = vadd.s32 %v2765_v9, %v716_v4  ;;  %v2768_v21 = vmul.u32 %v5869_v2, %v1743_v17  ;;  %v1744_v23 = vld [vmem:[%s5861_s6 + $0xff0] sm:$0xff]  ;;  %v721_v24 = vld [vmem:[%s5853_s23 + $0xff8] sm:$0xff]  ;;  %v722_v28 = vld [vmem:[%s5853_s23 + $0x1000] sm:$0xff] }
 0x1db   : > { %4811 = vst [vmem:[%s5891_s24 + $0xfc0] sm:$0xff] %v3787_v13  ;;  %v3790_v25 = vadd.s32 %v2766_v14, %v717_v10  ;;  %v2769_v26 = vmul.u32 %v5869_v2, %v1744_v23  ;;  %v1745_v27 = vld [vmem:[%s5861_s6 + $0xff8] sm:$0xff]  ;;  %v1746_v29 = vld [vmem:[%s5861_s6 + $0x1000] sm:$0xff]  ;;  %v3791_v30 = vadd.s32 %v2767_v20, %v718_v12  ;;  %v723_v34 = vld [vmem:[%s5853_s23 + $0x1008] sm:$0xff] }
 0x1dc   : > { %4812 = vst [vmem:[%s5891_s24 + $0xfc8] sm:$0xff] %v3788_v18  ;;  %4813 = vst [vmem:[%s5891_s24 + $0xfd0] sm:$0xff] %v3789_v19  ;;  %v3792_v31 = vadd.s32 %v2768_v21, %v719_v16  ;;  %v2770_v32 = vmul.u32 %v5869_v2, %v1745_v27  ;;  %v2771_v33 = vmul.u32 %v5869_v2, %v1746_v29  ;;  %v1747_v35 = vld [vmem:[%s5861_s6 + $0x1008] sm:$0xff]  ;;  %v724_v36 = vld [vmem:[%s5853_s23 + $0x1010] sm:$0xff] }
 0x1dd   : > { %4814 = vst [vmem:[%s5891_s24 + $0xfd8] sm:$0xff] %v3790_v25  ;;  %v3793_v37 = vadd.s32 %v2769_v26, %v720_v22  ;;  %v2772_v38 = vmul.u32 %v5869_v2, %v1747_v35  ;;  %v1748_v39 = vld [vmem:[%s5861_s6 + $0x1010] sm:$0xff]  ;;  %v725_v40 = vld [vmem:[%s5853_s23 + $0x1018] sm:$0xff]  ;;  %4815 = vst [vmem:[%s5891_s24 + $0xfe0] sm:$0xff] %v3791_v30 }
 0x1de   : > { %v1749_v41 = vld [vmem:[%s5861_s6 + $0x1018] sm:$0xff]  ;;  %4816 = vst [vmem:[%s5891_s24 + $0xfe8] sm:$0xff] %v3792_v31  ;;  %v3794_v42 = vadd.s32 %v2770_v32, %v721_v24  ;;  %v3795_v43 = vadd.s32 %v2771_v33, %v722_v28  ;;  %v2773_v44 = vmul.u32 %v5869_v2, %v1748_v39  ;;  %v726_v46 = vld [vmem:[%s5853_s23 + $0x1020] sm:$0xff]  ;;  %v727_v48 = vld [vmem:[%s5853_s23 + $0x1028] sm:$0xff] }
 0x1df   : > { %v2774_v45 = vmul.u32 %v5869_v2, %v1749_v41  ;;  %v1750_v47 = vld [vmem:[%s5861_s6 + $0x1020] sm:$0xff]  ;;  %4817 = vst [vmem:[%s5891_s24 + $0xff0] sm:$0xff] %v3793_v37  ;;  %v3796_v49 = vadd.s32 %v2772_v38, %v723_v34  ;;  %v1751_v51 = vld [vmem:[%s5861_s6 + $0x1028] sm:$0xff]  ;;  %v728_v52 = vld [vmem:[%s5853_s23 + $0x1030] sm:$0xff] }
 0x1e0   : > { %v2775_v50 = vmul.u32 %v5869_v2, %v1750_v47  ;;  %v1752_v53 = vld [vmem:[%s5861_s6 + $0x1030] sm:$0xff]  ;;  %4818 = vst [vmem:[%s5891_s24 + $0xff8] sm:$0xff] %v3794_v42  ;;  %4819 = vst [vmem:[%s5891_s24 + $0x1000] sm:$0xff] %v3795_v43  ;;  %v3797_v54 = vadd.s32 %v2773_v44, %v724_v36  ;;  %v2776_v56 = vmul.u32 %v5869_v2, %v1751_v51  ;;  %v729_v58 = vld [vmem:[%s5853_s23 + $0x1038] sm:$0xff] }
 0x1e1   : > { %v3798_v55 = vadd.s32 %v2774_v45, %v725_v40  ;;  %v2777_v57 = vmul.u32 %v5869_v2, %v1752_v53  ;;  %v1753_v59 = vld [vmem:[%s5861_s6 + $0x1038] sm:$0xff]  ;;  %v730_v60 = vld [vmem:[%s5853_s23 + $0x1040] sm:$0xff]  ;;  %4820 = vst [vmem:[%s5891_s24 + $0x1008] sm:$0xff] %v3796_v49  ;;  %v731_v0 = vld [vmem:[%s5853_s23 + $0x1048] sm:$0xff] }
 0x1e2   : > { %v3799_v61 = vadd.s32 %v2775_v50, %v726_v46  ;;  %v2778_v62 = vmul.u32 %v5869_v2, %v1753_v59  ;;  %v1754_v63 = vld [vmem:[%s5861_s6 + $0x1040] sm:$0xff]  ;;  %v1755_v1 = vld [vmem:[%s5861_s6 + $0x1048] sm:$0xff]  ;;  %4821 = vst [vmem:[%s5891_s24 + $0x1010] sm:$0xff] %v3797_v54  ;;  %v3800_v3 = vadd.s32 %v2776_v56, %v727_v48  ;;  %v732_v7 = vld [vmem:[%s5853_s23 + $0x1050] sm:$0xff] }
 0x1e3   : > { %4822 = vst [vmem:[%s5891_s24 + $0x1018] sm:$0xff] %v3798_v55  ;;  %v3801_v4 = vadd.s32 %v2777_v57, %v728_v52  ;;  %v2779_v5 = vmul.u32 %v5869_v2, %v1754_v63  ;;  %v2780_v6 = vmul.u32 %v5869_v2, %v1755_v1  ;;  %v1756_v8 = vld [vmem:[%s5861_s6 + $0x1050] sm:$0xff]  ;;  %v733_v9 = vld [vmem:[%s5853_s23 + $0x1058] sm:$0xff]  ;;  %v734_v13 = vld [vmem:[%s5853_s23 + $0x1060] sm:$0xff] }
 0x1e4   : > { %4823 = vst [vmem:[%s5891_s24 + $0x1020] sm:$0xff] %v3799_v61  ;;  %v3802_v10 = vadd.s32 %v2778_v62, %v729_v58  ;;  %v2781_v11 = vmul.u32 %v5869_v2, %v1756_v8  ;;  %v1757_v12 = vld [vmem:[%s5861_s6 + $0x1058] sm:$0xff]  ;;  %v1758_v14 = vld [vmem:[%s5861_s6 + $0x1060] sm:$0xff]  ;;  %4824 = vst [vmem:[%s5891_s24 + $0x1028] sm:$0xff] %v3800_v3 }
 0x1e5   : > { %4825 = vst [vmem:[%s5891_s24 + $0x1030] sm:$0xff] %v3801_v4  ;;  %v3803_v15 = vadd.s32 %v2779_v5, %v730_v60  ;;  %v3804_v16 = vadd.s32 %v2780_v6, %v731_v0  ;;  %v2782_v17 = vmul.u32 %v5869_v2, %v1757_v12  ;;  %v2783_v18 = vmul.u32 %v5869_v2, %v1758_v14  ;;  %v735_v19 = vld [vmem:[%s5853_s23 + $0x1068] sm:$0xff]  ;;  %v736_v21 = vld [vmem:[%s5853_s23 + $0x1070] sm:$0xff]  ;;  %v737_v25 = vld [vmem:[%s5853_s23 + $0x1078] sm:$0xff] }
 0x1e6   : > { %v1759_v20 = vld [vmem:[%s5861_s6 + $0x1068] sm:$0xff]  ;;  %4826 = vst [vmem:[%s5891_s24 + $0x1038] sm:$0xff] %v3802_v10  ;;  %v3805_v22 = vadd.s32 %v2781_v11, %v732_v7  ;;  %v1760_v24 = vld [vmem:[%s5861_s6 + $0x1070] sm:$0xff]  ;;  %v1761_v26 = vld [vmem:[%s5861_s6 + $0x1078] sm:$0xff] }
 0x1e7   : > { %v2784_v23 = vmul.u32 %v5869_v2, %v1759_v20  ;;  %4827 = vst [vmem:[%s5891_s24 + $0x1040] sm:$0xff] %v3803_v15  ;;  %4828 = vst [vmem:[%s5891_s24 + $0x1048] sm:$0xff] %v3804_v16  ;;  %v3806_v27 = vadd.s32 %v2782_v17, %v733_v9  ;;  %v3807_v28 = vadd.s32 %v2783_v18, %v734_v13  ;;  %v738_v31 = vld [vmem:[%s5853_s23 + $0x1080] sm:$0xff]  ;;  %v739_v33 = vld [vmem:[%s5853_s23 + $0x1088] sm:$0xff] }
 0x1e8   : > { %v2785_v29 = vmul.u32 %v5869_v2, %v1760_v24  ;;  %v2786_v30 = vmul.u32 %v5869_v2, %v1761_v26  ;;  %v1762_v32 = vld [vmem:[%s5861_s6 + $0x1080] sm:$0xff]  ;;  %4829 = vst [vmem:[%s5891_s24 + $0x1050] sm:$0xff] %v3805_v22  ;;  %v1763_v36 = vld [vmem:[%s5861_s6 + $0x1088] sm:$0xff]  ;;  %v740_v37 = vld [vmem:[%s5853_s23 + $0x1090] sm:$0xff] }
 0x1e9   : > { %v3808_v34 = vadd.s32 %v2784_v23, %v735_v19  ;;  %v2787_v35 = vmul.u32 %v5869_v2, %v1762_v32  ;;  %v1764_v38 = vld [vmem:[%s5861_s6 + $0x1090] sm:$0xff]  ;;  %4830 = vst [vmem:[%s5891_s24 + $0x1058] sm:$0xff] %v3806_v27  ;;  %4831 = vst [vmem:[%s5891_s24 + $0x1060] sm:$0xff] %v3807_v28  ;;  %v2788_v41 = vmul.u32 %v5869_v2, %v1763_v36  ;;  %v741_v43 = vld [vmem:[%s5853_s23 + $0x1098] sm:$0xff] }
 0x1ea   : > { %v3809_v39 = vadd.s32 %v2785_v29, %v736_v21  ;;  %v3810_v40 = vadd.s32 %v2786_v30, %v737_v25  ;;  %v2789_v42 = vmul.u32 %v5869_v2, %v1764_v38  ;;  %v1765_v44 = vld [vmem:[%s5861_s6 + $0x1098] sm:$0xff]  ;;  %v742_v45 = vld [vmem:[%s5853_s23 + $0x10a0] sm:$0xff]  ;;  %v743_v49 = vld [vmem:[%s5853_s23 + $0x10a8] sm:$0xff] }
 0x1eb   : > { %4832 = vst [vmem:[%s5891_s24 + $0x1068] sm:$0xff] %v3808_v34  ;;  %v3811_v46 = vadd.s32 %v2787_v35, %v738_v31  ;;  %v2790_v47 = vmul.u32 %v5869_v2, %v1765_v44  ;;  %v1766_v48 = vld [vmem:[%s5861_s6 + $0x10a0] sm:$0xff]  ;;  %v1767_v50 = vld [vmem:[%s5861_s6 + $0x10a8] sm:$0xff]  ;;  %v3812_v51 = vadd.s32 %v2788_v41, %v739_v33  ;;  %v744_v55 = vld [vmem:[%s5853_s23 + $0x10b0] sm:$0xff] }
 0x1ec   : > { %4833 = vst [vmem:[%s5891_s24 + $0x1070] sm:$0xff] %v3809_v39  ;;  %4834 = vst [vmem:[%s5891_s24 + $0x1078] sm:$0xff] %v3810_v40  ;;  %v3813_v52 = vadd.s32 %v2789_v42, %v740_v37  ;;  %v2791_v53 = vmul.u32 %v5869_v2, %v1766_v48  ;;  %v2792_v54 = vmul.u32 %v5869_v2, %v1767_v50  ;;  %v1768_v56 = vld [vmem:[%s5861_s6 + $0x10b0] sm:$0xff]  ;;  %v745_v57 = vld [vmem:[%s5853_s23 + $0x10b8] sm:$0xff] }
 0x1ed   : > { %4835 = vst [vmem:[%s5891_s24 + $0x1080] sm:$0xff] %v3811_v46  ;;  %v3814_v58 = vadd.s32 %v2790_v47, %v741_v43  ;;  %v2793_v59 = vmul.u32 %v5869_v2, %v1768_v56  ;;  %v1769_v60 = vld [vmem:[%s5861_s6 + $0x10b8] sm:$0xff]  ;;  %v746_v61 = vld [vmem:[%s5853_s23 + $0x10c0] sm:$0xff]  ;;  %4836 = vst [vmem:[%s5891_s24 + $0x1088] sm:$0xff] %v3812_v51 }
 0x1ee   : > { %v1770_v62 = vld [vmem:[%s5861_s6 + $0x10c0] sm:$0xff]  ;;  %4837 = vst [vmem:[%s5891_s24 + $0x1090] sm:$0xff] %v3813_v52  ;;  %v3815_v63 = vadd.s32 %v2791_v53, %v742_v45  ;;  %v3816_v0 = vadd.s32 %v2792_v54, %v743_v49  ;;  %v2794_v1 = vmul.u32 %v5869_v2, %v1769_v60  ;;  %v747_v4 = vld [vmem:[%s5853_s23 + $0x10c8] sm:$0xff]  ;;  %v748_v6 = vld [vmem:[%s5853_s23 + $0x10d0] sm:$0xff] }
 0x1ef   : > { %v2795_v3 = vmul.u32 %v5869_v2, %v1770_v62  ;;  %v1771_v5 = vld [vmem:[%s5861_s6 + $0x10c8] sm:$0xff]  ;;  %4838 = vst [vmem:[%s5891_s24 + $0x1098] sm:$0xff] %v3814_v58  ;;  %v3817_v7 = vadd.s32 %v2793_v59, %v744_v55  ;;  %v1772_v9 = vld [vmem:[%s5861_s6 + $0x10d0] sm:$0xff]  ;;  %v749_v10 = vld [vmem:[%s5853_s23 + $0x10d8] sm:$0xff] }
 0x1f0   : > { %v2796_v8 = vmul.u32 %v5869_v2, %v1771_v5  ;;  %v1773_v11 = vld [vmem:[%s5861_s6 + $0x10d8] sm:$0xff]  ;;  %4839 = vst [vmem:[%s5891_s24 + $0x10a0] sm:$0xff] %v3815_v63  ;;  %4840 = vst [vmem:[%s5891_s24 + $0x10a8] sm:$0xff] %v3816_v0  ;;  %v3818_v12 = vadd.s32 %v2794_v1, %v745_v57  ;;  %v2797_v14 = vmul.u32 %v5869_v2, %v1772_v9  ;;  %v750_v16 = vld [vmem:[%s5853_s23 + $0x10e0] sm:$0xff] }
 0x1f1   : > { %v3819_v13 = vadd.s32 %v2795_v3, %v746_v61  ;;  %v2798_v15 = vmul.u32 %v5869_v2, %v1773_v11  ;;  %v1774_v17 = vld [vmem:[%s5861_s6 + $0x10e0] sm:$0xff]  ;;  %v751_v18 = vld [vmem:[%s5853_s23 + $0x10e8] sm:$0xff]  ;;  %4841 = vst [vmem:[%s5891_s24 + $0x10b0] sm:$0xff] %v3817_v7  ;;  %v752_v22 = vld [vmem:[%s5853_s23 + $0x10f0] sm:$0xff] }
 0x1f2   : > { %v3820_v19 = vadd.s32 %v2796_v8, %v747_v4  ;;  %v2799_v20 = vmul.u32 %v5869_v2, %v1774_v17  ;;  %v1775_v21 = vld [vmem:[%s5861_s6 + $0x10e8] sm:$0xff]  ;;  %v1776_v23 = vld [vmem:[%s5861_s6 + $0x10f0] sm:$0xff]  ;;  %4842 = vst [vmem:[%s5891_s24 + $0x10b8] sm:$0xff] %v3818_v12  ;;  %v3821_v24 = vadd.s32 %v2797_v14, %v748_v6  ;;  %v753_v28 = vld [vmem:[%s5853_s23 + $0x10f8] sm:$0xff] }
 0x1f3   : > { %4843 = vst [vmem:[%s5891_s24 + $0x10c0] sm:$0xff] %v3819_v13  ;;  %v3822_v25 = vadd.s32 %v2798_v15, %v749_v10  ;;  %v2800_v26 = vmul.u32 %v5869_v2, %v1775_v21  ;;  %v2801_v27 = vmul.u32 %v5869_v2, %v1776_v23  ;;  %v1777_v29 = vld [vmem:[%s5861_s6 + $0x10f8] sm:$0xff]  ;;  %v754_v30 = vld [vmem:[%s5853_s23 + $0x1100] sm:$0xff]  ;;  %v755_v34 = vld [vmem:[%s5853_s23 + $0x1108] sm:$0xff] }
 0x1f4   : > { %4844 = vst [vmem:[%s5891_s24 + $0x10c8] sm:$0xff] %v3820_v19  ;;  %v3823_v31 = vadd.s32 %v2799_v20, %v750_v16  ;;  %v2802_v32 = vmul.u32 %v5869_v2, %v1777_v29  ;;  %v1778_v33 = vld [vmem:[%s5861_s6 + $0x1100] sm:$0xff]  ;;  %v1779_v35 = vld [vmem:[%s5861_s6 + $0x1108] sm:$0xff]  ;;  %4845 = vst [vmem:[%s5891_s24 + $0x10d0] sm:$0xff] %v3821_v24 }
 0x1f5   : > { %4846 = vst [vmem:[%s5891_s24 + $0x10d8] sm:$0xff] %v3822_v25  ;;  %v3824_v36 = vadd.s32 %v2800_v26, %v751_v18  ;;  %v3825_v37 = vadd.s32 %v2801_v27, %v752_v22  ;;  %v2803_v38 = vmul.u32 %v5869_v2, %v1778_v33  ;;  %v2804_v39 = vmul.u32 %v5869_v2, %v1779_v35  ;;  %v756_v40 = vld [vmem:[%s5853_s23 + $0x1110] sm:$0xff]  ;;  %v757_v42 = vld [vmem:[%s5853_s23 + $0x1118] sm:$0xff]  ;;  %v758_v46 = vld [vmem:[%s5853_s23 + $0x1120] sm:$0xff] }
 0x1f6   : > { %v1780_v41 = vld [vmem:[%s5861_s6 + $0x1110] sm:$0xff]  ;;  %4847 = vst [vmem:[%s5891_s24 + $0x10e0] sm:$0xff] %v3823_v31  ;;  %v3826_v43 = vadd.s32 %v2802_v32, %v753_v28  ;;  %v1781_v45 = vld [vmem:[%s5861_s6 + $0x1118] sm:$0xff]  ;;  %v1782_v47 = vld [vmem:[%s5861_s6 + $0x1120] sm:$0xff] }
 0x1f7   : > { %v2805_v44 = vmul.u32 %v5869_v2, %v1780_v41  ;;  %4848 = vst [vmem:[%s5891_s24 + $0x10e8] sm:$0xff] %v3824_v36  ;;  %4849 = vst [vmem:[%s5891_s24 + $0x10f0] sm:$0xff] %v3825_v37  ;;  %v3827_v48 = vadd.s32 %v2803_v38, %v754_v30  ;;  %v3828_v49 = vadd.s32 %v2804_v39, %v755_v34  ;;  %v759_v52 = vld [vmem:[%s5853_s23 + $0x1128] sm:$0xff]  ;;  %v760_v54 = vld [vmem:[%s5853_s23 + $0x1130] sm:$0xff] }
 0x1f8   : > { %v2806_v50 = vmul.u32 %v5869_v2, %v1781_v45  ;;  %v2807_v51 = vmul.u32 %v5869_v2, %v1782_v47  ;;  %v1783_v53 = vld [vmem:[%s5861_s6 + $0x1128] sm:$0xff]  ;;  %4850 = vst [vmem:[%s5891_s24 + $0x10f8] sm:$0xff] %v3826_v43  ;;  %v1784_v57 = vld [vmem:[%s5861_s6 + $0x1130] sm:$0xff]  ;;  %v761_v58 = vld [vmem:[%s5853_s23 + $0x1138] sm:$0xff] }
 0x1f9   : > { %v3829_v55 = vadd.s32 %v2805_v44, %v756_v40  ;;  %v2808_v56 = vmul.u32 %v5869_v2, %v1783_v53  ;;  %v1785_v59 = vld [vmem:[%s5861_s6 + $0x1138] sm:$0xff]  ;;  %4851 = vst [vmem:[%s5891_s24 + $0x1100] sm:$0xff] %v3827_v48  ;;  %4852 = vst [vmem:[%s5891_s24 + $0x1108] sm:$0xff] %v3828_v49  ;;  %v2809_v62 = vmul.u32 %v5869_v2, %v1784_v57  ;;  %v762_v0 = vld [vmem:[%s5853_s23 + $0x1140] sm:$0xff] }
 0x1fa   : > { %v3830_v60 = vadd.s32 %v2806_v50, %v757_v42  ;;  %v3831_v61 = vadd.s32 %v2807_v51, %v758_v46  ;;  %v2810_v63 = vmul.u32 %v5869_v2, %v1785_v59  ;;  %v1786_v1 = vld [vmem:[%s5861_s6 + $0x1140] sm:$0xff]  ;;  %v763_v3 = vld [vmem:[%s5853_s23 + $0x1148] sm:$0xff]  ;;  %v764_v7 = vld [vmem:[%s5853_s23 + $0x1150] sm:$0xff] }
 0x1fb   : > { %4853 = vst [vmem:[%s5891_s24 + $0x1110] sm:$0xff] %v3829_v55  ;;  %v3832_v4 = vadd.s32 %v2808_v56, %v759_v52  ;;  %v2811_v5 = vmul.u32 %v5869_v2, %v1786_v1  ;;  %v1787_v6 = vld [vmem:[%s5861_s6 + $0x1148] sm:$0xff]  ;;  %v1788_v8 = vld [vmem:[%s5861_s6 + $0x1150] sm:$0xff]  ;;  %v3833_v9 = vadd.s32 %v2809_v62, %v760_v54  ;;  %v765_v13 = vld [vmem:[%s5853_s23 + $0x1158] sm:$0xff] }
 0x1fc   : > { %4854 = vst [vmem:[%s5891_s24 + $0x1118] sm:$0xff] %v3830_v60  ;;  %4855 = vst [vmem:[%s5891_s24 + $0x1120] sm:$0xff] %v3831_v61  ;;  %v3834_v10 = vadd.s32 %v2810_v63, %v761_v58  ;;  %v2812_v11 = vmul.u32 %v5869_v2, %v1787_v6  ;;  %v2813_v12 = vmul.u32 %v5869_v2, %v1788_v8  ;;  %v1789_v14 = vld [vmem:[%s5861_s6 + $0x1158] sm:$0xff]  ;;  %v766_v15 = vld [vmem:[%s5853_s23 + $0x1160] sm:$0xff] }
 0x1fd   : > { %4856 = vst [vmem:[%s5891_s24 + $0x1128] sm:$0xff] %v3832_v4  ;;  %v3835_v16 = vadd.s32 %v2811_v5, %v762_v0  ;;  %v2814_v17 = vmul.u32 %v5869_v2, %v1789_v14  ;;  %v1790_v18 = vld [vmem:[%s5861_s6 + $0x1160] sm:$0xff]  ;;  %v767_v19 = vld [vmem:[%s5853_s23 + $0x1168] sm:$0xff]  ;;  %4857 = vst [vmem:[%s5891_s24 + $0x1130] sm:$0xff] %v3833_v9 }
 0x1fe   : > { %v1791_v20 = vld [vmem:[%s5861_s6 + $0x1168] sm:$0xff]  ;;  %4858 = vst [vmem:[%s5891_s24 + $0x1138] sm:$0xff] %v3834_v10  ;;  %v3836_v21 = vadd.s32 %v2812_v11, %v763_v3  ;;  %v3837_v22 = vadd.s32 %v2813_v12, %v764_v7  ;;  %v2815_v23 = vmul.u32 %v5869_v2, %v1790_v18  ;;  %v768_v25 = vld [vmem:[%s5853_s23 + $0x1170] sm:$0xff]  ;;  %v769_v27 = vld [vmem:[%s5853_s23 + $0x1178] sm:$0xff] }
 0x1ff   : > { %v2816_v24 = vmul.u32 %v5869_v2, %v1791_v20  ;;  %v1792_v26 = vld [vmem:[%s5861_s6 + $0x1170] sm:$0xff]  ;;  %4859 = vst [vmem:[%s5891_s24 + $0x1140] sm:$0xff] %v3835_v16  ;;  %v3838_v28 = vadd.s32 %v2814_v17, %v765_v13  ;;  %v1793_v30 = vld [vmem:[%s5861_s6 + $0x1178] sm:$0xff]  ;;  %v770_v31 = vld [vmem:[%s5853_s23 + $0x1180] sm:$0xff] }
 0x200   : > { %v2817_v29 = vmul.u32 %v5869_v2, %v1792_v26  ;;  %v1794_v32 = vld [vmem:[%s5861_s6 + $0x1180] sm:$0xff]  ;;  %4860 = vst [vmem:[%s5891_s24 + $0x1148] sm:$0xff] %v3836_v21  ;;  %4861 = vst [vmem:[%s5891_s24 + $0x1150] sm:$0xff] %v3837_v22  ;;  %v3839_v33 = vadd.s32 %v2815_v23, %v766_v15  ;;  %v2818_v35 = vmul.u32 %v5869_v2, %v1793_v30  ;;  %v771_v37 = vld [vmem:[%s5853_s23 + $0x1188] sm:$0xff] }
 0x201   : > { %v3840_v34 = vadd.s32 %v2816_v24, %v767_v19  ;;  %v2819_v36 = vmul.u32 %v5869_v2, %v1794_v32  ;;  %v1795_v38 = vld [vmem:[%s5861_s6 + $0x1188] sm:$0xff]  ;;  %v772_v39 = vld [vmem:[%s5853_s23 + $0x1190] sm:$0xff]  ;;  %4862 = vst [vmem:[%s5891_s24 + $0x1158] sm:$0xff] %v3838_v28  ;;  %v773_v43 = vld [vmem:[%s5853_s23 + $0x1198] sm:$0xff] }
 0x202   : > { %v3841_v40 = vadd.s32 %v2817_v29, %v768_v25  ;;  %v2820_v41 = vmul.u32 %v5869_v2, %v1795_v38  ;;  %v1796_v42 = vld [vmem:[%s5861_s6 + $0x1190] sm:$0xff]  ;;  %v1797_v44 = vld [vmem:[%s5861_s6 + $0x1198] sm:$0xff]  ;;  %4863 = vst [vmem:[%s5891_s24 + $0x1160] sm:$0xff] %v3839_v33  ;;  %v3842_v45 = vadd.s32 %v2818_v35, %v769_v27  ;;  %v774_v49 = vld [vmem:[%s5853_s23 + $0x11a0] sm:$0xff] }
 0x203   : > { %4864 = vst [vmem:[%s5891_s24 + $0x1168] sm:$0xff] %v3840_v34  ;;  %v3843_v46 = vadd.s32 %v2819_v36, %v770_v31  ;;  %v2821_v47 = vmul.u32 %v5869_v2, %v1796_v42  ;;  %v2822_v48 = vmul.u32 %v5869_v2, %v1797_v44  ;;  %v1798_v50 = vld [vmem:[%s5861_s6 + $0x11a0] sm:$0xff]  ;;  %v775_v51 = vld [vmem:[%s5853_s23 + $0x11a8] sm:$0xff]  ;;  %v776_v55 = vld [vmem:[%s5853_s23 + $0x11b0] sm:$0xff] }
 0x204   : > { %4865 = vst [vmem:[%s5891_s24 + $0x1170] sm:$0xff] %v3841_v40  ;;  %v3844_v52 = vadd.s32 %v2820_v41, %v771_v37  ;;  %v2823_v53 = vmul.u32 %v5869_v2, %v1798_v50  ;;  %v1799_v54 = vld [vmem:[%s5861_s6 + $0x11a8] sm:$0xff]  ;;  %v1800_v56 = vld [vmem:[%s5861_s6 + $0x11b0] sm:$0xff]  ;;  %4866 = vst [vmem:[%s5891_s24 + $0x1178] sm:$0xff] %v3842_v45 }
 0x205   : > { %4867 = vst [vmem:[%s5891_s24 + $0x1180] sm:$0xff] %v3843_v46  ;;  %v3845_v57 = vadd.s32 %v2821_v47, %v772_v39  ;;  %v3846_v58 = vadd.s32 %v2822_v48, %v773_v43  ;;  %v2824_v59 = vmul.u32 %v5869_v2, %v1799_v54  ;;  %v2825_v60 = vmul.u32 %v5869_v2, %v1800_v56  ;;  %v777_v61 = vld [vmem:[%s5853_s23 + $0x11b8] sm:$0xff]  ;;  %v778_v63 = vld [vmem:[%s5853_s23 + $0x11c0] sm:$0xff]  ;;  %v779_v4 = vld [vmem:[%s5853_s23 + $0x11c8] sm:$0xff] }
 0x206   : > { %v1801_v62 = vld [vmem:[%s5861_s6 + $0x11b8] sm:$0xff]  ;;  %4868 = vst [vmem:[%s5891_s24 + $0x1188] sm:$0xff] %v3844_v52  ;;  %v3847_v0 = vadd.s32 %v2823_v53, %v774_v49  ;;  %v1802_v3 = vld [vmem:[%s5861_s6 + $0x11c0] sm:$0xff]  ;;  %v1803_v5 = vld [vmem:[%s5861_s6 + $0x11c8] sm:$0xff] }
 0x207   : > { %v2826_v1 = vmul.u32 %v5869_v2, %v1801_v62  ;;  %4869 = vst [vmem:[%s5891_s24 + $0x1190] sm:$0xff] %v3845_v57  ;;  %4870 = vst [vmem:[%s5891_s24 + $0x1198] sm:$0xff] %v3846_v58  ;;  %v3848_v6 = vadd.s32 %v2824_v59, %v775_v51  ;;  %v3849_v7 = vadd.s32 %v2825_v60, %v776_v55  ;;  %v780_v10 = vld [vmem:[%s5853_s23 + $0x11d0] sm:$0xff]  ;;  %v781_v12 = vld [vmem:[%s5853_s23 + $0x11d8] sm:$0xff] }
 0x208   : > { %v2827_v8 = vmul.u32 %v5869_v2, %v1802_v3  ;;  %v2828_v9 = vmul.u32 %v5869_v2, %v1803_v5  ;;  %v1804_v11 = vld [vmem:[%s5861_s6 + $0x11d0] sm:$0xff]  ;;  %4871 = vst [vmem:[%s5891_s24 + $0x11a0] sm:$0xff] %v3847_v0  ;;  %v1805_v15 = vld [vmem:[%s5861_s6 + $0x11d8] sm:$0xff]  ;;  %v782_v16 = vld [vmem:[%s5853_s23 + $0x11e0] sm:$0xff] }
 0x209   : > { %v3850_v13 = vadd.s32 %v2826_v1, %v777_v61  ;;  %v2829_v14 = vmul.u32 %v5869_v2, %v1804_v11  ;;  %v1806_v17 = vld [vmem:[%s5861_s6 + $0x11e0] sm:$0xff]  ;;  %4872 = vst [vmem:[%s5891_s24 + $0x11a8] sm:$0xff] %v3848_v6  ;;  %4873 = vst [vmem:[%s5891_s24 + $0x11b0] sm:$0xff] %v3849_v7  ;;  %v2830_v20 = vmul.u32 %v5869_v2, %v1805_v15  ;;  %v783_v22 = vld [vmem:[%s5853_s23 + $0x11e8] sm:$0xff] }
 0x20a   : > { %v3851_v18 = vadd.s32 %v2827_v8, %v778_v63  ;;  %v3852_v19 = vadd.s32 %v2828_v9, %v779_v4  ;;  %v2831_v21 = vmul.u32 %v5869_v2, %v1806_v17  ;;  %v1807_v23 = vld [vmem:[%s5861_s6 + $0x11e8] sm:$0xff]  ;;  %v784_v24 = vld [vmem:[%s5853_s23 + $0x11f0] sm:$0xff]  ;;  %v785_v28 = vld [vmem:[%s5853_s23 + $0x11f8] sm:$0xff] }
 0x20b   : > { %4874 = vst [vmem:[%s5891_s24 + $0x11b8] sm:$0xff] %v3850_v13  ;;  %v3853_v25 = vadd.s32 %v2829_v14, %v780_v10  ;;  %v2832_v26 = vmul.u32 %v5869_v2, %v1807_v23  ;;  %v1808_v27 = vld [vmem:[%s5861_s6 + $0x11f0] sm:$0xff]  ;;  %v1809_v29 = vld [vmem:[%s5861_s6 + $0x11f8] sm:$0xff]  ;;  %v3854_v30 = vadd.s32 %v2830_v20, %v781_v12  ;;  %v786_v34 = vld [vmem:[%s5853_s23 + $0x1200] sm:$0xff] }
 0x20c   : > { %4875 = vst [vmem:[%s5891_s24 + $0x11c0] sm:$0xff] %v3851_v18  ;;  %4876 = vst [vmem:[%s5891_s24 + $0x11c8] sm:$0xff] %v3852_v19  ;;  %v3855_v31 = vadd.s32 %v2831_v21, %v782_v16  ;;  %v2833_v32 = vmul.u32 %v5869_v2, %v1808_v27  ;;  %v2834_v33 = vmul.u32 %v5869_v2, %v1809_v29  ;;  %v1810_v35 = vld [vmem:[%s5861_s6 + $0x1200] sm:$0xff]  ;;  %v787_v36 = vld [vmem:[%s5853_s23 + $0x1208] sm:$0xff] }
 0x20d   : > { %4877 = vst [vmem:[%s5891_s24 + $0x11d0] sm:$0xff] %v3853_v25  ;;  %v3856_v37 = vadd.s32 %v2832_v26, %v783_v22  ;;  %v2835_v38 = vmul.u32 %v5869_v2, %v1810_v35  ;;  %v1811_v39 = vld [vmem:[%s5861_s6 + $0x1208] sm:$0xff]  ;;  %v788_v40 = vld [vmem:[%s5853_s23 + $0x1210] sm:$0xff]  ;;  %4878 = vst [vmem:[%s5891_s24 + $0x11d8] sm:$0xff] %v3854_v30 }
 0x20e   : > { %v1812_v41 = vld [vmem:[%s5861_s6 + $0x1210] sm:$0xff]  ;;  %4879 = vst [vmem:[%s5891_s24 + $0x11e0] sm:$0xff] %v3855_v31  ;;  %v3857_v42 = vadd.s32 %v2833_v32, %v784_v24  ;;  %v3858_v43 = vadd.s32 %v2834_v33, %v785_v28  ;;  %v2836_v44 = vmul.u32 %v5869_v2, %v1811_v39  ;;  %v789_v46 = vld [vmem:[%s5853_s23 + $0x1218] sm:$0xff]  ;;  %v790_v48 = vld [vmem:[%s5853_s23 + $0x1220] sm:$0xff] }
 0x20f   : > { %v2837_v45 = vmul.u32 %v5869_v2, %v1812_v41  ;;  %v1813_v47 = vld [vmem:[%s5861_s6 + $0x1218] sm:$0xff]  ;;  %4880 = vst [vmem:[%s5891_s24 + $0x11e8] sm:$0xff] %v3856_v37  ;;  %v3859_v49 = vadd.s32 %v2835_v38, %v786_v34  ;;  %v1814_v51 = vld [vmem:[%s5861_s6 + $0x1220] sm:$0xff]  ;;  %v791_v52 = vld [vmem:[%s5853_s23 + $0x1228] sm:$0xff] }
 0x210   : > { %v2838_v50 = vmul.u32 %v5869_v2, %v1813_v47  ;;  %v1815_v53 = vld [vmem:[%s5861_s6 + $0x1228] sm:$0xff]  ;;  %4881 = vst [vmem:[%s5891_s24 + $0x11f0] sm:$0xff] %v3857_v42  ;;  %4882 = vst [vmem:[%s5891_s24 + $0x11f8] sm:$0xff] %v3858_v43  ;;  %v3860_v54 = vadd.s32 %v2836_v44, %v787_v36  ;;  %v2839_v56 = vmul.u32 %v5869_v2, %v1814_v51  ;;  %v792_v58 = vld [vmem:[%s5853_s23 + $0x1230] sm:$0xff] }
 0x211   : > { %v3861_v55 = vadd.s32 %v2837_v45, %v788_v40  ;;  %v2840_v57 = vmul.u32 %v5869_v2, %v1815_v53  ;;  %v1816_v59 = vld [vmem:[%s5861_s6 + $0x1230] sm:$0xff]  ;;  %v793_v60 = vld [vmem:[%s5853_s23 + $0x1238] sm:$0xff]  ;;  %4883 = vst [vmem:[%s5891_s24 + $0x1200] sm:$0xff] %v3859_v49  ;;  %v794_v0 = vld [vmem:[%s5853_s23 + $0x1240] sm:$0xff] }
 0x212   : > { %v3862_v61 = vadd.s32 %v2838_v50, %v789_v46  ;;  %v2841_v62 = vmul.u32 %v5869_v2, %v1816_v59  ;;  %v1817_v63 = vld [vmem:[%s5861_s6 + $0x1238] sm:$0xff]  ;;  %v1818_v1 = vld [vmem:[%s5861_s6 + $0x1240] sm:$0xff]  ;;  %4884 = vst [vmem:[%s5891_s24 + $0x1208] sm:$0xff] %v3860_v54  ;;  %v3863_v3 = vadd.s32 %v2839_v56, %v790_v48  ;;  %v795_v7 = vld [vmem:[%s5853_s23 + $0x1248] sm:$0xff] }
 0x213   : > { %4885 = vst [vmem:[%s5891_s24 + $0x1210] sm:$0xff] %v3861_v55  ;;  %v3864_v4 = vadd.s32 %v2840_v57, %v791_v52  ;;  %v2842_v5 = vmul.u32 %v5869_v2, %v1817_v63  ;;  %v2843_v6 = vmul.u32 %v5869_v2, %v1818_v1  ;;  %v1819_v8 = vld [vmem:[%s5861_s6 + $0x1248] sm:$0xff]  ;;  %v796_v9 = vld [vmem:[%s5853_s23 + $0x1250] sm:$0xff]  ;;  %v797_v13 = vld [vmem:[%s5853_s23 + $0x1258] sm:$0xff] }
 0x214   : > { %4886 = vst [vmem:[%s5891_s24 + $0x1218] sm:$0xff] %v3862_v61  ;;  %v3865_v10 = vadd.s32 %v2841_v62, %v792_v58  ;;  %v2844_v11 = vmul.u32 %v5869_v2, %v1819_v8  ;;  %v1820_v12 = vld [vmem:[%s5861_s6 + $0x1250] sm:$0xff]  ;;  %v1821_v14 = vld [vmem:[%s5861_s6 + $0x1258] sm:$0xff]  ;;  %4887 = vst [vmem:[%s5891_s24 + $0x1220] sm:$0xff] %v3863_v3 }
 0x215   : > { %4888 = vst [vmem:[%s5891_s24 + $0x1228] sm:$0xff] %v3864_v4  ;;  %v3866_v15 = vadd.s32 %v2842_v5, %v793_v60  ;;  %v3867_v16 = vadd.s32 %v2843_v6, %v794_v0  ;;  %v2845_v17 = vmul.u32 %v5869_v2, %v1820_v12  ;;  %v2846_v18 = vmul.u32 %v5869_v2, %v1821_v14  ;;  %v798_v19 = vld [vmem:[%s5853_s23 + $0x1260] sm:$0xff]  ;;  %v799_v21 = vld [vmem:[%s5853_s23 + $0x1268] sm:$0xff]  ;;  %v800_v25 = vld [vmem:[%s5853_s23 + $0x1270] sm:$0xff] }
 0x216   : > { %v1822_v20 = vld [vmem:[%s5861_s6 + $0x1260] sm:$0xff]  ;;  %4889 = vst [vmem:[%s5891_s24 + $0x1230] sm:$0xff] %v3865_v10  ;;  %v3868_v22 = vadd.s32 %v2844_v11, %v795_v7  ;;  %v1823_v24 = vld [vmem:[%s5861_s6 + $0x1268] sm:$0xff]  ;;  %v1824_v26 = vld [vmem:[%s5861_s6 + $0x1270] sm:$0xff] }
 0x217   : > { %v2847_v23 = vmul.u32 %v5869_v2, %v1822_v20  ;;  %4890 = vst [vmem:[%s5891_s24 + $0x1238] sm:$0xff] %v3866_v15  ;;  %4891 = vst [vmem:[%s5891_s24 + $0x1240] sm:$0xff] %v3867_v16  ;;  %v3869_v27 = vadd.s32 %v2845_v17, %v796_v9  ;;  %v3870_v28 = vadd.s32 %v2846_v18, %v797_v13  ;;  %v801_v31 = vld [vmem:[%s5853_s23 + $0x1278] sm:$0xff]  ;;  %v802_v33 = vld [vmem:[%s5853_s23 + $0x1280] sm:$0xff] }
 0x218   : > { %v2848_v29 = vmul.u32 %v5869_v2, %v1823_v24  ;;  %v2849_v30 = vmul.u32 %v5869_v2, %v1824_v26  ;;  %v1825_v32 = vld [vmem:[%s5861_s6 + $0x1278] sm:$0xff]  ;;  %4892 = vst [vmem:[%s5891_s24 + $0x1248] sm:$0xff] %v3868_v22  ;;  %v1826_v36 = vld [vmem:[%s5861_s6 + $0x1280] sm:$0xff]  ;;  %v803_v37 = vld [vmem:[%s5853_s23 + $0x1288] sm:$0xff] }
 0x219   : > { %v3871_v34 = vadd.s32 %v2847_v23, %v798_v19  ;;  %v2850_v35 = vmul.u32 %v5869_v2, %v1825_v32  ;;  %v1827_v38 = vld [vmem:[%s5861_s6 + $0x1288] sm:$0xff]  ;;  %4893 = vst [vmem:[%s5891_s24 + $0x1250] sm:$0xff] %v3869_v27  ;;  %4894 = vst [vmem:[%s5891_s24 + $0x1258] sm:$0xff] %v3870_v28  ;;  %v2851_v41 = vmul.u32 %v5869_v2, %v1826_v36  ;;  %v804_v43 = vld [vmem:[%s5853_s23 + $0x1290] sm:$0xff] }
 0x21a   : > { %v3872_v39 = vadd.s32 %v2848_v29, %v799_v21  ;;  %v3873_v40 = vadd.s32 %v2849_v30, %v800_v25  ;;  %v2852_v42 = vmul.u32 %v5869_v2, %v1827_v38  ;;  %v1828_v44 = vld [vmem:[%s5861_s6 + $0x1290] sm:$0xff]  ;;  %v805_v45 = vld [vmem:[%s5853_s23 + $0x1298] sm:$0xff]  ;;  %v806_v49 = vld [vmem:[%s5853_s23 + $0x12a0] sm:$0xff] }
 0x21b   : > { %4895 = vst [vmem:[%s5891_s24 + $0x1260] sm:$0xff] %v3871_v34  ;;  %v3874_v46 = vadd.s32 %v2850_v35, %v801_v31  ;;  %v2853_v47 = vmul.u32 %v5869_v2, %v1828_v44  ;;  %v1829_v48 = vld [vmem:[%s5861_s6 + $0x1298] sm:$0xff]  ;;  %v1830_v50 = vld [vmem:[%s5861_s6 + $0x12a0] sm:$0xff]  ;;  %v3875_v51 = vadd.s32 %v2851_v41, %v802_v33  ;;  %v807_v55 = vld [vmem:[%s5853_s23 + $0x12a8] sm:$0xff] }
 0x21c   : > { %4896 = vst [vmem:[%s5891_s24 + $0x1268] sm:$0xff] %v3872_v39  ;;  %4897 = vst [vmem:[%s5891_s24 + $0x1270] sm:$0xff] %v3873_v40  ;;  %v3876_v52 = vadd.s32 %v2852_v42, %v803_v37  ;;  %v2854_v53 = vmul.u32 %v5869_v2, %v1829_v48  ;;  %v2855_v54 = vmul.u32 %v5869_v2, %v1830_v50  ;;  %v1831_v56 = vld [vmem:[%s5861_s6 + $0x12a8] sm:$0xff]  ;;  %v808_v57 = vld [vmem:[%s5853_s23 + $0x12b0] sm:$0xff] }
 0x21d   : > { %4898 = vst [vmem:[%s5891_s24 + $0x1278] sm:$0xff] %v3874_v46  ;;  %v3877_v58 = vadd.s32 %v2853_v47, %v804_v43  ;;  %v2856_v59 = vmul.u32 %v5869_v2, %v1831_v56  ;;  %v1832_v60 = vld [vmem:[%s5861_s6 + $0x12b0] sm:$0xff]  ;;  %v809_v61 = vld [vmem:[%s5853_s23 + $0x12b8] sm:$0xff]  ;;  %4899 = vst [vmem:[%s5891_s24 + $0x1280] sm:$0xff] %v3875_v51 }
 0x21e   : > { %v1833_v62 = vld [vmem:[%s5861_s6 + $0x12b8] sm:$0xff]  ;;  %4900 = vst [vmem:[%s5891_s24 + $0x1288] sm:$0xff] %v3876_v52  ;;  %v3878_v63 = vadd.s32 %v2854_v53, %v805_v45  ;;  %v3879_v0 = vadd.s32 %v2855_v54, %v806_v49  ;;  %v2857_v1 = vmul.u32 %v5869_v2, %v1832_v60  ;;  %v810_v4 = vld [vmem:[%s5853_s23 + $0x12c0] sm:$0xff]  ;;  %v811_v6 = vld [vmem:[%s5853_s23 + $0x12c8] sm:$0xff] }
 0x21f   : > { %v2858_v3 = vmul.u32 %v5869_v2, %v1833_v62  ;;  %v1834_v5 = vld [vmem:[%s5861_s6 + $0x12c0] sm:$0xff]  ;;  %4901 = vst [vmem:[%s5891_s24 + $0x1290] sm:$0xff] %v3877_v58  ;;  %v3880_v7 = vadd.s32 %v2856_v59, %v807_v55  ;;  %v1835_v9 = vld [vmem:[%s5861_s6 + $0x12c8] sm:$0xff]  ;;  %v812_v10 = vld [vmem:[%s5853_s23 + $0x12d0] sm:$0xff] }
 0x220   : > { %v2859_v8 = vmul.u32 %v5869_v2, %v1834_v5  ;;  %v1836_v11 = vld [vmem:[%s5861_s6 + $0x12d0] sm:$0xff]  ;;  %4902 = vst [vmem:[%s5891_s24 + $0x1298] sm:$0xff] %v3878_v63  ;;  %4903 = vst [vmem:[%s5891_s24 + $0x12a0] sm:$0xff] %v3879_v0  ;;  %v3881_v12 = vadd.s32 %v2857_v1, %v808_v57  ;;  %v2860_v14 = vmul.u32 %v5869_v2, %v1835_v9  ;;  %v813_v16 = vld [vmem:[%s5853_s23 + $0x12d8] sm:$0xff] }
 0x221   : > { %v3882_v13 = vadd.s32 %v2858_v3, %v809_v61  ;;  %v2861_v15 = vmul.u32 %v5869_v2, %v1836_v11  ;;  %v1837_v17 = vld [vmem:[%s5861_s6 + $0x12d8] sm:$0xff]  ;;  %v814_v18 = vld [vmem:[%s5853_s23 + $0x12e0] sm:$0xff]  ;;  %4904 = vst [vmem:[%s5891_s24 + $0x12a8] sm:$0xff] %v3880_v7  ;;  %v815_v22 = vld [vmem:[%s5853_s23 + $0x12e8] sm:$0xff] }
 0x222   : > { %v3883_v19 = vadd.s32 %v2859_v8, %v810_v4  ;;  %v2862_v20 = vmul.u32 %v5869_v2, %v1837_v17  ;;  %v1838_v21 = vld [vmem:[%s5861_s6 + $0x12e0] sm:$0xff]  ;;  %v1839_v23 = vld [vmem:[%s5861_s6 + $0x12e8] sm:$0xff]  ;;  %4905 = vst [vmem:[%s5891_s24 + $0x12b0] sm:$0xff] %v3881_v12  ;;  %v3884_v24 = vadd.s32 %v2860_v14, %v811_v6  ;;  %v816_v28 = vld [vmem:[%s5853_s23 + $0x12f0] sm:$0xff] }
 0x223   : > { %4906 = vst [vmem:[%s5891_s24 + $0x12b8] sm:$0xff] %v3882_v13  ;;  %v3885_v25 = vadd.s32 %v2861_v15, %v812_v10  ;;  %v2863_v26 = vmul.u32 %v5869_v2, %v1838_v21  ;;  %v2864_v27 = vmul.u32 %v5869_v2, %v1839_v23  ;;  %v1840_v29 = vld [vmem:[%s5861_s6 + $0x12f0] sm:$0xff]  ;;  %v817_v30 = vld [vmem:[%s5853_s23 + $0x12f8] sm:$0xff]  ;;  %v818_v34 = vld [vmem:[%s5853_s23 + $0x1300] sm:$0xff] }
 0x224   : > { %4907 = vst [vmem:[%s5891_s24 + $0x12c0] sm:$0xff] %v3883_v19  ;;  %v3886_v31 = vadd.s32 %v2862_v20, %v813_v16  ;;  %v2865_v32 = vmul.u32 %v5869_v2, %v1840_v29  ;;  %v1841_v33 = vld [vmem:[%s5861_s6 + $0x12f8] sm:$0xff]  ;;  %v1842_v35 = vld [vmem:[%s5861_s6 + $0x1300] sm:$0xff]  ;;  %4908 = vst [vmem:[%s5891_s24 + $0x12c8] sm:$0xff] %v3884_v24 }
 0x225   : > { %4909 = vst [vmem:[%s5891_s24 + $0x12d0] sm:$0xff] %v3885_v25  ;;  %v3887_v36 = vadd.s32 %v2863_v26, %v814_v18  ;;  %v3888_v37 = vadd.s32 %v2864_v27, %v815_v22  ;;  %v2866_v38 = vmul.u32 %v5869_v2, %v1841_v33  ;;  %v2867_v39 = vmul.u32 %v5869_v2, %v1842_v35  ;;  %v819_v40 = vld [vmem:[%s5853_s23 + $0x1308] sm:$0xff]  ;;  %v820_v42 = vld [vmem:[%s5853_s23 + $0x1310] sm:$0xff]  ;;  %v821_v46 = vld [vmem:[%s5853_s23 + $0x1318] sm:$0xff] }
 0x226   : > { %v1843_v41 = vld [vmem:[%s5861_s6 + $0x1308] sm:$0xff]  ;;  %4910 = vst [vmem:[%s5891_s24 + $0x12d8] sm:$0xff] %v3886_v31  ;;  %v3889_v43 = vadd.s32 %v2865_v32, %v816_v28  ;;  %v1844_v45 = vld [vmem:[%s5861_s6 + $0x1310] sm:$0xff]  ;;  %v1845_v47 = vld [vmem:[%s5861_s6 + $0x1318] sm:$0xff] }
 0x227   : > { %v2868_v44 = vmul.u32 %v5869_v2, %v1843_v41  ;;  %4911 = vst [vmem:[%s5891_s24 + $0x12e0] sm:$0xff] %v3887_v36  ;;  %4912 = vst [vmem:[%s5891_s24 + $0x12e8] sm:$0xff] %v3888_v37  ;;  %v3890_v48 = vadd.s32 %v2866_v38, %v817_v30  ;;  %v3891_v49 = vadd.s32 %v2867_v39, %v818_v34  ;;  %v822_v52 = vld [vmem:[%s5853_s23 + $0x1320] sm:$0xff]  ;;  %v823_v54 = vld [vmem:[%s5853_s23 + $0x1328] sm:$0xff] }
 0x228   : > { %v2869_v50 = vmul.u32 %v5869_v2, %v1844_v45  ;;  %v2870_v51 = vmul.u32 %v5869_v2, %v1845_v47  ;;  %v1846_v53 = vld [vmem:[%s5861_s6 + $0x1320] sm:$0xff]  ;;  %4913 = vst [vmem:[%s5891_s24 + $0x12f0] sm:$0xff] %v3889_v43  ;;  %v1847_v57 = vld [vmem:[%s5861_s6 + $0x1328] sm:$0xff]  ;;  %v824_v58 = vld [vmem:[%s5853_s23 + $0x1330] sm:$0xff] }
 0x229   : > { %v3892_v55 = vadd.s32 %v2868_v44, %v819_v40  ;;  %v2871_v56 = vmul.u32 %v5869_v2, %v1846_v53  ;;  %v1848_v59 = vld [vmem:[%s5861_s6 + $0x1330] sm:$0xff]  ;;  %4914 = vst [vmem:[%s5891_s24 + $0x12f8] sm:$0xff] %v3890_v48  ;;  %4915 = vst [vmem:[%s5891_s24 + $0x1300] sm:$0xff] %v3891_v49  ;;  %v2872_v62 = vmul.u32 %v5869_v2, %v1847_v57  ;;  %v825_v0 = vld [vmem:[%s5853_s23 + $0x1338] sm:$0xff] }
 0x22a   : > { %v3893_v60 = vadd.s32 %v2869_v50, %v820_v42  ;;  %v3894_v61 = vadd.s32 %v2870_v51, %v821_v46  ;;  %v2873_v63 = vmul.u32 %v5869_v2, %v1848_v59  ;;  %v1849_v1 = vld [vmem:[%s5861_s6 + $0x1338] sm:$0xff]  ;;  %v826_v3 = vld [vmem:[%s5853_s23 + $0x1340] sm:$0xff]  ;;  %v827_v7 = vld [vmem:[%s5853_s23 + $0x1348] sm:$0xff] }
 0x22b   : > { %4916 = vst [vmem:[%s5891_s24 + $0x1308] sm:$0xff] %v3892_v55  ;;  %v3895_v4 = vadd.s32 %v2871_v56, %v822_v52  ;;  %v2874_v5 = vmul.u32 %v5869_v2, %v1849_v1  ;;  %v1850_v6 = vld [vmem:[%s5861_s6 + $0x1340] sm:$0xff]  ;;  %v1851_v8 = vld [vmem:[%s5861_s6 + $0x1348] sm:$0xff]  ;;  %v3896_v9 = vadd.s32 %v2872_v62, %v823_v54  ;;  %v828_v13 = vld [vmem:[%s5853_s23 + $0x1350] sm:$0xff] }
 0x22c   : > { %4917 = vst [vmem:[%s5891_s24 + $0x1310] sm:$0xff] %v3893_v60  ;;  %4918 = vst [vmem:[%s5891_s24 + $0x1318] sm:$0xff] %v3894_v61  ;;  %v3897_v10 = vadd.s32 %v2873_v63, %v824_v58  ;;  %v2875_v11 = vmul.u32 %v5869_v2, %v1850_v6  ;;  %v2876_v12 = vmul.u32 %v5869_v2, %v1851_v8  ;;  %v1852_v14 = vld [vmem:[%s5861_s6 + $0x1350] sm:$0xff]  ;;  %v829_v15 = vld [vmem:[%s5853_s23 + $0x1358] sm:$0xff] }
 0x22d   : > { %4919 = vst [vmem:[%s5891_s24 + $0x1320] sm:$0xff] %v3895_v4  ;;  %v3898_v16 = vadd.s32 %v2874_v5, %v825_v0  ;;  %v2877_v17 = vmul.u32 %v5869_v2, %v1852_v14  ;;  %v1853_v18 = vld [vmem:[%s5861_s6 + $0x1358] sm:$0xff]  ;;  %v830_v19 = vld [vmem:[%s5853_s23 + $0x1360] sm:$0xff]  ;;  %4920 = vst [vmem:[%s5891_s24 + $0x1328] sm:$0xff] %v3896_v9 }
 0x22e   : > { %v1854_v20 = vld [vmem:[%s5861_s6 + $0x1360] sm:$0xff]  ;;  %4921 = vst [vmem:[%s5891_s24 + $0x1330] sm:$0xff] %v3897_v10  ;;  %v3899_v21 = vadd.s32 %v2875_v11, %v826_v3  ;;  %v3900_v22 = vadd.s32 %v2876_v12, %v827_v7  ;;  %v2878_v23 = vmul.u32 %v5869_v2, %v1853_v18  ;;  %v831_v25 = vld [vmem:[%s5853_s23 + $0x1368] sm:$0xff]  ;;  %v832_v27 = vld [vmem:[%s5853_s23 + $0x1370] sm:$0xff] }
 0x22f   : > { %v2879_v24 = vmul.u32 %v5869_v2, %v1854_v20  ;;  %v1855_v26 = vld [vmem:[%s5861_s6 + $0x1368] sm:$0xff]  ;;  %4922 = vst [vmem:[%s5891_s24 + $0x1338] sm:$0xff] %v3898_v16  ;;  %v3901_v28 = vadd.s32 %v2877_v17, %v828_v13  ;;  %v1856_v30 = vld [vmem:[%s5861_s6 + $0x1370] sm:$0xff]  ;;  %v833_v31 = vld [vmem:[%s5853_s23 + $0x1378] sm:$0xff] }
 0x230   : > { %v2880_v29 = vmul.u32 %v5869_v2, %v1855_v26  ;;  %v1857_v32 = vld [vmem:[%s5861_s6 + $0x1378] sm:$0xff]  ;;  %4923 = vst [vmem:[%s5891_s24 + $0x1340] sm:$0xff] %v3899_v21  ;;  %4924 = vst [vmem:[%s5891_s24 + $0x1348] sm:$0xff] %v3900_v22  ;;  %v3902_v33 = vadd.s32 %v2878_v23, %v829_v15  ;;  %v2881_v35 = vmul.u32 %v5869_v2, %v1856_v30  ;;  %v834_v37 = vld [vmem:[%s5853_s23 + $0x1380] sm:$0xff] }
 0x231   : > { %v3903_v34 = vadd.s32 %v2879_v24, %v830_v19  ;;  %v2882_v36 = vmul.u32 %v5869_v2, %v1857_v32  ;;  %v1858_v38 = vld [vmem:[%s5861_s6 + $0x1380] sm:$0xff]  ;;  %v835_v39 = vld [vmem:[%s5853_s23 + $0x1388] sm:$0xff]  ;;  %4925 = vst [vmem:[%s5891_s24 + $0x1350] sm:$0xff] %v3901_v28  ;;  %v836_v43 = vld [vmem:[%s5853_s23 + $0x1390] sm:$0xff] }
 0x232   : > { %v3904_v40 = vadd.s32 %v2880_v29, %v831_v25  ;;  %v2883_v41 = vmul.u32 %v5869_v2, %v1858_v38  ;;  %v1859_v42 = vld [vmem:[%s5861_s6 + $0x1388] sm:$0xff]  ;;  %v1860_v44 = vld [vmem:[%s5861_s6 + $0x1390] sm:$0xff]  ;;  %4926 = vst [vmem:[%s5891_s24 + $0x1358] sm:$0xff] %v3902_v33  ;;  %v3905_v45 = vadd.s32 %v2881_v35, %v832_v27  ;;  %v837_v49 = vld [vmem:[%s5853_s23 + $0x1398] sm:$0xff] }
 0x233   : > { %4927 = vst [vmem:[%s5891_s24 + $0x1360] sm:$0xff] %v3903_v34  ;;  %v3906_v46 = vadd.s32 %v2882_v36, %v833_v31  ;;  %v2884_v47 = vmul.u32 %v5869_v2, %v1859_v42  ;;  %v2885_v48 = vmul.u32 %v5869_v2, %v1860_v44  ;;  %v1861_v50 = vld [vmem:[%s5861_s6 + $0x1398] sm:$0xff]  ;;  %v838_v51 = vld [vmem:[%s5853_s23 + $0x13a0] sm:$0xff]  ;;  %v839_v55 = vld [vmem:[%s5853_s23 + $0x13a8] sm:$0xff] }
 0x234   : > { %4928 = vst [vmem:[%s5891_s24 + $0x1368] sm:$0xff] %v3904_v40  ;;  %v3907_v52 = vadd.s32 %v2883_v41, %v834_v37  ;;  %v2886_v53 = vmul.u32 %v5869_v2, %v1861_v50  ;;  %v1862_v54 = vld [vmem:[%s5861_s6 + $0x13a0] sm:$0xff]  ;;  %v1863_v56 = vld [vmem:[%s5861_s6 + $0x13a8] sm:$0xff]  ;;  %4929 = vst [vmem:[%s5891_s24 + $0x1370] sm:$0xff] %v3905_v45 }
 0x235   : > { %4930 = vst [vmem:[%s5891_s24 + $0x1378] sm:$0xff] %v3906_v46  ;;  %v3908_v57 = vadd.s32 %v2884_v47, %v835_v39  ;;  %v3909_v58 = vadd.s32 %v2885_v48, %v836_v43  ;;  %v2887_v59 = vmul.u32 %v5869_v2, %v1862_v54  ;;  %v2888_v60 = vmul.u32 %v5869_v2, %v1863_v56  ;;  %v840_v61 = vld [vmem:[%s5853_s23 + $0x13b0] sm:$0xff]  ;;  %v841_v63 = vld [vmem:[%s5853_s23 + $0x13b8] sm:$0xff]  ;;  %v842_v4 = vld [vmem:[%s5853_s23 + $0x13c0] sm:$0xff] }
 0x236   : > { %v1864_v62 = vld [vmem:[%s5861_s6 + $0x13b0] sm:$0xff]  ;;  %4931 = vst [vmem:[%s5891_s24 + $0x1380] sm:$0xff] %v3907_v52  ;;  %v3910_v0 = vadd.s32 %v2886_v53, %v837_v49  ;;  %v1865_v3 = vld [vmem:[%s5861_s6 + $0x13b8] sm:$0xff]  ;;  %v1866_v5 = vld [vmem:[%s5861_s6 + $0x13c0] sm:$0xff] }
 0x237   : > { %v2889_v1 = vmul.u32 %v5869_v2, %v1864_v62  ;;  %4932 = vst [vmem:[%s5891_s24 + $0x1388] sm:$0xff] %v3908_v57  ;;  %4933 = vst [vmem:[%s5891_s24 + $0x1390] sm:$0xff] %v3909_v58  ;;  %v3911_v6 = vadd.s32 %v2887_v59, %v838_v51  ;;  %v3912_v7 = vadd.s32 %v2888_v60, %v839_v55  ;;  %v843_v10 = vld [vmem:[%s5853_s23 + $0x13c8] sm:$0xff]  ;;  %v844_v12 = vld [vmem:[%s5853_s23 + $0x13d0] sm:$0xff] }
 0x238   : > { %v2890_v8 = vmul.u32 %v5869_v2, %v1865_v3  ;;  %v2891_v9 = vmul.u32 %v5869_v2, %v1866_v5  ;;  %v1867_v11 = vld [vmem:[%s5861_s6 + $0x13c8] sm:$0xff]  ;;  %4934 = vst [vmem:[%s5891_s24 + $0x1398] sm:$0xff] %v3910_v0  ;;  %v1868_v15 = vld [vmem:[%s5861_s6 + $0x13d0] sm:$0xff]  ;;  %v845_v16 = vld [vmem:[%s5853_s23 + $0x13d8] sm:$0xff] }
 0x239   : > { %v3913_v13 = vadd.s32 %v2889_v1, %v840_v61  ;;  %v2892_v14 = vmul.u32 %v5869_v2, %v1867_v11  ;;  %v1869_v17 = vld [vmem:[%s5861_s6 + $0x13d8] sm:$0xff]  ;;  %4935 = vst [vmem:[%s5891_s24 + $0x13a0] sm:$0xff] %v3911_v6  ;;  %4936 = vst [vmem:[%s5891_s24 + $0x13a8] sm:$0xff] %v3912_v7  ;;  %v2893_v20 = vmul.u32 %v5869_v2, %v1868_v15  ;;  %v846_v22 = vld [vmem:[%s5853_s23 + $0x13e0] sm:$0xff] }
 0x23a   : > { %v3914_v18 = vadd.s32 %v2890_v8, %v841_v63  ;;  %v3915_v19 = vadd.s32 %v2891_v9, %v842_v4  ;;  %v2894_v21 = vmul.u32 %v5869_v2, %v1869_v17  ;;  %v1870_v23 = vld [vmem:[%s5861_s6 + $0x13e0] sm:$0xff]  ;;  %v847_v24 = vld [vmem:[%s5853_s23 + $0x13e8] sm:$0xff]  ;;  %v848_v28 = vld [vmem:[%s5853_s23 + $0x13f0] sm:$0xff] }
 0x23b   : > { %4937 = vst [vmem:[%s5891_s24 + $0x13b0] sm:$0xff] %v3913_v13  ;;  %v3916_v25 = vadd.s32 %v2892_v14, %v843_v10  ;;  %v2895_v26 = vmul.u32 %v5869_v2, %v1870_v23  ;;  %v1871_v27 = vld [vmem:[%s5861_s6 + $0x13e8] sm:$0xff]  ;;  %v1872_v29 = vld [vmem:[%s5861_s6 + $0x13f0] sm:$0xff]  ;;  %v3917_v30 = vadd.s32 %v2893_v20, %v844_v12  ;;  %v849_v34 = vld [vmem:[%s5853_s23 + $0x13f8] sm:$0xff] }
 0x23c   : > { %4938 = vst [vmem:[%s5891_s24 + $0x13b8] sm:$0xff] %v3914_v18  ;;  %4939 = vst [vmem:[%s5891_s24 + $0x13c0] sm:$0xff] %v3915_v19  ;;  %v3918_v31 = vadd.s32 %v2894_v21, %v845_v16  ;;  %v2896_v32 = vmul.u32 %v5869_v2, %v1871_v27  ;;  %v2897_v33 = vmul.u32 %v5869_v2, %v1872_v29  ;;  %v1873_v35 = vld [vmem:[%s5861_s6 + $0x13f8] sm:$0xff]  ;;  %v850_v36 = vld [vmem:[%s5853_s23 + $0x1400] sm:$0xff] }
 0x23d   : > { %4940 = vst [vmem:[%s5891_s24 + $0x13c8] sm:$0xff] %v3916_v25  ;;  %v3919_v37 = vadd.s32 %v2895_v26, %v846_v22  ;;  %v2898_v38 = vmul.u32 %v5869_v2, %v1873_v35  ;;  %v1874_v39 = vld [vmem:[%s5861_s6 + $0x1400] sm:$0xff]  ;;  %v851_v40 = vld [vmem:[%s5853_s23 + $0x1408] sm:$0xff]  ;;  %4941 = vst [vmem:[%s5891_s24 + $0x13d0] sm:$0xff] %v3917_v30 }
 0x23e   : > { %v1875_v41 = vld [vmem:[%s5861_s6 + $0x1408] sm:$0xff]  ;;  %4942 = vst [vmem:[%s5891_s24 + $0x13d8] sm:$0xff] %v3918_v31  ;;  %v3920_v42 = vadd.s32 %v2896_v32, %v847_v24  ;;  %v3921_v43 = vadd.s32 %v2897_v33, %v848_v28  ;;  %v2899_v44 = vmul.u32 %v5869_v2, %v1874_v39  ;;  %v852_v46 = vld [vmem:[%s5853_s23 + $0x1410] sm:$0xff]  ;;  %v853_v48 = vld [vmem:[%s5853_s23 + $0x1418] sm:$0xff] }
 0x23f   : > { %v2900_v45 = vmul.u32 %v5869_v2, %v1875_v41  ;;  %v1876_v47 = vld [vmem:[%s5861_s6 + $0x1410] sm:$0xff]  ;;  %4943 = vst [vmem:[%s5891_s24 + $0x13e0] sm:$0xff] %v3919_v37  ;;  %v3922_v49 = vadd.s32 %v2898_v38, %v849_v34  ;;  %v1877_v51 = vld [vmem:[%s5861_s6 + $0x1418] sm:$0xff]  ;;  %v854_v52 = vld [vmem:[%s5853_s23 + $0x1420] sm:$0xff] }
 0x240   : > { %v2901_v50 = vmul.u32 %v5869_v2, %v1876_v47  ;;  %v1878_v53 = vld [vmem:[%s5861_s6 + $0x1420] sm:$0xff]  ;;  %4944 = vst [vmem:[%s5891_s24 + $0x13e8] sm:$0xff] %v3920_v42  ;;  %4945 = vst [vmem:[%s5891_s24 + $0x13f0] sm:$0xff] %v3921_v43  ;;  %v3923_v54 = vadd.s32 %v2899_v44, %v850_v36  ;;  %v2902_v56 = vmul.u32 %v5869_v2, %v1877_v51  ;;  %v855_v58 = vld [vmem:[%s5853_s23 + $0x1428] sm:$0xff] }
 0x241   : > { %v3924_v55 = vadd.s32 %v2900_v45, %v851_v40  ;;  %v2903_v57 = vmul.u32 %v5869_v2, %v1878_v53  ;;  %v1879_v59 = vld [vmem:[%s5861_s6 + $0x1428] sm:$0xff]  ;;  %v856_v60 = vld [vmem:[%s5853_s23 + $0x1430] sm:$0xff]  ;;  %4946 = vst [vmem:[%s5891_s24 + $0x13f8] sm:$0xff] %v3922_v49  ;;  %v857_v0 = vld [vmem:[%s5853_s23 + $0x1438] sm:$0xff] }
 0x242   : > { %v3925_v61 = vadd.s32 %v2901_v50, %v852_v46  ;;  %v2904_v62 = vmul.u32 %v5869_v2, %v1879_v59  ;;  %v1880_v63 = vld [vmem:[%s5861_s6 + $0x1430] sm:$0xff]  ;;  %v1881_v1 = vld [vmem:[%s5861_s6 + $0x1438] sm:$0xff]  ;;  %4947 = vst [vmem:[%s5891_s24 + $0x1400] sm:$0xff] %v3923_v54  ;;  %v3926_v3 = vadd.s32 %v2902_v56, %v853_v48  ;;  %v858_v7 = vld [vmem:[%s5853_s23 + $0x1440] sm:$0xff] }
 0x243   : > { %4948 = vst [vmem:[%s5891_s24 + $0x1408] sm:$0xff] %v3924_v55  ;;  %v3927_v4 = vadd.s32 %v2903_v57, %v854_v52  ;;  %v2905_v5 = vmul.u32 %v5869_v2, %v1880_v63  ;;  %v2906_v6 = vmul.u32 %v5869_v2, %v1881_v1  ;;  %v1882_v8 = vld [vmem:[%s5861_s6 + $0x1440] sm:$0xff]  ;;  %v859_v9 = vld [vmem:[%s5853_s23 + $0x1448] sm:$0xff]  ;;  %v860_v13 = vld [vmem:[%s5853_s23 + $0x1450] sm:$0xff] }
 0x244   : > { %4949 = vst [vmem:[%s5891_s24 + $0x1410] sm:$0xff] %v3925_v61  ;;  %v3928_v10 = vadd.s32 %v2904_v62, %v855_v58  ;;  %v2907_v11 = vmul.u32 %v5869_v2, %v1882_v8  ;;  %v1883_v12 = vld [vmem:[%s5861_s6 + $0x1448] sm:$0xff]  ;;  %v1884_v14 = vld [vmem:[%s5861_s6 + $0x1450] sm:$0xff]  ;;  %4950 = vst [vmem:[%s5891_s24 + $0x1418] sm:$0xff] %v3926_v3 }
 0x245   : > { %4951 = vst [vmem:[%s5891_s24 + $0x1420] sm:$0xff] %v3927_v4  ;;  %v3929_v15 = vadd.s32 %v2905_v5, %v856_v60  ;;  %v3930_v16 = vadd.s32 %v2906_v6, %v857_v0  ;;  %v2908_v17 = vmul.u32 %v5869_v2, %v1883_v12  ;;  %v2909_v18 = vmul.u32 %v5869_v2, %v1884_v14  ;;  %v861_v19 = vld [vmem:[%s5853_s23 + $0x1458] sm:$0xff]  ;;  %v862_v21 = vld [vmem:[%s5853_s23 + $0x1460] sm:$0xff]  ;;  %v863_v25 = vld [vmem:[%s5853_s23 + $0x1468] sm:$0xff] }
 0x246   : > { %v1885_v20 = vld [vmem:[%s5861_s6 + $0x1458] sm:$0xff]  ;;  %4952 = vst [vmem:[%s5891_s24 + $0x1428] sm:$0xff] %v3928_v10  ;;  %v3931_v22 = vadd.s32 %v2907_v11, %v858_v7  ;;  %v1886_v24 = vld [vmem:[%s5861_s6 + $0x1460] sm:$0xff]  ;;  %v1887_v26 = vld [vmem:[%s5861_s6 + $0x1468] sm:$0xff] }
 0x247   : > { %v2910_v23 = vmul.u32 %v5869_v2, %v1885_v20  ;;  %4953 = vst [vmem:[%s5891_s24 + $0x1430] sm:$0xff] %v3929_v15  ;;  %4954 = vst [vmem:[%s5891_s24 + $0x1438] sm:$0xff] %v3930_v16  ;;  %v3932_v27 = vadd.s32 %v2908_v17, %v859_v9  ;;  %v3933_v28 = vadd.s32 %v2909_v18, %v860_v13  ;;  %v864_v31 = vld [vmem:[%s5853_s23 + $0x1470] sm:$0xff]  ;;  %v865_v33 = vld [vmem:[%s5853_s23 + $0x1478] sm:$0xff] }
 0x248   : > { %v2911_v29 = vmul.u32 %v5869_v2, %v1886_v24  ;;  %v2912_v30 = vmul.u32 %v5869_v2, %v1887_v26  ;;  %v1888_v32 = vld [vmem:[%s5861_s6 + $0x1470] sm:$0xff]  ;;  %4955 = vst [vmem:[%s5891_s24 + $0x1440] sm:$0xff] %v3931_v22  ;;  %v1889_v36 = vld [vmem:[%s5861_s6 + $0x1478] sm:$0xff]  ;;  %v866_v37 = vld [vmem:[%s5853_s23 + $0x1480] sm:$0xff] }
 0x249   : > { %v3934_v34 = vadd.s32 %v2910_v23, %v861_v19  ;;  %v2913_v35 = vmul.u32 %v5869_v2, %v1888_v32  ;;  %v1890_v38 = vld [vmem:[%s5861_s6 + $0x1480] sm:$0xff]  ;;  %4956 = vst [vmem:[%s5891_s24 + $0x1448] sm:$0xff] %v3932_v27  ;;  %4957 = vst [vmem:[%s5891_s24 + $0x1450] sm:$0xff] %v3933_v28  ;;  %v2914_v41 = vmul.u32 %v5869_v2, %v1889_v36  ;;  %v867_v43 = vld [vmem:[%s5853_s23 + $0x1488] sm:$0xff] }
 0x24a   : > { %v3935_v39 = vadd.s32 %v2911_v29, %v862_v21  ;;  %v3936_v40 = vadd.s32 %v2912_v30, %v863_v25  ;;  %v2915_v42 = vmul.u32 %v5869_v2, %v1890_v38  ;;  %v1891_v44 = vld [vmem:[%s5861_s6 + $0x1488] sm:$0xff]  ;;  %v868_v45 = vld [vmem:[%s5853_s23 + $0x1490] sm:$0xff]  ;;  %v869_v49 = vld [vmem:[%s5853_s23 + $0x1498] sm:$0xff] }
 0x24b   : > { %4958 = vst [vmem:[%s5891_s24 + $0x1458] sm:$0xff] %v3934_v34  ;;  %v3937_v46 = vadd.s32 %v2913_v35, %v864_v31  ;;  %v2916_v47 = vmul.u32 %v5869_v2, %v1891_v44  ;;  %v1892_v48 = vld [vmem:[%s5861_s6 + $0x1490] sm:$0xff]  ;;  %v1893_v50 = vld [vmem:[%s5861_s6 + $0x1498] sm:$0xff]  ;;  %v3938_v51 = vadd.s32 %v2914_v41, %v865_v33  ;;  %v870_v55 = vld [vmem:[%s5853_s23 + $0x14a0] sm:$0xff] }
 0x24c   : > { %4959 = vst [vmem:[%s5891_s24 + $0x1460] sm:$0xff] %v3935_v39  ;;  %4960 = vst [vmem:[%s5891_s24 + $0x1468] sm:$0xff] %v3936_v40  ;;  %v3939_v52 = vadd.s32 %v2915_v42, %v866_v37  ;;  %v2917_v53 = vmul.u32 %v5869_v2, %v1892_v48  ;;  %v2918_v54 = vmul.u32 %v5869_v2, %v1893_v50  ;;  %v1894_v56 = vld [vmem:[%s5861_s6 + $0x14a0] sm:$0xff]  ;;  %v871_v57 = vld [vmem:[%s5853_s23 + $0x14a8] sm:$0xff] }
 0x24d   : > { %4961 = vst [vmem:[%s5891_s24 + $0x1470] sm:$0xff] %v3937_v46  ;;  %v3940_v58 = vadd.s32 %v2916_v47, %v867_v43  ;;  %v2919_v59 = vmul.u32 %v5869_v2, %v1894_v56  ;;  %v1895_v60 = vld [vmem:[%s5861_s6 + $0x14a8] sm:$0xff]  ;;  %v872_v61 = vld [vmem:[%s5853_s23 + $0x14b0] sm:$0xff]  ;;  %4962 = vst [vmem:[%s5891_s24 + $0x1478] sm:$0xff] %v3938_v51 }
 0x24e   : > { %v1896_v62 = vld [vmem:[%s5861_s6 + $0x14b0] sm:$0xff]  ;;  %4963 = vst [vmem:[%s5891_s24 + $0x1480] sm:$0xff] %v3939_v52  ;;  %v3941_v63 = vadd.s32 %v2917_v53, %v868_v45  ;;  %v3942_v0 = vadd.s32 %v2918_v54, %v869_v49  ;;  %v2920_v1 = vmul.u32 %v5869_v2, %v1895_v60  ;;  %v873_v4 = vld [vmem:[%s5853_s23 + $0x14b8] sm:$0xff]  ;;  %v874_v6 = vld [vmem:[%s5853_s23 + $0x14c0] sm:$0xff] }
 0x24f   : > { %v2921_v3 = vmul.u32 %v5869_v2, %v1896_v62  ;;  %v1897_v5 = vld [vmem:[%s5861_s6 + $0x14b8] sm:$0xff]  ;;  %4964 = vst [vmem:[%s5891_s24 + $0x1488] sm:$0xff] %v3940_v58  ;;  %v3943_v7 = vadd.s32 %v2919_v59, %v870_v55  ;;  %v1898_v9 = vld [vmem:[%s5861_s6 + $0x14c0] sm:$0xff]  ;;  %v875_v10 = vld [vmem:[%s5853_s23 + $0x14c8] sm:$0xff] }
 0x250   : > { %v2922_v8 = vmul.u32 %v5869_v2, %v1897_v5  ;;  %v1899_v11 = vld [vmem:[%s5861_s6 + $0x14c8] sm:$0xff]  ;;  %4965 = vst [vmem:[%s5891_s24 + $0x1490] sm:$0xff] %v3941_v63  ;;  %4966 = vst [vmem:[%s5891_s24 + $0x1498] sm:$0xff] %v3942_v0  ;;  %v3944_v12 = vadd.s32 %v2920_v1, %v871_v57  ;;  %v2923_v14 = vmul.u32 %v5869_v2, %v1898_v9  ;;  %v876_v16 = vld [vmem:[%s5853_s23 + $0x14d0] sm:$0xff] }
 0x251   : > { %v3945_v13 = vadd.s32 %v2921_v3, %v872_v61  ;;  %v2924_v15 = vmul.u32 %v5869_v2, %v1899_v11  ;;  %v1900_v17 = vld [vmem:[%s5861_s6 + $0x14d0] sm:$0xff]  ;;  %v877_v18 = vld [vmem:[%s5853_s23 + $0x14d8] sm:$0xff]  ;;  %4967 = vst [vmem:[%s5891_s24 + $0x14a0] sm:$0xff] %v3943_v7  ;;  %v878_v22 = vld [vmem:[%s5853_s23 + $0x14e0] sm:$0xff] }
 0x252   : > { %v3946_v19 = vadd.s32 %v2922_v8, %v873_v4  ;;  %v2925_v20 = vmul.u32 %v5869_v2, %v1900_v17  ;;  %v1901_v21 = vld [vmem:[%s5861_s6 + $0x14d8] sm:$0xff]  ;;  %v1902_v23 = vld [vmem:[%s5861_s6 + $0x14e0] sm:$0xff]  ;;  %4968 = vst [vmem:[%s5891_s24 + $0x14a8] sm:$0xff] %v3944_v12  ;;  %v3947_v24 = vadd.s32 %v2923_v14, %v874_v6  ;;  %v879_v28 = vld [vmem:[%s5853_s23 + $0x14e8] sm:$0xff] }
 0x253   : > { %4969 = vst [vmem:[%s5891_s24 + $0x14b0] sm:$0xff] %v3945_v13  ;;  %v3948_v25 = vadd.s32 %v2924_v15, %v875_v10  ;;  %v2926_v26 = vmul.u32 %v5869_v2, %v1901_v21  ;;  %v2927_v27 = vmul.u32 %v5869_v2, %v1902_v23  ;;  %v1903_v29 = vld [vmem:[%s5861_s6 + $0x14e8] sm:$0xff]  ;;  %v880_v30 = vld [vmem:[%s5853_s23 + $0x14f0] sm:$0xff]  ;;  %v881_v34 = vld [vmem:[%s5853_s23 + $0x14f8] sm:$0xff] }
 0x254   : > { %4970 = vst [vmem:[%s5891_s24 + $0x14b8] sm:$0xff] %v3946_v19  ;;  %v3949_v31 = vadd.s32 %v2925_v20, %v876_v16  ;;  %v2928_v32 = vmul.u32 %v5869_v2, %v1903_v29  ;;  %v1904_v33 = vld [vmem:[%s5861_s6 + $0x14f0] sm:$0xff]  ;;  %v1905_v35 = vld [vmem:[%s5861_s6 + $0x14f8] sm:$0xff]  ;;  %4971 = vst [vmem:[%s5891_s24 + $0x14c0] sm:$0xff] %v3947_v24 }
 0x255   : > { %4972 = vst [vmem:[%s5891_s24 + $0x14c8] sm:$0xff] %v3948_v25  ;;  %v3950_v36 = vadd.s32 %v2926_v26, %v877_v18  ;;  %v3951_v37 = vadd.s32 %v2927_v27, %v878_v22  ;;  %v2929_v38 = vmul.u32 %v5869_v2, %v1904_v33  ;;  %v2930_v39 = vmul.u32 %v5869_v2, %v1905_v35  ;;  %v882_v40 = vld [vmem:[%s5853_s23 + $0x1500] sm:$0xff]  ;;  %v883_v42 = vld [vmem:[%s5853_s23 + $0x1508] sm:$0xff]  ;;  %v884_v46 = vld [vmem:[%s5853_s23 + $0x1510] sm:$0xff] }
 0x256   : > { %v1906_v41 = vld [vmem:[%s5861_s6 + $0x1500] sm:$0xff]  ;;  %4973 = vst [vmem:[%s5891_s24 + $0x14d0] sm:$0xff] %v3949_v31  ;;  %v3952_v43 = vadd.s32 %v2928_v32, %v879_v28  ;;  %v1907_v45 = vld [vmem:[%s5861_s6 + $0x1508] sm:$0xff]  ;;  %v1908_v47 = vld [vmem:[%s5861_s6 + $0x1510] sm:$0xff] }
 0x257   : > { %v2931_v44 = vmul.u32 %v5869_v2, %v1906_v41  ;;  %4974 = vst [vmem:[%s5891_s24 + $0x14d8] sm:$0xff] %v3950_v36  ;;  %4975 = vst [vmem:[%s5891_s24 + $0x14e0] sm:$0xff] %v3951_v37  ;;  %v3953_v48 = vadd.s32 %v2929_v38, %v880_v30  ;;  %v3954_v49 = vadd.s32 %v2930_v39, %v881_v34  ;;  %v885_v52 = vld [vmem:[%s5853_s23 + $0x1518] sm:$0xff]  ;;  %v886_v54 = vld [vmem:[%s5853_s23 + $0x1520] sm:$0xff] }
 0x258   : > { %v2932_v50 = vmul.u32 %v5869_v2, %v1907_v45  ;;  %v2933_v51 = vmul.u32 %v5869_v2, %v1908_v47  ;;  %v1909_v53 = vld [vmem:[%s5861_s6 + $0x1518] sm:$0xff]  ;;  %4976 = vst [vmem:[%s5891_s24 + $0x14e8] sm:$0xff] %v3952_v43  ;;  %v1910_v57 = vld [vmem:[%s5861_s6 + $0x1520] sm:$0xff]  ;;  %v887_v58 = vld [vmem:[%s5853_s23 + $0x1528] sm:$0xff] }
 0x259   : > { %v3955_v55 = vadd.s32 %v2931_v44, %v882_v40  ;;  %v2934_v56 = vmul.u32 %v5869_v2, %v1909_v53  ;;  %v1911_v59 = vld [vmem:[%s5861_s6 + $0x1528] sm:$0xff]  ;;  %4977 = vst [vmem:[%s5891_s24 + $0x14f0] sm:$0xff] %v3953_v48  ;;  %4978 = vst [vmem:[%s5891_s24 + $0x14f8] sm:$0xff] %v3954_v49  ;;  %v2935_v62 = vmul.u32 %v5869_v2, %v1910_v57  ;;  %v888_v0 = vld [vmem:[%s5853_s23 + $0x1530] sm:$0xff] }
 0x25a   : > { %v3956_v60 = vadd.s32 %v2932_v50, %v883_v42  ;;  %v3957_v61 = vadd.s32 %v2933_v51, %v884_v46  ;;  %v2936_v63 = vmul.u32 %v5869_v2, %v1911_v59  ;;  %v1912_v1 = vld [vmem:[%s5861_s6 + $0x1530] sm:$0xff]  ;;  %v889_v3 = vld [vmem:[%s5853_s23 + $0x1538] sm:$0xff]  ;;  %v890_v7 = vld [vmem:[%s5853_s23 + $0x1540] sm:$0xff] }
 0x25b   : > { %4979 = vst [vmem:[%s5891_s24 + $0x1500] sm:$0xff] %v3955_v55  ;;  %v3958_v4 = vadd.s32 %v2934_v56, %v885_v52  ;;  %v2937_v5 = vmul.u32 %v5869_v2, %v1912_v1  ;;  %v1913_v6 = vld [vmem:[%s5861_s6 + $0x1538] sm:$0xff]  ;;  %v1914_v8 = vld [vmem:[%s5861_s6 + $0x1540] sm:$0xff]  ;;  %v3959_v9 = vadd.s32 %v2935_v62, %v886_v54  ;;  %v891_v13 = vld [vmem:[%s5853_s23 + $0x1548] sm:$0xff] }
 0x25c   : > { %4980 = vst [vmem:[%s5891_s24 + $0x1508] sm:$0xff] %v3956_v60  ;;  %4981 = vst [vmem:[%s5891_s24 + $0x1510] sm:$0xff] %v3957_v61  ;;  %v3960_v10 = vadd.s32 %v2936_v63, %v887_v58  ;;  %v2938_v11 = vmul.u32 %v5869_v2, %v1913_v6  ;;  %v2939_v12 = vmul.u32 %v5869_v2, %v1914_v8  ;;  %v1915_v14 = vld [vmem:[%s5861_s6 + $0x1548] sm:$0xff]  ;;  %v892_v15 = vld [vmem:[%s5853_s23 + $0x1550] sm:$0xff] }
 0x25d   : > { %4982 = vst [vmem:[%s5891_s24 + $0x1518] sm:$0xff] %v3958_v4  ;;  %v3961_v16 = vadd.s32 %v2937_v5, %v888_v0  ;;  %v2940_v17 = vmul.u32 %v5869_v2, %v1915_v14  ;;  %v1916_v18 = vld [vmem:[%s5861_s6 + $0x1550] sm:$0xff]  ;;  %v893_v19 = vld [vmem:[%s5853_s23 + $0x1558] sm:$0xff]  ;;  %4983 = vst [vmem:[%s5891_s24 + $0x1520] sm:$0xff] %v3959_v9 }
 0x25e   : > { %v1917_v20 = vld [vmem:[%s5861_s6 + $0x1558] sm:$0xff]  ;;  %4984 = vst [vmem:[%s5891_s24 + $0x1528] sm:$0xff] %v3960_v10  ;;  %v3962_v21 = vadd.s32 %v2938_v11, %v889_v3  ;;  %v3963_v22 = vadd.s32 %v2939_v12, %v890_v7  ;;  %v2941_v23 = vmul.u32 %v5869_v2, %v1916_v18  ;;  %v894_v25 = vld [vmem:[%s5853_s23 + $0x1560] sm:$0xff]  ;;  %v895_v27 = vld [vmem:[%s5853_s23 + $0x1568] sm:$0xff] }
 0x25f   : > { %v2942_v24 = vmul.u32 %v5869_v2, %v1917_v20  ;;  %v1918_v26 = vld [vmem:[%s5861_s6 + $0x1560] sm:$0xff]  ;;  %4985 = vst [vmem:[%s5891_s24 + $0x1530] sm:$0xff] %v3961_v16  ;;  %v3964_v28 = vadd.s32 %v2940_v17, %v891_v13  ;;  %v1919_v30 = vld [vmem:[%s5861_s6 + $0x1568] sm:$0xff]  ;;  %v896_v31 = vld [vmem:[%s5853_s23 + $0x1570] sm:$0xff] }
 0x260   : > { %v2943_v29 = vmul.u32 %v5869_v2, %v1918_v26  ;;  %v1920_v32 = vld [vmem:[%s5861_s6 + $0x1570] sm:$0xff]  ;;  %4986 = vst [vmem:[%s5891_s24 + $0x1538] sm:$0xff] %v3962_v21  ;;  %4987 = vst [vmem:[%s5891_s24 + $0x1540] sm:$0xff] %v3963_v22  ;;  %v3965_v33 = vadd.s32 %v2941_v23, %v892_v15  ;;  %v2944_v35 = vmul.u32 %v5869_v2, %v1919_v30  ;;  %v897_v37 = vld [vmem:[%s5853_s23 + $0x1578] sm:$0xff] }
 0x261   : > { %v3966_v34 = vadd.s32 %v2942_v24, %v893_v19  ;;  %v2945_v36 = vmul.u32 %v5869_v2, %v1920_v32  ;;  %v1921_v38 = vld [vmem:[%s5861_s6 + $0x1578] sm:$0xff]  ;;  %v898_v39 = vld [vmem:[%s5853_s23 + $0x1580] sm:$0xff]  ;;  %4988 = vst [vmem:[%s5891_s24 + $0x1548] sm:$0xff] %v3964_v28  ;;  %v899_v43 = vld [vmem:[%s5853_s23 + $0x1588] sm:$0xff] }
 0x262   : > { %v3967_v40 = vadd.s32 %v2943_v29, %v894_v25  ;;  %v2946_v41 = vmul.u32 %v5869_v2, %v1921_v38  ;;  %v1922_v42 = vld [vmem:[%s5861_s6 + $0x1580] sm:$0xff]  ;;  %v1923_v44 = vld [vmem:[%s5861_s6 + $0x1588] sm:$0xff]  ;;  %4989 = vst [vmem:[%s5891_s24 + $0x1550] sm:$0xff] %v3965_v33  ;;  %v3968_v45 = vadd.s32 %v2944_v35, %v895_v27  ;;  %v900_v49 = vld [vmem:[%s5853_s23 + $0x1590] sm:$0xff] }
 0x263   : > { %4990 = vst [vmem:[%s5891_s24 + $0x1558] sm:$0xff] %v3966_v34  ;;  %v3969_v46 = vadd.s32 %v2945_v36, %v896_v31  ;;  %v2947_v47 = vmul.u32 %v5869_v2, %v1922_v42  ;;  %v2948_v48 = vmul.u32 %v5869_v2, %v1923_v44  ;;  %v1924_v50 = vld [vmem:[%s5861_s6 + $0x1590] sm:$0xff]  ;;  %v901_v51 = vld [vmem:[%s5853_s23 + $0x1598] sm:$0xff]  ;;  %v902_v55 = vld [vmem:[%s5853_s23 + $0x15a0] sm:$0xff] }
 0x264   : > { %4991 = vst [vmem:[%s5891_s24 + $0x1560] sm:$0xff] %v3967_v40  ;;  %v3970_v52 = vadd.s32 %v2946_v41, %v897_v37  ;;  %v2949_v53 = vmul.u32 %v5869_v2, %v1924_v50  ;;  %v1925_v54 = vld [vmem:[%s5861_s6 + $0x1598] sm:$0xff]  ;;  %v1926_v56 = vld [vmem:[%s5861_s6 + $0x15a0] sm:$0xff]  ;;  %4992 = vst [vmem:[%s5891_s24 + $0x1568] sm:$0xff] %v3968_v45 }
 0x265   : > { %4993 = vst [vmem:[%s5891_s24 + $0x1570] sm:$0xff] %v3969_v46  ;;  %v3971_v57 = vadd.s32 %v2947_v47, %v898_v39  ;;  %v3972_v58 = vadd.s32 %v2948_v48, %v899_v43  ;;  %v2950_v59 = vmul.u32 %v5869_v2, %v1925_v54  ;;  %v2951_v60 = vmul.u32 %v5869_v2, %v1926_v56  ;;  %v903_v61 = vld [vmem:[%s5853_s23 + $0x15a8] sm:$0xff]  ;;  %v904_v63 = vld [vmem:[%s5853_s23 + $0x15b0] sm:$0xff]  ;;  %v905_v4 = vld [vmem:[%s5853_s23 + $0x15b8] sm:$0xff] }
 0x266   : > { %v1927_v62 = vld [vmem:[%s5861_s6 + $0x15a8] sm:$0xff]  ;;  %4994 = vst [vmem:[%s5891_s24 + $0x1578] sm:$0xff] %v3970_v52  ;;  %v3973_v0 = vadd.s32 %v2949_v53, %v900_v49  ;;  %v1928_v3 = vld [vmem:[%s5861_s6 + $0x15b0] sm:$0xff]  ;;  %v1929_v5 = vld [vmem:[%s5861_s6 + $0x15b8] sm:$0xff] }
 0x267   : > { %v2952_v1 = vmul.u32 %v5869_v2, %v1927_v62  ;;  %4995 = vst [vmem:[%s5891_s24 + $0x1580] sm:$0xff] %v3971_v57  ;;  %4996 = vst [vmem:[%s5891_s24 + $0x1588] sm:$0xff] %v3972_v58  ;;  %v3974_v6 = vadd.s32 %v2950_v59, %v901_v51  ;;  %v3975_v7 = vadd.s32 %v2951_v60, %v902_v55  ;;  %v906_v10 = vld [vmem:[%s5853_s23 + $0x15c0] sm:$0xff]  ;;  %v907_v12 = vld [vmem:[%s5853_s23 + $0x15c8] sm:$0xff] }
 0x268   : > { %v2953_v8 = vmul.u32 %v5869_v2, %v1928_v3  ;;  %v2954_v9 = vmul.u32 %v5869_v2, %v1929_v5  ;;  %v1930_v11 = vld [vmem:[%s5861_s6 + $0x15c0] sm:$0xff]  ;;  %4997 = vst [vmem:[%s5891_s24 + $0x1590] sm:$0xff] %v3973_v0  ;;  %v1931_v15 = vld [vmem:[%s5861_s6 + $0x15c8] sm:$0xff]  ;;  %v908_v16 = vld [vmem:[%s5853_s23 + $0x15d0] sm:$0xff] }
 0x269   : > { %v3976_v13 = vadd.s32 %v2952_v1, %v903_v61  ;;  %v2955_v14 = vmul.u32 %v5869_v2, %v1930_v11  ;;  %v1932_v17 = vld [vmem:[%s5861_s6 + $0x15d0] sm:$0xff]  ;;  %4998 = vst [vmem:[%s5891_s24 + $0x1598] sm:$0xff] %v3974_v6  ;;  %4999 = vst [vmem:[%s5891_s24 + $0x15a0] sm:$0xff] %v3975_v7  ;;  %v2956_v20 = vmul.u32 %v5869_v2, %v1931_v15  ;;  %v909_v22 = vld [vmem:[%s5853_s23 + $0x15d8] sm:$0xff] }
 0x26a   : > { %v3977_v18 = vadd.s32 %v2953_v8, %v904_v63  ;;  %v3978_v19 = vadd.s32 %v2954_v9, %v905_v4  ;;  %v2957_v21 = vmul.u32 %v5869_v2, %v1932_v17  ;;  %v1933_v23 = vld [vmem:[%s5861_s6 + $0x15d8] sm:$0xff]  ;;  %v910_v24 = vld [vmem:[%s5853_s23 + $0x15e0] sm:$0xff]  ;;  %v911_v28 = vld [vmem:[%s5853_s23 + $0x15e8] sm:$0xff] }
 0x26b   : > { %5000 = vst [vmem:[%s5891_s24 + $0x15a8] sm:$0xff] %v3976_v13  ;;  %v3979_v25 = vadd.s32 %v2955_v14, %v906_v10  ;;  %v2958_v26 = vmul.u32 %v5869_v2, %v1933_v23  ;;  %v1934_v27 = vld [vmem:[%s5861_s6 + $0x15e0] sm:$0xff]  ;;  %v1935_v29 = vld [vmem:[%s5861_s6 + $0x15e8] sm:$0xff]  ;;  %v3980_v30 = vadd.s32 %v2956_v20, %v907_v12  ;;  %v912_v34 = vld [vmem:[%s5853_s23 + $0x15f0] sm:$0xff] }
 0x26c   : > { %5001 = vst [vmem:[%s5891_s24 + $0x15b0] sm:$0xff] %v3977_v18  ;;  %5002 = vst [vmem:[%s5891_s24 + $0x15b8] sm:$0xff] %v3978_v19  ;;  %v3981_v31 = vadd.s32 %v2957_v21, %v908_v16  ;;  %v2959_v32 = vmul.u32 %v5869_v2, %v1934_v27  ;;  %v2960_v33 = vmul.u32 %v5869_v2, %v1935_v29  ;;  %v1936_v35 = vld [vmem:[%s5861_s6 + $0x15f0] sm:$0xff]  ;;  %v913_v36 = vld [vmem:[%s5853_s23 + $0x15f8] sm:$0xff] }
 0x26d   : > { %5003 = vst [vmem:[%s5891_s24 + $0x15c0] sm:$0xff] %v3979_v25  ;;  %v3982_v37 = vadd.s32 %v2958_v26, %v909_v22  ;;  %v2961_v38 = vmul.u32 %v5869_v2, %v1936_v35  ;;  %v1937_v39 = vld [vmem:[%s5861_s6 + $0x15f8] sm:$0xff]  ;;  %v914_v40 = vld [vmem:[%s5853_s23 + $0x1600] sm:$0xff]  ;;  %5004 = vst [vmem:[%s5891_s24 + $0x15c8] sm:$0xff] %v3980_v30 }
 0x26e   : > { %v1938_v41 = vld [vmem:[%s5861_s6 + $0x1600] sm:$0xff]  ;;  %5005 = vst [vmem:[%s5891_s24 + $0x15d0] sm:$0xff] %v3981_v31  ;;  %v3983_v42 = vadd.s32 %v2959_v32, %v910_v24  ;;  %v3984_v43 = vadd.s32 %v2960_v33, %v911_v28  ;;  %v2962_v44 = vmul.u32 %v5869_v2, %v1937_v39  ;;  %v915_v46 = vld [vmem:[%s5853_s23 + $0x1608] sm:$0xff]  ;;  %v916_v48 = vld [vmem:[%s5853_s23 + $0x1610] sm:$0xff] }
 0x26f   : > { %v2963_v45 = vmul.u32 %v5869_v2, %v1938_v41  ;;  %v1939_v47 = vld [vmem:[%s5861_s6 + $0x1608] sm:$0xff]  ;;  %5006 = vst [vmem:[%s5891_s24 + $0x15d8] sm:$0xff] %v3982_v37  ;;  %v3985_v49 = vadd.s32 %v2961_v38, %v912_v34  ;;  %v1940_v51 = vld [vmem:[%s5861_s6 + $0x1610] sm:$0xff]  ;;  %v917_v52 = vld [vmem:[%s5853_s23 + $0x1618] sm:$0xff] }
 0x270   : > { %v2964_v50 = vmul.u32 %v5869_v2, %v1939_v47  ;;  %v1941_v53 = vld [vmem:[%s5861_s6 + $0x1618] sm:$0xff]  ;;  %5007 = vst [vmem:[%s5891_s24 + $0x15e0] sm:$0xff] %v3983_v42  ;;  %5008 = vst [vmem:[%s5891_s24 + $0x15e8] sm:$0xff] %v3984_v43  ;;  %v3986_v54 = vadd.s32 %v2962_v44, %v913_v36  ;;  %v2965_v56 = vmul.u32 %v5869_v2, %v1940_v51  ;;  %v918_v58 = vld [vmem:[%s5853_s23 + $0x1620] sm:$0xff] }
 0x271   : > { %v3987_v55 = vadd.s32 %v2963_v45, %v914_v40  ;;  %v2966_v57 = vmul.u32 %v5869_v2, %v1941_v53  ;;  %v1942_v59 = vld [vmem:[%s5861_s6 + $0x1620] sm:$0xff]  ;;  %v919_v60 = vld [vmem:[%s5853_s23 + $0x1628] sm:$0xff]  ;;  %5009 = vst [vmem:[%s5891_s24 + $0x15f0] sm:$0xff] %v3985_v49  ;;  %v920_v0 = vld [vmem:[%s5853_s23 + $0x1630] sm:$0xff] }
 0x272   : > { %v3988_v61 = vadd.s32 %v2964_v50, %v915_v46  ;;  %v2967_v62 = vmul.u32 %v5869_v2, %v1942_v59  ;;  %v1943_v63 = vld [vmem:[%s5861_s6 + $0x1628] sm:$0xff]  ;;  %v1944_v1 = vld [vmem:[%s5861_s6 + $0x1630] sm:$0xff]  ;;  %5010 = vst [vmem:[%s5891_s24 + $0x15f8] sm:$0xff] %v3986_v54  ;;  %v3989_v3 = vadd.s32 %v2965_v56, %v916_v48  ;;  %v921_v7 = vld [vmem:[%s5853_s23 + $0x1638] sm:$0xff] }
 0x273   : > { %5011 = vst [vmem:[%s5891_s24 + $0x1600] sm:$0xff] %v3987_v55  ;;  %v3990_v4 = vadd.s32 %v2966_v57, %v917_v52  ;;  %v2968_v5 = vmul.u32 %v5869_v2, %v1943_v63  ;;  %v2969_v6 = vmul.u32 %v5869_v2, %v1944_v1  ;;  %v1945_v8 = vld [vmem:[%s5861_s6 + $0x1638] sm:$0xff]  ;;  %v922_v9 = vld [vmem:[%s5853_s23 + $0x1640] sm:$0xff]  ;;  %v923_v13 = vld [vmem:[%s5853_s23 + $0x1648] sm:$0xff] }
 0x274   : > { %5012 = vst [vmem:[%s5891_s24 + $0x1608] sm:$0xff] %v3988_v61  ;;  %v3991_v10 = vadd.s32 %v2967_v62, %v918_v58  ;;  %v2970_v11 = vmul.u32 %v5869_v2, %v1945_v8  ;;  %v1946_v12 = vld [vmem:[%s5861_s6 + $0x1640] sm:$0xff]  ;;  %v1947_v14 = vld [vmem:[%s5861_s6 + $0x1648] sm:$0xff]  ;;  %5013 = vst [vmem:[%s5891_s24 + $0x1610] sm:$0xff] %v3989_v3 }
 0x275   : > { %5014 = vst [vmem:[%s5891_s24 + $0x1618] sm:$0xff] %v3990_v4  ;;  %v3992_v15 = vadd.s32 %v2968_v5, %v919_v60  ;;  %v3993_v16 = vadd.s32 %v2969_v6, %v920_v0  ;;  %v2971_v17 = vmul.u32 %v5869_v2, %v1946_v12  ;;  %v2972_v18 = vmul.u32 %v5869_v2, %v1947_v14  ;;  %v924_v19 = vld [vmem:[%s5853_s23 + $0x1650] sm:$0xff]  ;;  %v925_v21 = vld [vmem:[%s5853_s23 + $0x1658] sm:$0xff]  ;;  %v926_v25 = vld [vmem:[%s5853_s23 + $0x1660] sm:$0xff] }
 0x276   : > { %v1948_v20 = vld [vmem:[%s5861_s6 + $0x1650] sm:$0xff]  ;;  %5015 = vst [vmem:[%s5891_s24 + $0x1620] sm:$0xff] %v3991_v10  ;;  %v3994_v22 = vadd.s32 %v2970_v11, %v921_v7  ;;  %v1949_v24 = vld [vmem:[%s5861_s6 + $0x1658] sm:$0xff]  ;;  %v1950_v26 = vld [vmem:[%s5861_s6 + $0x1660] sm:$0xff] }
 0x277   : > { %v2973_v23 = vmul.u32 %v5869_v2, %v1948_v20  ;;  %5016 = vst [vmem:[%s5891_s24 + $0x1628] sm:$0xff] %v3992_v15  ;;  %5017 = vst [vmem:[%s5891_s24 + $0x1630] sm:$0xff] %v3993_v16  ;;  %v3995_v27 = vadd.s32 %v2971_v17, %v922_v9  ;;  %v3996_v28 = vadd.s32 %v2972_v18, %v923_v13  ;;  %v927_v31 = vld [vmem:[%s5853_s23 + $0x1668] sm:$0xff]  ;;  %v928_v33 = vld [vmem:[%s5853_s23 + $0x1670] sm:$0xff] }
 0x278   : > { %v2974_v29 = vmul.u32 %v5869_v2, %v1949_v24  ;;  %v2975_v30 = vmul.u32 %v5869_v2, %v1950_v26  ;;  %v1951_v32 = vld [vmem:[%s5861_s6 + $0x1668] sm:$0xff]  ;;  %5018 = vst [vmem:[%s5891_s24 + $0x1638] sm:$0xff] %v3994_v22  ;;  %v1952_v36 = vld [vmem:[%s5861_s6 + $0x1670] sm:$0xff]  ;;  %v929_v37 = vld [vmem:[%s5853_s23 + $0x1678] sm:$0xff] }
 0x279   : > { %v3997_v34 = vadd.s32 %v2973_v23, %v924_v19  ;;  %v2976_v35 = vmul.u32 %v5869_v2, %v1951_v32  ;;  %v1953_v38 = vld [vmem:[%s5861_s6 + $0x1678] sm:$0xff]  ;;  %5019 = vst [vmem:[%s5891_s24 + $0x1640] sm:$0xff] %v3995_v27  ;;  %5020 = vst [vmem:[%s5891_s24 + $0x1648] sm:$0xff] %v3996_v28  ;;  %v2977_v41 = vmul.u32 %v5869_v2, %v1952_v36  ;;  %v930_v43 = vld [vmem:[%s5853_s23 + $0x1680] sm:$0xff] }
 0x27a   : > { %v3998_v39 = vadd.s32 %v2974_v29, %v925_v21  ;;  %v3999_v40 = vadd.s32 %v2975_v30, %v926_v25  ;;  %v2978_v42 = vmul.u32 %v5869_v2, %v1953_v38  ;;  %v1954_v44 = vld [vmem:[%s5861_s6 + $0x1680] sm:$0xff]  ;;  %v931_v45 = vld [vmem:[%s5853_s23 + $0x1688] sm:$0xff]  ;;  %v932_v49 = vld [vmem:[%s5853_s23 + $0x1690] sm:$0xff] }
 0x27b   : > { %5021 = vst [vmem:[%s5891_s24 + $0x1650] sm:$0xff] %v3997_v34  ;;  %v4000_v46 = vadd.s32 %v2976_v35, %v927_v31  ;;  %v2979_v47 = vmul.u32 %v5869_v2, %v1954_v44  ;;  %v1955_v48 = vld [vmem:[%s5861_s6 + $0x1688] sm:$0xff]  ;;  %v1956_v50 = vld [vmem:[%s5861_s6 + $0x1690] sm:$0xff]  ;;  %v4001_v51 = vadd.s32 %v2977_v41, %v928_v33  ;;  %v933_v55 = vld [vmem:[%s5853_s23 + $0x1698] sm:$0xff] }
 0x27c   : > { %5022 = vst [vmem:[%s5891_s24 + $0x1658] sm:$0xff] %v3998_v39  ;;  %5023 = vst [vmem:[%s5891_s24 + $0x1660] sm:$0xff] %v3999_v40  ;;  %v4002_v52 = vadd.s32 %v2978_v42, %v929_v37  ;;  %v2980_v53 = vmul.u32 %v5869_v2, %v1955_v48  ;;  %v2981_v54 = vmul.u32 %v5869_v2, %v1956_v50  ;;  %v1957_v56 = vld [vmem:[%s5861_s6 + $0x1698] sm:$0xff]  ;;  %v934_v57 = vld [vmem:[%s5853_s23 + $0x16a0] sm:$0xff] }
 0x27d   : > { %5024 = vst [vmem:[%s5891_s24 + $0x1668] sm:$0xff] %v4000_v46  ;;  %v4003_v58 = vadd.s32 %v2979_v47, %v930_v43  ;;  %v2982_v59 = vmul.u32 %v5869_v2, %v1957_v56  ;;  %v1958_v60 = vld [vmem:[%s5861_s6 + $0x16a0] sm:$0xff]  ;;  %v935_v61 = vld [vmem:[%s5853_s23 + $0x16a8] sm:$0xff]  ;;  %5025 = vst [vmem:[%s5891_s24 + $0x1670] sm:$0xff] %v4001_v51 }
 0x27e   : > { %v1959_v62 = vld [vmem:[%s5861_s6 + $0x16a8] sm:$0xff]  ;;  %5026 = vst [vmem:[%s5891_s24 + $0x1678] sm:$0xff] %v4002_v52  ;;  %v4004_v63 = vadd.s32 %v2980_v53, %v931_v45  ;;  %v4005_v0 = vadd.s32 %v2981_v54, %v932_v49  ;;  %v2983_v1 = vmul.u32 %v5869_v2, %v1958_v60  ;;  %v936_v4 = vld [vmem:[%s5853_s23 + $0x16b0] sm:$0xff]  ;;  %v937_v6 = vld [vmem:[%s5853_s23 + $0x16b8] sm:$0xff] }
 0x27f   : > { %v2984_v3 = vmul.u32 %v5869_v2, %v1959_v62  ;;  %v1960_v5 = vld [vmem:[%s5861_s6 + $0x16b0] sm:$0xff]  ;;  %5027 = vst [vmem:[%s5891_s24 + $0x1680] sm:$0xff] %v4003_v58  ;;  %v4006_v7 = vadd.s32 %v2982_v59, %v933_v55  ;;  %v1961_v9 = vld [vmem:[%s5861_s6 + $0x16b8] sm:$0xff]  ;;  %v938_v10 = vld [vmem:[%s5853_s23 + $0x16c0] sm:$0xff] }
 0x280   : > { %v2985_v8 = vmul.u32 %v5869_v2, %v1960_v5  ;;  %v1962_v11 = vld [vmem:[%s5861_s6 + $0x16c0] sm:$0xff]  ;;  %5028 = vst [vmem:[%s5891_s24 + $0x1688] sm:$0xff] %v4004_v63  ;;  %5029 = vst [vmem:[%s5891_s24 + $0x1690] sm:$0xff] %v4005_v0  ;;  %v4007_v12 = vadd.s32 %v2983_v1, %v934_v57  ;;  %v2986_v14 = vmul.u32 %v5869_v2, %v1961_v9  ;;  %v939_v16 = vld [vmem:[%s5853_s23 + $0x16c8] sm:$0xff] }
 0x281   : > { %v4008_v13 = vadd.s32 %v2984_v3, %v935_v61  ;;  %v2987_v15 = vmul.u32 %v5869_v2, %v1962_v11  ;;  %v1963_v17 = vld [vmem:[%s5861_s6 + $0x16c8] sm:$0xff]  ;;  %v940_v18 = vld [vmem:[%s5853_s23 + $0x16d0] sm:$0xff]  ;;  %5030 = vst [vmem:[%s5891_s24 + $0x1698] sm:$0xff] %v4006_v7  ;;  %v941_v22 = vld [vmem:[%s5853_s23 + $0x16d8] sm:$0xff] }
 0x282   : > { %v4009_v19 = vadd.s32 %v2985_v8, %v936_v4  ;;  %v2988_v20 = vmul.u32 %v5869_v2, %v1963_v17  ;;  %v1964_v21 = vld [vmem:[%s5861_s6 + $0x16d0] sm:$0xff]  ;;  %v1965_v23 = vld [vmem:[%s5861_s6 + $0x16d8] sm:$0xff]  ;;  %5031 = vst [vmem:[%s5891_s24 + $0x16a0] sm:$0xff] %v4007_v12  ;;  %v4010_v24 = vadd.s32 %v2986_v14, %v937_v6  ;;  %v942_v28 = vld [vmem:[%s5853_s23 + $0x16e0] sm:$0xff] }
 0x283   : > { %5032 = vst [vmem:[%s5891_s24 + $0x16a8] sm:$0xff] %v4008_v13  ;;  %v4011_v25 = vadd.s32 %v2987_v15, %v938_v10  ;;  %v2989_v26 = vmul.u32 %v5869_v2, %v1964_v21  ;;  %v2990_v27 = vmul.u32 %v5869_v2, %v1965_v23  ;;  %v1966_v29 = vld [vmem:[%s5861_s6 + $0x16e0] sm:$0xff]  ;;  %v943_v30 = vld [vmem:[%s5853_s23 + $0x16e8] sm:$0xff]  ;;  %v944_v34 = vld [vmem:[%s5853_s23 + $0x16f0] sm:$0xff] }
 0x284   : > { %5033 = vst [vmem:[%s5891_s24 + $0x16b0] sm:$0xff] %v4009_v19  ;;  %v4012_v31 = vadd.s32 %v2988_v20, %v939_v16  ;;  %v2991_v32 = vmul.u32 %v5869_v2, %v1966_v29  ;;  %v1967_v33 = vld [vmem:[%s5861_s6 + $0x16e8] sm:$0xff]  ;;  %v1968_v35 = vld [vmem:[%s5861_s6 + $0x16f0] sm:$0xff]  ;;  %5034 = vst [vmem:[%s5891_s24 + $0x16b8] sm:$0xff] %v4010_v24 }
 0x285   : > { %5035 = vst [vmem:[%s5891_s24 + $0x16c0] sm:$0xff] %v4011_v25  ;;  %v4013_v36 = vadd.s32 %v2989_v26, %v940_v18  ;;  %v4014_v37 = vadd.s32 %v2990_v27, %v941_v22  ;;  %v2992_v38 = vmul.u32 %v5869_v2, %v1967_v33  ;;  %v2993_v39 = vmul.u32 %v5869_v2, %v1968_v35  ;;  %v945_v40 = vld [vmem:[%s5853_s23 + $0x16f8] sm:$0xff]  ;;  %v946_v42 = vld [vmem:[%s5853_s23 + $0x1700] sm:$0xff]  ;;  %v947_v46 = vld [vmem:[%s5853_s23 + $0x1708] sm:$0xff] }
 0x286   : > { %v1969_v41 = vld [vmem:[%s5861_s6 + $0x16f8] sm:$0xff]  ;;  %5036 = vst [vmem:[%s5891_s24 + $0x16c8] sm:$0xff] %v4012_v31  ;;  %v4015_v43 = vadd.s32 %v2991_v32, %v942_v28  ;;  %v1970_v45 = vld [vmem:[%s5861_s6 + $0x1700] sm:$0xff]  ;;  %v1971_v47 = vld [vmem:[%s5861_s6 + $0x1708] sm:$0xff] }
 0x287   : > { %v2994_v44 = vmul.u32 %v5869_v2, %v1969_v41  ;;  %5037 = vst [vmem:[%s5891_s24 + $0x16d0] sm:$0xff] %v4013_v36  ;;  %5038 = vst [vmem:[%s5891_s24 + $0x16d8] sm:$0xff] %v4014_v37  ;;  %v4016_v48 = vadd.s32 %v2992_v38, %v943_v30  ;;  %v4017_v49 = vadd.s32 %v2993_v39, %v944_v34  ;;  %v948_v52 = vld [vmem:[%s5853_s23 + $0x1710] sm:$0xff]  ;;  %v949_v54 = vld [vmem:[%s5853_s23 + $0x1718] sm:$0xff] }
 0x288   : > { %v2995_v50 = vmul.u32 %v5869_v2, %v1970_v45  ;;  %v2996_v51 = vmul.u32 %v5869_v2, %v1971_v47  ;;  %v1972_v53 = vld [vmem:[%s5861_s6 + $0x1710] sm:$0xff]  ;;  %5039 = vst [vmem:[%s5891_s24 + $0x16e0] sm:$0xff] %v4015_v43  ;;  %v1973_v57 = vld [vmem:[%s5861_s6 + $0x1718] sm:$0xff]  ;;  %v950_v58 = vld [vmem:[%s5853_s23 + $0x1720] sm:$0xff] }
 0x289   : > { %v4018_v55 = vadd.s32 %v2994_v44, %v945_v40  ;;  %v2997_v56 = vmul.u32 %v5869_v2, %v1972_v53  ;;  %v1974_v59 = vld [vmem:[%s5861_s6 + $0x1720] sm:$0xff]  ;;  %5040 = vst [vmem:[%s5891_s24 + $0x16e8] sm:$0xff] %v4016_v48  ;;  %5041 = vst [vmem:[%s5891_s24 + $0x16f0] sm:$0xff] %v4017_v49  ;;  %v2998_v62 = vmul.u32 %v5869_v2, %v1973_v57  ;;  %v951_v0 = vld [vmem:[%s5853_s23 + $0x1728] sm:$0xff] }
 0x28a   : > { %v4019_v60 = vadd.s32 %v2995_v50, %v946_v42  ;;  %v4020_v61 = vadd.s32 %v2996_v51, %v947_v46  ;;  %v2999_v63 = vmul.u32 %v5869_v2, %v1974_v59  ;;  %v1975_v1 = vld [vmem:[%s5861_s6 + $0x1728] sm:$0xff]  ;;  %v952_v3 = vld [vmem:[%s5853_s23 + $0x1730] sm:$0xff]  ;;  %v953_v7 = vld [vmem:[%s5853_s23 + $0x1738] sm:$0xff] }
 0x28b   : > { %5042 = vst [vmem:[%s5891_s24 + $0x16f8] sm:$0xff] %v4018_v55  ;;  %v4021_v4 = vadd.s32 %v2997_v56, %v948_v52  ;;  %v3000_v5 = vmul.u32 %v5869_v2, %v1975_v1  ;;  %v1976_v6 = vld [vmem:[%s5861_s6 + $0x1730] sm:$0xff]  ;;  %v1977_v8 = vld [vmem:[%s5861_s6 + $0x1738] sm:$0xff]  ;;  %v4022_v9 = vadd.s32 %v2998_v62, %v949_v54  ;;  %v954_v13 = vld [vmem:[%s5853_s23 + $0x1740] sm:$0xff] }
 0x28c   : > { %5043 = vst [vmem:[%s5891_s24 + $0x1700] sm:$0xff] %v4019_v60  ;;  %5044 = vst [vmem:[%s5891_s24 + $0x1708] sm:$0xff] %v4020_v61  ;;  %v4023_v10 = vadd.s32 %v2999_v63, %v950_v58  ;;  %v3001_v11 = vmul.u32 %v5869_v2, %v1976_v6  ;;  %v3002_v12 = vmul.u32 %v5869_v2, %v1977_v8  ;;  %v1978_v14 = vld [vmem:[%s5861_s6 + $0x1740] sm:$0xff]  ;;  %v955_v15 = vld [vmem:[%s5853_s23 + $0x1748] sm:$0xff] }
 0x28d   : > { %5045 = vst [vmem:[%s5891_s24 + $0x1710] sm:$0xff] %v4021_v4  ;;  %v4024_v16 = vadd.s32 %v3000_v5, %v951_v0  ;;  %v3003_v17 = vmul.u32 %v5869_v2, %v1978_v14  ;;  %v1979_v18 = vld [vmem:[%s5861_s6 + $0x1748] sm:$0xff]  ;;  %v956_v19 = vld [vmem:[%s5853_s23 + $0x1750] sm:$0xff]  ;;  %5046 = vst [vmem:[%s5891_s24 + $0x1718] sm:$0xff] %v4022_v9 }
 0x28e   : > { %v1980_v20 = vld [vmem:[%s5861_s6 + $0x1750] sm:$0xff]  ;;  %5047 = vst [vmem:[%s5891_s24 + $0x1720] sm:$0xff] %v4023_v10  ;;  %v4025_v21 = vadd.s32 %v3001_v11, %v952_v3  ;;  %v4026_v22 = vadd.s32 %v3002_v12, %v953_v7  ;;  %v3004_v23 = vmul.u32 %v5869_v2, %v1979_v18  ;;  %v957_v25 = vld [vmem:[%s5853_s23 + $0x1758] sm:$0xff]  ;;  %v958_v27 = vld [vmem:[%s5853_s23 + $0x1760] sm:$0xff] }
 0x28f   : > { %v3005_v24 = vmul.u32 %v5869_v2, %v1980_v20  ;;  %v1981_v26 = vld [vmem:[%s5861_s6 + $0x1758] sm:$0xff]  ;;  %5048 = vst [vmem:[%s5891_s24 + $0x1728] sm:$0xff] %v4024_v16  ;;  %v4027_v28 = vadd.s32 %v3003_v17, %v954_v13  ;;  %v1982_v30 = vld [vmem:[%s5861_s6 + $0x1760] sm:$0xff]  ;;  %v959_v31 = vld [vmem:[%s5853_s23 + $0x1768] sm:$0xff] }
 0x290   : > { %v3006_v29 = vmul.u32 %v5869_v2, %v1981_v26  ;;  %v1983_v32 = vld [vmem:[%s5861_s6 + $0x1768] sm:$0xff]  ;;  %5049 = vst [vmem:[%s5891_s24 + $0x1730] sm:$0xff] %v4025_v21  ;;  %5050 = vst [vmem:[%s5891_s24 + $0x1738] sm:$0xff] %v4026_v22  ;;  %v4028_v33 = vadd.s32 %v3004_v23, %v955_v15  ;;  %v3007_v35 = vmul.u32 %v5869_v2, %v1982_v30  ;;  %v960_v37 = vld [vmem:[%s5853_s23 + $0x1770] sm:$0xff] }
 0x291   : > { %v4029_v34 = vadd.s32 %v3005_v24, %v956_v19  ;;  %v3008_v36 = vmul.u32 %v5869_v2, %v1983_v32  ;;  %v1984_v38 = vld [vmem:[%s5861_s6 + $0x1770] sm:$0xff]  ;;  %v961_v39 = vld [vmem:[%s5853_s23 + $0x1778] sm:$0xff]  ;;  %5051 = vst [vmem:[%s5891_s24 + $0x1740] sm:$0xff] %v4027_v28  ;;  %v962_v43 = vld [vmem:[%s5853_s23 + $0x1780] sm:$0xff] }
 0x292   : > { %v4030_v40 = vadd.s32 %v3006_v29, %v957_v25  ;;  %v3009_v41 = vmul.u32 %v5869_v2, %v1984_v38  ;;  %v1985_v42 = vld [vmem:[%s5861_s6 + $0x1778] sm:$0xff]  ;;  %v1986_v44 = vld [vmem:[%s5861_s6 + $0x1780] sm:$0xff]  ;;  %5052 = vst [vmem:[%s5891_s24 + $0x1748] sm:$0xff] %v4028_v33  ;;  %v4031_v45 = vadd.s32 %v3007_v35, %v958_v27  ;;  %v963_v49 = vld [vmem:[%s5853_s23 + $0x1788] sm:$0xff] }
 0x293   : > { %5053 = vst [vmem:[%s5891_s24 + $0x1750] sm:$0xff] %v4029_v34  ;;  %v4032_v46 = vadd.s32 %v3008_v36, %v959_v31  ;;  %v3010_v47 = vmul.u32 %v5869_v2, %v1985_v42  ;;  %v3011_v48 = vmul.u32 %v5869_v2, %v1986_v44  ;;  %v1987_v50 = vld [vmem:[%s5861_s6 + $0x1788] sm:$0xff]  ;;  %v964_v51 = vld [vmem:[%s5853_s23 + $0x1790] sm:$0xff]  ;;  %v965_v55 = vld [vmem:[%s5853_s23 + $0x1798] sm:$0xff] }
 0x294   : > { %5054 = vst [vmem:[%s5891_s24 + $0x1758] sm:$0xff] %v4030_v40  ;;  %v4033_v52 = vadd.s32 %v3009_v41, %v960_v37  ;;  %v3012_v53 = vmul.u32 %v5869_v2, %v1987_v50  ;;  %v1988_v54 = vld [vmem:[%s5861_s6 + $0x1790] sm:$0xff]  ;;  %v1989_v56 = vld [vmem:[%s5861_s6 + $0x1798] sm:$0xff]  ;;  %5055 = vst [vmem:[%s5891_s24 + $0x1760] sm:$0xff] %v4031_v45 }
 0x295   : > { %5056 = vst [vmem:[%s5891_s24 + $0x1768] sm:$0xff] %v4032_v46  ;;  %v4034_v57 = vadd.s32 %v3010_v47, %v961_v39  ;;  %v4035_v58 = vadd.s32 %v3011_v48, %v962_v43  ;;  %v3013_v59 = vmul.u32 %v5869_v2, %v1988_v54  ;;  %v3014_v60 = vmul.u32 %v5869_v2, %v1989_v56  ;;  %v966_v61 = vld [vmem:[%s5853_s23 + $0x17a0] sm:$0xff]  ;;  %v967_v63 = vld [vmem:[%s5853_s23 + $0x17a8] sm:$0xff]  ;;  %v968_v4 = vld [vmem:[%s5853_s23 + $0x17b0] sm:$0xff] }
 0x296   : > { %v1990_v62 = vld [vmem:[%s5861_s6 + $0x17a0] sm:$0xff]  ;;  %5057 = vst [vmem:[%s5891_s24 + $0x1770] sm:$0xff] %v4033_v52  ;;  %v4036_v0 = vadd.s32 %v3012_v53, %v963_v49  ;;  %v1991_v3 = vld [vmem:[%s5861_s6 + $0x17a8] sm:$0xff]  ;;  %v1992_v5 = vld [vmem:[%s5861_s6 + $0x17b0] sm:$0xff] }
 0x297   : > { %v3015_v1 = vmul.u32 %v5869_v2, %v1990_v62  ;;  %5058 = vst [vmem:[%s5891_s24 + $0x1778] sm:$0xff] %v4034_v57  ;;  %5059 = vst [vmem:[%s5891_s24 + $0x1780] sm:$0xff] %v4035_v58  ;;  %v4037_v6 = vadd.s32 %v3013_v59, %v964_v51  ;;  %v4038_v7 = vadd.s32 %v3014_v60, %v965_v55  ;;  %v969_v10 = vld [vmem:[%s5853_s23 + $0x17b8] sm:$0xff]  ;;  %v970_v12 = vld [vmem:[%s5853_s23 + $0x17c0] sm:$0xff] }
 0x298   : > { %v3016_v8 = vmul.u32 %v5869_v2, %v1991_v3  ;;  %v3017_v9 = vmul.u32 %v5869_v2, %v1992_v5  ;;  %v1993_v11 = vld [vmem:[%s5861_s6 + $0x17b8] sm:$0xff]  ;;  %5060 = vst [vmem:[%s5891_s24 + $0x1788] sm:$0xff] %v4036_v0  ;;  %v1994_v15 = vld [vmem:[%s5861_s6 + $0x17c0] sm:$0xff]  ;;  %v971_v16 = vld [vmem:[%s5853_s23 + $0x17c8] sm:$0xff] }
 0x299   : > { %v4039_v13 = vadd.s32 %v3015_v1, %v966_v61  ;;  %v3018_v14 = vmul.u32 %v5869_v2, %v1993_v11  ;;  %v1995_v17 = vld [vmem:[%s5861_s6 + $0x17c8] sm:$0xff]  ;;  %5061 = vst [vmem:[%s5891_s24 + $0x1790] sm:$0xff] %v4037_v6  ;;  %5062 = vst [vmem:[%s5891_s24 + $0x1798] sm:$0xff] %v4038_v7  ;;  %v3019_v20 = vmul.u32 %v5869_v2, %v1994_v15  ;;  %v972_v22 = vld [vmem:[%s5853_s23 + $0x17d0] sm:$0xff] }
 0x29a   : > { %v4040_v18 = vadd.s32 %v3016_v8, %v967_v63  ;;  %v4041_v19 = vadd.s32 %v3017_v9, %v968_v4  ;;  %v3020_v21 = vmul.u32 %v5869_v2, %v1995_v17  ;;  %v1996_v23 = vld [vmem:[%s5861_s6 + $0x17d0] sm:$0xff]  ;;  %v973_v24 = vld [vmem:[%s5853_s23 + $0x17d8] sm:$0xff]  ;;  %v974_v28 = vld [vmem:[%s5853_s23 + $0x17e0] sm:$0xff] }
 0x29b   : > { %5063 = vst [vmem:[%s5891_s24 + $0x17a0] sm:$0xff] %v4039_v13  ;;  %v4042_v25 = vadd.s32 %v3018_v14, %v969_v10  ;;  %v3021_v26 = vmul.u32 %v5869_v2, %v1996_v23  ;;  %v1997_v27 = vld [vmem:[%s5861_s6 + $0x17d8] sm:$0xff]  ;;  %v1998_v29 = vld [vmem:[%s5861_s6 + $0x17e0] sm:$0xff]  ;;  %v4043_v30 = vadd.s32 %v3019_v20, %v970_v12  ;;  %v975_v34 = vld [vmem:[%s5853_s23 + $0x17e8] sm:$0xff] }
 0x29c   : > { %5064 = vst [vmem:[%s5891_s24 + $0x17a8] sm:$0xff] %v4040_v18  ;;  %5065 = vst [vmem:[%s5891_s24 + $0x17b0] sm:$0xff] %v4041_v19  ;;  %v4044_v31 = vadd.s32 %v3020_v21, %v971_v16  ;;  %v3022_v32 = vmul.u32 %v5869_v2, %v1997_v27  ;;  %v3023_v33 = vmul.u32 %v5869_v2, %v1998_v29  ;;  %v1999_v35 = vld [vmem:[%s5861_s6 + $0x17e8] sm:$0xff]  ;;  %v976_v36 = vld [vmem:[%s5853_s23 + $0x17f0] sm:$0xff] }
 0x29d   : > { %5066 = vst [vmem:[%s5891_s24 + $0x17b8] sm:$0xff] %v4042_v25  ;;  %v4045_v37 = vadd.s32 %v3021_v26, %v972_v22  ;;  %v3024_v38 = vmul.u32 %v5869_v2, %v1999_v35  ;;  %v2000_v39 = vld [vmem:[%s5861_s6 + $0x17f0] sm:$0xff]  ;;  %v977_v40 = vld [vmem:[%s5853_s23 + $0x17f8] sm:$0xff]  ;;  %5067 = vst [vmem:[%s5891_s24 + $0x17c0] sm:$0xff] %v4043_v30 }
 0x29e   : > { %v2001_v41 = vld [vmem:[%s5861_s6 + $0x17f8] sm:$0xff]  ;;  %5068 = vst [vmem:[%s5891_s24 + $0x17c8] sm:$0xff] %v4044_v31  ;;  %v4046_v42 = vadd.s32 %v3022_v32, %v973_v24  ;;  %v4047_v43 = vadd.s32 %v3023_v33, %v974_v28  ;;  %v3025_v44 = vmul.u32 %v5869_v2, %v2000_v39  ;;  %v978_v46 = vld [vmem:[%s5853_s23 + $0x1800] sm:$0xff]  ;;  %v979_v48 = vld [vmem:[%s5853_s23 + $0x1808] sm:$0xff] }
 0x29f   : > { %v3026_v45 = vmul.u32 %v5869_v2, %v2001_v41  ;;  %v2002_v47 = vld [vmem:[%s5861_s6 + $0x1800] sm:$0xff]  ;;  %5069 = vst [vmem:[%s5891_s24 + $0x17d0] sm:$0xff] %v4045_v37  ;;  %v4048_v49 = vadd.s32 %v3024_v38, %v975_v34  ;;  %v2003_v51 = vld [vmem:[%s5861_s6 + $0x1808] sm:$0xff]  ;;  %v980_v52 = vld [vmem:[%s5853_s23 + $0x1810] sm:$0xff] }
 0x2a0   : > { %v3027_v50 = vmul.u32 %v5869_v2, %v2002_v47  ;;  %v2004_v53 = vld [vmem:[%s5861_s6 + $0x1810] sm:$0xff]  ;;  %5070 = vst [vmem:[%s5891_s24 + $0x17d8] sm:$0xff] %v4046_v42  ;;  %5071 = vst [vmem:[%s5891_s24 + $0x17e0] sm:$0xff] %v4047_v43  ;;  %v4049_v54 = vadd.s32 %v3025_v44, %v976_v36  ;;  %v3028_v56 = vmul.u32 %v5869_v2, %v2003_v51  ;;  %v981_v58 = vld [vmem:[%s5853_s23 + $0x1818] sm:$0xff] }
 0x2a1   : > { %v4050_v55 = vadd.s32 %v3026_v45, %v977_v40  ;;  %v3029_v57 = vmul.u32 %v5869_v2, %v2004_v53  ;;  %v2005_v59 = vld [vmem:[%s5861_s6 + $0x1818] sm:$0xff]  ;;  %v982_v60 = vld [vmem:[%s5853_s23 + $0x1820] sm:$0xff]  ;;  %5072 = vst [vmem:[%s5891_s24 + $0x17e8] sm:$0xff] %v4048_v49  ;;  %v983_v0 = vld [vmem:[%s5853_s23 + $0x1828] sm:$0xff] }
 0x2a2   : > { %v4051_v61 = vadd.s32 %v3027_v50, %v978_v46  ;;  %v3030_v62 = vmul.u32 %v5869_v2, %v2005_v59  ;;  %v2006_v63 = vld [vmem:[%s5861_s6 + $0x1820] sm:$0xff]  ;;  %v2007_v1 = vld [vmem:[%s5861_s6 + $0x1828] sm:$0xff]  ;;  %5073 = vst [vmem:[%s5891_s24 + $0x17f0] sm:$0xff] %v4049_v54  ;;  %v4052_v3 = vadd.s32 %v3028_v56, %v979_v48  ;;  %v984_v7 = vld [vmem:[%s5853_s23 + $0x1830] sm:$0xff] }
 0x2a3   : > { %5074 = vst [vmem:[%s5891_s24 + $0x17f8] sm:$0xff] %v4050_v55  ;;  %v4053_v4 = vadd.s32 %v3029_v57, %v980_v52  ;;  %v3031_v5 = vmul.u32 %v5869_v2, %v2006_v63  ;;  %v3032_v6 = vmul.u32 %v5869_v2, %v2007_v1  ;;  %v2008_v8 = vld [vmem:[%s5861_s6 + $0x1830] sm:$0xff]  ;;  %v985_v9 = vld [vmem:[%s5853_s23 + $0x1838] sm:$0xff]  ;;  %v986_v13 = vld [vmem:[%s5853_s23 + $0x1840] sm:$0xff] }
 0x2a4   : > { %5075 = vst [vmem:[%s5891_s24 + $0x1800] sm:$0xff] %v4051_v61  ;;  %v4054_v10 = vadd.s32 %v3030_v62, %v981_v58  ;;  %v3033_v11 = vmul.u32 %v5869_v2, %v2008_v8  ;;  %v2009_v12 = vld [vmem:[%s5861_s6 + $0x1838] sm:$0xff]  ;;  %v2010_v14 = vld [vmem:[%s5861_s6 + $0x1840] sm:$0xff]  ;;  %5076 = vst [vmem:[%s5891_s24 + $0x1808] sm:$0xff] %v4052_v3 }
 0x2a5   : > { %5077 = vst [vmem:[%s5891_s24 + $0x1810] sm:$0xff] %v4053_v4  ;;  %v4055_v15 = vadd.s32 %v3031_v5, %v982_v60  ;;  %v4056_v16 = vadd.s32 %v3032_v6, %v983_v0  ;;  %v3034_v17 = vmul.u32 %v5869_v2, %v2009_v12  ;;  %v3035_v18 = vmul.u32 %v5869_v2, %v2010_v14  ;;  %v987_v19 = vld [vmem:[%s5853_s23 + $0x1848] sm:$0xff]  ;;  %v988_v21 = vld [vmem:[%s5853_s23 + $0x1850] sm:$0xff]  ;;  %v989_v25 = vld [vmem:[%s5853_s23 + $0x1858] sm:$0xff] }
 0x2a6   : > { %v2011_v20 = vld [vmem:[%s5861_s6 + $0x1848] sm:$0xff]  ;;  %5078 = vst [vmem:[%s5891_s24 + $0x1818] sm:$0xff] %v4054_v10  ;;  %v4057_v22 = vadd.s32 %v3033_v11, %v984_v7  ;;  %v2012_v24 = vld [vmem:[%s5861_s6 + $0x1850] sm:$0xff]  ;;  %v2013_v26 = vld [vmem:[%s5861_s6 + $0x1858] sm:$0xff] }
 0x2a7   : > { %v3036_v23 = vmul.u32 %v5869_v2, %v2011_v20  ;;  %5079 = vst [vmem:[%s5891_s24 + $0x1820] sm:$0xff] %v4055_v15  ;;  %5080 = vst [vmem:[%s5891_s24 + $0x1828] sm:$0xff] %v4056_v16  ;;  %v4058_v27 = vadd.s32 %v3034_v17, %v985_v9  ;;  %v4059_v28 = vadd.s32 %v3035_v18, %v986_v13  ;;  %v990_v31 = vld [vmem:[%s5853_s23 + $0x1860] sm:$0xff]  ;;  %v991_v33 = vld [vmem:[%s5853_s23 + $0x1868] sm:$0xff] }
 0x2a8   : > { %v3037_v29 = vmul.u32 %v5869_v2, %v2012_v24  ;;  %v3038_v30 = vmul.u32 %v5869_v2, %v2013_v26  ;;  %v2014_v32 = vld [vmem:[%s5861_s6 + $0x1860] sm:$0xff]  ;;  %5081 = vst [vmem:[%s5891_s24 + $0x1830] sm:$0xff] %v4057_v22  ;;  %v2015_v36 = vld [vmem:[%s5861_s6 + $0x1868] sm:$0xff]  ;;  %v992_v37 = vld [vmem:[%s5853_s23 + $0x1870] sm:$0xff] }
 0x2a9   : > { %v4060_v34 = vadd.s32 %v3036_v23, %v987_v19  ;;  %v3039_v35 = vmul.u32 %v5869_v2, %v2014_v32  ;;  %v2016_v38 = vld [vmem:[%s5861_s6 + $0x1870] sm:$0xff]  ;;  %5082 = vst [vmem:[%s5891_s24 + $0x1838] sm:$0xff] %v4058_v27  ;;  %5083 = vst [vmem:[%s5891_s24 + $0x1840] sm:$0xff] %v4059_v28  ;;  %v3040_v41 = vmul.u32 %v5869_v2, %v2015_v36  ;;  %v993_v43 = vld [vmem:[%s5853_s23 + $0x1878] sm:$0xff] }
 0x2aa   : > { %v4061_v39 = vadd.s32 %v3037_v29, %v988_v21  ;;  %v4062_v40 = vadd.s32 %v3038_v30, %v989_v25  ;;  %v3041_v42 = vmul.u32 %v5869_v2, %v2016_v38  ;;  %v2017_v44 = vld [vmem:[%s5861_s6 + $0x1878] sm:$0xff]  ;;  %v994_v45 = vld [vmem:[%s5853_s23 + $0x1880] sm:$0xff]  ;;  %v995_v49 = vld [vmem:[%s5853_s23 + $0x1888] sm:$0xff] }
 0x2ab   : > { %5084 = vst [vmem:[%s5891_s24 + $0x1848] sm:$0xff] %v4060_v34  ;;  %v4063_v46 = vadd.s32 %v3039_v35, %v990_v31  ;;  %v3042_v47 = vmul.u32 %v5869_v2, %v2017_v44  ;;  %v2018_v48 = vld [vmem:[%s5861_s6 + $0x1880] sm:$0xff]  ;;  %v2019_v50 = vld [vmem:[%s5861_s6 + $0x1888] sm:$0xff]  ;;  %v4064_v51 = vadd.s32 %v3040_v41, %v991_v33  ;;  %v996_v55 = vld [vmem:[%s5853_s23 + $0x1890] sm:$0xff] }
 0x2ac   : > { %5085 = vst [vmem:[%s5891_s24 + $0x1850] sm:$0xff] %v4061_v39  ;;  %5086 = vst [vmem:[%s5891_s24 + $0x1858] sm:$0xff] %v4062_v40  ;;  %v4065_v52 = vadd.s32 %v3041_v42, %v992_v37  ;;  %v3043_v53 = vmul.u32 %v5869_v2, %v2018_v48  ;;  %v3044_v54 = vmul.u32 %v5869_v2, %v2019_v50  ;;  %v2020_v56 = vld [vmem:[%s5861_s6 + $0x1890] sm:$0xff]  ;;  %v997_v57 = vld [vmem:[%s5853_s23 + $0x1898] sm:$0xff] }
 0x2ad   : > { %5087 = vst [vmem:[%s5891_s24 + $0x1860] sm:$0xff] %v4063_v46  ;;  %v4066_v58 = vadd.s32 %v3042_v47, %v993_v43  ;;  %v3045_v59 = vmul.u32 %v5869_v2, %v2020_v56  ;;  %v2021_v60 = vld [vmem:[%s5861_s6 + $0x1898] sm:$0xff]  ;;  %v998_v61 = vld [vmem:[%s5853_s23 + $0x18a0] sm:$0xff]  ;;  %5088 = vst [vmem:[%s5891_s24 + $0x1868] sm:$0xff] %v4064_v51 }
 0x2ae   : > { %v2022_v62 = vld [vmem:[%s5861_s6 + $0x18a0] sm:$0xff]  ;;  %5089 = vst [vmem:[%s5891_s24 + $0x1870] sm:$0xff] %v4065_v52  ;;  %v4067_v63 = vadd.s32 %v3043_v53, %v994_v45  ;;  %v4068_v0 = vadd.s32 %v3044_v54, %v995_v49  ;;  %v3046_v1 = vmul.u32 %v5869_v2, %v2021_v60  ;;  %v999_v4 = vld [vmem:[%s5853_s23 + $0x18a8] sm:$0xff]  ;;  %v1000_v6 = vld [vmem:[%s5853_s23 + $0x18b0] sm:$0xff] }
 0x2af   : > { %v3047_v3 = vmul.u32 %v5869_v2, %v2022_v62  ;;  %v2023_v5 = vld [vmem:[%s5861_s6 + $0x18a8] sm:$0xff]  ;;  %5090 = vst [vmem:[%s5891_s24 + $0x1878] sm:$0xff] %v4066_v58  ;;  %v4069_v7 = vadd.s32 %v3045_v59, %v996_v55  ;;  %v2024_v9 = vld [vmem:[%s5861_s6 + $0x18b0] sm:$0xff]  ;;  %v1001_v10 = vld [vmem:[%s5853_s23 + $0x18b8] sm:$0xff] }
 0x2b0   : > { %v3048_v8 = vmul.u32 %v5869_v2, %v2023_v5  ;;  %v2025_v11 = vld [vmem:[%s5861_s6 + $0x18b8] sm:$0xff]  ;;  %5091 = vst [vmem:[%s5891_s24 + $0x1880] sm:$0xff] %v4067_v63  ;;  %5092 = vst [vmem:[%s5891_s24 + $0x1888] sm:$0xff] %v4068_v0  ;;  %v4070_v12 = vadd.s32 %v3046_v1, %v997_v57  ;;  %v3049_v14 = vmul.u32 %v5869_v2, %v2024_v9  ;;  %v1002_v16 = vld [vmem:[%s5853_s23 + $0x18c0] sm:$0xff] }
 0x2b1   : > { %v4071_v13 = vadd.s32 %v3047_v3, %v998_v61  ;;  %v3050_v15 = vmul.u32 %v5869_v2, %v2025_v11  ;;  %v2026_v17 = vld [vmem:[%s5861_s6 + $0x18c0] sm:$0xff]  ;;  %v1003_v18 = vld [vmem:[%s5853_s23 + $0x18c8] sm:$0xff]  ;;  %5093 = vst [vmem:[%s5891_s24 + $0x1890] sm:$0xff] %v4069_v7  ;;  %v1004_v22 = vld [vmem:[%s5853_s23 + $0x18d0] sm:$0xff] }
 0x2b2   : > { %v4072_v19 = vadd.s32 %v3048_v8, %v999_v4  ;;  %v3051_v20 = vmul.u32 %v5869_v2, %v2026_v17  ;;  %v2027_v21 = vld [vmem:[%s5861_s6 + $0x18c8] sm:$0xff]  ;;  %v2028_v23 = vld [vmem:[%s5861_s6 + $0x18d0] sm:$0xff]  ;;  %5094 = vst [vmem:[%s5891_s24 + $0x1898] sm:$0xff] %v4070_v12  ;;  %v4073_v24 = vadd.s32 %v3049_v14, %v1000_v6  ;;  %v1005_v28 = vld [vmem:[%s5853_s23 + $0x18d8] sm:$0xff] }
 0x2b3   : > { %5095 = vst [vmem:[%s5891_s24 + $0x18a0] sm:$0xff] %v4071_v13  ;;  %v4074_v25 = vadd.s32 %v3050_v15, %v1001_v10  ;;  %v3052_v26 = vmul.u32 %v5869_v2, %v2027_v21  ;;  %v3053_v27 = vmul.u32 %v5869_v2, %v2028_v23  ;;  %v2029_v29 = vld [vmem:[%s5861_s6 + $0x18d8] sm:$0xff]  ;;  %v1006_v30 = vld [vmem:[%s5853_s23 + $0x18e0] sm:$0xff]  ;;  %v1007_v34 = vld [vmem:[%s5853_s23 + $0x18e8] sm:$0xff] }
 0x2b4   : > { %5096 = vst [vmem:[%s5891_s24 + $0x18a8] sm:$0xff] %v4072_v19  ;;  %v4075_v31 = vadd.s32 %v3051_v20, %v1002_v16  ;;  %v3054_v32 = vmul.u32 %v5869_v2, %v2029_v29  ;;  %v2030_v33 = vld [vmem:[%s5861_s6 + $0x18e0] sm:$0xff]  ;;  %v2031_v35 = vld [vmem:[%s5861_s6 + $0x18e8] sm:$0xff]  ;;  %5097 = vst [vmem:[%s5891_s24 + $0x18b0] sm:$0xff] %v4073_v24 }
 0x2b5   : > { %5098 = vst [vmem:[%s5891_s24 + $0x18b8] sm:$0xff] %v4074_v25  ;;  %v4076_v36 = vadd.s32 %v3052_v26, %v1003_v18  ;;  %v4077_v37 = vadd.s32 %v3053_v27, %v1004_v22  ;;  %v3055_v38 = vmul.u32 %v5869_v2, %v2030_v33  ;;  %v3056_v39 = vmul.u32 %v5869_v2, %v2031_v35  ;;  %v1008_v40 = vld [vmem:[%s5853_s23 + $0x18f0] sm:$0xff]  ;;  %v1009_v42 = vld [vmem:[%s5853_s23 + $0x18f8] sm:$0xff]  ;;  %v1010_v46 = vld [vmem:[%s5853_s23 + $0x1900] sm:$0xff] }
 0x2b6   : > { %v2032_v41 = vld [vmem:[%s5861_s6 + $0x18f0] sm:$0xff]  ;;  %5099 = vst [vmem:[%s5891_s24 + $0x18c0] sm:$0xff] %v4075_v31  ;;  %v4078_v43 = vadd.s32 %v3054_v32, %v1005_v28  ;;  %v2033_v45 = vld [vmem:[%s5861_s6 + $0x18f8] sm:$0xff]  ;;  %v2034_v47 = vld [vmem:[%s5861_s6 + $0x1900] sm:$0xff] }
 0x2b7   : > { %v3057_v44 = vmul.u32 %v5869_v2, %v2032_v41  ;;  %5100 = vst [vmem:[%s5891_s24 + $0x18c8] sm:$0xff] %v4076_v36  ;;  %5101 = vst [vmem:[%s5891_s24 + $0x18d0] sm:$0xff] %v4077_v37  ;;  %v4079_v48 = vadd.s32 %v3055_v38, %v1006_v30  ;;  %v4080_v49 = vadd.s32 %v3056_v39, %v1007_v34  ;;  %v1011_v52 = vld [vmem:[%s5853_s23 + $0x1908] sm:$0xff]  ;;  %v1012_v54 = vld [vmem:[%s5853_s23 + $0x1910] sm:$0xff] }
 0x2b8   : > { %v3058_v50 = vmul.u32 %v5869_v2, %v2033_v45  ;;  %v3059_v51 = vmul.u32 %v5869_v2, %v2034_v47  ;;  %v2035_v53 = vld [vmem:[%s5861_s6 + $0x1908] sm:$0xff]  ;;  %5102 = vst [vmem:[%s5891_s24 + $0x18d8] sm:$0xff] %v4078_v43  ;;  %v2036_v57 = vld [vmem:[%s5861_s6 + $0x1910] sm:$0xff]  ;;  %v1013_v58 = vld [vmem:[%s5853_s23 + $0x1918] sm:$0xff] }
 0x2b9   : > { %v4081_v55 = vadd.s32 %v3057_v44, %v1008_v40  ;;  %v3060_v56 = vmul.u32 %v5869_v2, %v2035_v53  ;;  %v2037_v59 = vld [vmem:[%s5861_s6 + $0x1918] sm:$0xff]  ;;  %5103 = vst [vmem:[%s5891_s24 + $0x18e0] sm:$0xff] %v4079_v48  ;;  %5104 = vst [vmem:[%s5891_s24 + $0x18e8] sm:$0xff] %v4080_v49  ;;  %v3061_v62 = vmul.u32 %v5869_v2, %v2036_v57  ;;  %v1014_v0 = vld [vmem:[%s5853_s23 + $0x1920] sm:$0xff] }
 0x2ba   : > { %v4082_v60 = vadd.s32 %v3058_v50, %v1009_v42  ;;  %v4083_v61 = vadd.s32 %v3059_v51, %v1010_v46  ;;  %v3062_v63 = vmul.u32 %v5869_v2, %v2037_v59  ;;  %v2038_v1 = vld [vmem:[%s5861_s6 + $0x1920] sm:$0xff]  ;;  %v1015_v3 = vld [vmem:[%s5853_s23 + $0x1928] sm:$0xff]  ;;  %v1016_v7 = vld [vmem:[%s5853_s23 + $0x1930] sm:$0xff] }
 0x2bb   : > { %5105 = vst [vmem:[%s5891_s24 + $0x18f0] sm:$0xff] %v4081_v55  ;;  %v4084_v4 = vadd.s32 %v3060_v56, %v1011_v52  ;;  %v3063_v5 = vmul.u32 %v5869_v2, %v2038_v1  ;;  %v2039_v6 = vld [vmem:[%s5861_s6 + $0x1928] sm:$0xff]  ;;  %v2040_v8 = vld [vmem:[%s5861_s6 + $0x1930] sm:$0xff]  ;;  %v4085_v9 = vadd.s32 %v3061_v62, %v1012_v54  ;;  %v1017_v13 = vld [vmem:[%s5853_s23 + $0x1938] sm:$0xff] }
 0x2bc   : > { %5106 = vst [vmem:[%s5891_s24 + $0x18f8] sm:$0xff] %v4082_v60  ;;  %5107 = vst [vmem:[%s5891_s24 + $0x1900] sm:$0xff] %v4083_v61  ;;  %v4086_v10 = vadd.s32 %v3062_v63, %v1013_v58  ;;  %v3064_v11 = vmul.u32 %v5869_v2, %v2039_v6  ;;  %v3065_v12 = vmul.u32 %v5869_v2, %v2040_v8  ;;  %v2041_v14 = vld [vmem:[%s5861_s6 + $0x1938] sm:$0xff]  ;;  %v1018_v15 = vld [vmem:[%s5853_s23 + $0x1940] sm:$0xff] }
 0x2bd   : > { %5108 = vst [vmem:[%s5891_s24 + $0x1908] sm:$0xff] %v4084_v4  ;;  %v4087_v16 = vadd.s32 %v3063_v5, %v1014_v0  ;;  %v3066_v17 = vmul.u32 %v5869_v2, %v2041_v14  ;;  %v2042_v18 = vld [vmem:[%s5861_s6 + $0x1940] sm:$0xff]  ;;  %v1019_v19 = vld [vmem:[%s5853_s23 + $0x1948] sm:$0xff]  ;;  %5109 = vst [vmem:[%s5891_s24 + $0x1910] sm:$0xff] %v4085_v9 }
 0x2be   : > { %v2043_v20 = vld [vmem:[%s5861_s6 + $0x1948] sm:$0xff]  ;;  %5110 = vst [vmem:[%s5891_s24 + $0x1918] sm:$0xff] %v4086_v10  ;;  %v4088_v21 = vadd.s32 %v3064_v11, %v1015_v3  ;;  %v4089_v22 = vadd.s32 %v3065_v12, %v1016_v7  ;;  %v3067_v23 = vmul.u32 %v5869_v2, %v2042_v18  ;;  %v1020_v25 = vld [vmem:[%s5853_s23 + $0x1950] sm:$0xff]  ;;  %v1021_v27 = vld [vmem:[%s5853_s23 + $0x1958] sm:$0xff] }
 0x2bf   : > { %v3068_v24 = vmul.u32 %v5869_v2, %v2043_v20  ;;  %v2044_v26 = vld [vmem:[%s5861_s6 + $0x1950] sm:$0xff]  ;;  %5111 = vst [vmem:[%s5891_s24 + $0x1920] sm:$0xff] %v4087_v16  ;;  %v4090_v28 = vadd.s32 %v3066_v17, %v1017_v13  ;;  %v2045_v30 = vld [vmem:[%s5861_s6 + $0x1958] sm:$0xff]  ;;  %v1022_v31 = vld [vmem:[%s5853_s23 + $0x1960] sm:$0xff] }
 0x2c0   : > { %v3069_v29 = vmul.u32 %v5869_v2, %v2044_v26  ;;  %v2046_v32 = vld [vmem:[%s5861_s6 + $0x1960] sm:$0xff]  ;;  %5112 = vst [vmem:[%s5891_s24 + $0x1928] sm:$0xff] %v4088_v21  ;;  %5113 = vst [vmem:[%s5891_s24 + $0x1930] sm:$0xff] %v4089_v22  ;;  %v4091_v33 = vadd.s32 %v3067_v23, %v1018_v15  ;;  %v3070_v35 = vmul.u32 %v5869_v2, %v2045_v30  ;;  %v1023_v37 = vld [vmem:[%s5853_s23 + $0x1968] sm:$0xff] }
 0x2c1   : > { %v4092_v34 = vadd.s32 %v3068_v24, %v1019_v19  ;;  %v3071_v36 = vmul.u32 %v5869_v2, %v2046_v32  ;;  %v2047_v38 = vld [vmem:[%s5861_s6 + $0x1968] sm:$0xff]  ;;  %v1024_v39 = vld [vmem:[%s5853_s23 + $0x1970] sm:$0xff]  ;;  %5114 = vst [vmem:[%s5891_s24 + $0x1938] sm:$0xff] %v4090_v28  ;;  %v1025_v43 = vld [vmem:[%s5853_s23 + $0x1978] sm:$0xff] }
 0x2c2   : > { %v4093_v40 = vadd.s32 %v3069_v29, %v1020_v25  ;;  %v3072_v41 = vmul.u32 %v5869_v2, %v2047_v38  ;;  %v2048_v42 = vld [vmem:[%s5861_s6 + $0x1970] sm:$0xff]  ;;  %v2049_v44 = vld [vmem:[%s5861_s6 + $0x1978] sm:$0xff]  ;;  %5115 = vst [vmem:[%s5891_s24 + $0x1940] sm:$0xff] %v4091_v33  ;;  %v4094_v45 = vadd.s32 %v3070_v35, %v1021_v27  ;;  %v1026_v49 = vld [vmem:[%s5853_s23 + $0x1980] sm:$0xff] }
 0x2c3   : > { %5116 = vst [vmem:[%s5891_s24 + $0x1948] sm:$0xff] %v4092_v34  ;;  %v4095_v46 = vadd.s32 %v3071_v36, %v1022_v31  ;;  %v3073_v47 = vmul.u32 %v5869_v2, %v2048_v42  ;;  %v3074_v48 = vmul.u32 %v5869_v2, %v2049_v44  ;;  %v2050_v50 = vld [vmem:[%s5861_s6 + $0x1980] sm:$0xff]  ;;  %v1027_v51 = vld [vmem:[%s5853_s23 + $0x1988] sm:$0xff]  ;;  %v1028_v55 = vld [vmem:[%s5853_s23 + $0x1990] sm:$0xff] }
 0x2c4   : > { %5117 = vst [vmem:[%s5891_s24 + $0x1950] sm:$0xff] %v4093_v40  ;;  %v4096_v52 = vadd.s32 %v3072_v41, %v1023_v37  ;;  %v3075_v53 = vmul.u32 %v5869_v2, %v2050_v50  ;;  %v2051_v54 = vld [vmem:[%s5861_s6 + $0x1988] sm:$0xff]  ;;  %v2052_v56 = vld [vmem:[%s5861_s6 + $0x1990] sm:$0xff]  ;;  %5118 = vst [vmem:[%s5891_s24 + $0x1958] sm:$0xff] %v4094_v45 }
 0x2c5   : > { %5119 = vst [vmem:[%s5891_s24 + $0x1960] sm:$0xff] %v4095_v46  ;;  %v4097_v57 = vadd.s32 %v3073_v47, %v1024_v39  ;;  %v4098_v58 = vadd.s32 %v3074_v48, %v1025_v43  ;;  %v3076_v59 = vmul.u32 %v5869_v2, %v2051_v54  ;;  %v3077_v60 = vmul.u32 %v5869_v2, %v2052_v56  ;;  %v1029_v61 = vld [vmem:[%s5853_s23 + $0x1998] sm:$0xff]  ;;  %v1030_v63 = vld [vmem:[%s5853_s23 + $0x19a0] sm:$0xff]  ;;  %v1031_v4 = vld [vmem:[%s5853_s23 + $0x19a8] sm:$0xff] }
 0x2c6   : > { %v2053_v62 = vld [vmem:[%s5861_s6 + $0x1998] sm:$0xff]  ;;  %5120 = vst [vmem:[%s5891_s24 + $0x1968] sm:$0xff] %v4096_v52  ;;  %v4099_v0 = vadd.s32 %v3075_v53, %v1026_v49  ;;  %v2054_v3 = vld [vmem:[%s5861_s6 + $0x19a0] sm:$0xff]  ;;  %v2055_v5 = vld [vmem:[%s5861_s6 + $0x19a8] sm:$0xff] }
 0x2c7   : > { %v3078_v1 = vmul.u32 %v5869_v2, %v2053_v62  ;;  %5121 = vst [vmem:[%s5891_s24 + $0x1970] sm:$0xff] %v4097_v57  ;;  %5122 = vst [vmem:[%s5891_s24 + $0x1978] sm:$0xff] %v4098_v58  ;;  %v4100_v6 = vadd.s32 %v3076_v59, %v1027_v51  ;;  %v4101_v7 = vadd.s32 %v3077_v60, %v1028_v55  ;;  %v1032_v10 = vld [vmem:[%s5853_s23 + $0x19b0] sm:$0xff]  ;;  %v1033_v12 = vld [vmem:[%s5853_s23 + $0x19b8] sm:$0xff] }
 0x2c8   : > { %v3079_v8 = vmul.u32 %v5869_v2, %v2054_v3  ;;  %v3080_v9 = vmul.u32 %v5869_v2, %v2055_v5  ;;  %v2056_v11 = vld [vmem:[%s5861_s6 + $0x19b0] sm:$0xff]  ;;  %5123 = vst [vmem:[%s5891_s24 + $0x1980] sm:$0xff] %v4099_v0  ;;  %v2057_v15 = vld [vmem:[%s5861_s6 + $0x19b8] sm:$0xff]  ;;  %v1034_v16 = vld [vmem:[%s5853_s23 + $0x19c0] sm:$0xff] }
 0x2c9   : > { %v4102_v13 = vadd.s32 %v3078_v1, %v1029_v61  ;;  %v3081_v14 = vmul.u32 %v5869_v2, %v2056_v11  ;;  %v2058_v17 = vld [vmem:[%s5861_s6 + $0x19c0] sm:$0xff]  ;;  %5124 = vst [vmem:[%s5891_s24 + $0x1988] sm:$0xff] %v4100_v6  ;;  %5125 = vst [vmem:[%s5891_s24 + $0x1990] sm:$0xff] %v4101_v7  ;;  %v3082_v20 = vmul.u32 %v5869_v2, %v2057_v15  ;;  %v1035_v22 = vld [vmem:[%s5853_s23 + $0x19c8] sm:$0xff] }
 0x2ca   : > { %v4103_v18 = vadd.s32 %v3079_v8, %v1030_v63  ;;  %v4104_v19 = vadd.s32 %v3080_v9, %v1031_v4  ;;  %v3083_v21 = vmul.u32 %v5869_v2, %v2058_v17  ;;  %v2059_v23 = vld [vmem:[%s5861_s6 + $0x19c8] sm:$0xff]  ;;  %v1036_v24 = vld [vmem:[%s5853_s23 + $0x19d0] sm:$0xff]  ;;  %v1037_v28 = vld [vmem:[%s5853_s23 + $0x19d8] sm:$0xff] }
 0x2cb   : > { %5126 = vst [vmem:[%s5891_s24 + $0x1998] sm:$0xff] %v4102_v13  ;;  %v4105_v25 = vadd.s32 %v3081_v14, %v1032_v10  ;;  %v3084_v26 = vmul.u32 %v5869_v2, %v2059_v23  ;;  %v2060_v27 = vld [vmem:[%s5861_s6 + $0x19d0] sm:$0xff]  ;;  %v2061_v29 = vld [vmem:[%s5861_s6 + $0x19d8] sm:$0xff]  ;;  %v4106_v30 = vadd.s32 %v3082_v20, %v1033_v12  ;;  %v1038_v34 = vld [vmem:[%s5853_s23 + $0x19e0] sm:$0xff] }
 0x2cc   : > { %5127 = vst [vmem:[%s5891_s24 + $0x19a0] sm:$0xff] %v4103_v18  ;;  %5128 = vst [vmem:[%s5891_s24 + $0x19a8] sm:$0xff] %v4104_v19  ;;  %v4107_v31 = vadd.s32 %v3083_v21, %v1034_v16  ;;  %v3085_v32 = vmul.u32 %v5869_v2, %v2060_v27  ;;  %v3086_v33 = vmul.u32 %v5869_v2, %v2061_v29  ;;  %v2062_v35 = vld [vmem:[%s5861_s6 + $0x19e0] sm:$0xff]  ;;  %v1039_v36 = vld [vmem:[%s5853_s23 + $0x19e8] sm:$0xff] }
 0x2cd   : > { %5129 = vst [vmem:[%s5891_s24 + $0x19b0] sm:$0xff] %v4105_v25  ;;  %v4108_v37 = vadd.s32 %v3084_v26, %v1035_v22  ;;  %v3087_v38 = vmul.u32 %v5869_v2, %v2062_v35  ;;  %v2063_v39 = vld [vmem:[%s5861_s6 + $0x19e8] sm:$0xff]  ;;  %v1040_v40 = vld [vmem:[%s5853_s23 + $0x19f0] sm:$0xff]  ;;  %5130 = vst [vmem:[%s5891_s24 + $0x19b8] sm:$0xff] %v4106_v30 }
 0x2ce   : > { %v2064_v41 = vld [vmem:[%s5861_s6 + $0x19f0] sm:$0xff]  ;;  %5131 = vst [vmem:[%s5891_s24 + $0x19c0] sm:$0xff] %v4107_v31  ;;  %v4109_v42 = vadd.s32 %v3085_v32, %v1036_v24  ;;  %v4110_v43 = vadd.s32 %v3086_v33, %v1037_v28  ;;  %v3088_v44 = vmul.u32 %v5869_v2, %v2063_v39  ;;  %v1041_v46 = vld [vmem:[%s5853_s23 + $0x19f8] sm:$0xff]  ;;  %v1042_v48 = vld [vmem:[%s5853_s23 + $0x1a00] sm:$0xff] }
 0x2cf   : > { %v3089_v45 = vmul.u32 %v5869_v2, %v2064_v41  ;;  %v2065_v47 = vld [vmem:[%s5861_s6 + $0x19f8] sm:$0xff]  ;;  %5132 = vst [vmem:[%s5891_s24 + $0x19c8] sm:$0xff] %v4108_v37  ;;  %v4111_v49 = vadd.s32 %v3087_v38, %v1038_v34  ;;  %v2066_v51 = vld [vmem:[%s5861_s6 + $0x1a00] sm:$0xff]  ;;  %v1043_v52 = vld [vmem:[%s5853_s23 + $0x1a08] sm:$0xff] }
 0x2d0   : > { %v3090_v50 = vmul.u32 %v5869_v2, %v2065_v47  ;;  %v2067_v53 = vld [vmem:[%s5861_s6 + $0x1a08] sm:$0xff]  ;;  %5133 = vst [vmem:[%s5891_s24 + $0x19d0] sm:$0xff] %v4109_v42  ;;  %5134 = vst [vmem:[%s5891_s24 + $0x19d8] sm:$0xff] %v4110_v43  ;;  %v4112_v54 = vadd.s32 %v3088_v44, %v1039_v36  ;;  %v3091_v56 = vmul.u32 %v5869_v2, %v2066_v51  ;;  %v1044_v58 = vld [vmem:[%s5853_s23 + $0x1a10] sm:$0xff] }
 0x2d1   : > { %v4113_v55 = vadd.s32 %v3089_v45, %v1040_v40  ;;  %v3092_v57 = vmul.u32 %v5869_v2, %v2067_v53  ;;  %v2068_v59 = vld [vmem:[%s5861_s6 + $0x1a10] sm:$0xff]  ;;  %v1045_v60 = vld [vmem:[%s5853_s23 + $0x1a18] sm:$0xff]  ;;  %5135 = vst [vmem:[%s5891_s24 + $0x19e0] sm:$0xff] %v4111_v49  ;;  %v1046_v0 = vld [vmem:[%s5853_s23 + $0x1a20] sm:$0xff] }
 0x2d2   : > { %v4114_v61 = vadd.s32 %v3090_v50, %v1041_v46  ;;  %v3093_v62 = vmul.u32 %v5869_v2, %v2068_v59  ;;  %v2069_v63 = vld [vmem:[%s5861_s6 + $0x1a18] sm:$0xff]  ;;  %v2070_v1 = vld [vmem:[%s5861_s6 + $0x1a20] sm:$0xff]  ;;  %5136 = vst [vmem:[%s5891_s24 + $0x19e8] sm:$0xff] %v4112_v54  ;;  %v4115_v3 = vadd.s32 %v3091_v56, %v1042_v48  ;;  %v1047_v7 = vld [vmem:[%s5853_s23 + $0x1a28] sm:$0xff] }
 0x2d3   : > { %5137 = vst [vmem:[%s5891_s24 + $0x19f0] sm:$0xff] %v4113_v55  ;;  %v4116_v4 = vadd.s32 %v3092_v57, %v1043_v52  ;;  %v3094_v5 = vmul.u32 %v5869_v2, %v2069_v63  ;;  %v3095_v6 = vmul.u32 %v5869_v2, %v2070_v1  ;;  %v2071_v8 = vld [vmem:[%s5861_s6 + $0x1a28] sm:$0xff]  ;;  %v1048_v9 = vld [vmem:[%s5853_s23 + $0x1a30] sm:$0xff]  ;;  %v1049_v13 = vld [vmem:[%s5853_s23 + $0x1a38] sm:$0xff] }
 0x2d4   : > { %5138 = vst [vmem:[%s5891_s24 + $0x19f8] sm:$0xff] %v4114_v61  ;;  %v4117_v10 = vadd.s32 %v3093_v62, %v1044_v58  ;;  %v3096_v11 = vmul.u32 %v5869_v2, %v2071_v8  ;;  %v2072_v12 = vld [vmem:[%s5861_s6 + $0x1a30] sm:$0xff]  ;;  %v2073_v14 = vld [vmem:[%s5861_s6 + $0x1a38] sm:$0xff]  ;;  %5139 = vst [vmem:[%s5891_s24 + $0x1a00] sm:$0xff] %v4115_v3 }
 0x2d5   : > { %5140 = vst [vmem:[%s5891_s24 + $0x1a08] sm:$0xff] %v4116_v4  ;;  %v4118_v15 = vadd.s32 %v3094_v5, %v1045_v60  ;;  %v4119_v16 = vadd.s32 %v3095_v6, %v1046_v0  ;;  %v3097_v17 = vmul.u32 %v5869_v2, %v2072_v12  ;;  %v3098_v18 = vmul.u32 %v5869_v2, %v2073_v14  ;;  %v1050_v19 = vld [vmem:[%s5853_s23 + $0x1a40] sm:$0xff]  ;;  %v1051_v21 = vld [vmem:[%s5853_s23 + $0x1a48] sm:$0xff]  ;;  %v1052_v25 = vld [vmem:[%s5853_s23 + $0x1a50] sm:$0xff] }
 0x2d6   : > { %v2074_v20 = vld [vmem:[%s5861_s6 + $0x1a40] sm:$0xff]  ;;  %5141 = vst [vmem:[%s5891_s24 + $0x1a10] sm:$0xff] %v4117_v10  ;;  %v4120_v22 = vadd.s32 %v3096_v11, %v1047_v7  ;;  %v2075_v24 = vld [vmem:[%s5861_s6 + $0x1a48] sm:$0xff]  ;;  %v2076_v26 = vld [vmem:[%s5861_s6 + $0x1a50] sm:$0xff] }
 0x2d7   : > { %v3099_v23 = vmul.u32 %v5869_v2, %v2074_v20  ;;  %5142 = vst [vmem:[%s5891_s24 + $0x1a18] sm:$0xff] %v4118_v15  ;;  %5143 = vst [vmem:[%s5891_s24 + $0x1a20] sm:$0xff] %v4119_v16  ;;  %v4121_v27 = vadd.s32 %v3097_v17, %v1048_v9  ;;  %v4122_v28 = vadd.s32 %v3098_v18, %v1049_v13  ;;  %v1053_v31 = vld [vmem:[%s5853_s23 + $0x1a58] sm:$0xff]  ;;  %v1054_v33 = vld [vmem:[%s5853_s23 + $0x1a60] sm:$0xff] }
 0x2d8   : > { %v3100_v29 = vmul.u32 %v5869_v2, %v2075_v24  ;;  %v3101_v30 = vmul.u32 %v5869_v2, %v2076_v26  ;;  %v2077_v32 = vld [vmem:[%s5861_s6 + $0x1a58] sm:$0xff]  ;;  %5144 = vst [vmem:[%s5891_s24 + $0x1a28] sm:$0xff] %v4120_v22  ;;  %v2078_v36 = vld [vmem:[%s5861_s6 + $0x1a60] sm:$0xff]  ;;  %v1055_v37 = vld [vmem:[%s5853_s23 + $0x1a68] sm:$0xff] }
 0x2d9   : > { %v4123_v34 = vadd.s32 %v3099_v23, %v1050_v19  ;;  %v3102_v35 = vmul.u32 %v5869_v2, %v2077_v32  ;;  %v2079_v38 = vld [vmem:[%s5861_s6 + $0x1a68] sm:$0xff]  ;;  %5145 = vst [vmem:[%s5891_s24 + $0x1a30] sm:$0xff] %v4121_v27  ;;  %5146 = vst [vmem:[%s5891_s24 + $0x1a38] sm:$0xff] %v4122_v28  ;;  %v3103_v41 = vmul.u32 %v5869_v2, %v2078_v36  ;;  %v1056_v43 = vld [vmem:[%s5853_s23 + $0x1a70] sm:$0xff] }
 0x2da   : > { %v4124_v39 = vadd.s32 %v3100_v29, %v1051_v21  ;;  %v4125_v40 = vadd.s32 %v3101_v30, %v1052_v25  ;;  %v3104_v42 = vmul.u32 %v5869_v2, %v2079_v38  ;;  %v2080_v44 = vld [vmem:[%s5861_s6 + $0x1a70] sm:$0xff]  ;;  %v1057_v45 = vld [vmem:[%s5853_s23 + $0x1a78] sm:$0xff]  ;;  %v1058_v49 = vld [vmem:[%s5853_s23 + $0x1a80] sm:$0xff] }
 0x2db   : > { %5147 = vst [vmem:[%s5891_s24 + $0x1a40] sm:$0xff] %v4123_v34  ;;  %v4126_v46 = vadd.s32 %v3102_v35, %v1053_v31  ;;  %v3105_v47 = vmul.u32 %v5869_v2, %v2080_v44  ;;  %v2081_v48 = vld [vmem:[%s5861_s6 + $0x1a78] sm:$0xff]  ;;  %v2082_v50 = vld [vmem:[%s5861_s6 + $0x1a80] sm:$0xff]  ;;  %v4127_v51 = vadd.s32 %v3103_v41, %v1054_v33  ;;  %v1059_v55 = vld [vmem:[%s5853_s23 + $0x1a88] sm:$0xff] }
 0x2dc   : > { %5148 = vst [vmem:[%s5891_s24 + $0x1a48] sm:$0xff] %v4124_v39  ;;  %5149 = vst [vmem:[%s5891_s24 + $0x1a50] sm:$0xff] %v4125_v40  ;;  %v4128_v52 = vadd.s32 %v3104_v42, %v1055_v37  ;;  %v3106_v53 = vmul.u32 %v5869_v2, %v2081_v48  ;;  %v3107_v54 = vmul.u32 %v5869_v2, %v2082_v50  ;;  %v2083_v56 = vld [vmem:[%s5861_s6 + $0x1a88] sm:$0xff]  ;;  %v1060_v57 = vld [vmem:[%s5853_s23 + $0x1a90] sm:$0xff] }
 0x2dd   : > { %5150 = vst [vmem:[%s5891_s24 + $0x1a58] sm:$0xff] %v4126_v46  ;;  %v4129_v58 = vadd.s32 %v3105_v47, %v1056_v43  ;;  %v3108_v59 = vmul.u32 %v5869_v2, %v2083_v56  ;;  %v2084_v60 = vld [vmem:[%s5861_s6 + $0x1a90] sm:$0xff]  ;;  %v1061_v61 = vld [vmem:[%s5853_s23 + $0x1a98] sm:$0xff]  ;;  %5151 = vst [vmem:[%s5891_s24 + $0x1a60] sm:$0xff] %v4127_v51 }
 0x2de   : > { %v2085_v62 = vld [vmem:[%s5861_s6 + $0x1a98] sm:$0xff]  ;;  %5152 = vst [vmem:[%s5891_s24 + $0x1a68] sm:$0xff] %v4128_v52  ;;  %v4130_v63 = vadd.s32 %v3106_v53, %v1057_v45  ;;  %v4131_v0 = vadd.s32 %v3107_v54, %v1058_v49  ;;  %v3109_v1 = vmul.u32 %v5869_v2, %v2084_v60  ;;  %v1062_v4 = vld [vmem:[%s5853_s23 + $0x1aa0] sm:$0xff]  ;;  %v1063_v6 = vld [vmem:[%s5853_s23 + $0x1aa8] sm:$0xff] }
 0x2df   : > { %v3110_v3 = vmul.u32 %v5869_v2, %v2085_v62  ;;  %v2086_v5 = vld [vmem:[%s5861_s6 + $0x1aa0] sm:$0xff]  ;;  %5153 = vst [vmem:[%s5891_s24 + $0x1a70] sm:$0xff] %v4129_v58  ;;  %v4132_v7 = vadd.s32 %v3108_v59, %v1059_v55  ;;  %v2087_v9 = vld [vmem:[%s5861_s6 + $0x1aa8] sm:$0xff]  ;;  %v1064_v10 = vld [vmem:[%s5853_s23 + $0x1ab0] sm:$0xff] }
 0x2e0   : > { %v3111_v8 = vmul.u32 %v5869_v2, %v2086_v5  ;;  %v2088_v11 = vld [vmem:[%s5861_s6 + $0x1ab0] sm:$0xff]  ;;  %5154 = vst [vmem:[%s5891_s24 + $0x1a78] sm:$0xff] %v4130_v63  ;;  %5155 = vst [vmem:[%s5891_s24 + $0x1a80] sm:$0xff] %v4131_v0  ;;  %v4133_v12 = vadd.s32 %v3109_v1, %v1060_v57  ;;  %v3112_v14 = vmul.u32 %v5869_v2, %v2087_v9  ;;  %v1065_v16 = vld [vmem:[%s5853_s23 + $0x1ab8] sm:$0xff] }
 0x2e1   : > { %v4134_v13 = vadd.s32 %v3110_v3, %v1061_v61  ;;  %v3113_v15 = vmul.u32 %v5869_v2, %v2088_v11  ;;  %v2089_v17 = vld [vmem:[%s5861_s6 + $0x1ab8] sm:$0xff]  ;;  %v1066_v18 = vld [vmem:[%s5853_s23 + $0x1ac0] sm:$0xff]  ;;  %5156 = vst [vmem:[%s5891_s24 + $0x1a88] sm:$0xff] %v4132_v7  ;;  %v1067_v22 = vld [vmem:[%s5853_s23 + $0x1ac8] sm:$0xff] }
 0x2e2   : > { %v4135_v19 = vadd.s32 %v3111_v8, %v1062_v4  ;;  %v3114_v20 = vmul.u32 %v5869_v2, %v2089_v17  ;;  %v2090_v21 = vld [vmem:[%s5861_s6 + $0x1ac0] sm:$0xff]  ;;  %v2091_v23 = vld [vmem:[%s5861_s6 + $0x1ac8] sm:$0xff]  ;;  %5157 = vst [vmem:[%s5891_s24 + $0x1a90] sm:$0xff] %v4133_v12  ;;  %v4136_v24 = vadd.s32 %v3112_v14, %v1063_v6  ;;  %v1068_v28 = vld [vmem:[%s5853_s23 + $0x1ad0] sm:$0xff] }
 0x2e3   : > { %5158 = vst [vmem:[%s5891_s24 + $0x1a98] sm:$0xff] %v4134_v13  ;;  %v4137_v25 = vadd.s32 %v3113_v15, %v1064_v10  ;;  %v3115_v26 = vmul.u32 %v5869_v2, %v2090_v21  ;;  %v3116_v27 = vmul.u32 %v5869_v2, %v2091_v23  ;;  %v2092_v29 = vld [vmem:[%s5861_s6 + $0x1ad0] sm:$0xff]  ;;  %v1069_v30 = vld [vmem:[%s5853_s23 + $0x1ad8] sm:$0xff]  ;;  %v1070_v34 = vld [vmem:[%s5853_s23 + $0x1ae0] sm:$0xff] }
 0x2e4   : > { %5159 = vst [vmem:[%s5891_s24 + $0x1aa0] sm:$0xff] %v4135_v19  ;;  %v4138_v31 = vadd.s32 %v3114_v20, %v1065_v16  ;;  %v3117_v32 = vmul.u32 %v5869_v2, %v2092_v29  ;;  %v2093_v33 = vld [vmem:[%s5861_s6 + $0x1ad8] sm:$0xff]  ;;  %v2094_v35 = vld [vmem:[%s5861_s6 + $0x1ae0] sm:$0xff]  ;;  %5160 = vst [vmem:[%s5891_s24 + $0x1aa8] sm:$0xff] %v4136_v24 }
 0x2e5   : > { %5161 = vst [vmem:[%s5891_s24 + $0x1ab0] sm:$0xff] %v4137_v25  ;;  %v4139_v36 = vadd.s32 %v3115_v26, %v1066_v18  ;;  %v4140_v37 = vadd.s32 %v3116_v27, %v1067_v22  ;;  %v3118_v38 = vmul.u32 %v5869_v2, %v2093_v33  ;;  %v3119_v39 = vmul.u32 %v5869_v2, %v2094_v35  ;;  %v1071_v40 = vld [vmem:[%s5853_s23 + $0x1ae8] sm:$0xff]  ;;  %v1072_v42 = vld [vmem:[%s5853_s23 + $0x1af0] sm:$0xff]  ;;  %v1073_v46 = vld [vmem:[%s5853_s23 + $0x1af8] sm:$0xff] }
 0x2e6   : > { %v2095_v41 = vld [vmem:[%s5861_s6 + $0x1ae8] sm:$0xff]  ;;  %5162 = vst [vmem:[%s5891_s24 + $0x1ab8] sm:$0xff] %v4138_v31  ;;  %v4141_v43 = vadd.s32 %v3117_v32, %v1068_v28  ;;  %v2096_v45 = vld [vmem:[%s5861_s6 + $0x1af0] sm:$0xff]  ;;  %v2097_v47 = vld [vmem:[%s5861_s6 + $0x1af8] sm:$0xff] }
 0x2e7   : > { %v3120_v44 = vmul.u32 %v5869_v2, %v2095_v41  ;;  %5163 = vst [vmem:[%s5891_s24 + $0x1ac0] sm:$0xff] %v4139_v36  ;;  %5164 = vst [vmem:[%s5891_s24 + $0x1ac8] sm:$0xff] %v4140_v37  ;;  %v4142_v48 = vadd.s32 %v3118_v38, %v1069_v30  ;;  %v4143_v49 = vadd.s32 %v3119_v39, %v1070_v34  ;;  %v1074_v52 = vld [vmem:[%s5853_s23 + $0x1b00] sm:$0xff]  ;;  %v1075_v54 = vld [vmem:[%s5853_s23 + $0x1b08] sm:$0xff] }
 0x2e8   : > { %v3121_v50 = vmul.u32 %v5869_v2, %v2096_v45  ;;  %v3122_v51 = vmul.u32 %v5869_v2, %v2097_v47  ;;  %v2098_v53 = vld [vmem:[%s5861_s6 + $0x1b00] sm:$0xff]  ;;  %5165 = vst [vmem:[%s5891_s24 + $0x1ad0] sm:$0xff] %v4141_v43  ;;  %v2099_v57 = vld [vmem:[%s5861_s6 + $0x1b08] sm:$0xff]  ;;  %v1076_v58 = vld [vmem:[%s5853_s23 + $0x1b10] sm:$0xff] }
 0x2e9   : > { %v4144_v55 = vadd.s32 %v3120_v44, %v1071_v40  ;;  %v3123_v56 = vmul.u32 %v5869_v2, %v2098_v53  ;;  %v2100_v59 = vld [vmem:[%s5861_s6 + $0x1b10] sm:$0xff]  ;;  %5166 = vst [vmem:[%s5891_s24 + $0x1ad8] sm:$0xff] %v4142_v48  ;;  %5167 = vst [vmem:[%s5891_s24 + $0x1ae0] sm:$0xff] %v4143_v49  ;;  %v3124_v62 = vmul.u32 %v5869_v2, %v2099_v57  ;;  %v1077_v0 = vld [vmem:[%s5853_s23 + $0x1b18] sm:$0xff] }
 0x2ea   : > { %v4145_v60 = vadd.s32 %v3121_v50, %v1072_v42  ;;  %v4146_v61 = vadd.s32 %v3122_v51, %v1073_v46  ;;  %v3125_v63 = vmul.u32 %v5869_v2, %v2100_v59  ;;  %v2101_v1 = vld [vmem:[%s5861_s6 + $0x1b18] sm:$0xff]  ;;  %v1078_v3 = vld [vmem:[%s5853_s23 + $0x1b20] sm:$0xff]  ;;  %v1079_v7 = vld [vmem:[%s5853_s23 + $0x1b28] sm:$0xff] }
 0x2eb   : > { %5168 = vst [vmem:[%s5891_s24 + $0x1ae8] sm:$0xff] %v4144_v55  ;;  %v4147_v4 = vadd.s32 %v3123_v56, %v1074_v52  ;;  %v3126_v5 = vmul.u32 %v5869_v2, %v2101_v1  ;;  %v2102_v6 = vld [vmem:[%s5861_s6 + $0x1b20] sm:$0xff]  ;;  %v2103_v8 = vld [vmem:[%s5861_s6 + $0x1b28] sm:$0xff]  ;;  %v4148_v9 = vadd.s32 %v3124_v62, %v1075_v54  ;;  %v1080_v13 = vld [vmem:[%s5853_s23 + $0x1b30] sm:$0xff] }
 0x2ec   : > { %5169 = vst [vmem:[%s5891_s24 + $0x1af0] sm:$0xff] %v4145_v60  ;;  %5170 = vst [vmem:[%s5891_s24 + $0x1af8] sm:$0xff] %v4146_v61  ;;  %v4149_v10 = vadd.s32 %v3125_v63, %v1076_v58  ;;  %v3127_v11 = vmul.u32 %v5869_v2, %v2102_v6  ;;  %v3128_v12 = vmul.u32 %v5869_v2, %v2103_v8  ;;  %v2104_v14 = vld [vmem:[%s5861_s6 + $0x1b30] sm:$0xff]  ;;  %v1081_v15 = vld [vmem:[%s5853_s23 + $0x1b38] sm:$0xff] }
 0x2ed   : > { %5171 = vst [vmem:[%s5891_s24 + $0x1b00] sm:$0xff] %v4147_v4  ;;  %v4150_v16 = vadd.s32 %v3126_v5, %v1077_v0  ;;  %v3129_v17 = vmul.u32 %v5869_v2, %v2104_v14  ;;  %v2105_v18 = vld [vmem:[%s5861_s6 + $0x1b38] sm:$0xff]  ;;  %v1082_v19 = vld [vmem:[%s5853_s23 + $0x1b40] sm:$0xff]  ;;  %5172 = vst [vmem:[%s5891_s24 + $0x1b08] sm:$0xff] %v4148_v9 }
 0x2ee   : > { %v2106_v20 = vld [vmem:[%s5861_s6 + $0x1b40] sm:$0xff]  ;;  %5173 = vst [vmem:[%s5891_s24 + $0x1b10] sm:$0xff] %v4149_v10  ;;  %v4151_v21 = vadd.s32 %v3127_v11, %v1078_v3  ;;  %v4152_v22 = vadd.s32 %v3128_v12, %v1079_v7  ;;  %v3130_v23 = vmul.u32 %v5869_v2, %v2105_v18  ;;  %v1083_v25 = vld [vmem:[%s5853_s23 + $0x1b48] sm:$0xff]  ;;  %v1084_v27 = vld [vmem:[%s5853_s23 + $0x1b50] sm:$0xff] }
 0x2ef   : > { %v3131_v24 = vmul.u32 %v5869_v2, %v2106_v20  ;;  %v2107_v26 = vld [vmem:[%s5861_s6 + $0x1b48] sm:$0xff]  ;;  %5174 = vst [vmem:[%s5891_s24 + $0x1b18] sm:$0xff] %v4150_v16  ;;  %v4153_v28 = vadd.s32 %v3129_v17, %v1080_v13  ;;  %v2108_v30 = vld [vmem:[%s5861_s6 + $0x1b50] sm:$0xff]  ;;  %v1085_v31 = vld [vmem:[%s5853_s23 + $0x1b58] sm:$0xff] }
 0x2f0   : > { %v3132_v29 = vmul.u32 %v5869_v2, %v2107_v26  ;;  %v2109_v32 = vld [vmem:[%s5861_s6 + $0x1b58] sm:$0xff]  ;;  %5175 = vst [vmem:[%s5891_s24 + $0x1b20] sm:$0xff] %v4151_v21  ;;  %5176 = vst [vmem:[%s5891_s24 + $0x1b28] sm:$0xff] %v4152_v22  ;;  %v4154_v33 = vadd.s32 %v3130_v23, %v1081_v15  ;;  %v3133_v35 = vmul.u32 %v5869_v2, %v2108_v30  ;;  %v1086_v37 = vld [vmem:[%s5853_s23 + $0x1b60] sm:$0xff] }
 0x2f1   : > { %v4155_v34 = vadd.s32 %v3131_v24, %v1082_v19  ;;  %v3134_v36 = vmul.u32 %v5869_v2, %v2109_v32  ;;  %v2110_v38 = vld [vmem:[%s5861_s6 + $0x1b60] sm:$0xff]  ;;  %v1087_v39 = vld [vmem:[%s5853_s23 + $0x1b68] sm:$0xff]  ;;  %5177 = vst [vmem:[%s5891_s24 + $0x1b30] sm:$0xff] %v4153_v28  ;;  %v1088_v43 = vld [vmem:[%s5853_s23 + $0x1b70] sm:$0xff] }
 0x2f2   : > { %v4156_v40 = vadd.s32 %v3132_v29, %v1083_v25  ;;  %v3135_v41 = vmul.u32 %v5869_v2, %v2110_v38  ;;  %v2111_v42 = vld [vmem:[%s5861_s6 + $0x1b68] sm:$0xff]  ;;  %v2112_v44 = vld [vmem:[%s5861_s6 + $0x1b70] sm:$0xff]  ;;  %5178 = vst [vmem:[%s5891_s24 + $0x1b38] sm:$0xff] %v4154_v33  ;;  %v4157_v45 = vadd.s32 %v3133_v35, %v1084_v27  ;;  %v1089_v49 = vld [vmem:[%s5853_s23 + $0x1b78] sm:$0xff] }
 0x2f3   : > { %5179 = vst [vmem:[%s5891_s24 + $0x1b40] sm:$0xff] %v4155_v34  ;;  %v4158_v46 = vadd.s32 %v3134_v36, %v1085_v31  ;;  %v3136_v47 = vmul.u32 %v5869_v2, %v2111_v42  ;;  %v3137_v48 = vmul.u32 %v5869_v2, %v2112_v44  ;;  %v2113_v50 = vld [vmem:[%s5861_s6 + $0x1b78] sm:$0xff]  ;;  %v1090_v51 = vld [vmem:[%s5853_s23 + $0x1b80] sm:$0xff]  ;;  %v1091_v55 = vld [vmem:[%s5853_s23 + $0x1b88] sm:$0xff] }
 0x2f4   : > { %5180 = vst [vmem:[%s5891_s24 + $0x1b48] sm:$0xff] %v4156_v40  ;;  %v4159_v52 = vadd.s32 %v3135_v41, %v1086_v37  ;;  %v3138_v53 = vmul.u32 %v5869_v2, %v2113_v50  ;;  %v2114_v54 = vld [vmem:[%s5861_s6 + $0x1b80] sm:$0xff]  ;;  %v2115_v56 = vld [vmem:[%s5861_s6 + $0x1b88] sm:$0xff]  ;;  %5181 = vst [vmem:[%s5891_s24 + $0x1b50] sm:$0xff] %v4157_v45 }
 0x2f5   : > { %5182 = vst [vmem:[%s5891_s24 + $0x1b58] sm:$0xff] %v4158_v46  ;;  %v4160_v57 = vadd.s32 %v3136_v47, %v1087_v39  ;;  %v4161_v58 = vadd.s32 %v3137_v48, %v1088_v43  ;;  %v3139_v59 = vmul.u32 %v5869_v2, %v2114_v54  ;;  %v3140_v60 = vmul.u32 %v5869_v2, %v2115_v56  ;;  %v1092_v61 = vld [vmem:[%s5853_s23 + $0x1b90] sm:$0xff]  ;;  %v1093_v63 = vld [vmem:[%s5853_s23 + $0x1b98] sm:$0xff]  ;;  %v1094_v4 = vld [vmem:[%s5853_s23 + $0x1ba0] sm:$0xff] }
 0x2f6   : > { %v2116_v62 = vld [vmem:[%s5861_s6 + $0x1b90] sm:$0xff]  ;;  %5183 = vst [vmem:[%s5891_s24 + $0x1b60] sm:$0xff] %v4159_v52  ;;  %v4162_v0 = vadd.s32 %v3138_v53, %v1089_v49  ;;  %v2117_v3 = vld [vmem:[%s5861_s6 + $0x1b98] sm:$0xff]  ;;  %v2118_v5 = vld [vmem:[%s5861_s6 + $0x1ba0] sm:$0xff] }
 0x2f7   : > { %v3141_v1 = vmul.u32 %v5869_v2, %v2116_v62  ;;  %5184 = vst [vmem:[%s5891_s24 + $0x1b68] sm:$0xff] %v4160_v57  ;;  %5185 = vst [vmem:[%s5891_s24 + $0x1b70] sm:$0xff] %v4161_v58  ;;  %v4163_v6 = vadd.s32 %v3139_v59, %v1090_v51  ;;  %v4164_v7 = vadd.s32 %v3140_v60, %v1091_v55  ;;  %v1095_v10 = vld [vmem:[%s5853_s23 + $0x1ba8] sm:$0xff]  ;;  %v1096_v12 = vld [vmem:[%s5853_s23 + $0x1bb0] sm:$0xff] }
 0x2f8   : > { %v3142_v8 = vmul.u32 %v5869_v2, %v2117_v3  ;;  %v3143_v9 = vmul.u32 %v5869_v2, %v2118_v5  ;;  %v2119_v11 = vld [vmem:[%s5861_s6 + $0x1ba8] sm:$0xff]  ;;  %5186 = vst [vmem:[%s5891_s24 + $0x1b78] sm:$0xff] %v4162_v0  ;;  %v2120_v15 = vld [vmem:[%s5861_s6 + $0x1bb0] sm:$0xff]  ;;  %v1097_v16 = vld [vmem:[%s5853_s23 + $0x1bb8] sm:$0xff] }
 0x2f9   : > { %v4165_v13 = vadd.s32 %v3141_v1, %v1092_v61  ;;  %v3144_v14 = vmul.u32 %v5869_v2, %v2119_v11  ;;  %v2121_v17 = vld [vmem:[%s5861_s6 + $0x1bb8] sm:$0xff]  ;;  %5187 = vst [vmem:[%s5891_s24 + $0x1b80] sm:$0xff] %v4163_v6  ;;  %5188 = vst [vmem:[%s5891_s24 + $0x1b88] sm:$0xff] %v4164_v7  ;;  %v3145_v20 = vmul.u32 %v5869_v2, %v2120_v15  ;;  %v1098_v22 = vld [vmem:[%s5853_s23 + $0x1bc0] sm:$0xff] }
 0x2fa   : > { %v4166_v18 = vadd.s32 %v3142_v8, %v1093_v63  ;;  %v4167_v19 = vadd.s32 %v3143_v9, %v1094_v4  ;;  %v3146_v21 = vmul.u32 %v5869_v2, %v2121_v17  ;;  %v2122_v23 = vld [vmem:[%s5861_s6 + $0x1bc0] sm:$0xff]  ;;  %v1099_v24 = vld [vmem:[%s5853_s23 + $0x1bc8] sm:$0xff]  ;;  %v1100_v28 = vld [vmem:[%s5853_s23 + $0x1bd0] sm:$0xff] }
 0x2fb   : > { %5189 = vst [vmem:[%s5891_s24 + $0x1b90] sm:$0xff] %v4165_v13  ;;  %v4168_v25 = vadd.s32 %v3144_v14, %v1095_v10  ;;  %v3147_v26 = vmul.u32 %v5869_v2, %v2122_v23  ;;  %v2123_v27 = vld [vmem:[%s5861_s6 + $0x1bc8] sm:$0xff]  ;;  %v2124_v29 = vld [vmem:[%s5861_s6 + $0x1bd0] sm:$0xff]  ;;  %v4169_v30 = vadd.s32 %v3145_v20, %v1096_v12  ;;  %v1101_v34 = vld [vmem:[%s5853_s23 + $0x1bd8] sm:$0xff] }
 0x2fc   : > { %5190 = vst [vmem:[%s5891_s24 + $0x1b98] sm:$0xff] %v4166_v18  ;;  %5191 = vst [vmem:[%s5891_s24 + $0x1ba0] sm:$0xff] %v4167_v19  ;;  %v4170_v31 = vadd.s32 %v3146_v21, %v1097_v16  ;;  %v3148_v32 = vmul.u32 %v5869_v2, %v2123_v27  ;;  %v3149_v33 = vmul.u32 %v5869_v2, %v2124_v29  ;;  %v2125_v35 = vld [vmem:[%s5861_s6 + $0x1bd8] sm:$0xff]  ;;  %v1102_v36 = vld [vmem:[%s5853_s23 + $0x1be0] sm:$0xff] }
 0x2fd   : > { %5192 = vst [vmem:[%s5891_s24 + $0x1ba8] sm:$0xff] %v4168_v25  ;;  %v4171_v37 = vadd.s32 %v3147_v26, %v1098_v22  ;;  %v3150_v38 = vmul.u32 %v5869_v2, %v2125_v35  ;;  %v2126_v39 = vld [vmem:[%s5861_s6 + $0x1be0] sm:$0xff]  ;;  %v1103_v40 = vld [vmem:[%s5853_s23 + $0x1be8] sm:$0xff]  ;;  %5193 = vst [vmem:[%s5891_s24 + $0x1bb0] sm:$0xff] %v4169_v30 }
 0x2fe   : > { %v2127_v41 = vld [vmem:[%s5861_s6 + $0x1be8] sm:$0xff]  ;;  %5194 = vst [vmem:[%s5891_s24 + $0x1bb8] sm:$0xff] %v4170_v31  ;;  %v4172_v42 = vadd.s32 %v3148_v32, %v1099_v24  ;;  %v4173_v43 = vadd.s32 %v3149_v33, %v1100_v28  ;;  %v3151_v44 = vmul.u32 %v5869_v2, %v2126_v39  ;;  %v1104_v46 = vld [vmem:[%s5853_s23 + $0x1bf0] sm:$0xff]  ;;  %v1105_v48 = vld [vmem:[%s5853_s23 + $0x1bf8] sm:$0xff] }
 0x2ff   : > { %v3152_v45 = vmul.u32 %v5869_v2, %v2127_v41  ;;  %v2128_v47 = vld [vmem:[%s5861_s6 + $0x1bf0] sm:$0xff]  ;;  %5195 = vst [vmem:[%s5891_s24 + $0x1bc0] sm:$0xff] %v4171_v37  ;;  %v4174_v49 = vadd.s32 %v3150_v38, %v1101_v34  ;;  %v2129_v51 = vld [vmem:[%s5861_s6 + $0x1bf8] sm:$0xff]  ;;  %v1106_v52 = vld [vmem:[%s5853_s23 + $0x1c00] sm:$0xff] }
 0x300   : > { %v3153_v50 = vmul.u32 %v5869_v2, %v2128_v47  ;;  %v2130_v53 = vld [vmem:[%s5861_s6 + $0x1c00] sm:$0xff]  ;;  %5196 = vst [vmem:[%s5891_s24 + $0x1bc8] sm:$0xff] %v4172_v42  ;;  %5197 = vst [vmem:[%s5891_s24 + $0x1bd0] sm:$0xff] %v4173_v43  ;;  %v4175_v54 = vadd.s32 %v3151_v44, %v1102_v36  ;;  %v3154_v56 = vmul.u32 %v5869_v2, %v2129_v51  ;;  %v1107_v58 = vld [vmem:[%s5853_s23 + $0x1c08] sm:$0xff] }
 0x301   : > { %v4176_v55 = vadd.s32 %v3152_v45, %v1103_v40  ;;  %v3155_v57 = vmul.u32 %v5869_v2, %v2130_v53  ;;  %v2131_v59 = vld [vmem:[%s5861_s6 + $0x1c08] sm:$0xff]  ;;  %v1108_v60 = vld [vmem:[%s5853_s23 + $0x1c10] sm:$0xff]  ;;  %5198 = vst [vmem:[%s5891_s24 + $0x1bd8] sm:$0xff] %v4174_v49  ;;  %v1109_v0 = vld [vmem:[%s5853_s23 + $0x1c18] sm:$0xff] }
 0x302   : > { %v4177_v61 = vadd.s32 %v3153_v50, %v1104_v46  ;;  %v3156_v62 = vmul.u32 %v5869_v2, %v2131_v59  ;;  %v2132_v63 = vld [vmem:[%s5861_s6 + $0x1c10] sm:$0xff]  ;;  %v2133_v1 = vld [vmem:[%s5861_s6 + $0x1c18] sm:$0xff]  ;;  %5199 = vst [vmem:[%s5891_s24 + $0x1be0] sm:$0xff] %v4175_v54  ;;  %v4178_v3 = vadd.s32 %v3154_v56, %v1105_v48  ;;  %v1110_v7 = vld [vmem:[%s5853_s23 + $0x1c20] sm:$0xff] }
 0x303   : > { %5200 = vst [vmem:[%s5891_s24 + $0x1be8] sm:$0xff] %v4176_v55  ;;  %v4179_v4 = vadd.s32 %v3155_v57, %v1106_v52  ;;  %v3157_v5 = vmul.u32 %v5869_v2, %v2132_v63  ;;  %v3158_v6 = vmul.u32 %v5869_v2, %v2133_v1  ;;  %v2134_v8 = vld [vmem:[%s5861_s6 + $0x1c20] sm:$0xff]  ;;  %v1111_v9 = vld [vmem:[%s5853_s23 + $0x1c28] sm:$0xff]  ;;  %v1112_v13 = vld [vmem:[%s5853_s23 + $0x1c30] sm:$0xff] }
 0x304   : > { %5201 = vst [vmem:[%s5891_s24 + $0x1bf0] sm:$0xff] %v4177_v61  ;;  %v4180_v10 = vadd.s32 %v3156_v62, %v1107_v58  ;;  %v3159_v11 = vmul.u32 %v5869_v2, %v2134_v8  ;;  %v2135_v12 = vld [vmem:[%s5861_s6 + $0x1c28] sm:$0xff]  ;;  %v2136_v14 = vld [vmem:[%s5861_s6 + $0x1c30] sm:$0xff]  ;;  %5202 = vst [vmem:[%s5891_s24 + $0x1bf8] sm:$0xff] %v4178_v3 }
 0x305   : > { %5203 = vst [vmem:[%s5891_s24 + $0x1c00] sm:$0xff] %v4179_v4  ;;  %v4181_v15 = vadd.s32 %v3157_v5, %v1108_v60  ;;  %v4182_v16 = vadd.s32 %v3158_v6, %v1109_v0  ;;  %v3160_v17 = vmul.u32 %v5869_v2, %v2135_v12  ;;  %v3161_v18 = vmul.u32 %v5869_v2, %v2136_v14  ;;  %v1113_v19 = vld [vmem:[%s5853_s23 + $0x1c38] sm:$0xff]  ;;  %v1114_v21 = vld [vmem:[%s5853_s23 + $0x1c40] sm:$0xff]  ;;  %v1115_v25 = vld [vmem:[%s5853_s23 + $0x1c48] sm:$0xff] }
 0x306   : > { %v2137_v20 = vld [vmem:[%s5861_s6 + $0x1c38] sm:$0xff]  ;;  %5204 = vst [vmem:[%s5891_s24 + $0x1c08] sm:$0xff] %v4180_v10  ;;  %v4183_v22 = vadd.s32 %v3159_v11, %v1110_v7  ;;  %v2138_v24 = vld [vmem:[%s5861_s6 + $0x1c40] sm:$0xff]  ;;  %v2139_v26 = vld [vmem:[%s5861_s6 + $0x1c48] sm:$0xff] }
 0x307   : > { %v3162_v23 = vmul.u32 %v5869_v2, %v2137_v20  ;;  %5205 = vst [vmem:[%s5891_s24 + $0x1c10] sm:$0xff] %v4181_v15  ;;  %5206 = vst [vmem:[%s5891_s24 + $0x1c18] sm:$0xff] %v4182_v16  ;;  %v4184_v27 = vadd.s32 %v3160_v17, %v1111_v9  ;;  %v4185_v28 = vadd.s32 %v3161_v18, %v1112_v13  ;;  %v1116_v31 = vld [vmem:[%s5853_s23 + $0x1c50] sm:$0xff]  ;;  %v1117_v33 = vld [vmem:[%s5853_s23 + $0x1c58] sm:$0xff] }
 0x308   : > { %v3163_v29 = vmul.u32 %v5869_v2, %v2138_v24  ;;  %v3164_v30 = vmul.u32 %v5869_v2, %v2139_v26  ;;  %v2140_v32 = vld [vmem:[%s5861_s6 + $0x1c50] sm:$0xff]  ;;  %5207 = vst [vmem:[%s5891_s24 + $0x1c20] sm:$0xff] %v4183_v22  ;;  %v2141_v36 = vld [vmem:[%s5861_s6 + $0x1c58] sm:$0xff]  ;;  %v1118_v37 = vld [vmem:[%s5853_s23 + $0x1c60] sm:$0xff] }
 0x309   : > { %v4186_v34 = vadd.s32 %v3162_v23, %v1113_v19  ;;  %v3165_v35 = vmul.u32 %v5869_v2, %v2140_v32  ;;  %v2142_v38 = vld [vmem:[%s5861_s6 + $0x1c60] sm:$0xff]  ;;  %5208 = vst [vmem:[%s5891_s24 + $0x1c28] sm:$0xff] %v4184_v27  ;;  %5209 = vst [vmem:[%s5891_s24 + $0x1c30] sm:$0xff] %v4185_v28  ;;  %v3166_v41 = vmul.u32 %v5869_v2, %v2141_v36  ;;  %v1119_v43 = vld [vmem:[%s5853_s23 + $0x1c68] sm:$0xff] }
 0x30a   : > { %v4187_v39 = vadd.s32 %v3163_v29, %v1114_v21  ;;  %v4188_v40 = vadd.s32 %v3164_v30, %v1115_v25  ;;  %v3167_v42 = vmul.u32 %v5869_v2, %v2142_v38  ;;  %v2143_v44 = vld [vmem:[%s5861_s6 + $0x1c68] sm:$0xff]  ;;  %v1120_v45 = vld [vmem:[%s5853_s23 + $0x1c70] sm:$0xff]  ;;  %v1121_v49 = vld [vmem:[%s5853_s23 + $0x1c78] sm:$0xff] }
 0x30b   : > { %5210 = vst [vmem:[%s5891_s24 + $0x1c38] sm:$0xff] %v4186_v34  ;;  %v4189_v46 = vadd.s32 %v3165_v35, %v1116_v31  ;;  %v3168_v47 = vmul.u32 %v5869_v2, %v2143_v44  ;;  %v2144_v48 = vld [vmem:[%s5861_s6 + $0x1c70] sm:$0xff]  ;;  %v2145_v50 = vld [vmem:[%s5861_s6 + $0x1c78] sm:$0xff]  ;;  %v4190_v51 = vadd.s32 %v3166_v41, %v1117_v33  ;;  %v1122_v55 = vld [vmem:[%s5853_s23 + $0x1c80] sm:$0xff] }
 0x30c   : > { %5211 = vst [vmem:[%s5891_s24 + $0x1c40] sm:$0xff] %v4187_v39  ;;  %5212 = vst [vmem:[%s5891_s24 + $0x1c48] sm:$0xff] %v4188_v40  ;;  %v4191_v52 = vadd.s32 %v3167_v42, %v1118_v37  ;;  %v3169_v53 = vmul.u32 %v5869_v2, %v2144_v48  ;;  %v3170_v54 = vmul.u32 %v5869_v2, %v2145_v50  ;;  %v2146_v56 = vld [vmem:[%s5861_s6 + $0x1c80] sm:$0xff]  ;;  %v1123_v57 = vld [vmem:[%s5853_s23 + $0x1c88] sm:$0xff] }
 0x30d   : > { %5213 = vst [vmem:[%s5891_s24 + $0x1c50] sm:$0xff] %v4189_v46  ;;  %v4192_v58 = vadd.s32 %v3168_v47, %v1119_v43  ;;  %v3171_v59 = vmul.u32 %v5869_v2, %v2146_v56  ;;  %v2147_v60 = vld [vmem:[%s5861_s6 + $0x1c88] sm:$0xff]  ;;  %v1124_v61 = vld [vmem:[%s5853_s23 + $0x1c90] sm:$0xff]  ;;  %5214 = vst [vmem:[%s5891_s24 + $0x1c58] sm:$0xff] %v4190_v51 }
 0x30e   : > { %v2148_v62 = vld [vmem:[%s5861_s6 + $0x1c90] sm:$0xff]  ;;  %5215 = vst [vmem:[%s5891_s24 + $0x1c60] sm:$0xff] %v4191_v52  ;;  %v4193_v63 = vadd.s32 %v3169_v53, %v1120_v45  ;;  %v4194_v0 = vadd.s32 %v3170_v54, %v1121_v49  ;;  %v3172_v1 = vmul.u32 %v5869_v2, %v2147_v60  ;;  %v1125_v4 = vld [vmem:[%s5853_s23 + $0x1c98] sm:$0xff]  ;;  %v1126_v6 = vld [vmem:[%s5853_s23 + $0x1ca0] sm:$0xff] }
 0x30f   : > { %v3173_v3 = vmul.u32 %v5869_v2, %v2148_v62  ;;  %v2149_v5 = vld [vmem:[%s5861_s6 + $0x1c98] sm:$0xff]  ;;  %5216 = vst [vmem:[%s5891_s24 + $0x1c68] sm:$0xff] %v4192_v58  ;;  %v4195_v7 = vadd.s32 %v3171_v59, %v1122_v55  ;;  %v2150_v9 = vld [vmem:[%s5861_s6 + $0x1ca0] sm:$0xff]  ;;  %v1127_v10 = vld [vmem:[%s5853_s23 + $0x1ca8] sm:$0xff] }
 0x310   : > { %v3174_v8 = vmul.u32 %v5869_v2, %v2149_v5  ;;  %v2151_v11 = vld [vmem:[%s5861_s6 + $0x1ca8] sm:$0xff]  ;;  %5217 = vst [vmem:[%s5891_s24 + $0x1c70] sm:$0xff] %v4193_v63  ;;  %5218 = vst [vmem:[%s5891_s24 + $0x1c78] sm:$0xff] %v4194_v0  ;;  %v4196_v12 = vadd.s32 %v3172_v1, %v1123_v57  ;;  %v3175_v14 = vmul.u32 %v5869_v2, %v2150_v9  ;;  %v1128_v16 = vld [vmem:[%s5853_s23 + $0x1cb0] sm:$0xff] }
 0x311   : > { %v4197_v13 = vadd.s32 %v3173_v3, %v1124_v61  ;;  %v3176_v15 = vmul.u32 %v5869_v2, %v2151_v11  ;;  %v2152_v17 = vld [vmem:[%s5861_s6 + $0x1cb0] sm:$0xff]  ;;  %v1129_v18 = vld [vmem:[%s5853_s23 + $0x1cb8] sm:$0xff]  ;;  %5219 = vst [vmem:[%s5891_s24 + $0x1c80] sm:$0xff] %v4195_v7  ;;  %v1130_v22 = vld [vmem:[%s5853_s23 + $0x1cc0] sm:$0xff] }
 0x312   : > { %v4198_v19 = vadd.s32 %v3174_v8, %v1125_v4  ;;  %v3177_v20 = vmul.u32 %v5869_v2, %v2152_v17  ;;  %v2153_v21 = vld [vmem:[%s5861_s6 + $0x1cb8] sm:$0xff]  ;;  %v2154_v23 = vld [vmem:[%s5861_s6 + $0x1cc0] sm:$0xff]  ;;  %5220 = vst [vmem:[%s5891_s24 + $0x1c88] sm:$0xff] %v4196_v12  ;;  %v4199_v24 = vadd.s32 %v3175_v14, %v1126_v6  ;;  %v1131_v28 = vld [vmem:[%s5853_s23 + $0x1cc8] sm:$0xff] }
 0x313   : > { %5221 = vst [vmem:[%s5891_s24 + $0x1c90] sm:$0xff] %v4197_v13  ;;  %v4200_v25 = vadd.s32 %v3176_v15, %v1127_v10  ;;  %v3178_v26 = vmul.u32 %v5869_v2, %v2153_v21  ;;  %v3179_v27 = vmul.u32 %v5869_v2, %v2154_v23  ;;  %v2155_v29 = vld [vmem:[%s5861_s6 + $0x1cc8] sm:$0xff]  ;;  %v1132_v30 = vld [vmem:[%s5853_s23 + $0x1cd0] sm:$0xff]  ;;  %v1133_v34 = vld [vmem:[%s5853_s23 + $0x1cd8] sm:$0xff] }
 0x314   : > { %5222 = vst [vmem:[%s5891_s24 + $0x1c98] sm:$0xff] %v4198_v19  ;;  %v4201_v31 = vadd.s32 %v3177_v20, %v1128_v16  ;;  %v3180_v32 = vmul.u32 %v5869_v2, %v2155_v29  ;;  %v2156_v33 = vld [vmem:[%s5861_s6 + $0x1cd0] sm:$0xff]  ;;  %v2157_v35 = vld [vmem:[%s5861_s6 + $0x1cd8] sm:$0xff]  ;;  %5223 = vst [vmem:[%s5891_s24 + $0x1ca0] sm:$0xff] %v4199_v24 }
 0x315   : > { %5224 = vst [vmem:[%s5891_s24 + $0x1ca8] sm:$0xff] %v4200_v25  ;;  %v4202_v36 = vadd.s32 %v3178_v26, %v1129_v18  ;;  %v4203_v37 = vadd.s32 %v3179_v27, %v1130_v22  ;;  %v3181_v38 = vmul.u32 %v5869_v2, %v2156_v33  ;;  %v3182_v39 = vmul.u32 %v5869_v2, %v2157_v35  ;;  %v1134_v40 = vld [vmem:[%s5853_s23 + $0x1ce0] sm:$0xff]  ;;  %v1135_v42 = vld [vmem:[%s5853_s23 + $0x1ce8] sm:$0xff]  ;;  %v1136_v46 = vld [vmem:[%s5853_s23 + $0x1cf0] sm:$0xff] }
 0x316   : > { %v2158_v41 = vld [vmem:[%s5861_s6 + $0x1ce0] sm:$0xff]  ;;  %5225 = vst [vmem:[%s5891_s24 + $0x1cb0] sm:$0xff] %v4201_v31  ;;  %v4204_v43 = vadd.s32 %v3180_v32, %v1131_v28  ;;  %v2159_v45 = vld [vmem:[%s5861_s6 + $0x1ce8] sm:$0xff]  ;;  %v2160_v47 = vld [vmem:[%s5861_s6 + $0x1cf0] sm:$0xff] }
 0x317   : > { %v3183_v44 = vmul.u32 %v5869_v2, %v2158_v41  ;;  %5226 = vst [vmem:[%s5891_s24 + $0x1cb8] sm:$0xff] %v4202_v36  ;;  %5227 = vst [vmem:[%s5891_s24 + $0x1cc0] sm:$0xff] %v4203_v37  ;;  %v4205_v48 = vadd.s32 %v3181_v38, %v1132_v30  ;;  %v4206_v49 = vadd.s32 %v3182_v39, %v1133_v34  ;;  %v1137_v52 = vld [vmem:[%s5853_s23 + $0x1cf8] sm:$0xff]  ;;  %v1138_v54 = vld [vmem:[%s5853_s23 + $0x1d00] sm:$0xff] }
 0x318   : > { %v3184_v50 = vmul.u32 %v5869_v2, %v2159_v45  ;;  %v3185_v51 = vmul.u32 %v5869_v2, %v2160_v47  ;;  %v2161_v53 = vld [vmem:[%s5861_s6 + $0x1cf8] sm:$0xff]  ;;  %5228 = vst [vmem:[%s5891_s24 + $0x1cc8] sm:$0xff] %v4204_v43  ;;  %v2162_v57 = vld [vmem:[%s5861_s6 + $0x1d00] sm:$0xff]  ;;  %v1139_v58 = vld [vmem:[%s5853_s23 + $0x1d08] sm:$0xff] }
 0x319   : > { %v4207_v55 = vadd.s32 %v3183_v44, %v1134_v40  ;;  %v3186_v56 = vmul.u32 %v5869_v2, %v2161_v53  ;;  %v2163_v59 = vld [vmem:[%s5861_s6 + $0x1d08] sm:$0xff]  ;;  %5229 = vst [vmem:[%s5891_s24 + $0x1cd0] sm:$0xff] %v4205_v48  ;;  %5230 = vst [vmem:[%s5891_s24 + $0x1cd8] sm:$0xff] %v4206_v49  ;;  %v3187_v62 = vmul.u32 %v5869_v2, %v2162_v57  ;;  %v1140_v0 = vld [vmem:[%s5853_s23 + $0x1d10] sm:$0xff] }
 0x31a   : > { %v4208_v60 = vadd.s32 %v3184_v50, %v1135_v42  ;;  %v4209_v61 = vadd.s32 %v3185_v51, %v1136_v46  ;;  %v3188_v63 = vmul.u32 %v5869_v2, %v2163_v59  ;;  %v2164_v1 = vld [vmem:[%s5861_s6 + $0x1d10] sm:$0xff]  ;;  %v1141_v3 = vld [vmem:[%s5853_s23 + $0x1d18] sm:$0xff]  ;;  %v1142_v7 = vld [vmem:[%s5853_s23 + $0x1d20] sm:$0xff] }
 0x31b   : > { %5231 = vst [vmem:[%s5891_s24 + $0x1ce0] sm:$0xff] %v4207_v55  ;;  %v4210_v4 = vadd.s32 %v3186_v56, %v1137_v52  ;;  %v3189_v5 = vmul.u32 %v5869_v2, %v2164_v1  ;;  %v2165_v6 = vld [vmem:[%s5861_s6 + $0x1d18] sm:$0xff]  ;;  %v2166_v8 = vld [vmem:[%s5861_s6 + $0x1d20] sm:$0xff]  ;;  %v4211_v9 = vadd.s32 %v3187_v62, %v1138_v54  ;;  %v1143_v13 = vld [vmem:[%s5853_s23 + $0x1d28] sm:$0xff] }
 0x31c   : > { %5232 = vst [vmem:[%s5891_s24 + $0x1ce8] sm:$0xff] %v4208_v60  ;;  %5233 = vst [vmem:[%s5891_s24 + $0x1cf0] sm:$0xff] %v4209_v61  ;;  %v4212_v10 = vadd.s32 %v3188_v63, %v1139_v58  ;;  %v3190_v11 = vmul.u32 %v5869_v2, %v2165_v6  ;;  %v3191_v12 = vmul.u32 %v5869_v2, %v2166_v8  ;;  %v2167_v14 = vld [vmem:[%s5861_s6 + $0x1d28] sm:$0xff]  ;;  %v1144_v15 = vld [vmem:[%s5853_s23 + $0x1d30] sm:$0xff] }
 0x31d   : > { %5234 = vst [vmem:[%s5891_s24 + $0x1cf8] sm:$0xff] %v4210_v4  ;;  %v4213_v16 = vadd.s32 %v3189_v5, %v1140_v0  ;;  %v3192_v17 = vmul.u32 %v5869_v2, %v2167_v14  ;;  %v2168_v18 = vld [vmem:[%s5861_s6 + $0x1d30] sm:$0xff]  ;;  %v1145_v19 = vld [vmem:[%s5853_s23 + $0x1d38] sm:$0xff]  ;;  %5235 = vst [vmem:[%s5891_s24 + $0x1d00] sm:$0xff] %v4211_v9 }
 0x31e   : > { %v2169_v20 = vld [vmem:[%s5861_s6 + $0x1d38] sm:$0xff]  ;;  %5236 = vst [vmem:[%s5891_s24 + $0x1d08] sm:$0xff] %v4212_v10  ;;  %v4214_v21 = vadd.s32 %v3190_v11, %v1141_v3  ;;  %v4215_v22 = vadd.s32 %v3191_v12, %v1142_v7  ;;  %v3193_v23 = vmul.u32 %v5869_v2, %v2168_v18  ;;  %v1146_v25 = vld [vmem:[%s5853_s23 + $0x1d40] sm:$0xff]  ;;  %v1147_v27 = vld [vmem:[%s5853_s23 + $0x1d48] sm:$0xff] }
 0x31f   : > { %v3194_v24 = vmul.u32 %v5869_v2, %v2169_v20  ;;  %v2170_v26 = vld [vmem:[%s5861_s6 + $0x1d40] sm:$0xff]  ;;  %5237 = vst [vmem:[%s5891_s24 + $0x1d10] sm:$0xff] %v4213_v16  ;;  %v4216_v28 = vadd.s32 %v3192_v17, %v1143_v13  ;;  %v2171_v30 = vld [vmem:[%s5861_s6 + $0x1d48] sm:$0xff]  ;;  %v1148_v31 = vld [vmem:[%s5853_s23 + $0x1d50] sm:$0xff] }
 0x320   : > { %v3195_v29 = vmul.u32 %v5869_v2, %v2170_v26  ;;  %v2172_v32 = vld [vmem:[%s5861_s6 + $0x1d50] sm:$0xff]  ;;  %5238 = vst [vmem:[%s5891_s24 + $0x1d18] sm:$0xff] %v4214_v21  ;;  %5239 = vst [vmem:[%s5891_s24 + $0x1d20] sm:$0xff] %v4215_v22  ;;  %v4217_v33 = vadd.s32 %v3193_v23, %v1144_v15  ;;  %v3196_v35 = vmul.u32 %v5869_v2, %v2171_v30  ;;  %v1149_v37 = vld [vmem:[%s5853_s23 + $0x1d58] sm:$0xff] }
 0x321   : > { %v4218_v34 = vadd.s32 %v3194_v24, %v1145_v19  ;;  %v3197_v36 = vmul.u32 %v5869_v2, %v2172_v32  ;;  %v2173_v38 = vld [vmem:[%s5861_s6 + $0x1d58] sm:$0xff]  ;;  %v1150_v39 = vld [vmem:[%s5853_s23 + $0x1d60] sm:$0xff]  ;;  %5240 = vst [vmem:[%s5891_s24 + $0x1d28] sm:$0xff] %v4216_v28  ;;  %v1151_v43 = vld [vmem:[%s5853_s23 + $0x1d68] sm:$0xff] }
 0x322   : > { %v4219_v40 = vadd.s32 %v3195_v29, %v1146_v25  ;;  %v3198_v41 = vmul.u32 %v5869_v2, %v2173_v38  ;;  %v2174_v42 = vld [vmem:[%s5861_s6 + $0x1d60] sm:$0xff]  ;;  %v2175_v44 = vld [vmem:[%s5861_s6 + $0x1d68] sm:$0xff]  ;;  %5241 = vst [vmem:[%s5891_s24 + $0x1d30] sm:$0xff] %v4217_v33  ;;  %v4220_v45 = vadd.s32 %v3196_v35, %v1147_v27  ;;  %v1152_v49 = vld [vmem:[%s5853_s23 + $0x1d70] sm:$0xff] }
 0x323   : > { %5242 = vst [vmem:[%s5891_s24 + $0x1d38] sm:$0xff] %v4218_v34  ;;  %v4221_v46 = vadd.s32 %v3197_v36, %v1148_v31  ;;  %v3199_v47 = vmul.u32 %v5869_v2, %v2174_v42  ;;  %v3200_v48 = vmul.u32 %v5869_v2, %v2175_v44  ;;  %v2176_v50 = vld [vmem:[%s5861_s6 + $0x1d70] sm:$0xff]  ;;  %v1153_v51 = vld [vmem:[%s5853_s23 + $0x1d78] sm:$0xff]  ;;  %v1154_v55 = vld [vmem:[%s5853_s23 + $0x1d80] sm:$0xff] }
 0x324   : > { %5243 = vst [vmem:[%s5891_s24 + $0x1d40] sm:$0xff] %v4219_v40  ;;  %v4222_v52 = vadd.s32 %v3198_v41, %v1149_v37  ;;  %v3201_v53 = vmul.u32 %v5869_v2, %v2176_v50  ;;  %v2177_v54 = vld [vmem:[%s5861_s6 + $0x1d78] sm:$0xff]  ;;  %v2178_v56 = vld [vmem:[%s5861_s6 + $0x1d80] sm:$0xff]  ;;  %5244 = vst [vmem:[%s5891_s24 + $0x1d48] sm:$0xff] %v4220_v45 }
 0x325   : > { %5245 = vst [vmem:[%s5891_s24 + $0x1d50] sm:$0xff] %v4221_v46  ;;  %v4223_v57 = vadd.s32 %v3199_v47, %v1150_v39  ;;  %v4224_v58 = vadd.s32 %v3200_v48, %v1151_v43  ;;  %v3202_v59 = vmul.u32 %v5869_v2, %v2177_v54  ;;  %v3203_v60 = vmul.u32 %v5869_v2, %v2178_v56  ;;  %v1155_v61 = vld [vmem:[%s5853_s23 + $0x1d88] sm:$0xff]  ;;  %v1156_v63 = vld [vmem:[%s5853_s23 + $0x1d90] sm:$0xff]  ;;  %v1157_v4 = vld [vmem:[%s5853_s23 + $0x1d98] sm:$0xff] }
 0x326   : > { %v2179_v62 = vld [vmem:[%s5861_s6 + $0x1d88] sm:$0xff]  ;;  %5246 = vst [vmem:[%s5891_s24 + $0x1d58] sm:$0xff] %v4222_v52  ;;  %v4225_v0 = vadd.s32 %v3201_v53, %v1152_v49  ;;  %v2180_v3 = vld [vmem:[%s5861_s6 + $0x1d90] sm:$0xff]  ;;  %v2181_v5 = vld [vmem:[%s5861_s6 + $0x1d98] sm:$0xff] }
 0x327   : > { %v3204_v1 = vmul.u32 %v5869_v2, %v2179_v62  ;;  %5247 = vst [vmem:[%s5891_s24 + $0x1d60] sm:$0xff] %v4223_v57  ;;  %5248 = vst [vmem:[%s5891_s24 + $0x1d68] sm:$0xff] %v4224_v58  ;;  %v4226_v6 = vadd.s32 %v3202_v59, %v1153_v51  ;;  %v4227_v7 = vadd.s32 %v3203_v60, %v1154_v55  ;;  %v1158_v10 = vld [vmem:[%s5853_s23 + $0x1da0] sm:$0xff]  ;;  %v1159_v12 = vld [vmem:[%s5853_s23 + $0x1da8] sm:$0xff] }
 0x328   : > { %v3205_v8 = vmul.u32 %v5869_v2, %v2180_v3  ;;  %v3206_v9 = vmul.u32 %v5869_v2, %v2181_v5  ;;  %v2182_v11 = vld [vmem:[%s5861_s6 + $0x1da0] sm:$0xff]  ;;  %5249 = vst [vmem:[%s5891_s24 + $0x1d70] sm:$0xff] %v4225_v0  ;;  %v2183_v15 = vld [vmem:[%s5861_s6 + $0x1da8] sm:$0xff]  ;;  %v1160_v16 = vld [vmem:[%s5853_s23 + $0x1db0] sm:$0xff] }
 0x329   : > { %v4228_v13 = vadd.s32 %v3204_v1, %v1155_v61  ;;  %v3207_v14 = vmul.u32 %v5869_v2, %v2182_v11  ;;  %v2184_v17 = vld [vmem:[%s5861_s6 + $0x1db0] sm:$0xff]  ;;  %5250 = vst [vmem:[%s5891_s24 + $0x1d78] sm:$0xff] %v4226_v6  ;;  %5251 = vst [vmem:[%s5891_s24 + $0x1d80] sm:$0xff] %v4227_v7  ;;  %v3208_v20 = vmul.u32 %v5869_v2, %v2183_v15  ;;  %v1161_v22 = vld [vmem:[%s5853_s23 + $0x1db8] sm:$0xff] }
 0x32a   : > { %v4229_v18 = vadd.s32 %v3205_v8, %v1156_v63  ;;  %v4230_v19 = vadd.s32 %v3206_v9, %v1157_v4  ;;  %v3209_v21 = vmul.u32 %v5869_v2, %v2184_v17  ;;  %v2185_v23 = vld [vmem:[%s5861_s6 + $0x1db8] sm:$0xff]  ;;  %v1162_v24 = vld [vmem:[%s5853_s23 + $0x1dc0] sm:$0xff]  ;;  %v1163_v28 = vld [vmem:[%s5853_s23 + $0x1dc8] sm:$0xff] }
 0x32b   : > { %5252 = vst [vmem:[%s5891_s24 + $0x1d88] sm:$0xff] %v4228_v13  ;;  %v4231_v25 = vadd.s32 %v3207_v14, %v1158_v10  ;;  %v3210_v26 = vmul.u32 %v5869_v2, %v2185_v23  ;;  %v2186_v27 = vld [vmem:[%s5861_s6 + $0x1dc0] sm:$0xff]  ;;  %v2187_v29 = vld [vmem:[%s5861_s6 + $0x1dc8] sm:$0xff]  ;;  %v4232_v30 = vadd.s32 %v3208_v20, %v1159_v12  ;;  %v1164_v34 = vld [vmem:[%s5853_s23 + $0x1dd0] sm:$0xff] }
 0x32c   : > { %5253 = vst [vmem:[%s5891_s24 + $0x1d90] sm:$0xff] %v4229_v18  ;;  %5254 = vst [vmem:[%s5891_s24 + $0x1d98] sm:$0xff] %v4230_v19  ;;  %v4233_v31 = vadd.s32 %v3209_v21, %v1160_v16  ;;  %v3211_v32 = vmul.u32 %v5869_v2, %v2186_v27  ;;  %v3212_v33 = vmul.u32 %v5869_v2, %v2187_v29  ;;  %v2188_v35 = vld [vmem:[%s5861_s6 + $0x1dd0] sm:$0xff]  ;;  %v1165_v36 = vld [vmem:[%s5853_s23 + $0x1dd8] sm:$0xff] }
 0x32d   : > { %5255 = vst [vmem:[%s5891_s24 + $0x1da0] sm:$0xff] %v4231_v25  ;;  %v4234_v37 = vadd.s32 %v3210_v26, %v1161_v22  ;;  %v3213_v38 = vmul.u32 %v5869_v2, %v2188_v35  ;;  %v2189_v39 = vld [vmem:[%s5861_s6 + $0x1dd8] sm:$0xff]  ;;  %v1166_v40 = vld [vmem:[%s5853_s23 + $0x1de0] sm:$0xff]  ;;  %5256 = vst [vmem:[%s5891_s24 + $0x1da8] sm:$0xff] %v4232_v30 }
 0x32e   : > { %v2190_v41 = vld [vmem:[%s5861_s6 + $0x1de0] sm:$0xff]  ;;  %5257 = vst [vmem:[%s5891_s24 + $0x1db0] sm:$0xff] %v4233_v31  ;;  %v4235_v42 = vadd.s32 %v3211_v32, %v1162_v24  ;;  %v4236_v43 = vadd.s32 %v3212_v33, %v1163_v28  ;;  %v3214_v44 = vmul.u32 %v5869_v2, %v2189_v39  ;;  %v1167_v46 = vld [vmem:[%s5853_s23 + $0x1de8] sm:$0xff]  ;;  %v1168_v48 = vld [vmem:[%s5853_s23 + $0x1df0] sm:$0xff] }
 0x32f   : > { %v3215_v45 = vmul.u32 %v5869_v2, %v2190_v41  ;;  %v2191_v47 = vld [vmem:[%s5861_s6 + $0x1de8] sm:$0xff]  ;;  %5258 = vst [vmem:[%s5891_s24 + $0x1db8] sm:$0xff] %v4234_v37  ;;  %v4237_v49 = vadd.s32 %v3213_v38, %v1164_v34  ;;  %v2192_v51 = vld [vmem:[%s5861_s6 + $0x1df0] sm:$0xff]  ;;  %v1169_v52 = vld [vmem:[%s5853_s23 + $0x1df8] sm:$0xff] }
 0x330   : > { %v3216_v50 = vmul.u32 %v5869_v2, %v2191_v47  ;;  %v2193_v53 = vld [vmem:[%s5861_s6 + $0x1df8] sm:$0xff]  ;;  %5259 = vst [vmem:[%s5891_s24 + $0x1dc0] sm:$0xff] %v4235_v42  ;;  %5260 = vst [vmem:[%s5891_s24 + $0x1dc8] sm:$0xff] %v4236_v43  ;;  %v4238_v54 = vadd.s32 %v3214_v44, %v1165_v36  ;;  %v3217_v56 = vmul.u32 %v5869_v2, %v2192_v51  ;;  %v1170_v58 = vld [vmem:[%s5853_s23 + $0x1e00] sm:$0xff] }
 0x331   : > { %v4239_v55 = vadd.s32 %v3215_v45, %v1166_v40  ;;  %v3218_v57 = vmul.u32 %v5869_v2, %v2193_v53  ;;  %v2194_v59 = vld [vmem:[%s5861_s6 + $0x1e00] sm:$0xff]  ;;  %v1171_v60 = vld [vmem:[%s5853_s23 + $0x1e08] sm:$0xff]  ;;  %5261 = vst [vmem:[%s5891_s24 + $0x1dd0] sm:$0xff] %v4237_v49  ;;  %v1172_v0 = vld [vmem:[%s5853_s23 + $0x1e10] sm:$0xff] }
 0x332   : > { %v4240_v61 = vadd.s32 %v3216_v50, %v1167_v46  ;;  %v3219_v62 = vmul.u32 %v5869_v2, %v2194_v59  ;;  %v2195_v63 = vld [vmem:[%s5861_s6 + $0x1e08] sm:$0xff]  ;;  %v2196_v1 = vld [vmem:[%s5861_s6 + $0x1e10] sm:$0xff]  ;;  %5262 = vst [vmem:[%s5891_s24 + $0x1dd8] sm:$0xff] %v4238_v54  ;;  %v4241_v3 = vadd.s32 %v3217_v56, %v1168_v48  ;;  %v1173_v7 = vld [vmem:[%s5853_s23 + $0x1e18] sm:$0xff] }
 0x333   : > { %5263 = vst [vmem:[%s5891_s24 + $0x1de0] sm:$0xff] %v4239_v55  ;;  %v4242_v4 = vadd.s32 %v3218_v57, %v1169_v52  ;;  %v3220_v5 = vmul.u32 %v5869_v2, %v2195_v63  ;;  %v3221_v6 = vmul.u32 %v5869_v2, %v2196_v1  ;;  %v2197_v8 = vld [vmem:[%s5861_s6 + $0x1e18] sm:$0xff]  ;;  %v1174_v9 = vld [vmem:[%s5853_s23 + $0x1e20] sm:$0xff]  ;;  %v1175_v13 = vld [vmem:[%s5853_s23 + $0x1e28] sm:$0xff] }
 0x334   : > { %5264 = vst [vmem:[%s5891_s24 + $0x1de8] sm:$0xff] %v4240_v61  ;;  %v4243_v10 = vadd.s32 %v3219_v62, %v1170_v58  ;;  %v3222_v11 = vmul.u32 %v5869_v2, %v2197_v8  ;;  %v2198_v12 = vld [vmem:[%s5861_s6 + $0x1e20] sm:$0xff]  ;;  %v2199_v14 = vld [vmem:[%s5861_s6 + $0x1e28] sm:$0xff]  ;;  %5265 = vst [vmem:[%s5891_s24 + $0x1df0] sm:$0xff] %v4241_v3 }
 0x335   : > { %5266 = vst [vmem:[%s5891_s24 + $0x1df8] sm:$0xff] %v4242_v4  ;;  %v4244_v15 = vadd.s32 %v3220_v5, %v1171_v60  ;;  %v4245_v16 = vadd.s32 %v3221_v6, %v1172_v0  ;;  %v3223_v17 = vmul.u32 %v5869_v2, %v2198_v12  ;;  %v3224_v18 = vmul.u32 %v5869_v2, %v2199_v14  ;;  %v1176_v19 = vld [vmem:[%s5853_s23 + $0x1e30] sm:$0xff]  ;;  %v1177_v21 = vld [vmem:[%s5853_s23 + $0x1e38] sm:$0xff]  ;;  %v1178_v25 = vld [vmem:[%s5853_s23 + $0x1e40] sm:$0xff] }
 0x336   : > { %v2200_v20 = vld [vmem:[%s5861_s6 + $0x1e30] sm:$0xff]  ;;  %5267 = vst [vmem:[%s5891_s24 + $0x1e00] sm:$0xff] %v4243_v10  ;;  %v4246_v22 = vadd.s32 %v3222_v11, %v1173_v7  ;;  %v2201_v24 = vld [vmem:[%s5861_s6 + $0x1e38] sm:$0xff]  ;;  %v2202_v26 = vld [vmem:[%s5861_s6 + $0x1e40] sm:$0xff] }
 0x337   : > { %v3225_v23 = vmul.u32 %v5869_v2, %v2200_v20  ;;  %5268 = vst [vmem:[%s5891_s24 + $0x1e08] sm:$0xff] %v4244_v15  ;;  %5269 = vst [vmem:[%s5891_s24 + $0x1e10] sm:$0xff] %v4245_v16  ;;  %v4247_v27 = vadd.s32 %v3223_v17, %v1174_v9  ;;  %v4248_v28 = vadd.s32 %v3224_v18, %v1175_v13  ;;  %v1179_v31 = vld [vmem:[%s5853_s23 + $0x1e48] sm:$0xff]  ;;  %v1180_v33 = vld [vmem:[%s5853_s23 + $0x1e50] sm:$0xff] }
 0x338   : > { %v3226_v29 = vmul.u32 %v5869_v2, %v2201_v24  ;;  %v3227_v30 = vmul.u32 %v5869_v2, %v2202_v26  ;;  %v2203_v32 = vld [vmem:[%s5861_s6 + $0x1e48] sm:$0xff]  ;;  %5270 = vst [vmem:[%s5891_s24 + $0x1e18] sm:$0xff] %v4246_v22  ;;  %v2204_v36 = vld [vmem:[%s5861_s6 + $0x1e50] sm:$0xff]  ;;  %v1181_v37 = vld [vmem:[%s5853_s23 + $0x1e58] sm:$0xff] }
 0x339   : > { %v4249_v34 = vadd.s32 %v3225_v23, %v1176_v19  ;;  %v3228_v35 = vmul.u32 %v5869_v2, %v2203_v32  ;;  %v2205_v38 = vld [vmem:[%s5861_s6 + $0x1e58] sm:$0xff]  ;;  %5271 = vst [vmem:[%s5891_s24 + $0x1e20] sm:$0xff] %v4247_v27  ;;  %5272 = vst [vmem:[%s5891_s24 + $0x1e28] sm:$0xff] %v4248_v28  ;;  %v3229_v41 = vmul.u32 %v5869_v2, %v2204_v36  ;;  %v1182_v43 = vld [vmem:[%s5853_s23 + $0x1e60] sm:$0xff] }
 0x33a   : > { %v4250_v39 = vadd.s32 %v3226_v29, %v1177_v21  ;;  %v4251_v40 = vadd.s32 %v3227_v30, %v1178_v25  ;;  %v3230_v42 = vmul.u32 %v5869_v2, %v2205_v38  ;;  %v2206_v44 = vld [vmem:[%s5861_s6 + $0x1e60] sm:$0xff]  ;;  %v1183_v45 = vld [vmem:[%s5853_s23 + $0x1e68] sm:$0xff]  ;;  %v1184_v49 = vld [vmem:[%s5853_s23 + $0x1e70] sm:$0xff] }
 0x33b   : > { %5273 = vst [vmem:[%s5891_s24 + $0x1e30] sm:$0xff] %v4249_v34  ;;  %v4252_v46 = vadd.s32 %v3228_v35, %v1179_v31  ;;  %v3231_v47 = vmul.u32 %v5869_v2, %v2206_v44  ;;  %v2207_v48 = vld [vmem:[%s5861_s6 + $0x1e68] sm:$0xff]  ;;  %v2208_v50 = vld [vmem:[%s5861_s6 + $0x1e70] sm:$0xff]  ;;  %v4253_v51 = vadd.s32 %v3229_v41, %v1180_v33  ;;  %v1185_v55 = vld [vmem:[%s5853_s23 + $0x1e78] sm:$0xff] }
 0x33c   : > { %5274 = vst [vmem:[%s5891_s24 + $0x1e38] sm:$0xff] %v4250_v39  ;;  %5275 = vst [vmem:[%s5891_s24 + $0x1e40] sm:$0xff] %v4251_v40  ;;  %v4254_v52 = vadd.s32 %v3230_v42, %v1181_v37  ;;  %v3232_v53 = vmul.u32 %v5869_v2, %v2207_v48  ;;  %v3233_v54 = vmul.u32 %v5869_v2, %v2208_v50  ;;  %v2209_v56 = vld [vmem:[%s5861_s6 + $0x1e78] sm:$0xff]  ;;  %v1186_v57 = vld [vmem:[%s5853_s23 + $0x1e80] sm:$0xff] }
 0x33d   : > { %5276 = vst [vmem:[%s5891_s24 + $0x1e48] sm:$0xff] %v4252_v46  ;;  %v4255_v58 = vadd.s32 %v3231_v47, %v1182_v43  ;;  %v3234_v59 = vmul.u32 %v5869_v2, %v2209_v56  ;;  %v2210_v60 = vld [vmem:[%s5861_s6 + $0x1e80] sm:$0xff]  ;;  %v1187_v61 = vld [vmem:[%s5853_s23 + $0x1e88] sm:$0xff]  ;;  %5277 = vst [vmem:[%s5891_s24 + $0x1e50] sm:$0xff] %v4253_v51 }
 0x33e   : > { %v2211_v62 = vld [vmem:[%s5861_s6 + $0x1e88] sm:$0xff]  ;;  %5278 = vst [vmem:[%s5891_s24 + $0x1e58] sm:$0xff] %v4254_v52  ;;  %v4256_v63 = vadd.s32 %v3232_v53, %v1183_v45  ;;  %v4257_v0 = vadd.s32 %v3233_v54, %v1184_v49  ;;  %v3235_v1 = vmul.u32 %v5869_v2, %v2210_v60  ;;  %v1188_v4 = vld [vmem:[%s5853_s23 + $0x1e90] sm:$0xff]  ;;  %v1189_v6 = vld [vmem:[%s5853_s23 + $0x1e98] sm:$0xff] }
 0x33f   : > { %v3236_v3 = vmul.u32 %v5869_v2, %v2211_v62  ;;  %v2212_v5 = vld [vmem:[%s5861_s6 + $0x1e90] sm:$0xff]  ;;  %5279 = vst [vmem:[%s5891_s24 + $0x1e60] sm:$0xff] %v4255_v58  ;;  %v4258_v7 = vadd.s32 %v3234_v59, %v1185_v55  ;;  %v2213_v9 = vld [vmem:[%s5861_s6 + $0x1e98] sm:$0xff]  ;;  %v1190_v10 = vld [vmem:[%s5853_s23 + $0x1ea0] sm:$0xff] }
 0x340   : > { %v3237_v8 = vmul.u32 %v5869_v2, %v2212_v5  ;;  %v2214_v11 = vld [vmem:[%s5861_s6 + $0x1ea0] sm:$0xff]  ;;  %5280 = vst [vmem:[%s5891_s24 + $0x1e68] sm:$0xff] %v4256_v63  ;;  %5281 = vst [vmem:[%s5891_s24 + $0x1e70] sm:$0xff] %v4257_v0  ;;  %v4259_v12 = vadd.s32 %v3235_v1, %v1186_v57  ;;  %v3238_v14 = vmul.u32 %v5869_v2, %v2213_v9  ;;  %v1191_v16 = vld [vmem:[%s5853_s23 + $0x1ea8] sm:$0xff] }
 0x341   : > { %v4260_v13 = vadd.s32 %v3236_v3, %v1187_v61  ;;  %v3239_v15 = vmul.u32 %v5869_v2, %v2214_v11  ;;  %v2215_v17 = vld [vmem:[%s5861_s6 + $0x1ea8] sm:$0xff]  ;;  %v1192_v18 = vld [vmem:[%s5853_s23 + $0x1eb0] sm:$0xff]  ;;  %5282 = vst [vmem:[%s5891_s24 + $0x1e78] sm:$0xff] %v4258_v7  ;;  %v1193_v22 = vld [vmem:[%s5853_s23 + $0x1eb8] sm:$0xff] }
 0x342   : > { %v4261_v19 = vadd.s32 %v3237_v8, %v1188_v4  ;;  %v3240_v20 = vmul.u32 %v5869_v2, %v2215_v17  ;;  %v2216_v21 = vld [vmem:[%s5861_s6 + $0x1eb0] sm:$0xff]  ;;  %v2217_v23 = vld [vmem:[%s5861_s6 + $0x1eb8] sm:$0xff]  ;;  %5283 = vst [vmem:[%s5891_s24 + $0x1e80] sm:$0xff] %v4259_v12  ;;  %v4262_v24 = vadd.s32 %v3238_v14, %v1189_v6  ;;  %v1194_v28 = vld [vmem:[%s5853_s23 + $0x1ec0] sm:$0xff] }
 0x343   : > { %5284 = vst [vmem:[%s5891_s24 + $0x1e88] sm:$0xff] %v4260_v13  ;;  %v4263_v25 = vadd.s32 %v3239_v15, %v1190_v10  ;;  %v3241_v26 = vmul.u32 %v5869_v2, %v2216_v21  ;;  %v3242_v27 = vmul.u32 %v5869_v2, %v2217_v23  ;;  %v2218_v29 = vld [vmem:[%s5861_s6 + $0x1ec0] sm:$0xff]  ;;  %v1195_v30 = vld [vmem:[%s5853_s23 + $0x1ec8] sm:$0xff]  ;;  %v1196_v34 = vld [vmem:[%s5853_s23 + $0x1ed0] sm:$0xff] }
 0x344   : > { %5285 = vst [vmem:[%s5891_s24 + $0x1e90] sm:$0xff] %v4261_v19  ;;  %v4264_v31 = vadd.s32 %v3240_v20, %v1191_v16  ;;  %v3243_v32 = vmul.u32 %v5869_v2, %v2218_v29  ;;  %v2219_v33 = vld [vmem:[%s5861_s6 + $0x1ec8] sm:$0xff]  ;;  %v2220_v35 = vld [vmem:[%s5861_s6 + $0x1ed0] sm:$0xff]  ;;  %5286 = vst [vmem:[%s5891_s24 + $0x1e98] sm:$0xff] %v4262_v24 }
 0x345   : > { %5287 = vst [vmem:[%s5891_s24 + $0x1ea0] sm:$0xff] %v4263_v25  ;;  %v4265_v36 = vadd.s32 %v3241_v26, %v1192_v18  ;;  %v4266_v37 = vadd.s32 %v3242_v27, %v1193_v22  ;;  %v3244_v38 = vmul.u32 %v5869_v2, %v2219_v33  ;;  %v3245_v39 = vmul.u32 %v5869_v2, %v2220_v35  ;;  %v1197_v40 = vld [vmem:[%s5853_s23 + $0x1ed8] sm:$0xff]  ;;  %v1198_v42 = vld [vmem:[%s5853_s23 + $0x1ee0] sm:$0xff]  ;;  %v1199_v46 = vld [vmem:[%s5853_s23 + $0x1ee8] sm:$0xff] }
 0x346   : > { %v2221_v41 = vld [vmem:[%s5861_s6 + $0x1ed8] sm:$0xff]  ;;  %5288 = vst [vmem:[%s5891_s24 + $0x1ea8] sm:$0xff] %v4264_v31  ;;  %v4267_v43 = vadd.s32 %v3243_v32, %v1194_v28  ;;  %v2222_v45 = vld [vmem:[%s5861_s6 + $0x1ee0] sm:$0xff]  ;;  %v2223_v47 = vld [vmem:[%s5861_s6 + $0x1ee8] sm:$0xff] }
 0x347   : > { %v3246_v44 = vmul.u32 %v5869_v2, %v2221_v41  ;;  %5289 = vst [vmem:[%s5891_s24 + $0x1eb0] sm:$0xff] %v4265_v36  ;;  %5290 = vst [vmem:[%s5891_s24 + $0x1eb8] sm:$0xff] %v4266_v37  ;;  %v4268_v48 = vadd.s32 %v3244_v38, %v1195_v30  ;;  %v4269_v49 = vadd.s32 %v3245_v39, %v1196_v34  ;;  %v1200_v52 = vld [vmem:[%s5853_s23 + $0x1ef0] sm:$0xff]  ;;  %v1201_v54 = vld [vmem:[%s5853_s23 + $0x1ef8] sm:$0xff] }
 0x348   : > { %v3247_v50 = vmul.u32 %v5869_v2, %v2222_v45  ;;  %v3248_v51 = vmul.u32 %v5869_v2, %v2223_v47  ;;  %v2224_v53 = vld [vmem:[%s5861_s6 + $0x1ef0] sm:$0xff]  ;;  %5291 = vst [vmem:[%s5891_s24 + $0x1ec0] sm:$0xff] %v4267_v43  ;;  %v2225_v57 = vld [vmem:[%s5861_s6 + $0x1ef8] sm:$0xff]  ;;  %v1202_v58 = vld [vmem:[%s5853_s23 + $0x1f00] sm:$0xff] }
 0x349   : > { %v4270_v55 = vadd.s32 %v3246_v44, %v1197_v40  ;;  %v3249_v56 = vmul.u32 %v5869_v2, %v2224_v53  ;;  %v2226_v59 = vld [vmem:[%s5861_s6 + $0x1f00] sm:$0xff]  ;;  %5292 = vst [vmem:[%s5891_s24 + $0x1ec8] sm:$0xff] %v4268_v48  ;;  %5293 = vst [vmem:[%s5891_s24 + $0x1ed0] sm:$0xff] %v4269_v49  ;;  %v3250_v62 = vmul.u32 %v5869_v2, %v2225_v57  ;;  %v1203_v0 = vld [vmem:[%s5853_s23 + $0x1f08] sm:$0xff] }
 0x34a   : > { %v4271_v60 = vadd.s32 %v3247_v50, %v1198_v42  ;;  %v4272_v61 = vadd.s32 %v3248_v51, %v1199_v46  ;;  %v3251_v63 = vmul.u32 %v5869_v2, %v2226_v59  ;;  %v2227_v1 = vld [vmem:[%s5861_s6 + $0x1f08] sm:$0xff]  ;;  %v1204_v3 = vld [vmem:[%s5853_s23 + $0x1f10] sm:$0xff]  ;;  %v1205_v7 = vld [vmem:[%s5853_s23 + $0x1f18] sm:$0xff] }
 0x34b   : > { %5294 = vst [vmem:[%s5891_s24 + $0x1ed8] sm:$0xff] %v4270_v55  ;;  %v4273_v4 = vadd.s32 %v3249_v56, %v1200_v52  ;;  %v3252_v5 = vmul.u32 %v5869_v2, %v2227_v1  ;;  %v2228_v6 = vld [vmem:[%s5861_s6 + $0x1f10] sm:$0xff]  ;;  %v2229_v8 = vld [vmem:[%s5861_s6 + $0x1f18] sm:$0xff]  ;;  %v4274_v9 = vadd.s32 %v3250_v62, %v1201_v54  ;;  %v1206_v13 = vld [vmem:[%s5853_s23 + $0x1f20] sm:$0xff] }
 0x34c   : > { %5295 = vst [vmem:[%s5891_s24 + $0x1ee0] sm:$0xff] %v4271_v60  ;;  %5296 = vst [vmem:[%s5891_s24 + $0x1ee8] sm:$0xff] %v4272_v61  ;;  %v4275_v10 = vadd.s32 %v3251_v63, %v1202_v58  ;;  %v3253_v11 = vmul.u32 %v5869_v2, %v2228_v6  ;;  %v3254_v12 = vmul.u32 %v5869_v2, %v2229_v8  ;;  %v2230_v14 = vld [vmem:[%s5861_s6 + $0x1f20] sm:$0xff]  ;;  %v1207_v15 = vld [vmem:[%s5853_s23 + $0x1f28] sm:$0xff] }
 0x34d   : > { %5297 = vst [vmem:[%s5891_s24 + $0x1ef0] sm:$0xff] %v4273_v4  ;;  %v4276_v16 = vadd.s32 %v3252_v5, %v1203_v0  ;;  %v3255_v17 = vmul.u32 %v5869_v2, %v2230_v14  ;;  %v2231_v18 = vld [vmem:[%s5861_s6 + $0x1f28] sm:$0xff]  ;;  %v1208_v19 = vld [vmem:[%s5853_s23 + $0x1f30] sm:$0xff]  ;;  %5298 = vst [vmem:[%s5891_s24 + $0x1ef8] sm:$0xff] %v4274_v9 }
 0x34e   : > { %v2232_v20 = vld [vmem:[%s5861_s6 + $0x1f30] sm:$0xff]  ;;  %5299 = vst [vmem:[%s5891_s24 + $0x1f00] sm:$0xff] %v4275_v10  ;;  %v4277_v21 = vadd.s32 %v3253_v11, %v1204_v3  ;;  %v4278_v22 = vadd.s32 %v3254_v12, %v1205_v7  ;;  %v3256_v23 = vmul.u32 %v5869_v2, %v2231_v18  ;;  %v1209_v25 = vld [vmem:[%s5853_s23 + $0x1f38] sm:$0xff]  ;;  %v1210_v27 = vld [vmem:[%s5853_s23 + $0x1f40] sm:$0xff] }
 0x34f   : > { %v3257_v24 = vmul.u32 %v5869_v2, %v2232_v20  ;;  %v2233_v26 = vld [vmem:[%s5861_s6 + $0x1f38] sm:$0xff]  ;;  %5300 = vst [vmem:[%s5891_s24 + $0x1f08] sm:$0xff] %v4276_v16  ;;  %v4279_v28 = vadd.s32 %v3255_v17, %v1206_v13  ;;  %v2234_v30 = vld [vmem:[%s5861_s6 + $0x1f40] sm:$0xff]  ;;  %v1211_v31 = vld [vmem:[%s5853_s23 + $0x1f48] sm:$0xff] }
 0x350   : > { %v3258_v29 = vmul.u32 %v5869_v2, %v2233_v26  ;;  %v2235_v32 = vld [vmem:[%s5861_s6 + $0x1f48] sm:$0xff]  ;;  %5301 = vst [vmem:[%s5891_s24 + $0x1f10] sm:$0xff] %v4277_v21  ;;  %5302 = vst [vmem:[%s5891_s24 + $0x1f18] sm:$0xff] %v4278_v22  ;;  %v4280_v33 = vadd.s32 %v3256_v23, %v1207_v15  ;;  %v3259_v35 = vmul.u32 %v5869_v2, %v2234_v30  ;;  %v1212_v37 = vld [vmem:[%s5853_s23 + $0x1f50] sm:$0xff] }
 0x351   : > { %v4281_v34 = vadd.s32 %v3257_v24, %v1208_v19  ;;  %v3260_v36 = vmul.u32 %v5869_v2, %v2235_v32  ;;  %v2236_v38 = vld [vmem:[%s5861_s6 + $0x1f50] sm:$0xff]  ;;  %v1213_v39 = vld [vmem:[%s5853_s23 + $0x1f58] sm:$0xff]  ;;  %5303 = vst [vmem:[%s5891_s24 + $0x1f20] sm:$0xff] %v4279_v28  ;;  %v1214_v43 = vld [vmem:[%s5853_s23 + $0x1f60] sm:$0xff] }
 0x352   : > { %v4282_v40 = vadd.s32 %v3258_v29, %v1209_v25  ;;  %v3261_v41 = vmul.u32 %v5869_v2, %v2236_v38  ;;  %v2237_v42 = vld [vmem:[%s5861_s6 + $0x1f58] sm:$0xff]  ;;  %v2238_v44 = vld [vmem:[%s5861_s6 + $0x1f60] sm:$0xff]  ;;  %5304 = vst [vmem:[%s5891_s24 + $0x1f28] sm:$0xff] %v4280_v33  ;;  %v4283_v45 = vadd.s32 %v3259_v35, %v1210_v27  ;;  %v1215_v49 = vld [vmem:[%s5853_s23 + $0x1f68] sm:$0xff] }
 0x353   : > { %5305 = vst [vmem:[%s5891_s24 + $0x1f30] sm:$0xff] %v4281_v34  ;;  %v4284_v46 = vadd.s32 %v3260_v36, %v1211_v31  ;;  %v3262_v47 = vmul.u32 %v5869_v2, %v2237_v42  ;;  %v3263_v48 = vmul.u32 %v5869_v2, %v2238_v44  ;;  %v2239_v50 = vld [vmem:[%s5861_s6 + $0x1f68] sm:$0xff]  ;;  %v1216_v51 = vld [vmem:[%s5853_s23 + $0x1f70] sm:$0xff]  ;;  %v1217_v55 = vld [vmem:[%s5853_s23 + $0x1f78] sm:$0xff] }
 0x354   : > { %5306 = vst [vmem:[%s5891_s24 + $0x1f38] sm:$0xff] %v4282_v40  ;;  %v4285_v52 = vadd.s32 %v3261_v41, %v1212_v37  ;;  %v3264_v53 = vmul.u32 %v5869_v2, %v2239_v50  ;;  %v2240_v54 = vld [vmem:[%s5861_s6 + $0x1f70] sm:$0xff]  ;;  %v2241_v56 = vld [vmem:[%s5861_s6 + $0x1f78] sm:$0xff]  ;;  %5307 = vst [vmem:[%s5891_s24 + $0x1f40] sm:$0xff] %v4283_v45 }
 0x355   : > { %5308 = vst [vmem:[%s5891_s24 + $0x1f48] sm:$0xff] %v4284_v46  ;;  %v4286_v57 = vadd.s32 %v3262_v47, %v1213_v39  ;;  %v4287_v58 = vadd.s32 %v3263_v48, %v1214_v43  ;;  %v3265_v59 = vmul.u32 %v5869_v2, %v2240_v54  ;;  %v3266_v60 = vmul.u32 %v5869_v2, %v2241_v56  ;;  %v1218_v61 = vld [vmem:[%s5853_s23 + $0x1f80] sm:$0xff]  ;;  %v1219_v63 = vld [vmem:[%s5853_s23 + $0x1f88] sm:$0xff]  ;;  %v1220_v4 = vld [vmem:[%s5853_s23 + $0x1f90] sm:$0xff] }
 0x356   : > { %v2242_v62 = vld [vmem:[%s5861_s6 + $0x1f80] sm:$0xff]  ;;  %5309 = vst [vmem:[%s5891_s24 + $0x1f50] sm:$0xff] %v4285_v52  ;;  %v4288_v0 = vadd.s32 %v3264_v53, %v1215_v49  ;;  %v2243_v3 = vld [vmem:[%s5861_s6 + $0x1f88] sm:$0xff]  ;;  %v2244_v5 = vld [vmem:[%s5861_s6 + $0x1f90] sm:$0xff] }
 0x357   : > { %v3267_v1 = vmul.u32 %v5869_v2, %v2242_v62  ;;  %5310 = vst [vmem:[%s5891_s24 + $0x1f58] sm:$0xff] %v4286_v57  ;;  %5311 = vst [vmem:[%s5891_s24 + $0x1f60] sm:$0xff] %v4287_v58  ;;  %v4289_v6 = vadd.s32 %v3265_v59, %v1216_v51  ;;  %v4290_v7 = vadd.s32 %v3266_v60, %v1217_v55  ;;  %v1221_v10 = vld [vmem:[%s5853_s23 + $0x1f98] sm:$0xff]  ;;  %v1222_v12 = vld [vmem:[%s5853_s23 + $0x1fa0] sm:$0xff] }
 0x358   : > { %v3268_v8 = vmul.u32 %v5869_v2, %v2243_v3  ;;  %v3269_v9 = vmul.u32 %v5869_v2, %v2244_v5  ;;  %v2245_v11 = vld [vmem:[%s5861_s6 + $0x1f98] sm:$0xff]  ;;  %5312 = vst [vmem:[%s5891_s24 + $0x1f68] sm:$0xff] %v4288_v0  ;;  %v2246_v15 = vld [vmem:[%s5861_s6 + $0x1fa0] sm:$0xff]  ;;  %v1223_v16 = vld [vmem:[%s5853_s23 + $0x1fa8] sm:$0xff] }
 0x359   : > { %v4291_v13 = vadd.s32 %v3267_v1, %v1218_v61  ;;  %v3270_v14 = vmul.u32 %v5869_v2, %v2245_v11  ;;  %v2247_v17 = vld [vmem:[%s5861_s6 + $0x1fa8] sm:$0xff]  ;;  %5313 = vst [vmem:[%s5891_s24 + $0x1f70] sm:$0xff] %v4289_v6  ;;  %5314 = vst [vmem:[%s5891_s24 + $0x1f78] sm:$0xff] %v4290_v7  ;;  %v3271_v20 = vmul.u32 %v5869_v2, %v2246_v15  ;;  %v1224_v22 = vld [vmem:[%s5853_s23 + $0x1fb0] sm:$0xff] }
 0x35a   : > { %v4292_v18 = vadd.s32 %v3268_v8, %v1219_v63  ;;  %v4293_v19 = vadd.s32 %v3269_v9, %v1220_v4  ;;  %v3272_v21 = vmul.u32 %v5869_v2, %v2247_v17  ;;  %v2248_v23 = vld [vmem:[%s5861_s6 + $0x1fb0] sm:$0xff]  ;;  %v1225_v24 = vld [vmem:[%s5853_s23 + $0x1fb8] sm:$0xff]  ;;  %v1226_v28 = vld [vmem:[%s5853_s23 + $0x1fc0] sm:$0xff] }
 0x35b   : > { %5315 = vst [vmem:[%s5891_s24 + $0x1f80] sm:$0xff] %v4291_v13  ;;  %v4294_v25 = vadd.s32 %v3270_v14, %v1221_v10  ;;  %v3273_v26 = vmul.u32 %v5869_v2, %v2248_v23  ;;  %v2249_v27 = vld [vmem:[%s5861_s6 + $0x1fb8] sm:$0xff]  ;;  %v2250_v29 = vld [vmem:[%s5861_s6 + $0x1fc0] sm:$0xff]  ;;  %v4295_v30 = vadd.s32 %v3271_v20, %v1222_v12  ;;  %v1227_v34 = vld [vmem:[%s5853_s23 + $0x1fc8] sm:$0xff] }
 0x35c   : > { %5316 = vst [vmem:[%s5891_s24 + $0x1f88] sm:$0xff] %v4292_v18  ;;  %5317 = vst [vmem:[%s5891_s24 + $0x1f90] sm:$0xff] %v4293_v19  ;;  %v4296_v31 = vadd.s32 %v3272_v21, %v1223_v16  ;;  %v3274_v32 = vmul.u32 %v5869_v2, %v2249_v27  ;;  %v3275_v33 = vmul.u32 %v5869_v2, %v2250_v29  ;;  %v2251_v35 = vld [vmem:[%s5861_s6 + $0x1fc8] sm:$0xff]  ;;  %v1228_v36 = vld [vmem:[%s5853_s23 + $0x1fd0] sm:$0xff] }
 0x35d   : > { %5318 = vst [vmem:[%s5891_s24 + $0x1f98] sm:$0xff] %v4294_v25  ;;  %v4297_v37 = vadd.s32 %v3273_v26, %v1224_v22  ;;  %v3276_v38 = vmul.u32 %v5869_v2, %v2251_v35  ;;  %v2252_v39 = vld [vmem:[%s5861_s6 + $0x1fd0] sm:$0xff]  ;;  %v1229_v40 = vld [vmem:[%s5853_s23 + $0x1fd8] sm:$0xff]  ;;  %5319 = vst [vmem:[%s5891_s24 + $0x1fa0] sm:$0xff] %v4295_v30 }
 0x35e   : > { %v2253_v41 = vld [vmem:[%s5861_s6 + $0x1fd8] sm:$0xff]  ;;  %5320 = vst [vmem:[%s5891_s24 + $0x1fa8] sm:$0xff] %v4296_v31  ;;  %v4298_v42 = vadd.s32 %v3274_v32, %v1225_v24  ;;  %v4299_v43 = vadd.s32 %v3275_v33, %v1226_v28  ;;  %v3277_v44 = vmul.u32 %v5869_v2, %v2252_v39  ;;  %v1230_v46 = vld [vmem:[%s5853_s23 + $0x1fe0] sm:$0xff]  ;;  %v1231_v48 = vld [vmem:[%s5853_s23 + $0x1fe8] sm:$0xff] }
 0x35f   : > { %v3278_v45 = vmul.u32 %v5869_v2, %v2253_v41  ;;  %v2254_v47 = vld [vmem:[%s5861_s6 + $0x1fe0] sm:$0xff]  ;;  %5321 = vst [vmem:[%s5891_s24 + $0x1fb0] sm:$0xff] %v4297_v37  ;;  %v4300_v49 = vadd.s32 %v3276_v38, %v1227_v34  ;;  %v2255_v51 = vld [vmem:[%s5861_s6 + $0x1fe8] sm:$0xff]  ;;  %v1232_v52 = vld [vmem:[%s5853_s23 + $0x1ff0] sm:$0xff] }
 0x360   : > { %v3279_v50 = vmul.u32 %v5869_v2, %v2254_v47  ;;  %v2256_v53 = vld [vmem:[%s5861_s6 + $0x1ff0] sm:$0xff]  ;;  %5322 = vst [vmem:[%s5891_s24 + $0x1fb8] sm:$0xff] %v4298_v42  ;;  %5323 = vst [vmem:[%s5891_s24 + $0x1fc0] sm:$0xff] %v4299_v43  ;;  %v4301_v54 = vadd.s32 %v3277_v44, %v1228_v36  ;;  %v3280_v56 = vmul.u32 %v5869_v2, %v2255_v51  ;;  %v1233_v58 = vld [vmem:[%s5853_s23 + $0x1ff8] sm:$0xff] }
 0x361   : > { %v4302_v55 = vadd.s32 %v3278_v45, %v1229_v40  ;;  %v3281_v57 = vmul.u32 %v5869_v2, %v2256_v53  ;;  %v2257_v59 = vld [vmem:[%s5861_s6 + $0x1ff8] sm:$0xff]  ;;  %5324 = vst [vmem:[%s5891_s24 + $0x1fc8] sm:$0xff] %v4300_v49 }
 0x362   : > { %v4303_v60 = vadd.s32 %v3279_v50, %v1230_v46  ;;  %v3282_v61 = vmul.u32 %v5869_v2, %v2257_v59  ;;  %5325 = vst [vmem:[%s5891_s24 + $0x1fd0] sm:$0xff] %v4301_v54  ;;  %v4304_v62 = vadd.s32 %v3280_v56, %v1231_v48 }
 0x363   : > { %5326 = vst [vmem:[%s5891_s24 + $0x1fd8] sm:$0xff] %v4302_v55  ;;  %v4305_v63 = vadd.s32 %v3281_v57, %v1232_v52 }
 0x364   : > { %5327 = vst [vmem:[%s5891_s24 + $0x1fe0] sm:$0xff] %v4303_v60  ;;  %v4306_v0 = vadd.s32 %v3282_v61, %v1233_v58  ;;  %5328 = vst [vmem:[%s5891_s24 + $0x1fe8] sm:$0xff] %v4304_v62 }
 0x365   : > { %5329 = vst [vmem:[%s5891_s24 + $0x1ff0] sm:$0xff] %v4305_v63 }
 0x366   : > { %5330 = vst [vmem:[%s5891_s24 + $0x1ff8] sm:$0xff] %v4306_v0 }
 0x367   : > { %5597 = shalt.err (!%p5594_p11)
}
 0x368   : > { %s5598_s13 = scalar_lea.hbm %s9969_s5, 131072  ;;  %s5602_s8 = scalar_lea.hbm %s10022_s3, 262144 }
 0x369   : > { %p5599_p3 = scmp.ne.s32.totalorder %s9969_s5, %s5598_s13  ;;  %p5603_p2 = scmp.lt.u32.totalorder %s9969_s5, %s10022_s3 }
 0x36a   : > { %p5604_p4 = scmp.lt.u32.totalorder %s5602_s8, %s5598_s13  ;;  %p5606_p13 = scmp.lt.u32.totalorder %s5598_s13, %s9969_s5 }
 0x36b   : > { %p5600_p8 = pnand %p5599_p3, %p10032_p1 }
 0x36c   : > { %p5605_p6 = por %p5604_p4, %p5603_p2 }
 0x36d   : > { %p5601_p0 = pneg %p5600_p8 }
 0x36e   : > { %p5607_p12 = por %p5606_p13, %p5605_p6 }
 0x370   : > { %p5608_p10 = pnand %p5607_p12, %p5601_p0 }
 0x372   : > { %5611 = shalt.err (!%p5608_p10)
}
 0x373   : > { %s5661_s6 = smov 2048   ;;  %s5662_s10 = smov 128  }
 0x374   : > { %5473 = dma.vmem_to_hbm [thread:$0]  (%p10032_p1), %s9971_s18, 131072, %s9969_s5, %s5332_s28, %s5661_s6, %s5661_s6, %s5662_s10  }
 0x375 PF: > { %s5361_s24 = sand.u32 1, %s5642_s14   ;;  %p10033_p5 = scmp.ne.s32.totalorder %s10028_s26, 0 }
 0x376   : > { %p10034_p7 = scmp.ge.s32.totalorder %s5654_s17, 2  ;;  %s5362_s11 = scalar_lea.sflag [#allocation6], %s5361_s24 }
 0x378   : > { %p5483_p9 = pnand %p10034_p7, %p10033_p5 }
 0x37a   : > { %5637 = dma.done.wait (!%p5483_p9), %s5362_s11, 131072  }
 0x37b   : > { %5639 = vsyncadd (!%p5483_p9), %s5362_s11, 4294836224  ;;  %p20_p11 = scmp.ge.s32.totalorder %s5711_s19, 4   ;;  %s10035_s14 = smov %s5646_s15 }
 0x37c   : > { %s10036_s15 = smov %s5650_s16  ;;  %s10037_s16 = smov %s5723_s22 }
 0x37d   : > { %s10038_s17 = smov %s5711_s19  ;;  %22 = sbr.rel (!%p20_p11) target bundleno = 9 (0x9), region = 86 }
 0x384   :  { %5367 = vsyncpa [#allocation5], 1 }
 0x385   :  { %5369 = vsyncpa [#allocation5 + $0x1], 1 }
 0x386   :  { %5370 = vsyncpa [#allocation8], 1 }
 0x387   :  { %5372 = vsyncpa [#allocation8 + $0x1], 1 }
 0x388   :  { %5373 = vsyncpa [#allocation6], 1 }
 0x389   :  { %5375 = vsyncpa [#allocation6 + $0x1], 1 }

</bundles_post_ra>
